<compile_context>
chip_gen: v7x
topology: tpu7x:2x2x1
jax: 0.10.0
libtpu: 0.0.40
codegen_flags: <defaults>
</compile_context>

<pallas_src>
import numpy as np
import jax
import jax.numpy as jnp
from jax.experimental import pallas as pl
from jax.experimental.pallas import tpu as pltpu


def _round_up(x, m):
    return (x + m - 1) // m * m


# ----------------------------- Pallas kernels ------------------------------

def _conv1x1_kernel(x_ref, w_ref, b_ref, o_ref):
    # x: (TM, Cin) f32, w: (Cin, Cout) bf16 (resident), b: (1, Cout) f32
    x = x_ref[...].astype(jnp.bfloat16)
    o_ref[...] = (jnp.dot(x, w_ref[...], preferred_element_type=jnp.float32)
                  + b_ref[...]).astype(o_ref.dtype)


def _conv3x3_row_kernel(r0_ref, r1_ref, r2_ref, w_ref, b_ref, o_ref):
    # r{0,1,2}: (W+2, Cin) bf16 padded input rows at dy = 0,1,2 for this output row
    # w: (3, 3, Cin, Cout) bf16 (resident in VMEM), b: (1, Cout) f32
    # o: (W, Cout) f32
    W = o_ref.shape[0]
    acc = jnp.zeros(o_ref.shape, jnp.float32)
    for dy, r_ref in enumerate((r0_ref, r1_ref, r2_ref)):
        row = r_ref[...]                                   # (W+2, Cin) bf16
        for dx in range(3):
            acc = acc + jnp.dot(row[dx:dx + W, :], w_ref[dy, dx, :, :],
                                preferred_element_type=jnp.float32)
    o_ref[...] = (acc + b_ref[...]).astype(o_ref.dtype)


def _upsample_add_row_kernel(i0_ref, i1_ref, xlo_ref, xhi_ref, wh_ref,
                             uw_ref, y_ref, o_ref):
    # Scalar-prefetch refs i0/i1 are only used by the index_maps (row gather).
    # xlo/xhi: (Wi, C)       -- the two H source rows for this output row
    # wh:      (2, Ho) f32   -- H lerp weights, in SMEM
    # uw:      (Wo, Wi) bf16 -- dense 1-D W interpolation matrix (VMEM resident)
    # y:       (Wo, C)       -- residual row (raw c2 for the p2 path)
    # o:       (Wo, C)
    ho = pl.program_id(1)
    w0 = wh_ref[0, ho]
    w1 = wh_ref[1, ho]
    xrow = (w0 * xlo_ref[...].astype(jnp.float32)
            + w1 * xhi_ref[...].astype(jnp.float32)).astype(jnp.bfloat16)
    up = jnp.dot(uw_ref[...], xrow, preferred_element_type=jnp.float32)
    o_ref[...] = (up + y_ref[...].astype(jnp.float32)).astype(o_ref.dtype)


def _upsample_add_lat_kernel(i0_ref, i1_ref, xlo_ref, xhi_ref, c_ref,
                             wlat_ref, blat_ref, wh_ref, uw_ref, o_ref):
    # Fused: bilinear-upsample x (row ho) + conv1x1(c row) residual.
    # c:    (Wo, Cin_lat)     -- lateral source row (e.g. c4/c3), f32
    # wlat: (Cin_lat, Cout) bf16 (resident), blat: (1, Cout) f32
    ho = pl.program_id(1)
    w0 = wh_ref[0, ho]
    w1 = wh_ref[1, ho]
    xrow = (w0 * xlo_ref[...].astype(jnp.float32)
            + w1 * xhi_ref[...].astype(jnp.float32)).astype(jnp.bfloat16)
    up = jnp.dot(uw_ref[...], xrow, preferred_element_type=jnp.float32)
    lat = jnp.dot(c_ref[...].astype(jnp.bfloat16), wlat_ref[...],
                  preferred_element_type=jnp.float32) + blat_ref[...]
    o_ref[...] = (up + lat).astype(o_ref.dtype)


# ------------------------------- wrappers -----------------------------------

def conv1x1(x_nhwc, w, b, tm=1024):
    """1x1 conv: w (Cin, Cout), b (1, Cout). Tiled over M = N*H*W."""
    N, H, W, Cin = x_nhwc.shape
    Cout = w.shape[1]
    M = N * H * W
    xf = x_nhwc.reshape(M, Cin)          # free reshape; cast to bf16 in-kernel
    # TM=1024 keeps f32 input double-buffer + f32 output + weights ~10 MiB,
    # inside default scoped VMEM on v5e/v6e/v7x; clamp for tiny levels.
    TM = min(tm, _round_up(M, 8))
    out = pl.pallas_call(
        _conv1x1_kernel,
        out_shape=jax.ShapeDtypeStruct((M, Cout), jnp.float32),
        grid_spec=pltpu.PrefetchScalarGridSpec(
            num_scalar_prefetch=0,
            grid=(pl.cdiv(M, TM),),
            in_specs=[
                pl.BlockSpec((TM, Cin), lambda i: (i, 0)),
                pl.BlockSpec((Cin, Cout), lambda i: (0, 0)),   # resident
                pl.BlockSpec((1, Cout), lambda i: (0, 0)),     # resident
            ],
            out_specs=pl.BlockSpec((TM, Cout), lambda i: (i, 0)),
        ),
        compiler_params=pltpu.CompilerParams(
            dimension_semantics=("parallel",)),
    )(xf, w.astype(jnp.bfloat16), b)
    return out.reshape(N, H, W, Cout)


def conv3x3(x_nhwc, w, b):
    """3x3 conv, stride 1, pad 1.  w: (3, 3, Cin, Cout) (== torch (Cout,Cin,ky,kx)
    transposed to (ky,kx,Cin,Cout)), b: (1, Cout)."""
    N, H, W, Cin = x_nhwc.shape
    Cout = w.shape[-1]
    Wp = W + 2
    # Single 1x padded bf16 copy in HBM; no im2col materialization.
    xp = jnp.pad(x_nhwc.astype(jnp.bfloat16), ((0, 0), (1, 1), (1, 1), (0, 0)))
    out = pl.pallas_call(
        _conv3x3_row_kernel,
        out_shape=jax.ShapeDtypeStruct((N, H, W, Cout), jnp.float32),
        grid_spec=pltpu.PrefetchScalarGridSpec(
            num_scalar_prefetch=0,
            grid=(N, H),
            in_specs=[
                # Same padded array passed 3x with dy-shifted single-row blocks.
                pl.BlockSpec((None, None, Wp, Cin), lambda n, h: (n, h, 0, 0)),
                pl.BlockSpec((None, None, Wp, Cin), lambda n, h: (n, h + 1, 0, 0)),
                pl.BlockSpec((None, None, Wp, Cin), lambda n, h: (n, h + 2, 0, 0)),
                # Full weight block, constant index -> DMA'd once, stays resident.
                pl.BlockSpec((3, 3, Cin, Cout), lambda n, h: (0, 0, 0, 0)),
                pl.BlockSpec((1, Cout), lambda n, h: (0, 0)),
            ],
            out_specs=pl.BlockSpec((None, None, W, Cout), lambda n, h: (n, h, 0, 0)),
        ),
        compiler_params=pltpu.CompilerParams(
            dimension_semantics=("parallel", "parallel")),
    )(xp, xp, xp, w.astype(jnp.bfloat16), b)
    return out


def _bilinear_1d(out_size, in_size):
    """PyTorch F.interpolate(mode='bilinear', align_corners=False) 1-D indices/weights.

    Note: F.upsample (deprecated) forwards to F.interpolate, which defaults to
    align_corners=False (with a warning) in any PyTorch >= 0.4."""
    scale = in_size / out_size
    o = np.arange(out_size, dtype=np.float64)
    src = np.maximum(scale * (o + 0.5) - 0.5, 0.0)
    i0 = np.minimum(np.floor(src).astype(np.int64), in_size - 1)
    i1 = np.minimum(i0 + 1, in_size - 1)
    l1 = src - i0
    l0 = 1.0 - l1
    return (i0.astype(np.int32), i1.astype(np.int32),
            l0.astype(np.float32), l1.astype(np.float32))


def _bilinear_matrix(out_size, in_size):
    """Dense 1-D interpolation matrix (out_size, in_size); tiny (few KiB)."""
    i0, i1, l0, l1 = _bilinear_1d(out_size, in_size)
    U = np.zeros((out_size, in_size), np.float32)
    r = np.arange(out_size)
    np.add.at(U, (r, i0), l0)
    np.add.at(U, (r, i1), l1)
    return U


def _bilinear_tables(Ho, Hi, Wo, Wi):
    i0h, i1h, l0h, l1h = _bilinear_1d(Ho, Hi)
    i0 = jnp.asarray(i0h)
    i1 = jnp.asarray(i1h)
    wh = jnp.asarray(np.stack([l0h, l1h], axis=0))              # (2, Ho) f32
    Uw = jnp.asarray(_bilinear_matrix(Wo, Wi), jnp.bfloat16)    # (Wo, Wi)
    return i0, i1, wh, Uw


def upsample_add(x_nhwc, y_nhwc, out_dtype=jnp.bfloat16):
    """Bilinear-upsample x to y's spatial size and add y (PyTorch _upsample_add).

    Output is bf16 because its only consumer (conv3x3) casts to bf16 anyway."""
    N, Hi, Wi, C = x_nhwc.shape
    _, Ho, Wo, _ = y_nhwc.shape
    i0, i1, wh, Uw = _bilinear_tables(Ho, Hi, Wo, Wi)

    out = pl.pallas_call(
        _upsample_add_row_kernel,
        out_shape=jax.ShapeDtypeStruct((N, Ho, Wo, C), out_dtype),
        grid_spec=pltpu.PrefetchScalarGridSpec(
            num_scalar_prefetch=2,            # i0, i1 -> SMEM, used by index_maps
            grid=(N, Ho),
            in_specs=[
                pl.BlockSpec((None, None, Wi, C),
                             lambda n, ho, i0, i1: (n, i0[ho], 0, 0)),
                pl.BlockSpec((None, None, Wi, C),
                             lambda n, ho, i0, i1: (n, i1[ho], 0, 0)),
                pl.BlockSpec(memory_space=pltpu.MemorySpace.SMEM),   # wh (2, Ho)
                pl.BlockSpec((Wo, Wi), lambda n, ho, i0, i1: (0, 0)),  # resident
                pl.BlockSpec((None, None, Wo, C),
                             lambda n, ho, i0, i1: (n, ho, 0, 0)),
            ],
            out_specs=pl.BlockSpec((None, None, Wo, C),
                                   lambda n, ho, i0, i1: (n, ho, 0, 0)),
        ),
        compiler_params=pltpu.CompilerParams(
            dimension_semantics=("parallel", "parallel")),
    )(i0, i1, x_nhwc, x_nhwc, wh, Uw, y_nhwc)
    return out


def upsample_add_lateral(x_nhwc, c_nhwc, w_lat, b_lat, out_dtype=jnp.bfloat16):
    """Fused: bilinear-upsample x to c's spatial size and add conv1x1(c).

    Saves one full HBM round trip of the (N,Ho,Wo,256) lateral feature."""
    N, Hi, Wi, C = x_nhwc.shape
    _, Ho, Wo, Cin = c_nhwc.shape
    Cout = w_lat.shape[1]
    i0, i1, wh, Uw = _bilinear_tables(Ho, Hi, Wo, Wi)

    out = pl.pallas_call(
        _upsample_add_lat_kernel,
        out_shape=jax.ShapeDtypeStruct((N, Ho, Wo, Cout), out_dtype),
        grid_spec=pltpu.PrefetchScalarGridSpec(
            num_scalar_prefetch=2,            # i0, i1 -> SMEM, used by index_maps
            grid=(N, Ho),
            in_specs=[
                pl.BlockSpec((None, None, Wi, C),
                             lambda n, ho, i0, i1: (n, i0[ho], 0, 0)),
                pl.BlockSpec((None, None, Wi, C),
                             lambda n, ho, i0, i1: (n, i1[ho], 0, 0)),
                pl.BlockSpec((None, None, Wo, Cin),
                             lambda n, ho, i0, i1: (n, ho, 0, 0)),
                pl.BlockSpec((Cin, Cout), lambda n, ho, i0, i1: (0, 0)),  # resident
                pl.BlockSpec((1, Cout), lambda n, ho, i0, i1: (0, 0)),    # resident
                pl.BlockSpec(memory_space=pltpu.MemorySpace.SMEM),        # wh (2, Ho)
                pl.BlockSpec((Wo, Wi), lambda n, ho, i0, i1: (0, 0)),     # resident
            ],
            out_specs=pl.BlockSpec((None, None, Wo, Cout),
                                   lambda n, ho, i0, i1: (n, ho, 0, 0)),
        ),
        compiler_params=pltpu.CompilerParams(
            dimension_semantics=("parallel", "parallel")),
    )(i0, i1, x_nhwc, x_nhwc, c_nhwc,
      w_lat.astype(jnp.bfloat16), b_lat, wh, Uw)
    return out


# ------------------------------- FPN module ----------------------------------

def init_fpn_params(key):
    ks = jax.random.split(key, 6)

    def conv_w(k, shape, fan_in):
        # Stored bf16 once (MXU-native); accumulation stays f32 in-kernel.
        return (jax.random.normal(k, shape, jnp.float32)
                / np.sqrt(fan_in)).astype(jnp.bfloat16)

    return {
        # 1x1 lateral convs, stored as (Cin, Cout)
        "lat1_w": conv_w(ks[0], (1024, 256), 1024),
        "lat1_b": jnp.zeros((1, 256), jnp.float32),
        "lat2_w": conv_w(ks[1], (512, 256), 512),
        "lat2_b": jnp.zeros((1, 256), jnp.float32),
        "lat3_w": conv_w(ks[2], (512, 256), 512),
        "lat3_b": jnp.zeros((1, 256), jnp.float32),
        # 3x3 top convs, stored as (ky, kx, Cin, Cout)
        "top1_w": conv_w(ks[3], (3, 3, 256, 256), 9 * 256),
        "top1_b": jnp.zeros((1, 256), jnp.float32),
        "top2_w": conv_w(ks[4], (3, 3, 256, 256), 9 * 256),
        "top2_b": jnp.zeros((1, 256), jnp.float32),
        "top3_w": conv_w(ks[5], (3, 3, 256, 256), 9 * 256),
        "top3_b": jnp.zeros((1, 256), jnp.float32),
    }


def fpn_forward(params, c2, c3, c4, c5):
    """Inputs/outputs are NCHW float32 (PyTorch convention)."""
    to_nhwc = lambda t: jnp.transpose(t, (0, 2, 3, 1))
    to_nchw = lambda t: jnp.transpose(t, (0, 3, 1, 2))
    c2n, c3n, c4n, c5n = map(to_nhwc, (c2, c3, c4, c5))

    p5 = conv1x1(c5n, params["lat1_w"], params["lat1_b"])
    # p4 = toplayer1( upsample(p5) + latlayer2(c4) )   -- lateral conv fused
    p4 = conv3x3(upsample_add_lateral(p5, c4n, params["lat2_w"], params["lat2_b"]),
                 params["top1_w"], params["top1_b"])
    # p3 = toplayer2( upsample(p4) + latlayer3(c3) )
    p3 = conv3x3(upsample_add_lateral(p4, c3n, params["lat3_w"], params["lat3_b"]),
                 params["top2_w"], params["top2_b"])
    # p2 path adds raw c2 (no lateral conv) -- matches the reference forward().
    p2 = conv3x3(upsample_add(p3, c2n), params["top3_w"], params["top3_b"])
    # note: self.relu is defined in the PyTorch module but never used in forward
    return tuple(map(to_nchw, (p2, p3, p4, p5)))


# --------------------------------- main --------------------------------------

if __name__ == "__main__":
    key = jax.random.PRNGKey(0)
    k_params, k2, k3, k4, k5 = jax.random.split(key, 5)

    params = init_fpn_params(k_params)

    # Small, module-consistent shapes (channels fixed by the module; tiny spatial).
    c2 = jax.random.normal(k2, (2, 256, 16, 16), jnp.float32)
    c3 = jax.random.normal(k3, (2, 512, 8, 8), jnp.float32)
    c4 = jax.random.normal(k4, (2, 512, 4, 4), jnp.float32)
    c5 = jax.random.normal(k5, (2, 1024, 2, 2), jnp.float32)

    fwd = jax.jit(fpn_forward)
    p2, p3, p4, p5 = fwd(params, c2, c3, c4, c5)
    jax.block_until_ready((p2, p3, p4, p5))

    assert p2.shape == (2, 256, 16, 16)
    assert p3.shape == (2, 256, 8, 8)
    assert p4.shape == (2, 256, 4, 4)
    assert p5.shape == (2, 256, 2, 2)
    for t in (p2, p3, p4, p5):
        assert bool(jnp.all(jnp.isfinite(t)))

    print("KERNEL_OK")
</pallas_src>

<mosaic_0001>
module attributes {stable_mosaic.version = 11 : i64} {
  func.func @_conv1x1_kernel(%arg0: i32, %arg1: memref<8x1024xf32, #tpu.memory_space<vmem>>, %arg2: memref<1024x256xbf16, #tpu.memory_space<vmem>>, %arg3: memref<1x256xf32, #tpu.memory_space<vmem>>, %arg4: memref<8x256xf32, #tpu.memory_space<vmem>>) attributes {dimension_semantics = [#tpu.dimension_semantics<parallel>], iteration_bounds = array<i64: 1>, scalar_prefetch = 0 : i64, scratch_operands = 0 : i64, tpu.core_type = #tpu.core_type<tc>, window_params = [{transform_indices = @transform_0, window_bounds = array<i64: 8, 1024>}, {pipeline_mode = #tpu.pipeline_mode<synchronous>, transform_indices = @transform_1, window_bounds = array<i64: 1024, 256>}, {pipeline_mode = #tpu.pipeline_mode<synchronous>, transform_indices = @transform_2, window_bounds = array<i64: 1, 256>}, {transform_indices = @transform_3, window_bounds = array<i64: 8, 256>}]} {
    %c0 = arith.constant 0 : index
    %c0_0 = arith.constant 0 : index
    %0 = vector.load %arg1[%c0, %c0_0] : memref<8x1024xf32, #tpu.memory_space<vmem>>, vector<8x1024xf32>
    %1 = arith.truncf %0 : vector<8x1024xf32> to vector<8x1024xbf16>
    %c0_1 = arith.constant 0 : index
    %c0_2 = arith.constant 0 : index
    %2 = vector.load %arg2[%c0_1, %c0_2] : memref<1024x256xbf16, #tpu.memory_space<vmem>>, vector<1024x256xbf16>
    %cst = arith.constant dense<0.000000e+00> : vector<8x256xf32>
    %3 = tpu.matmul %1, %2, %cst {dimension_numbers = #tpu.dot_dimension_numbers<[1], [0], [0], [1], [0, 0, 1, 1], [], []>} : vector<8x1024xbf16>, vector<1024x256xbf16>, vector<8x256xf32> -> vector<8x256xf32>
    %c0_3 = arith.constant 0 : index
    %c0_4 = arith.constant 0 : index
    %4 = vector.load %arg3[%c0_3, %c0_4] : memref<1x256xf32, #tpu.memory_space<vmem>>, vector<1x256xf32>
    %5 = vector.broadcast %4 : vector<1x256xf32> to vector<8x256xf32>
    %6 = arith.addf %3, %5 : vector<8x256xf32>
    %c0_5 = arith.constant 0 : index
    %c0_6 = arith.constant 0 : index
    %7 = vector.load %arg4[%c0_5, %c0_6] : memref<8x256xf32, #tpu.memory_space<vmem>>, vector<8x256xf32>
    tpu.vector_store %arg4[%c0_5, %c0_6], %6 {strides = array<i32>} : memref<8x256xf32, #tpu.memory_space<vmem>>, vector<8x256xf32>,
    return
  }
  func.func @transform_0(%arg0: i32) -> (i32, i32) {
    %c0_i32 = arith.constant 0 : i32
    %c0_i32_0 = arith.constant 0 : i32
    return %arg0, %c0_i32 : i32, i32
  }
  func.func @transform_1(%arg0: i32) -> (i32, i32) {
    %c0_i32 = arith.constant 0 : i32
    %c0_i32_0 = arith.constant 0 : i32
    %c0_i32_1 = arith.constant 0 : i32
    return %c0_i32, %c0_i32_0 : i32, i32
  }
  func.func @transform_2(%arg0: i32) -> (i32, i32) {
    %c0_i32 = arith.constant 0 : i32
    %c0_i32_0 = arith.constant 0 : i32
    %c0_i32_1 = arith.constant 0 : i32
    return %c0_i32, %c0_i32_0 : i32, i32
  }
  func.func @transform_3(%arg0: i32) -> (i32, i32) {
    %c0_i32 = arith.constant 0 : i32
    %c0_i32_0 = arith.constant 0 : i32
    return %arg0, %c0_i32 : i32, i32
  }
}

module attributes {stable_mosaic.version = 11 : i64} {
  func.func @_upsample_add_lat_kernel(%arg0: i32, %arg1: i32, %arg2: memref<4xi32, #tpu.memory_space<smem>>, %arg3: memref<4xi32, #tpu.memory_space<smem>>, %arg4: memref<1x1x2x256xf32, #tpu.memory_space<vmem>>, %arg5: memref<1x1x2x256xf32, #tpu.memory_space<vmem>>, %arg6: memref<1x1x4x512xf32, #tpu.memory_space<vmem>>, %arg7: memref<512x256xbf16, #tpu.memory_space<vmem>>, %arg8: memref<1x256xf32, #tpu.memory_space<vmem>>, %arg9: memref<2x4xf32, #tpu.memory_space<smem>>, %arg10: memref<4x2xbf16, #tpu.memory_space<vmem>>, %arg11: memref<1x1x4x256xbf16, #tpu.memory_space<vmem>>) attributes {dimension_semantics = [#tpu.dimension_semantics<parallel>, #tpu.dimension_semantics<parallel>], iteration_bounds = array<i64: 2, 4>, scalar_prefetch = 2 : i64, scratch_operands = 0 : i64, tpu.core_type = #tpu.core_type<tc>, window_params = [{transform_indices = @transform_0, window_bounds = array<i64: 1, 1, 2, 256>}, {transform_indices = @transform_1, window_bounds = array<i64: 1, 1, 2, 256>}, {transform_indices = @transform_2, window_bounds = array<i64: 1, 1, 4, 512>}, {pipeline_mode = #tpu.pipeline_mode<synchronous>, transform_indices = @transform_3, window_bounds = array<i64: 512, 256>}, {pipeline_mode = #tpu.pipeline_mode<synchronous>, transform_indices = @transform_4, window_bounds = array<i64: 1, 256>}, {transform_indices = @transform_5, window_bounds = array<i64: 2, 4>}, {pipeline_mode = #tpu.pipeline_mode<synchronous>, transform_indices = @transform_6, window_bounds = array<i64: 4, 2>}, {transform_indices = @transform_7, window_bounds = array<i64: 1, 1, 4, 256>}]} {
    %c0 = arith.constant 0 : index
    %0 = arith.index_cast %arg1 : i32 to index
    %1 = memref.load %arg9[%c0, %0] : memref<2x4xf32, #tpu.memory_space<smem>>
    %c1 = arith.constant 1 : index
    %2 = arith.index_cast %arg1 : i32 to index
    %3 = memref.load %arg9[%c1, %2] : memref<2x4xf32, #tpu.memory_space<smem>>
    %c0_0 = arith.constant 0 : index
    %c0_1 = arith.constant 0 : index
    %c0_2 = arith.constant 0 : index
    %c0_3 = arith.constant 0 : index
    %4 = vector.load %arg4[%c0_0, %c0_1, %c0_2, %c0_3] : memref<1x1x2x256xf32, #tpu.memory_space<vmem>>, vector<1x1x2x256xf32>
    %5 = vector.shape_cast %4 : vector<1x1x2x256xf32> to vector<2x256xf32>
    %6 = vector.broadcast %1 : f32 to vector<2x256xf32>
    %7 = arith.mulf %6, %5 : vector<2x256xf32>
    %c0_4 = arith.constant 0 : index
    %c0_5 = arith.constant 0 : index
    %c0_6 = arith.constant 0 : index
    %c0_7 = arith.constant 0 : index
    %8 = vector.load %arg5[%c0_4, %c0_5, %c0_6, %c0_7] : memref<1x1x2x256xf32, #tpu.memory_space<vmem>>, vector<1x1x2x256xf32>
    %9 = vector.shape_cast %8 : vector<1x1x2x256xf32> to vector<2x256xf32>
    %10 = vector.broadcast %3 : f32 to vector<2x256xf32>
    %11 = arith.mulf %10, %9 : vector<2x256xf32>
    %12 = arith.addf %7, %11 : vector<2x256xf32>
    %13 = arith.truncf %12 : vector<2x256xf32> to vector<2x256xbf16>
    %c0_8 = arith.constant 0 : index
    %c0_9 = arith.constant 0 : index
    %14 = vector.load %arg10[%c0_8, %c0_9] : memref<4x2xbf16, #tpu.memory_space<vmem>>, vector<4x2xbf16>
    %cst = arith.constant dense<0.000000e+00> : vector<4x256xf32>
    %15 = tpu.matmul %14, %13, %cst {dimension_numbers = #tpu.dot_dimension_numbers<[1], [0], [0], [1], [0, 0, 1, 1], [], []>} : vector<4x2xbf16>, vector<2x256xbf16>, vector<4x256xf32> -> vector<4x256xf32>
    %c0_10 = arith.constant 0 : index
    %c0_11 = arith.constant 0 : index
    %c0_12 = arith.constant 0 : index
    %c0_13 = arith.constant 0 : index
    %16 = vector.load %arg6[%c0_10, %c0_11, %c0_12, %c0_13] : memref<1x1x4x512xf32, #tpu.memory_space<vmem>>, vector<1x1x4x512xf32>
    %17 = vector.shape_cast %16 : vector<1x1x4x512xf32> to vector<4x512xf32>
    %18 = arith.truncf %17 : vector<4x512xf32> to vector<4x512xbf16>
    %c0_14 = arith.constant 0 : index
    %c0_15 = arith.constant 0 : index
    %19 = vector.load %arg7[%c0_14, %c0_15] : memref<512x256xbf16, #tpu.memory_space<vmem>>, vector<512x256xbf16>
    %cst_16 = arith.constant dense<0.000000e+00> : vector<4x256xf32>
    %20 = tpu.matmul %18, %19, %cst_16 {dimension_numbers = #tpu.dot_dimension_numbers<[1], [0], [0], [1], [0, 0, 1, 1], [], []>} : vector<4x512xbf16>, vector<512x256xbf16>, vector<4x256xf32> -> vector<4x256xf32>
    %c0_17 = arith.constant 0 : index
    %c0_18 = arith.constant 0 : index
    %21 = vector.load %arg8[%c0_17, %c0_18] : memref<1x256xf32, #tpu.memory_space<vmem>>, vector<1x256xf32>
    %22 = vector.broadcast %21 : vector<1x256xf32> to vector<4x256xf32>
    %23 = arith.addf %20, %22 : vector<4x256xf32>
    %24 = arith.addf %15, %23 : vector<4x256xf32>
    %25 = arith.truncf %24 : vector<4x256xf32> to vector<4x256xbf16>
    %c0_19 = arith.constant 0 : index
    %c0_20 = arith.constant 0 : index
    %c0_21 = arith.constant 0 : index
    %c0_22 = arith.constant 0 : index
    %26 = vector.load %arg11[%c0_19, %c0_20, %c0_21, %c0_22] : memref<1x1x4x256xbf16, #tpu.memory_space<vmem>>, vector<1x1x4x256xbf16>
    %27 = vector.shape_cast %26 : vector<1x1x4x256xbf16> to vector<4x256xbf16>
    %28 = vector.shape_cast %25 : vector<4x256xbf16> to vector<1x1x4x256xbf16>
    tpu.vector_store %arg11[%c0_19, %c0_20, %c0_21, %c0_22], %28 {strides = array<i32>} : memref<1x1x4x256xbf16, #tpu.memory_space<vmem>>, vector<1x1x4x256xbf16>,
    return
  }
  func.func @transform_0(%arg0: i32, %arg1: i32, %arg2: memref<4xi32, #tpu.memory_space<smem>>, %arg3: memref<4xi32, #tpu.memory_space<smem>>) -> (i32, i32, i32, i32) {
    %0 = arith.index_cast %arg1 : i32 to index
    %1 = memref.load %arg2[%0] : memref<4xi32, #tpu.memory_space<smem>>
    %c0_i32 = arith.constant 0 : i32
    %c0_i32_0 = arith.constant 0 : i32
    %c0_i32_1 = arith.constant 0 : i32
    return %arg0, %1, %c0_i32, %c0_i32_0 : i32, i32, i32, i32
  }
  func.func @transform_1(%arg0: i32, %arg1: i32, %arg2: memref<4xi32, #tpu.memory_space<smem>>, %arg3: memref<4xi32, #tpu.memory_space<smem>>) -> (i32, i32, i32, i32) {
    %0 = arith.index_cast %arg1 : i32 to index
    %1 = memref.load %arg3[%0] : memref<4xi32, #tpu.memory_space<smem>>
    %c0_i32 = arith.constant 0 : i32
    %c0_i32_0 = arith.constant 0 : i32
    %c0_i32_1 = arith.constant 0 : i32
    return %arg0, %1, %c0_i32, %c0_i32_0 : i32, i32, i32, i32
  }
  func.func @transform_2(%arg0: i32, %arg1: i32, %arg2: memref<4xi32, #tpu.memory_space<smem>>, %arg3: memref<4xi32, #tpu.memory_space<smem>>) -> (i32, i32, i32, i32) {
    %c0_i32 = arith.constant 0 : i32
    %c0_i32_0 = arith.constant 0 : i32
    %c0_i32_1 = arith.constant 0 : i32
    return %arg0, %arg1, %c0_i32, %c0_i32_0 : i32, i32, i32, i32
  }
  func.func @transform_3(%arg0: i32, %arg1: i32, %arg2: memref<4xi32, #tpu.memory_space<smem>>, %arg3: memref<4xi32, #tpu.memory_space<smem>>) -> (i32, i32) {
    %c0_i32 = arith.constant 0 : i32
    %c0_i32_0 = arith.constant 0 : i32
    %c0_i32_1 = arith.constant 0 : i32
    return %c0_i32, %c0_i32_0 : i32, i32
  }
  func.func @transform_4(%arg0: i32, %arg1: i32, %arg2: memref<4xi32, #tpu.memory_space<smem>>, %arg3: memref<4xi32, #tpu.memory_space<smem>>) -> (i32, i32) {
    %c0_i32 = arith.constant 0 : i32
    %c0_i32_0 = arith.constant 0 : i32
    %c0_i32_1 = arith.constant 0 : i32
    return %c0_i32, %c0_i32_0 : i32, i32
  }
  func.func @transform_5(%arg0: i32, %arg1: i32, %arg2: memref<4xi32, #tpu.memory_space<smem>>, %arg3: memref<4xi32, #tpu.memory_space<smem>>) -> (i32, i32) {
    %c0_i32 = arith.constant 0 : i32
    %c0_i32_0 = arith.constant 0 : i32
    %c0_i32_1 = arith.constant 0 : i32
    return %c0_i32, %c0_i32_0 : i32, i32
  }
  func.func @transform_6(%arg0: i32, %arg1: i32, %arg2: memref<4xi32, #tpu.memory_space<smem>>, %arg3: memref<4xi32, #tpu.memory_space<smem>>) -> (i32, i32) {
    %c0_i32 = arith.constant 0 : i32
    %c0_i32_0 = arith.constant 0 : i32
    %c0_i32_1 = arith.constant 0 : i32
    return %c0_i32, %c0_i32_0 : i32, i32
  }
  func.func @transform_7(%arg0: i32, %arg1: i32, %arg2: memref<4xi32, #tpu.memory_space<smem>>, %arg3: memref<4xi32, #tpu.memory_space<smem>>) -> (i32, i32, i32, i32) {
    %c0_i32 = arith.constant 0 : i32
    %c0_i32_0 = arith.constant 0 : i32
    %c0_i32_1 = arith.constant 0 : i32
    return %arg0, %arg1, %c0_i32, %c0_i32_0 : i32, i32, i32, i32
  }
}

module attributes {stable_mosaic.version = 11 : i64} {
  func.func @_conv3x3_row_kernel(%arg0: i32, %arg1: i32, %arg2: memref<1x1x6x256xbf16, #tpu.memory_space<vmem>>, %arg3: memref<1x1x6x256xbf16, #tpu.memory_space<vmem>>, %arg4: memref<1x1x6x256xbf16, #tpu.memory_space<vmem>>, %arg5: memref<3x3x256x256xbf16, #tpu.memory_space<vmem>>, %arg6: memref<1x256xf32, #tpu.memory_space<vmem>>, %arg7: memref<1x1x4x256xf32, #tpu.memory_space<vmem>>) attributes {dimension_semantics = [#tpu.dimension_semantics<parallel>, #tpu.dimension_semantics<parallel>], iteration_bounds = array<i64: 2, 4>, scalar_prefetch = 0 : i64, scratch_operands = 0 : i64, tpu.core_type = #tpu.core_type<tc>, window_params = [{transform_indices = @transform_0, window_bounds = array<i64: 1, 1, 6, 256>}, {transform_indices = @transform_1, window_bounds = array<i64: 1, 1, 6, 256>}, {transform_indices = @transform_2, window_bounds = array<i64: 1, 1, 6, 256>}, {pipeline_mode = #tpu.pipeline_mode<synchronous>, transform_indices = @transform_3, window_bounds = array<i64: 3, 3, 256, 256>}, {pipeline_mode = #tpu.pipeline_mode<synchronous>, transform_indices = @transform_4, window_bounds = array<i64: 1, 256>}, {transform_indices = @transform_5, window_bounds = array<i64: 1, 1, 4, 256>}]} {
    %cst = arith.constant 0.000000e+00 : f32
    %0 = vector.broadcast %cst : f32 to vector<4x256xf32>
    %c0 = arith.constant 0 : index
    %c0_0 = arith.constant 0 : index
    %c0_1 = arith.constant 0 : index
    %c0_2 = arith.constant 0 : index
    %1 = vector.load %arg2[%c0, %c0_0, %c0_1, %c0_2] : memref<1x1x6x256xbf16, #tpu.memory_space<vmem>>, vector<1x1x6x256xbf16>
    %2 = vector.shape_cast %1 : vector<1x1x6x256xbf16> to vector<6x256xbf16>
    %3 = vector.extract_strided_slice %2 {offsets = [0, 0], sizes = [4, 256], strides = [1, 1]} : vector<6x256xbf16> to vector<4x256xbf16>
    %c0_3 = arith.constant 0 : index
    %c0_4 = arith.constant 0 : index
    %c0_5 = arith.constant 0 : index
    %c0_6 = arith.constant 0 : index
    %4 = vector.load %arg5[%c0_3, %c0_4, %c0_5, %c0_6] : memref<3x3x256x256xbf16, #tpu.memory_space<vmem>>, vector<1x1x256x256xbf16>
    %5 = vector.shape_cast %4 : vector<1x1x256x256xbf16> to vector<256x256xbf16>
    %cst_7 = arith.constant dense<0.000000e+00> : vector<4x256xf32>
    %6 = tpu.matmul %3, %5, %cst_7 {dimension_numbers = #tpu.dot_dimension_numbers<[1], [0], [0], [1], [0, 0, 1, 1], [], []>} : vector<4x256xbf16>, vector<256x256xbf16>, vector<4x256xf32> -> vector<4x256xf32>
    %7 = arith.addf %0, %6 : vector<4x256xf32>
    %8 = vector.extract_strided_slice %2 {offsets = [1, 0], sizes = [4, 256], strides = [1, 1]} : vector<6x256xbf16> to vector<4x256xbf16>
    %c0_8 = arith.constant 0 : index
    %c1 = arith.constant 1 : index
    %c0_9 = arith.constant 0 : index
    %c0_10 = arith.constant 0 : index
    %9 = vector.load %arg5[%c0_8, %c1, %c0_9, %c0_10] : memref<3x3x256x256xbf16, #tpu.memory_space<vmem>>, vector<1x1x256x256xbf16>
    %10 = vector.shape_cast %9 : vector<1x1x256x256xbf16> to vector<256x256xbf16>
    %cst_11 = arith.constant dense<0.000000e+00> : vector<4x256xf32>
    %11 = tpu.matmul %8, %10, %cst_11 {dimension_numbers = #tpu.dot_dimension_numbers<[1], [0], [0], [1], [0, 0, 1, 1], [], []>} : vector<4x256xbf16>, vector<256x256xbf16>, vector<4x256xf32> -> vector<4x256xf32>
    %12 = arith.addf %7, %11 : vector<4x256xf32>
    %13 = vector.extract_strided_slice %2 {offsets = [2, 0], sizes = [4, 256], strides = [1, 1]} : vector<6x256xbf16> to vector<4x256xbf16>
    %c0_12 = arith.constant 0 : index
    %c2 = arith.constant 2 : index
    %c0_13 = arith.constant 0 : index
    %c0_14 = arith.constant 0 : index
    %14 = vector.load %arg5[%c0_12, %c2, %c0_13, %c0_14] : memref<3x3x256x256xbf16, #tpu.memory_space<vmem>>, vector<1x1x256x256xbf16>
    %15 = vector.shape_cast %14 : vector<1x1x256x256xbf16> to vector<256x256xbf16>
    %cst_15 = arith.constant dense<0.000000e+00> : vector<4x256xf32>
    %16 = tpu.matmul %13, %15, %cst_15 {dimension_numbers = #tpu.dot_dimension_numbers<[1], [0], [0], [1], [0, 0, 1, 1], [], []>} : vector<4x256xbf16>, vector<256x256xbf16>, vector<4x256xf32> -> vector<4x256xf32>
    %17 = arith.addf %12, %16 : vector<4x256xf32>
    %c0_16 = arith.constant 0 : index
    %c0_17 = arith.constant 0 : index
    %c0_18 = arith.constant 0 : index
    %c0_19 = arith.constant 0 : index
    %18 = vector.load %arg3[%c0_16, %c0_17, %c0_18, %c0_19] : memref<1x1x6x256xbf16, #tpu.memory_space<vmem>>, vector<1x1x6x256xbf16>
    %19 = vector.shape_cast %18 : vector<1x1x6x256xbf16> to vector<6x256xbf16>
    %20 = vector.extract_strided_slice %19 {offsets = [0, 0], sizes = [4, 256], strides = [1, 1]} : vector<6x256xbf16> to vector<4x256xbf16>
    %c1_20 = arith.constant 1 : index
    %c0_21 = arith.constant 0 : index
    %c0_22 = arith.constant 0 : index
    %c0_23 = arith.constant 0 : index
    %21 = vector.load %arg5[%c1_20, %c0_21, %c0_22, %c0_23] : memref<3x3x256x256xbf16, #tpu.memory_space<vmem>>, vector<1x1x256x256xbf16>
    %22 = vector.shape_cast %21 : vector<1x1x256x256xbf16> to vector<256x256xbf16>
    %cst_24 = arith.constant dense<0.000000e+00> : vector<4x256xf32>
    %23 = tpu.matmul %20, %22, %cst_24 {dimension_numbers = #tpu.dot_dimension_numbers<[1], [0], [0], [1], [0, 0, 1, 1], [], []>} : vector<4x256xbf16>, vector<256x256xbf16>, vector<4x256xf32> -> vector<4x256xf32>
    %24 = arith.addf %17, %23 : vector<4x256xf32>
    %25 = vector.extract_strided_slice %19 {offsets = [1, 0], sizes = [4, 256], strides = [1, 1]} : vector<6x256xbf16> to vector<4x256xbf16>
    %c1_25 = arith.constant 1 : index
    %c1_26 = arith.constant 1 : index
    %c0_27 = arith.constant 0 : index
    %c0_28 = arith.constant 0 : index
    %26 = vector.load %arg5[%c1_25, %c1_26, %c0_27, %c0_28] : memref<3x3x256x256xbf16, #tpu.memory_space<vmem>>, vector<1x1x256x256xbf16>
    %27 = vector.shape_cast %26 : vector<1x1x256x256xbf16> to vector<256x256xbf16>
    %cst_29 = arith.constant dense<0.000000e+00> : vector<4x256xf32>
    %28 = tpu.matmul %25, %27, %cst_29 {dimension_numbers = #tpu.dot_dimension_numbers<[1], [0], [0], [1], [0, 0, 1, 1], [], []>} : vector<4x256xbf16>, vector<256x256xbf16>, vector<4x256xf32> -> vector<4x256xf32>
    %29 = arith.addf %24, %28 : vector<4x256xf32>
    %30 = vector.extract_strided_slice %19 {offsets = [2, 0], sizes = [4, 256], strides = [1, 1]} : vector<6x256xbf16> to vector<4x256xbf16>
    %c1_30 = arith.constant 1 : index
    %c2_31 = arith.constant 2 : index
    %c0_32 = arith.constant 0 : index
    %c0_33 = arith.constant 0 : index
    %31 = vector.load %arg5[%c1_30, %c2_31, %c0_32, %c0_33] : memref<3x3x256x256xbf16, #tpu.memory_space<vmem>>, vector<1x1x256x256xbf16>
    %32 = vector.shape_cast %31 : vector<1x1x256x256xbf16> to vector<256x256xbf16>
    %cst_34 = arith.constant dense<0.000000e+00> : vector<4x256xf32>
    %33 = tpu.matmul %30, %32, %cst_34 {dimension_numbers = #tpu.dot_dimension_numbers<[1], [0], [0], [1], [0, 0, 1, 1], [], []>} : vector<4x256xbf16>, vector<256x256xbf16>, vector<4x256xf32> -> vector<4x256xf32>
    %34 = arith.addf %29, %33 : vector<4x256xf32>
    %c0_35 = arith.constant 0 : index
    %c0_36 = arith.constant 0 : index
    %c0_37 = arith.constant 0 : index
    %c0_38 = arith.constant 0 : index
    %35 = vector.load %arg4[%c0_35, %c0_36, %c0_37, %c0_38] : memref<1x1x6x256xbf16, #tpu.memory_space<vmem>>, vector<1x1x6x256xbf16>
    %36 = vector.shape_cast %35 : vector<1x1x6x256xbf16> to vector<6x256xbf16>
    %37 = vector.extract_strided_slice %36 {offsets = [0, 0], sizes = [4, 256], strides = [1, 1]} : vector<6x256xbf16> to vector<4x256xbf16>
    %c2_39 = arith.constant 2 : index
    %c0_40 = arith.constant 0 : index
    %c0_41 = arith.constant 0 : index
    %c0_42 = arith.constant 0 : index
    %38 = vector.load %arg5[%c2_39, %c0_40, %c0_41, %c0_42] : memref<3x3x256x256xbf16, #tpu.memory_space<vmem>>, vector<1x1x256x256xbf16>
    %39 = vector.shape_cast %38 : vector<1x1x256x256xbf16> to vector<256x256xbf16>
    %cst_43 = arith.constant dense<0.000000e+00> : vector<4x256xf32>
    %40 = tpu.matmul %37, %39, %cst_43 {dimension_numbers = #tpu.dot_dimension_numbers<[1], [0], [0], [1], [0, 0, 1, 1], [], []>} : vector<4x256xbf16>, vector<256x256xbf16>, vector<4x256xf32> -> vector<4x256xf32>
    %41 = arith.addf %34, %40 : vector<4x256xf32>
    %42 = vector.extract_strided_slice %36 {offsets = [1, 0], sizes = [4, 256], strides = [1, 1]} : vector<6x256xbf16> to vector<4x256xbf16>
    %c2_44 = arith.constant 2 : index
    %c1_45 = arith.constant 1 : index
    %c0_46 = arith.constant 0 : index
    %c0_47 = arith.constant 0 : index
    %43 = vector.load %arg5[%c2_44, %c1_45, %c0_46, %c0_47] : memref<3x3x256x256xbf16, #tpu.memory_space<vmem>>, vector<1x1x256x256xbf16>
    %44 = vector.shape_cast %43 : vector<1x1x256x256xbf16> to vector<256x256xbf16>
    %cst_48 = arith.constant dense<0.000000e+00> : vector<4x256xf32>
    %45 = tpu.matmul %42, %44, %cst_48 {dimension_numbers = #tpu.dot_dimension_numbers<[1], [0], [0], [1], [0, 0, 1, 1], [], []>} : vector<4x256xbf16>, vector<256x256xbf16>, vector<4x256xf32> -> vector<4x256xf32>
    %46 = arith.addf %41, %45 : vector<4x256xf32>
    %47 = vector.extract_strided_slice %36 {offsets = [2, 0], sizes = [4, 256], strides = [1, 1]} : vector<6x256xbf16> to vector<4x256xbf16>
    %c2_49 = arith.constant 2 : index
    %c2_50 = arith.constant 2 : index
    %c0_51 = arith.constant 0 : index
    %c0_52 = arith.constant 0 : index
    %48 = vector.load %arg5[%c2_49, %c2_50, %c0_51, %c0_52] : memref<3x3x256x256xbf16, #tpu.memory_space<vmem>>, vector<1x1x256x256xbf16>
    %49 = vector.shape_cast %48 : vector<1x1x256x256xbf16> to vector<256x256xbf16>
    %cst_53 = arith.constant dense<0.000000e+00> : vector<4x256xf32>
    %50 = tpu.matmul %47, %49, %cst_53 {dimension_numbers = #tpu.dot_dimension_numbers<[1], [0], [0], [1], [0, 0, 1, 1], [], []>} : vector<4x256xbf16>, vector<256x256xbf16>, vector<4x256xf32> -> vector<4x256xf32>
    %51 = arith.addf %46, %50 : vector<4x256xf32>
    %c0_54 = arith.constant 0 : index
    %c0_55 = arith.constant 0 : index
    %52 = vector.load %arg6[%c0_54, %c0_55] : memref<1x256xf32, #tpu.memory_space<vmem>>, vector<1x256xf32>
    %53 = vector.broadcast %52 : vector<1x256xf32> to vector<4x256xf32>
    %54 = arith.addf %51, %53 : vector<4x256xf32>
    %c0_56 = arith.constant 0 : index
    %c0_57 = arith.constant 0 : index
    %c0_58 = arith.constant 0 : index
    %c0_59 = arith.constant 0 : index
    %55 = vector.load %arg7[%c0_56, %c0_57, %c0_58, %c0_59] : memref<1x1x4x256xf32, #tpu.memory_space<vmem>>, vector<1x1x4x256xf32>
    %56 = vector.shape_cast %55 : vector<1x1x4x256xf32> to vector<4x256xf32>
    %57 = vector.shape_cast %54 : vector<4x256xf32> to vector<1x1x4x256xf32>
    tpu.vector_store %arg7[%c0_56, %c0_57, %c0_58, %c0_59], %57 {strides = array<i32>} : memref<1x1x4x256xf32, #tpu.memory_space<vmem>>, vector<1x1x4x256xf32>,
    return
  }
  func.func @transform_0(%arg0: i32, %arg1: i32) -> (i32, i32, i32, i32) {
    %c0_i32 = arith.constant 0 : i32
    %c0_i32_0 = arith.constant 0 : i32
    %c0_i32_1 = arith.constant 0 : i32
    return %arg0, %arg1, %c0_i32, %c0_i32_0 : i32, i32, i32, i32
  }
  func.func @transform_1(%arg0: i32, %arg1: i32) -> (i32, i32, i32, i32) {
    %c1_i32 = arith.constant 1 : i32
    %0 = arith.addi %arg1, %c1_i32 : i32
    %c0_i32 = arith.constant 0 : i32
    %c0_i32_0 = arith.constant 0 : i32
    %c0_i32_1 = arith.constant 0 : i32
    return %arg0, %0, %c0_i32, %c0_i32_0 : i32, i32, i32, i32
  }
  func.func @transform_2(%arg0: i32, %arg1: i32) -> (i32, i32, i32, i32) {
    %c2_i32 = arith.constant 2 : i32
    %0 = arith.addi %arg1, %c2_i32 : i32
    %c0_i32 = arith.constant 0 : i32
    %c0_i32_0 = arith.constant 0 : i32
    %c0_i32_1 = arith.constant 0 : i32
    return %arg0, %0, %c0_i32, %c0_i32_0 : i32, i32, i32, i32
  }
  func.func @transform_3(%arg0: i32, %arg1: i32) -> (i32, i32, i32, i32) {
    %c0_i32 = arith.constant 0 : i32
    %c0_i32_0 = arith.constant 0 : i32
    %c0_i32_1 = arith.constant 0 : i32
    %c0_i32_2 = arith.constant 0 : i32
    %c0_i32_3 = arith.constant 0 : i32
    return %c0_i32, %c0_i32_0, %c0_i32_1, %c0_i32_2 : i32, i32, i32, i32
  }
  func.func @transform_4(%arg0: i32, %arg1: i32) -> (i32, i32) {
    %c0_i32 = arith.constant 0 : i32
    %c0_i32_0 = arith.constant 0 : i32
    %c0_i32_1 = arith.constant 0 : i32
    return %c0_i32, %c0_i32_0 : i32, i32
  }
  func.func @transform_5(%arg0: i32, %arg1: i32) -> (i32, i32, i32, i32) {
    %c0_i32 = arith.constant 0 : i32
    %c0_i32_0 = arith.constant 0 : i32
    %c0_i32_1 = arith.constant 0 : i32
    return %arg0, %arg1, %c0_i32, %c0_i32_0 : i32, i32, i32, i32
  }
}

module attributes {stable_mosaic.version = 11 : i64} {
  func.func @_upsample_add_lat_kernel(%arg0: i32, %arg1: i32, %arg2: memref<8xi32, #tpu.memory_space<smem>>, %arg3: memref<8xi32, #tpu.memory_space<smem>>, %arg4: memref<1x1x4x256xf32, #tpu.memory_space<vmem>>, %arg5: memref<1x1x4x256xf32, #tpu.memory_space<vmem>>, %arg6: memref<1x1x8x512xf32, #tpu.memory_space<vmem>>, %arg7: memref<512x256xbf16, #tpu.memory_space<vmem>>, %arg8: memref<1x256xf32, #tpu.memory_space<vmem>>, %arg9: memref<2x8xf32, #tpu.memory_space<smem>>, %arg10: memref<8x4xbf16, #tpu.memory_space<vmem>>, %arg11: memref<1x1x8x256xbf16, #tpu.memory_space<vmem>>) attributes {dimension_semantics = [#tpu.dimension_semantics<parallel>, #tpu.dimension_semantics<parallel>], iteration_bounds = array<i64: 2, 8>, scalar_prefetch = 2 : i64, scratch_operands = 0 : i64, tpu.core_type = #tpu.core_type<tc>, window_params = [{transform_indices = @transform_0, window_bounds = array<i64: 1, 1, 4, 256>}, {transform_indices = @transform_1, window_bounds = array<i64: 1, 1, 4, 256>}, {transform_indices = @transform_2, window_bounds = array<i64: 1, 1, 8, 512>}, {pipeline_mode = #tpu.pipeline_mode<synchronous>, transform_indices = @transform_3, window_bounds = array<i64: 512, 256>}, {pipeline_mode = #tpu.pipeline_mode<synchronous>, transform_indices = @transform_4, window_bounds = array<i64: 1, 256>}, {transform_indices = @transform_5, window_bounds = array<i64: 2, 8>}, {pipeline_mode = #tpu.pipeline_mode<synchronous>, transform_indices = @transform_6, window_bounds = array<i64: 8, 4>}, {transform_indices = @transform_7, window_bounds = array<i64: 1, 1, 8, 256>}]} {
    %c0 = arith.constant 0 : index
    %0 = arith.index_cast %arg1 : i32 to index
    %1 = memref.load %arg9[%c0, %0] : memref<2x8xf32, #tpu.memory_space<smem>>
    %c1 = arith.constant 1 : index
    %2 = arith.index_cast %arg1 : i32 to index
    %3 = memref.load %arg9[%c1, %2] : memref<2x8xf32, #tpu.memory_space<smem>>
    %c0_0 = arith.constant 0 : index
    %c0_1 = arith.constant 0 : index
    %c0_2 = arith.constant 0 : index
    %c0_3 = arith.constant 0 : index
    %4 = vector.load %arg4[%c0_0, %c0_1, %c0_2, %c0_3] : memref<1x1x4x256xf32, #tpu.memory_space<vmem>>, vector<1x1x4x256xf32>
    %5 = vector.shape_cast %4 : vector<1x1x4x256xf32> to vector<4x256xf32>
    %6 = vector.broadcast %1 : f32 to vector<4x256xf32>
    %7 = arith.mulf %6, %5 : vector<4x256xf32>
    %c0_4 = arith.constant 0 : index
    %c0_5 = arith.constant 0 : index
    %c0_6 = arith.constant 0 : index
    %c0_7 = arith.constant 0 : index
    %8 = vector.load %arg5[%c0_4, %c0_5, %c0_6, %c0_7] : memref<1x1x4x256xf32, #tpu.memory_space<vmem>>, vector<1x1x4x256xf32>
    %9 = vector.shape_cast %8 : vector<1x1x4x256xf32> to vector<4x256xf32>
    %10 = vector.broadcast %3 : f32 to vector<4x256xf32>
    %11 = arith.mulf %10, %9 : vector<4x256xf32>
    %12 = arith.addf %7, %11 : vector<4x256xf32>
    %13 = arith.truncf %12 : vector<4x256xf32> to vector<4x256xbf16>
    %c0_8 = arith.constant 0 : index
    %c0_9 = arith.constant 0 : index
    %14 = vector.load %arg10[%c0_8, %c0_9] : memref<8x4xbf16, #tpu.memory_space<vmem>>, vector<8x4xbf16>
    %cst = arith.constant dense<0.000000e+00> : vector<8x256xf32>
    %15 = tpu.matmul %14, %13, %cst {dimension_numbers = #tpu.dot_dimension_numbers<[1], [0], [0], [1], [0, 0, 1, 1], [], []>} : vector<8x4xbf16>, vector<4x256xbf16>, vector<8x256xf32> -> vector<8x256xf32>
    %c0_10 = arith.constant 0 : index
    %c0_11 = arith.constant 0 : index
    %c0_12 = arith.constant 0 : index
    %c0_13 = arith.constant 0 : index
    %16 = vector.load %arg6[%c0_10, %c0_11, %c0_12, %c0_13] : memref<1x1x8x512xf32, #tpu.memory_space<vmem>>, vector<1x1x8x512xf32>
    %17 = vector.shape_cast %16 : vector<1x1x8x512xf32> to vector<8x512xf32>
    %18 = arith.truncf %17 : vector<8x512xf32> to vector<8x512xbf16>
    %c0_14 = arith.constant 0 : index
    %c0_15 = arith.constant 0 : index
    %19 = vector.load %arg7[%c0_14, %c0_15] : memref<512x256xbf16, #tpu.memory_space<vmem>>, vector<512x256xbf16>
    %cst_16 = arith.constant dense<0.000000e+00> : vector<8x256xf32>
    %20 = tpu.matmul %18, %19, %cst_16 {dimension_numbers = #tpu.dot_dimension_numbers<[1], [0], [0], [1], [0, 0, 1, 1], [], []>} : vector<8x512xbf16>, vector<512x256xbf16>, vector<8x256xf32> -> vector<8x256xf32>
    %c0_17 = arith.constant 0 : index
    %c0_18 = arith.constant 0 : index
    %21 = vector.load %arg8[%c0_17, %c0_18] : memref<1x256xf32, #tpu.memory_space<vmem>>, vector<1x256xf32>
    %22 = vector.broadcast %21 : vector<1x256xf32> to vector<8x256xf32>
    %23 = arith.addf %20, %22 : vector<8x256xf32>
    %24 = arith.addf %15, %23 : vector<8x256xf32>
    %25 = arith.truncf %24 : vector<8x256xf32> to vector<8x256xbf16>
    %c0_19 = arith.constant 0 : index
    %c0_20 = arith.constant 0 : index
    %c0_21 = arith.constant 0 : index
    %c0_22 = arith.constant 0 : index
    %26 = vector.load %arg11[%c0_19, %c0_20, %c0_21, %c0_22] : memref<1x1x8x256xbf16, #tpu.memory_space<vmem>>, vector<1x1x8x256xbf16>
    %27 = vector.shape_cast %26 : vector<1x1x8x256xbf16> to vector<8x256xbf16>
    %28 = vector.shape_cast %25 : vector<8x256xbf16> to vector<1x1x8x256xbf16>
    tpu.vector_store %arg11[%c0_19, %c0_20, %c0_21, %c0_22], %28 {strides = array<i32>} : memref<1x1x8x256xbf16, #tpu.memory_space<vmem>>, vector<1x1x8x256xbf16>,
    return
  }
  func.func @transform_0(%arg0: i32, %arg1: i32, %arg2: memref<8xi32, #tpu.memory_space<smem>>, %arg3: memref<8xi32, #tpu.memory_space<smem>>) -> (i32, i32, i32, i32) {
    %0 = arith.index_cast %arg1 : i32 to index
    %1 = memref.load %arg2[%0] : memref<8xi32, #tpu.memory_space<smem>>
    %c0_i32 = arith.constant 0 : i32
    %c0_i32_0 = arith.constant 0 : i32
    %c0_i32_1 = arith.constant 0 : i32
    return %arg0, %1, %c0_i32, %c0_i32_0 : i32, i32, i32, i32
  }
  func.func @transform_1(%arg0: i32, %arg1: i32, %arg2: memref<8xi32, #tpu.memory_space<smem>>, %arg3: memref<8xi32, #tpu.memory_space<smem>>) -> (i32, i32, i32, i32) {
    %0 = arith.index_cast %arg1 : i32 to index
    %1 = memref.load %arg3[%0] : memref<8xi32, #tpu.memory_space<smem>>
    %c0_i32 = arith.constant 0 : i32
    %c0_i32_0 = arith.constant 0 : i32
    %c0_i32_1 = arith.constant 0 : i32
    return %arg0, %1, %c0_i32, %c0_i32_0 : i32, i32, i32, i32
  }
  func.func @transform_2(%arg0: i32, %arg1: i32, %arg2: memref<8xi32, #tpu.memory_space<smem>>, %arg3: memref<8xi32, #tpu.memory_space<smem>>) -> (i32, i32, i32, i32) {
    %c0_i32 = arith.constant 0 : i32
    %c0_i32_0 = arith.constant 0 : i32
    %c0_i32_1 = arith.constant 0 : i32
    return %arg0, %arg1, %c0_i32, %c0_i32_0 : i32, i32, i32, i32
  }
  func.func @transform_3(%arg0: i32, %arg1: i32, %arg2: memref<8xi32, #tpu.memory_space<smem>>, %arg3: memref<8xi32, #tpu.memory_space<smem>>) -> (i32, i32) {
    %c0_i32 = arith.constant 0 : i32
    %c0_i32_0 = arith.constant 0 : i32
    %c0_i32_1 = arith.constant 0 : i32
    return %c0_i32, %c0_i32_0 : i32, i32
  }
  func.func @transform_4(%arg0: i32, %arg1: i32, %arg2: memref<8xi32, #tpu.memory_space<smem>>, %arg3: memref<8xi32, #tpu.memory_space<smem>>) -> (i32, i32) {
    %c0_i32 = arith.constant 0 : i32
    %c0_i32_0 = arith.constant 0 : i32
    %c0_i32_1 = arith.constant 0 : i32
    return %c0_i32, %c0_i32_0 : i32, i32
  }
  func.func @transform_5(%arg0: i32, %arg1: i32, %arg2: memref<8xi32, #tpu.memory_space<smem>>, %arg3: memref<8xi32, #tpu.memory_space<smem>>) -> (i32, i32) {
    %c0_i32 = arith.constant 0 : i32
    %c0_i32_0 = arith.constant 0 : i32
    %c0_i32_1 = arith.constant 0 : i32
    return %c0_i32, %c0_i32_0 : i32, i32
  }
  func.func @transform_6(%arg0: i32, %arg1: i32, %arg2: memref<8xi32, #tpu.memory_space<smem>>, %arg3: memref<8xi32, #tpu.memory_space<smem>>) -> (i32, i32) {
    %c0_i32 = arith.constant 0 : i32
    %c0_i32_0 = arith.constant 0 : i32
    %c0_i32_1 = arith.constant 0 : i32
    return %c0_i32, %c0_i32_0 : i32, i32
  }
  func.func @transform_7(%arg0: i32, %arg1: i32, %arg2: memref<8xi32, #tpu.memory_space<smem>>, %arg3: memref<8xi32, #tpu.memory_space<smem>>) -> (i32, i32, i32, i32) {
    %c0_i32 = arith.constant 0 : i32
    %c0_i32_0 = arith.constant 0 : i32
    %c0_i32_1 = arith.constant 0 : i32
    return %arg0, %arg1, %c0_i32, %c0_i32_0 : i32, i32, i32, i32
  }
}

module attributes {stable_mosaic.version = 11 : i64} {
  func.func @_conv3x3_row_kernel(%arg0: i32, %arg1: i32, %arg2: memref<1x1x10x256xbf16, #tpu.memory_space<vmem>>, %arg3: memref<1x1x10x256xbf16, #tpu.memory_space<vmem>>, %arg4: memref<1x1x10x256xbf16, #tpu.memory_space<vmem>>, %arg5: memref<3x3x256x256xbf16, #tpu.memory_space<vmem>>, %arg6: memref<1x256xf32, #tpu.memory_space<vmem>>, %arg7: memref<1x1x8x256xf32, #tpu.memory_space<vmem>>) attributes {dimension_semantics = [#tpu.dimension_semantics<parallel>, #tpu.dimension_semantics<parallel>], iteration_bounds = array<i64: 2, 8>, scalar_prefetch = 0 : i64, scratch_operands = 0 : i64, tpu.core_type = #tpu.core_type<tc>, window_params = [{transform_indices = @transform_0, window_bounds = array<i64: 1, 1, 10, 256>}, {transform_indices = @transform_1, window_bounds = array<i64: 1, 1, 10, 256>}, {transform_indices = @transform_2, window_bounds = array<i64: 1, 1, 10, 256>}, {pipeline_mode = #tpu.pipeline_mode<synchronous>, transform_indices = @transform_3, window_bounds = array<i64: 3, 3, 256, 256>}, {pipeline_mode = #tpu.pipeline_mode<synchronous>, transform_indices = @transform_4, window_bounds = array<i64: 1, 256>}, {transform_indices = @transform_5, window_bounds = array<i64: 1, 1, 8, 256>}]} {
    %cst = arith.constant 0.000000e+00 : f32
    %0 = vector.broadcast %cst : f32 to vector<8x256xf32>
    %c0 = arith.constant 0 : index
    %c0_0 = arith.constant 0 : index
    %c0_1 = arith.constant 0 : index
    %c0_2 = arith.constant 0 : index
    %1 = vector.load %arg2[%c0, %c0_0, %c0_1, %c0_2] : memref<1x1x10x256xbf16, #tpu.memory_space<vmem>>, vector<1x1x10x256xbf16>
    %2 = vector.shape_cast %1 : vector<1x1x10x256xbf16> to vector<10x256xbf16>
    %3 = vector.extract_strided_slice %2 {offsets = [0, 0], sizes = [8, 256], strides = [1, 1]} : vector<10x256xbf16> to vector<8x256xbf16>
    %c0_3 = arith.constant 0 : index
    %c0_4 = arith.constant 0 : index
    %c0_5 = arith.constant 0 : index
    %c0_6 = arith.constant 0 : index
    %4 = vector.load %arg5[%c0_3, %c0_4, %c0_5, %c0_6] : memref<3x3x256x256xbf16, #tpu.memory_space<vmem>>, vector<1x1x256x256xbf16>
    %5 = vector.shape_cast %4 : vector<1x1x256x256xbf16> to vector<256x256xbf16>
    %cst_7 = arith.constant dense<0.000000e+00> : vector<8x256xf32>
    %6 = tpu.matmul %3, %5, %cst_7 {dimension_numbers = #tpu.dot_dimension_numbers<[1], [0], [0], [1], [0, 0, 1, 1], [], []>} : vector<8x256xbf16>, vector<256x256xbf16>, vector<8x256xf32> -> vector<8x256xf32>
    %7 = arith.addf %0, %6 : vector<8x256xf32>
    %8 = vector.extract_strided_slice %2 {offsets = [1, 0], sizes = [8, 256], strides = [1, 1]} : vector<10x256xbf16> to vector<8x256xbf16>
    %c0_8 = arith.constant 0 : index
    %c1 = arith.constant 1 : index
    %c0_9 = arith.constant 0 : index
    %c0_10 = arith.constant 0 : index
    %9 = vector.load %arg5[%c0_8, %c1, %c0_9, %c0_10] : memref<3x3x256x256xbf16, #tpu.memory_space<vmem>>, vector<1x1x256x256xbf16>
    %10 = vector.shape_cast %9 : vector<1x1x256x256xbf16> to vector<256x256xbf16>
    %cst_11 = arith.constant dense<0.000000e+00> : vector<8x256xf32>
    %11 = tpu.matmul %8, %10, %cst_11 {dimension_numbers = #tpu.dot_dimension_numbers<[1], [0], [0], [1], [0, 0, 1, 1], [], []>} : vector<8x256xbf16>, vector<256x256xbf16>, vector<8x256xf32> -> vector<8x256xf32>
    %12 = arith.addf %7, %11 : vector<8x256xf32>
    %13 = vector.extract_strided_slice %2 {offsets = [2, 0], sizes = [8, 256], strides = [1, 1]} : vector<10x256xbf16> to vector<8x256xbf16>
    %c0_12 = arith.constant 0 : index
    %c2 = arith.constant 2 : index
    %c0_13 = arith.constant 0 : index
    %c0_14 = arith.constant 0 : index
    %14 = vector.load %arg5[%c0_12, %c2, %c0_13, %c0_14] : memref<3x3x256x256xbf16, #tpu.memory_space<vmem>>, vector<1x1x256x256xbf16>
    %15 = vector.shape_cast %14 : vector<1x1x256x256xbf16> to vector<256x256xbf16>
    %cst_15 = arith.constant dense<0.000000e+00> : vector<8x256xf32>
    %16 = tpu.matmul %13, %15, %cst_15 {dimension_numbers = #tpu.dot_dimension_numbers<[1], [0], [0], [1], [0, 0, 1, 1], [], []>} : vector<8x256xbf16>, vector<256x256xbf16>, vector<8x256xf32> -> vector<8x256xf32>
    %17 = arith.addf %12, %16 : vector<8x256xf32>
    %c0_16 = arith.constant 0 : index
    %c0_17 = arith.constant 0 : index
    %c0_18 = arith.constant 0 : index
    %c0_19 = arith.constant 0 : index
    %18 = vector.load %arg3[%c0_16, %c0_17, %c0_18, %c0_19] : memref<1x1x10x256xbf16, #tpu.memory_space<vmem>>, vector<1x1x10x256xbf16>
    %19 = vector.shape_cast %18 : vector<1x1x10x256xbf16> to vector<10x256xbf16>
    %20 = vector.extract_strided_slice %19 {offsets = [0, 0], sizes = [8, 256], strides = [1, 1]} : vector<10x256xbf16> to vector<8x256xbf16>
    %c1_20 = arith.constant 1 : index
    %c0_21 = arith.constant 0 : index
    %c0_22 = arith.constant 0 : index
    %c0_23 = arith.constant 0 : index
    %21 = vector.load %arg5[%c1_20, %c0_21, %c0_22, %c0_23] : memref<3x3x256x256xbf16, #tpu.memory_space<vmem>>, vector<1x1x256x256xbf16>
    %22 = vector.shape_cast %21 : vector<1x1x256x256xbf16> to vector<256x256xbf16>
    %cst_24 = arith.constant dense<0.000000e+00> : vector<8x256xf32>
    %23 = tpu.matmul %20, %22, %cst_24 {dimension_numbers = #tpu.dot_dimension_numbers<[1], [0], [0], [1], [0, 0, 1, 1], [], []>} : vector<8x256xbf16>, vector<256x256xbf16>, vector<8x256xf32> -> vector<8x256xf32>
    %24 = arith.addf %17, %23 : vector<8x256xf32>
    %25 = vector.extract_strided_slice %19 {offsets = [1, 0], sizes = [8, 256], strides = [1, 1]} : vector<10x256xbf16> to vector<8x256xbf16>
    %c1_25 = arith.constant 1 : index
    %c1_26 = arith.constant 1 : index
    %c0_27 = arith.constant 0 : index
    %c0_28 = arith.constant 0 : index
    %26 = vector.load %arg5[%c1_25, %c1_26, %c0_27, %c0_28] : memref<3x3x256x256xbf16, #tpu.memory_space<vmem>>, vector<1x1x256x256xbf16>
    %27 = vector.shape_cast %26 : vector<1x1x256x256xbf16> to vector<256x256xbf16>
    %cst_29 = arith.constant dense<0.000000e+00> : vector<8x256xf32>
    %28 = tpu.matmul %25, %27, %cst_29 {dimension_numbers = #tpu.dot_dimension_numbers<[1], [0], [0], [1], [0, 0, 1, 1], [], []>} : vector<8x256xbf16>, vector<256x256xbf16>, vector<8x256xf32> -> vector<8x256xf32>
    %29 = arith.addf %24, %28 : vector<8x256xf32>
    %30 = vector.extract_strided_slice %19 {offsets = [2, 0], sizes = [8, 256], strides = [1, 1]} : vector<10x256xbf16> to vector<8x256xbf16>
    %c1_30 = arith.constant 1 : index
    %c2_31 = arith.constant 2 : index
    %c0_32 = arith.constant 0 : index
    %c0_33 = arith.constant 0 : index
    %31 = vector.load %arg5[%c1_30, %c2_31, %c0_32, %c0_33] : memref<3x3x256x256xbf16, #tpu.memory_space<vmem>>, vector<1x1x256x256xbf16>
    %32 = vector.shape_cast %31 : vector<1x1x256x256xbf16> to vector<256x256xbf16>
    %cst_34 = arith.constant dense<0.000000e+00> : vector<8x256xf32>
    %33 = tpu.matmul %30, %32, %cst_34 {dimension_numbers = #tpu.dot_dimension_numbers<[1], [0], [0], [1], [0, 0, 1, 1], [], []>} : vector<8x256xbf16>, vector<256x256xbf16>, vector<8x256xf32> -> vector<8x256xf32>
    %34 = arith.addf %29, %33 : vector<8x256xf32>
    %c0_35 = arith.constant 0 : index
    %c0_36 = arith.constant 0 : index
    %c0_37 = arith.constant 0 : index
    %c0_38 = arith.constant 0 : index
    %35 = vector.load %arg4[%c0_35, %c0_36, %c0_37, %c0_38] : memref<1x1x10x256xbf16, #tpu.memory_space<vmem>>, vector<1x1x10x256xbf16>
    %36 = vector.shape_cast %35 : vector<1x1x10x256xbf16> to vector<10x256xbf16>
    %37 = vector.extract_strided_slice %36 {offsets = [0, 0], sizes = [8, 256], strides = [1, 1]} : vector<10x256xbf16> to vector<8x256xbf16>
    %c2_39 = arith.constant 2 : index
    %c0_40 = arith.constant 0 : index
    %c0_41 = arith.constant 0 : index
    %c0_42 = arith.constant 0 : index
    %38 = vector.load %arg5[%c2_39, %c0_40, %c0_41, %c0_42] : memref<3x3x256x256xbf16, #tpu.memory_space<vmem>>, vector<1x1x256x256xbf16>
    %39 = vector.shape_cast %38 : vector<1x1x256x256xbf16> to vector<256x256xbf16>
    %cst_43 = arith.constant dense<0.000000e+00> : vector<8x256xf32>
    %40 = tpu.matmul %37, %39, %cst_43 {dimension_numbers = #tpu.dot_dimension_numbers<[1], [0], [0], [1], [0, 0, 1, 1], [], []>} : vector<8x256xbf16>, vector<256x256xbf16>, vector<8x256xf32> -> vector<8x256xf32>
    %41 = arith.addf %34, %40 : vector<8x256xf32>
    %42 = vector.extract_strided_slice %36 {offsets = [1, 0], sizes = [8, 256], strides = [1, 1]} : vector<10x256xbf16> to vector<8x256xbf16>
    %c2_44 = arith.constant 2 : index
    %c1_45 = arith.constant 1 : index
    %c0_46 = arith.constant 0 : index
    %c0_47 = arith.constant 0 : index
    %43 = vector.load %arg5[%c2_44, %c1_45, %c0_46, %c0_47] : memref<3x3x256x256xbf16, #tpu.memory_space<vmem>>, vector<1x1x256x256xbf16>
    %44 = vector.shape_cast %43 : vector<1x1x256x256xbf16> to vector<256x256xbf16>
    %cst_48 = arith.constant dense<0.000000e+00> : vector<8x256xf32>
    %45 = tpu.matmul %42, %44, %cst_48 {dimension_numbers = #tpu.dot_dimension_numbers<[1], [0], [0], [1], [0, 0, 1, 1], [], []>} : vector<8x256xbf16>, vector<256x256xbf16>, vector<8x256xf32> -> vector<8x256xf32>
    %46 = arith.addf %41, %45 : vector<8x256xf32>
    %47 = vector.extract_strided_slice %36 {offsets = [2, 0], sizes = [8, 256], strides = [1, 1]} : vector<10x256xbf16> to vector<8x256xbf16>
    %c2_49 = arith.constant 2 : index
    %c2_50 = arith.constant 2 : index
    %c0_51 = arith.constant 0 : index
    %c0_52 = arith.constant 0 : index
    %48 = vector.load %arg5[%c2_49, %c2_50, %c0_51, %c0_52] : memref<3x3x256x256xbf16, #tpu.memory_space<vmem>>, vector<1x1x256x256xbf16>
    %49 = vector.shape_cast %48 : vector<1x1x256x256xbf16> to vector<256x256xbf16>
    %cst_53 = arith.constant dense<0.000000e+00> : vector<8x256xf32>
    %50 = tpu.matmul %47, %49, %cst_53 {dimension_numbers = #tpu.dot_dimension_numbers<[1], [0], [0], [1], [0, 0, 1, 1], [], []>} : vector<8x256xbf16>, vector<256x256xbf16>, vector<8x256xf32> -> vector<8x256xf32>
    %51 = arith.addf %46, %50 : vector<8x256xf32>
    %c0_54 = arith.constant 0 : index
    %c0_55 = arith.constant 0 : index
    %52 = vector.load %arg6[%c0_54, %c0_55] : memref<1x256xf32, #tpu.memory_space<vmem>>, vector<1x256xf32>
    %53 = vector.broadcast %52 : vector<1x256xf32> to vector<8x256xf32>
    %54 = arith.addf %51, %53 : vector<8x256xf32>
    %c0_56 = arith.constant 0 : index
    %c0_57 = arith.constant 0 : index
    %c0_58 = arith.constant 0 : index
    %c0_59 = arith.constant 0 : index
    %55 = vector.load %arg7[%c0_56, %c0_57, %c0_58, %c0_59] : memref<1x1x8x256xf32, #tpu.memory_space<vmem>>, vector<1x1x8x256xf32>
    %56 = vector.shape_cast %55 : vector<1x1x8x256xf32> to vector<8x256xf32>
    %57 = vector.shape_cast %54 : vector<8x256xf32> to vector<1x1x8x256xf32>
    tpu.vector_store %arg7[%c0_56, %c0_57, %c0_58, %c0_59], %57 {strides = array<i32>} : memref<1x1x8x256xf32, #tpu.memory_space<vmem>>, vector<1x1x8x256xf32>,
    return
  }
  func.func @transform_0(%arg0: i32, %arg1: i32) -> (i32, i32, i32, i32) {
    %c0_i32 = arith.constant 0 : i32
    %c0_i32_0 = arith.constant 0 : i32
    %c0_i32_1 = arith.constant 0 : i32
    return %arg0, %arg1, %c0_i32, %c0_i32_0 : i32, i32, i32, i32
  }
  func.func @transform_1(%arg0: i32, %arg1: i32) -> (i32, i32, i32, i32) {
    %c1_i32 = arith.constant 1 : i32
    %0 = arith.addi %arg1, %c1_i32 : i32
    %c0_i32 = arith.constant 0 : i32
    %c0_i32_0 = arith.constant 0 : i32
    %c0_i32_1 = arith.constant 0 : i32
    return %arg0, %0, %c0_i32, %c0_i32_0 : i32, i32, i32, i32
  }
  func.func @transform_2(%arg0: i32, %arg1: i32) -> (i32, i32, i32, i32) {
    %c2_i32 = arith.constant 2 : i32
    %0 = arith.addi %arg1, %c2_i32 : i32
    %c0_i32 = arith.constant 0 : i32
    %c0_i32_0 = arith.constant 0 : i32
    %c0_i32_1 = arith.constant 0 : i32
    return %arg0, %0, %c0_i32, %c0_i32_0 : i32, i32, i32, i32
  }
  func.func @transform_3(%arg0: i32, %arg1: i32) -> (i32, i32, i32, i32) {
    %c0_i32 = arith.constant 0 : i32
    %c0_i32_0 = arith.constant 0 : i32
    %c0_i32_1 = arith.constant 0 : i32
    %c0_i32_2 = arith.constant 0 : i32
    %c0_i32_3 = arith.constant 0 : i32
    return %c0_i32, %c0_i32_0, %c0_i32_1, %c0_i32_2 : i32, i32, i32, i32
  }
  func.func @transform_4(%arg0: i32, %arg1: i32) -> (i32, i32) {
    %c0_i32 = arith.constant 0 : i32
    %c0_i32_0 = arith.constant 0 : i32
    %c0_i32_1 = arith.constant 0 : i32
    return %c0_i32, %c0_i32_0 : i32, i32
  }
  func.func @transform_5(%arg0: i32, %arg1: i32) -> (i32, i32, i32, i32) {
    %c0_i32 = arith.constant 0 : i32
    %c0_i32_0 = arith.constant 0 : i32
    %c0_i32_1 = arith.constant 0 : i32
    return %arg0, %arg1, %c0_i32, %c0_i32_0 : i32, i32, i32, i32
  }
}

module attributes {stable_mosaic.version = 11 : i64} {
  func.func @_upsample_add_row_kernel(%arg0: i32, %arg1: i32, %arg2: memref<16xi32, #tpu.memory_space<smem>>, %arg3: memref<16xi32, #tpu.memory_space<smem>>, %arg4: memref<1x1x8x256xf32, #tpu.memory_space<vmem>>, %arg5: memref<1x1x8x256xf32, #tpu.memory_space<vmem>>, %arg6: memref<2x16xf32, #tpu.memory_space<smem>>, %arg7: memref<16x8xbf16, #tpu.memory_space<vmem>>, %arg8: memref<1x1x16x256xf32, #tpu.memory_space<vmem>>, %arg9: memref<1x1x16x256xbf16, #tpu.memory_space<vmem>>) attributes {dimension_semantics = [#tpu.dimension_semantics<parallel>, #tpu.dimension_semantics<parallel>], iteration_bounds = array<i64: 2, 16>, scalar_prefetch = 2 : i64, scratch_operands = 0 : i64, tpu.core_type = #tpu.core_type<tc>, window_params = [{transform_indices = @transform_0, window_bounds = array<i64: 1, 1, 8, 256>}, {transform_indices = @transform_1, window_bounds = array<i64: 1, 1, 8, 256>}, {transform_indices = @transform_2, window_bounds = array<i64: 2, 16>}, {pipeline_mode = #tpu.pipeline_mode<synchronous>, transform_indices = @transform_3, window_bounds = array<i64: 16, 8>}, {transform_indices = @transform_4, window_bounds = array<i64: 1, 1, 16, 256>}, {transform_indices = @transform_5, window_bounds = array<i64: 1, 1, 16, 256>}]} {
    %c0 = arith.constant 0 : index
    %0 = arith.index_cast %arg1 : i32 to index
    %1 = memref.load %arg6[%c0, %0] : memref<2x16xf32, #tpu.memory_space<smem>>
    %c1 = arith.constant 1 : index
    %2 = arith.index_cast %arg1 : i32 to index
    %3 = memref.load %arg6[%c1, %2] : memref<2x16xf32, #tpu.memory_space<smem>>
    %c0_0 = arith.constant 0 : index
    %c0_1 = arith.constant 0 : index
    %c0_2 = arith.constant 0 : index
    %c0_3 = arith.constant 0 : index
    %4 = vector.load %arg4[%c0_0, %c0_1, %c0_2, %c0_3] : memref<1x1x8x256xf32, #tpu.memory_space<vmem>>, vector<1x1x8x256xf32>
    %5 = vector.shape_cast %4 : vector<1x1x8x256xf32> to vector<8x256xf32>
    %6 = vector.broadcast %1 : f32 to vector<8x256xf32>
    %7 = arith.mulf %6, %5 : vector<8x256xf32>
    %c0_4 = arith.constant 0 : index
    %c0_5 = arith.constant 0 : index
    %c0_6 = arith.constant 0 : index
    %c0_7 = arith.constant 0 : index
    %8 = vector.load %arg5[%c0_4, %c0_5, %c0_6, %c0_7] : memref<1x1x8x256xf32, #tpu.memory_space<vmem>>, vector<1x1x8x256xf32>
    %9 = vector.shape_cast %8 : vector<1x1x8x256xf32> to vector<8x256xf32>
    %10 = vector.broadcast %3 : f32 to vector<8x256xf32>
    %11 = arith.mulf %10, %9 : vector<8x256xf32>
    %12 = arith.addf %7, %11 : vector<8x256xf32>
    %13 = arith.truncf %12 : vector<8x256xf32> to vector<8x256xbf16>
    %c0_8 = arith.constant 0 : index
    %c0_9 = arith.constant 0 : index
    %14 = vector.load %arg7[%c0_8, %c0_9] : memref<16x8xbf16, #tpu.memory_space<vmem>>, vector<16x8xbf16>
    %cst = arith.constant dense<0.000000e+00> : vector<16x256xf32>
    %15 = tpu.matmul %14, %13, %cst {dimension_numbers = #tpu.dot_dimension_numbers<[1], [0], [0], [1], [0, 0, 1, 1], [], []>} : vector<16x8xbf16>, vector<8x256xbf16>, vector<16x256xf32> -> vector<16x256xf32>
    %c0_10 = arith.constant 0 : index
    %c0_11 = arith.constant 0 : index
    %c0_12 = arith.constant 0 : index
    %c0_13 = arith.constant 0 : index
    %16 = vector.load %arg8[%c0_10, %c0_11, %c0_12, %c0_13] : memref<1x1x16x256xf32, #tpu.memory_space<vmem>>, vector<1x1x16x256xf32>
    %17 = vector.shape_cast %16 : vector<1x1x16x256xf32> to vector<16x256xf32>
    %18 = arith.addf %15, %17 : vector<16x256xf32>
    %19 = arith.truncf %18 : vector<16x256xf32> to vector<16x256xbf16>
    %c0_14 = arith.constant 0 : index
    %c0_15 = arith.constant 0 : index
    %c0_16 = arith.constant 0 : index
    %c0_17 = arith.constant 0 : index
    %20 = vector.load %arg9[%c0_14, %c0_15, %c0_16, %c0_17] : memref<1x1x16x256xbf16, #tpu.memory_space<vmem>>, vector<1x1x16x256xbf16>
    %21 = vector.shape_cast %20 : vector<1x1x16x256xbf16> to vector<16x256xbf16>
    %22 = vector.shape_cast %19 : vector<16x256xbf16> to vector<1x1x16x256xbf16>
    tpu.vector_store %arg9[%c0_14, %c0_15, %c0_16, %c0_17], %22 {strides = array<i32>} : memref<1x1x16x256xbf16, #tpu.memory_space<vmem>>, vector<1x1x16x256xbf16>,
    return
  }
  func.func @transform_0(%arg0: i32, %arg1: i32, %arg2: memref<16xi32, #tpu.memory_space<smem>>, %arg3: memref<16xi32, #tpu.memory_space<smem>>) -> (i32, i32, i32, i32) {
    %0 = arith.index_cast %arg1 : i32 to index
    %1 = memref.load %arg2[%0] : memref<16xi32, #tpu.memory_space<smem>>
    %c0_i32 = arith.constant 0 : i32
    %c0_i32_0 = arith.constant 0 : i32
    %c0_i32_1 = arith.constant 0 : i32
    return %arg0, %1, %c0_i32, %c0_i32_0 : i32, i32, i32, i32
  }
  func.func @transform_1(%arg0: i32, %arg1: i32, %arg2: memref<16xi32, #tpu.memory_space<smem>>, %arg3: memref<16xi32, #tpu.memory_space<smem>>) -> (i32, i32, i32, i32) {
    %0 = arith.index_cast %arg1 : i32 to index
    %1 = memref.load %arg3[%0] : memref<16xi32, #tpu.memory_space<smem>>
    %c0_i32 = arith.constant 0 : i32
    %c0_i32_0 = arith.constant 0 : i32
    %c0_i32_1 = arith.constant 0 : i32
    return %arg0, %1, %c0_i32, %c0_i32_0 : i32, i32, i32, i32
  }
  func.func @transform_2(%arg0: i32, %arg1: i32, %arg2: memref<16xi32, #tpu.memory_space<smem>>, %arg3: memref<16xi32, #tpu.memory_space<smem>>) -> (i32, i32) {
    %c0_i32 = arith.constant 0 : i32
    %c0_i32_0 = arith.constant 0 : i32
    %c0_i32_1 = arith.constant 0 : i32
    return %c0_i32, %c0_i32_0 : i32, i32
  }
  func.func @transform_3(%arg0: i32, %arg1: i32, %arg2: memref<16xi32, #tpu.memory_space<smem>>, %arg3: memref<16xi32, #tpu.memory_space<smem>>) -> (i32, i32) {
    %c0_i32 = arith.constant 0 : i32
    %c0_i32_0 = arith.constant 0 : i32
    %c0_i32_1 = arith.constant 0 : i32
    return %c0_i32, %c0_i32_0 : i32, i32
  }
  func.func @transform_4(%arg0: i32, %arg1: i32, %arg2: memref<16xi32, #tpu.memory_space<smem>>, %arg3: memref<16xi32, #tpu.memory_space<smem>>) -> (i32, i32, i32, i32) {
    %c0_i32 = arith.constant 0 : i32
    %c0_i32_0 = arith.constant 0 : i32
    %c0_i32_1 = arith.constant 0 : i32
    return %arg0, %arg1, %c0_i32, %c0_i32_0 : i32, i32, i32, i32
  }
  func.func @transform_5(%arg0: i32, %arg1: i32, %arg2: memref<16xi32, #tpu.memory_space<smem>>, %arg3: memref<16xi32, #tpu.memory_space<smem>>) -> (i32, i32, i32, i32) {
    %c0_i32 = arith.constant 0 : i32
    %c0_i32_0 = arith.constant 0 : i32
    %c0_i32_1 = arith.constant 0 : i32
    return %arg0, %arg1, %c0_i32, %c0_i32_0 : i32, i32, i32, i32
  }
}

module attributes {stable_mosaic.version = 11 : i64} {
  func.func @_conv3x3_row_kernel(%arg0: i32, %arg1: i32, %arg2: memref<1x1x18x256xbf16, #tpu.memory_space<vmem>>, %arg3: memref<1x1x18x256xbf16, #tpu.memory_space<vmem>>, %arg4: memref<1x1x18x256xbf16, #tpu.memory_space<vmem>>, %arg5: memref<3x3x256x256xbf16, #tpu.memory_space<vmem>>, %arg6: memref<1x256xf32, #tpu.memory_space<vmem>>, %arg7: memref<1x1x16x256xf32, #tpu.memory_space<vmem>>) attributes {dimension_semantics = [#tpu.dimension_semantics<parallel>, #tpu.dimension_semantics<parallel>], iteration_bounds = array<i64: 2, 16>, scalar_prefetch = 0 : i64, scratch_operands = 0 : i64, tpu.core_type = #tpu.core_type<tc>, window_params = [{transform_indices = @transform_0, window_bounds = array<i64: 1, 1, 18, 256>}, {transform_indices = @transform_1, window_bounds = array<i64: 1, 1, 18, 256>}, {transform_indices = @transform_2, window_bounds = array<i64: 1, 1, 18, 256>}, {pipeline_mode = #tpu.pipeline_mode<synchronous>, transform_indices = @transform_3, window_bounds = array<i64: 3, 3, 256, 256>}, {pipeline_mode = #tpu.pipeline_mode<synchronous>, transform_indices = @transform_4, window_bounds = array<i64: 1, 256>}, {transform_indices = @transform_5, window_bounds = array<i64: 1, 1, 16, 256>}]} {
    %cst = arith.constant 0.000000e+00 : f32
    %0 = vector.broadcast %cst : f32 to vector<16x256xf32>
    %c0 = arith.constant 0 : index
    %c0_0 = arith.constant 0 : index
    %c0_1 = arith.constant 0 : index
    %c0_2 = arith.constant 0 : index
    %1 = vector.load %arg2[%c0, %c0_0, %c0_1, %c0_2] : memref<1x1x18x256xbf16, #tpu.memory_space<vmem>>, vector<1x1x18x256xbf16>
    %2 = vector.shape_cast %1 : vector<1x1x18x256xbf16> to vector<18x256xbf16>
    %3 = vector.extract_strided_slice %2 {offsets = [0, 0], sizes = [16, 256], strides = [1, 1]} : vector<18x256xbf16> to vector<16x256xbf16>
    %c0_3 = arith.constant 0 : index
    %c0_4 = arith.constant 0 : index
    %c0_5 = arith.constant 0 : index
    %c0_6 = arith.constant 0 : index
    %4 = vector.load %arg5[%c0_3, %c0_4, %c0_5, %c0_6] : memref<3x3x256x256xbf16, #tpu.memory_space<vmem>>, vector<1x1x256x256xbf16>
    %5 = vector.shape_cast %4 : vector<1x1x256x256xbf16> to vector<256x256xbf16>
    %cst_7 = arith.constant dense<0.000000e+00> : vector<16x256xf32>
    %6 = tpu.matmul %3, %5, %cst_7 {dimension_numbers = #tpu.dot_dimension_numbers<[1], [0], [0], [1], [0, 0, 1, 1], [], []>} : vector<16x256xbf16>, vector<256x256xbf16>, vector<16x256xf32> -> vector<16x256xf32>
    %7 = arith.addf %0, %6 : vector<16x256xf32>
    %8 = vector.extract_strided_slice %2 {offsets = [1, 0], sizes = [16, 256], strides = [1, 1]} : vector<18x256xbf16> to vector<16x256xbf16>
    %c0_8 = arith.constant 0 : index
    %c1 = arith.constant 1 : index
    %c0_9 = arith.constant 0 : index
    %c0_10 = arith.constant 0 : index
    %9 = vector.load %arg5[%c0_8, %c1, %c0_9, %c0_10] : memref<3x3x256x256xbf16, #tpu.memory_space<vmem>>, vector<1x1x256x256xbf16>
    %10 = vector.shape_cast %9 : vector<1x1x256x256xbf16> to vector<256x256xbf16>
    %cst_11 = arith.constant dense<0.000000e+00> : vector<16x256xf32>
    %11 = tpu.matmul %8, %10, %cst_11 {dimension_numbers = #tpu.dot_dimension_numbers<[1], [0], [0], [1], [0, 0, 1, 1], [], []>} : vector<16x256xbf16>, vector<256x256xbf16>, vector<16x256xf32> -> vector<16x256xf32>
    %12 = arith.addf %7, %11 : vector<16x256xf32>
    %13 = vector.extract_strided_slice %2 {offsets = [2, 0], sizes = [16, 256], strides = [1, 1]} : vector<18x256xbf16> to vector<16x256xbf16>
    %c0_12 = arith.constant 0 : index
    %c2 = arith.constant 2 : index
    %c0_13 = arith.constant 0 : index
    %c0_14 = arith.constant 0 : index
    %14 = vector.load %arg5[%c0_12, %c2, %c0_13, %c0_14] : memref<3x3x256x256xbf16, #tpu.memory_space<vmem>>, vector<1x1x256x256xbf16>
    %15 = vector.shape_cast %14 : vector<1x1x256x256xbf16> to vector<256x256xbf16>
    %cst_15 = arith.constant dense<0.000000e+00> : vector<16x256xf32>
    %16 = tpu.matmul %13, %15, %cst_15 {dimension_numbers = #tpu.dot_dimension_numbers<[1], [0], [0], [1], [0, 0, 1, 1], [], []>} : vector<16x256xbf16>, vector<256x256xbf16>, vector<16x256xf32> -> vector<16x256xf32>
    %17 = arith.addf %12, %16 : vector<16x256xf32>
    %c0_16 = arith.constant 0 : index
    %c0_17 = arith.constant 0 : index
    %c0_18 = arith.constant 0 : index
    %c0_19 = arith.constant 0 : index
    %18 = vector.load %arg3[%c0_16, %c0_17, %c0_18, %c0_19] : memref<1x1x18x256xbf16, #tpu.memory_space<vmem>>, vector<1x1x18x256xbf16>
    %19 = vector.shape_cast %18 : vector<1x1x18x256xbf16> to vector<18x256xbf16>
    %20 = vector.extract_strided_slice %19 {offsets = [0, 0], sizes = [16, 256], strides = [1, 1]} : vector<18x256xbf16> to vector<16x256xbf16>
    %c1_20 = arith.constant 1 : index
    %c0_21 = arith.constant 0 : index
    %c0_22 = arith.constant 0 : index
    %c0_23 = arith.constant 0 : index
    %21 = vector.load %arg5[%c1_20, %c0_21, %c0_22, %c0_23] : memref<3x3x256x256xbf16, #tpu.memory_space<vmem>>, vector<1x1x256x256xbf16>
    %22 = vector.shape_cast %21 : vector<1x1x256x256xbf16> to vector<256x256xbf16>
    %cst_24 = arith.constant dense<0.000000e+00> : vector<16x256xf32>
    %23 = tpu.matmul %20, %22, %cst_24 {dimension_numbers = #tpu.dot_dimension_numbers<[1], [0], [0], [1], [0, 0, 1, 1], [], []>} : vector<16x256xbf16>, vector<256x256xbf16>, vector<16x256xf32> -> vector<16x256xf32>
    %24 = arith.addf %17, %23 : vector<16x256xf32>
    %25 = vector.extract_strided_slice %19 {offsets = [1, 0], sizes = [16, 256], strides = [1, 1]} : vector<18x256xbf16> to vector<16x256xbf16>
    %c1_25 = arith.constant 1 : index
    %c1_26 = arith.constant 1 : index
    %c0_27 = arith.constant 0 : index
    %c0_28 = arith.constant 0 : index
    %26 = vector.load %arg5[%c1_25, %c1_26, %c0_27, %c0_28] : memref<3x3x256x256xbf16, #tpu.memory_space<vmem>>, vector<1x1x256x256xbf16>
    %27 = vector.shape_cast %26 : vector<1x1x256x256xbf16> to vector<256x256xbf16>
    %cst_29 = arith.constant dense<0.000000e+00> : vector<16x256xf32>
    %28 = tpu.matmul %25, %27, %cst_29 {dimension_numbers = #tpu.dot_dimension_numbers<[1], [0], [0], [1], [0, 0, 1, 1], [], []>} : vector<16x256xbf16>, vector<256x256xbf16>, vector<16x256xf32> -> vector<16x256xf32>
    %29 = arith.addf %24, %28 : vector<16x256xf32>
    %30 = vector.extract_strided_slice %19 {offsets = [2, 0], sizes = [16, 256], strides = [1, 1]} : vector<18x256xbf16> to vector<16x256xbf16>
    %c1_30 = arith.constant 1 : index
    %c2_31 = arith.constant 2 : index
    %c0_32 = arith.constant 0 : index
    %c0_33 = arith.constant 0 : index
    %31 = vector.load %arg5[%c1_30, %c2_31, %c0_32, %c0_33] : memref<3x3x256x256xbf16, #tpu.memory_space<vmem>>, vector<1x1x256x256xbf16>
    %32 = vector.shape_cast %31 : vector<1x1x256x256xbf16> to vector<256x256xbf16>
    %cst_34 = arith.constant dense<0.000000e+00> : vector<16x256xf32>
    %33 = tpu.matmul %30, %32, %cst_34 {dimension_numbers = #tpu.dot_dimension_numbers<[1], [0], [0], [1], [0, 0, 1, 1], [], []>} : vector<16x256xbf16>, vector<256x256xbf16>, vector<16x256xf32> -> vector<16x256xf32>
    %34 = arith.addf %29, %33 : vector<16x256xf32>
    %c0_35 = arith.constant 0 : index
    %c0_36 = arith.constant 0 : index
    %c0_37 = arith.constant 0 : index
    %c0_38 = arith.constant 0 : index
    %35 = vector.load %arg4[%c0_35, %c0_36, %c0_37, %c0_38] : memref<1x1x18x256xbf16, #tpu.memory_space<vmem>>, vector<1x1x18x256xbf16>
    %36 = vector.shape_cast %35 : vector<1x1x18x256xbf16> to vector<18x256xbf16>
    %37 = vector.extract_strided_slice %36 {offsets = [0, 0], sizes = [16, 256], strides = [1, 1]} : vector<18x256xbf16> to vector<16x256xbf16>
    %c2_39 = arith.constant 2 : index
    %c0_40 = arith.constant 0 : index
    %c0_41 = arith.constant 0 : index
    %c0_42 = arith.constant 0 : index
    %38 = vector.load %arg5[%c2_39, %c0_40, %c0_41, %c0_42] : memref<3x3x256x256xbf16, #tpu.memory_space<vmem>>, vector<1x1x256x256xbf16>
    %39 = vector.shape_cast %38 : vector<1x1x256x256xbf16> to vector<256x256xbf16>
    %cst_43 = arith.constant dense<0.000000e+00> : vector<16x256xf32>
    %40 = tpu.matmul %37, %39, %cst_43 {dimension_numbers = #tpu.dot_dimension_numbers<[1], [0], [0], [1], [0, 0, 1, 1], [], []>} : vector<16x256xbf16>, vector<256x256xbf16>, vector<16x256xf32> -> vector<16x256xf32>
    %41 = arith.addf %34, %40 : vector<16x256xf32>
    %42 = vector.extract_strided_slice %36 {offsets = [1, 0], sizes = [16, 256], strides = [1, 1]} : vector<18x256xbf16> to vector<16x256xbf16>
    %c2_44 = arith.constant 2 : index
    %c1_45 = arith.constant 1 : index
    %c0_46 = arith.constant 0 : index
    %c0_47 = arith.constant 0 : index
    %43 = vector.load %arg5[%c2_44, %c1_45, %c0_46, %c0_47] : memref<3x3x256x256xbf16, #tpu.memory_space<vmem>>, vector<1x1x256x256xbf16>
    %44 = vector.shape_cast %43 : vector<1x1x256x256xbf16> to vector<256x256xbf16>
    %cst_48 = arith.constant dense<0.000000e+00> : vector<16x256xf32>
    %45 = tpu.matmul %42, %44, %cst_48 {dimension_numbers = #tpu.dot_dimension_numbers<[1], [0], [0], [1], [0, 0, 1, 1], [], []>} : vector<16x256xbf16>, vector<256x256xbf16>, vector<16x256xf32> -> vector<16x256xf32>
    %46 = arith.addf %41, %45 : vector<16x256xf32>
    %47 = vector.extract_strided_slice %36 {offsets = [2, 0], sizes = [16, 256], strides = [1, 1]} : vector<18x256xbf16> to vector<16x256xbf16>
    %c2_49 = arith.constant 2 : index
    %c2_50 = arith.constant 2 : index
    %c0_51 = arith.constant 0 : index
    %c0_52 = arith.constant 0 : index
    %48 = vector.load %arg5[%c2_49, %c2_50, %c0_51, %c0_52] : memref<3x3x256x256xbf16, #tpu.memory_space<vmem>>, vector<1x1x256x256xbf16>
    %49 = vector.shape_cast %48 : vector<1x1x256x256xbf16> to vector<256x256xbf16>
    %cst_53 = arith.constant dense<0.000000e+00> : vector<16x256xf32>
    %50 = tpu.matmul %47, %49, %cst_53 {dimension_numbers = #tpu.dot_dimension_numbers<[1], [0], [0], [1], [0, 0, 1, 1], [], []>} : vector<16x256xbf16>, vector<256x256xbf16>, vector<16x256xf32> -> vector<16x256xf32>
    %51 = arith.addf %46, %50 : vector<16x256xf32>
    %c0_54 = arith.constant 0 : index
    %c0_55 = arith.constant 0 : index
    %52 = vector.load %arg6[%c0_54, %c0_55] : memref<1x256xf32, #tpu.memory_space<vmem>>, vector<1x256xf32>
    %53 = vector.broadcast %52 : vector<1x256xf32> to vector<16x256xf32>
    %54 = arith.addf %51, %53 : vector<16x256xf32>
    %c0_56 = arith.constant 0 : index
    %c0_57 = arith.constant 0 : index
    %c0_58 = arith.constant 0 : index
    %c0_59 = arith.constant 0 : index
    %55 = vector.load %arg7[%c0_56, %c0_57, %c0_58, %c0_59] : memref<1x1x16x256xf32, #tpu.memory_space<vmem>>, vector<1x1x16x256xf32>
    %56 = vector.shape_cast %55 : vector<1x1x16x256xf32> to vector<16x256xf32>
    %57 = vector.shape_cast %54 : vector<16x256xf32> to vector<1x1x16x256xf32>
    tpu.vector_store %arg7[%c0_56, %c0_57, %c0_58, %c0_59], %57 {strides = array<i32>} : memref<1x1x16x256xf32, #tpu.memory_space<vmem>>, vector<1x1x16x256xf32>,
    return
  }
  func.func @transform_0(%arg0: i32, %arg1: i32) -> (i32, i32, i32, i32) {
    %c0_i32 = arith.constant 0 : i32
    %c0_i32_0 = arith.constant 0 : i32
    %c0_i32_1 = arith.constant 0 : i32
    return %arg0, %arg1, %c0_i32, %c0_i32_0 : i32, i32, i32, i32
  }
  func.func @transform_1(%arg0: i32, %arg1: i32) -> (i32, i32, i32, i32) {
    %c1_i32 = arith.constant 1 : i32
    %0 = arith.addi %arg1, %c1_i32 : i32
    %c0_i32 = arith.constant 0 : i32
    %c0_i32_0 = arith.constant 0 : i32
    %c0_i32_1 = arith.constant 0 : i32
    return %arg0, %0, %c0_i32, %c0_i32_0 : i32, i32, i32, i32
  }
  func.func @transform_2(%arg0: i32, %arg1: i32) -> (i32, i32, i32, i32) {
    %c2_i32 = arith.constant 2 : i32
    %0 = arith.addi %arg1, %c2_i32 : i32
    %c0_i32 = arith.constant 0 : i32
    %c0_i32_0 = arith.constant 0 : i32
    %c0_i32_1 = arith.constant 0 : i32
    return %arg0, %0, %c0_i32, %c0_i32_0 : i32, i32, i32, i32
  }
  func.func @transform_3(%arg0: i32, %arg1: i32) -> (i32, i32, i32, i32) {
    %c0_i32 = arith.constant 0 : i32
    %c0_i32_0 = arith.constant 0 : i32
    %c0_i32_1 = arith.constant 0 : i32
    %c0_i32_2 = arith.constant 0 : i32
    %c0_i32_3 = arith.constant 0 : i32
    return %c0_i32, %c0_i32_0, %c0_i32_1, %c0_i32_2 : i32, i32, i32, i32
  }
  func.func @transform_4(%arg0: i32, %arg1: i32) -> (i32, i32) {
    %c0_i32 = arith.constant 0 : i32
    %c0_i32_0 = arith.constant 0 : i32
    %c0_i32_1 = arith.constant 0 : i32
    return %c0_i32, %c0_i32_0 : i32, i32
  }
  func.func @transform_5(%arg0: i32, %arg1: i32) -> (i32, i32, i32, i32) {
    %c0_i32 = arith.constant 0 : i32
    %c0_i32_0 = arith.constant 0 : i32
    %c0_i32_1 = arith.constant 0 : i32
    return %arg0, %arg1, %c0_i32, %c0_i32_0 : i32, i32, i32, i32
  }
}

</mosaic_0001>

<bundles_post_ra>
// kernel: fpn_forward.10
= control target key start
LH: loop header
LB: loop body
LE: loop exit
PB: predicated region body
PF: predicated region fallthrough
CT: control target
= control target key end

     0   :  { %s1862_s0 = inlined_call_operand.vmem [shape: s32[8], index: 0, kind: input, shape index: {}]   ;;  %s1863_s2 = inlined_call_operand.vmem [shape: f32[2,4,4,256], index: 2, kind: input, shape index: {}, may-alias: {2,3}]   ;;  %s1864_s3 = inlined_call_operand.vmem [shape: f32[2,4,4,256], index: 3, kind: input, shape index: {}, may-alias: {2,3}]   ;;  %s1865_s4 = inlined_call_operand.vmem [shape: f32[2,8,8,512], index: 4, kind: input, shape index: {}]   ;;  %s1866_s5 = inlined_call_operand.vmem [shape: bf16[512,256], index: 5, kind: input, shape index: {}]   ;;  %s1867_s6 = inlined_call_operand.vmem [shape: f32[1,256], index: 6, kind: input, shape index: {}]   ;;  %s1868_s7 = inlined_call_operand.vmem [shape: f32[2,8], index: 7, kind: input, shape index: {}]   ;;  %s1869_s8 = inlined_call_operand.vmem [shape: bf16[8,4], index: 8, kind: input, shape index: {}]   ;;  %s1870_s9 = inlined_call_operand.vmem [shape: bf16[2,8,8,256], index: 9, kind: output, shape index: {}]   ;;  %s1871_s1 = inlined_call_operand.vmem [shape: s32[8], index: 1, kind: input, shape index: {}]  }
   0x1   :  { %1872 = sst [smem:[#allocation11_spill]] %s1868_s7  ;;  %s14_s11 = sshll.u32 %s1862_s0, 4  ;;  %s15_s11 = int_to_ptr.vmem [resolvable:$true] %s14_s11 }
   0x2   :  { %s18_s14 = sshll.u32 %s1871_s1, 4  ;;  %s1393_s15 = scalar_lea.vmem %s15_s11, 16  ;;  %s19_s14 = int_to_ptr.vmem [resolvable:$true] %s18_s14 }
   0x3   :  { %p1394_p0 = scmp.ne.s32.totalorder %s15_s11, %s1393_s15  ;;  %p1398_p1 = scmp.lt.s32.totalorder %s15_s11, %s15_s11 }
   0x4   :  { %p1399_p2 = scmp.lt.s32.totalorder %s1393_s15, %s1393_s15 }
   0x6   :  { %p1400_p3 = por %p1399_p2, %p1398_p1 }
   0x8   :  { %p1401_p4 = pnand %p1400_p3, %p1394_p0 }
   0xa   :  { %1404 = shalt.err (!%p1401_p4)  }
   0xb   :  { %s1478_s16 = smov [#allocation3]   ;;  %s1405_s17 = scalar_lea.vmem %s19_s14, 16 }
   0xc   :  { %17 = dma.vmem_to_smem %s15_s11, 16, %s1478_s16, [#allocation2] }
   0xd   :  { %p1406_p5 = scmp.ne.s32.totalorder %s19_s14, %s1405_s17  ;;  %p1410_p6 = scmp.lt.s32.totalorder %s19_s14, %s19_s14 }
   0xe   :  { %p1411_p7 = scmp.lt.s32.totalorder %s1405_s17, %s1405_s17 }
  0x10   :  { %p1412_p8 = por %p1411_p7, %p1410_p6 }
  0x12   :  { %p1413_p9 = pnand %p1412_p8, %p1406_p5 }
  0x14   :  { %1416 = shalt.err (!%p1413_p9)  }
  0x15   :  { %s1479_s0 = smov [#allocation4]  }
  0x16   :  { %21 = dma.vmem_to_smem %s19_s14, 16, %s1479_s0, [#allocation2] }
  0x17   :  { %1452 = dma.done.wait [#allocation2], 32 }
  0x18   :  { %1453 = vsyncadd [#allocation2], 4294967264 }
  0x19   :  { %23 = sfence }
  0x1a   :  { %24 = vsyncpa [#allocation6], 0  ;;  %s1538_s1 = smov 0   ;;  %s1540_s18 = smov 0  }
  0x1b   :  { %s1542_s19 = smov 0   ;;  %s1544_s20 = smov 0  }
  0x1c   :  { %s1546_s21 = smov 0  }
  0x1d LB: > { %s1143_s22 = sadd.s32 4294967295, %s1476_s21   ;;  %s39_s23 = sadd.s32 1, %s1468_s19  ;;  %s1476_s21 = sphi %s1546_s21, %s30_s21   ;;  %s1472_s20 = sphi %s1544_s20, %s1883_s20   ;;  %s1468_s19 = sphi %s1542_s19, %s1882_s19   ;;  %s1464_s18 = sphi %s1540_s18, %s1881_s18   ;;  %s1460_s1 = sphi %s1538_s1, %s1880_s1  }
  0x1e   : > { %p40_p10 = scmp.ge.s32.totalorder %s39_s23, 8  ;;  %s42_s24 = sadd.s32 1, %s1472_s20 }
  0x1f   : > { %p1145_p11 = scmp.ge.s32.totalorder %s1476_s21, 1  ;;  %p247_p12 = scmp.lt.s32.totalorder %s1476_s21, 17 }
  0x20   : > { %s1885_s23 = smov (%p40_p10, %s39_s23), 0  ;;  %s1887_s24 = smov (!%p40_p10, %s42_s24), %s1472_s20 }
  0x21   : > { %1873 = sst [smem:[#allocation9_spill]] %s1885_s23  ;;  %p1571_p13 = pnand %p1145_p11, %p247_p12 }
  0x22   : > { %p44_p0 = scmp.ge.s32.totalorder %s1887_s24, 2  ;;  %p1575_p1 = scmp.eq.s32.totalorder %s1143_s22, 0 }
  0x23   : > { %p1247_p2 = pneg %p1571_p13  ;;  %s1876_s7 = sld [smem:[#allocation11_spill]] }
  0x24   : > { %s1889_s24 = smov (%p44_p0, %s1887_s24), 0 }
  0x25   : > { %1877 = sst [smem:[#allocation10_spill]] %s1889_s24  ;;  %p1248_p3 = pnand %p1575_p1, %p1247_p2 }
  0x27   : > { %p1419_p5 = pneg %p1248_p3 }
  0x29   : > { %s266_s29 = sshll.u32 %s1876_s7, 4  ;;  %s267_s29 = int_to_ptr.vmem [resolvable:$true] %s266_s29 }
  0x2a   : > { %s1417_s30 = scalar_lea.vmem %s267_s29, 32  ;;  %p1425_p8 = scmp.lt.s32.totalorder %s267_s29, %s267_s29 }
  0x2b   : > { %p1418_p4 = scmp.ne.s32.totalorder %s267_s29, %s1417_s30  ;;  %p1426_p9 = scmp.lt.s32.totalorder %s1417_s30, %s1417_s30 }
  0x2d   : > { %p1420_p6 = pnand %p1419_p5, %p1418_p4  ;;  %p1427_p10 = por %p1426_p9, %p1425_p8 }
  0x2f   : > { %p1421_p7 = pneg %p1420_p6 }
  0x31   : > { %p1428_p11 = pnand %p1427_p10, %p1421_p7 }
  0x33   : > { %1431 = shalt.err (!%p1428_p11)
}
  0x34   : > { %s1480_s10 = smov [#allocation5]   ;;  %322 = sbr.rel (%p1571_p13) target bundleno = 357 (0x165), region = 48 }
  0x35   : > { %1250 = dma.vmem_to_smem (!%p1248_p3), %s267_s29, 32, %s1480_s10, [#allocation6]  }
  0x3b   : > { %1455 = dma.done.wait (%p1575_p1), [#allocation6], 32  }
  0x3c   : > { %1457 = vsyncadd (%p1575_p1), [#allocation6], 4294967264 }
  0x3d   : > { %328 = sfence }
  0x3e   : > { %v1297_v0 = vld [vmem:[%s1866_s5 + $0x104] ss:$8 sps:$4 sm:$0xff]   ;;  %v1299_v1 = vld [vmem:[%s1866_s5 + $0x100] ss:$8 sps:$4 sm:$0xff]   ;;  %v1300_v2 = vld [vmem:[%s1866_s5 + $0x114] ss:$8 sps:$4 sm:$0xff]  }
  0x3f   : > { %891 = vmatprep.subr.bf16.mxu0 %v1297_v0  ;;  %v1302_v3 = vld [vmem:[%s1866_s5 + $0x110] ss:$8 sps:$4 sm:$0xff]   ;;  %v1303_v4 = vld [vmem:[%s1866_s5 + $0x4] ss:$8 sps:$4 sm:$0xff]   ;;  %v1307_v6 = vld [vmem:[%s1866_s5] ss:$8 sps:$4 sm:$0xff]  }
  0x40   : > { %892 = vmatpush1.bf16.msra.mxu0 %v1299_v1  ;;  %v1305_v5 = vld [vmem:[%s1866_s5 + $0x124] ss:$8 sps:$4 sm:$0xff]   ;;  %850 = vmatprep.subr.bf16.mxu1 %v1303_v4  ;;  %v1309_v7 = vld [vmem:[%s1866_s5 + $0x14] ss:$8 sps:$4 sm:$0xff]   ;;  %v1308_v8 = vld [vmem:[%s1866_s5 + $0x120] ss:$8 sps:$4 sm:$0xff]  }
  0x41   : > { %893 = vmatprep.subr.bf16.mxu0 %v1300_v2  ;;  %851 = vmatpush1.bf16.msra.mxu1 %v1307_v6  ;;  %v1311_v9 = vld [vmem:[%s1866_s5 + $0x134] ss:$8 sps:$4 sm:$0xff]   ;;  %v1313_v10 = vld [vmem:[%s1866_s5 + $0x10] ss:$8 sps:$4 sm:$0xff]   ;;  %v1315_v11 = vld [vmem:[%s1866_s5 + $0x24] ss:$8 sps:$4 sm:$0xff]  }
  0x42   : > { %852 = vmatprep.subr.bf16.mxu1 %v1309_v7  ;;  %v1314_v12 = vld [vmem:[%s1866_s5 + $0x130] ss:$8 sps:$4 sm:$0xff]   ;;  %v1319_v13 = vld [vmem:[%s1866_s5 + $0x20] ss:$8 sps:$4 sm:$0xff]   ;;  %v1321_v14 = vld [vmem:[%s1866_s5 + $0x34] ss:$8 sps:$4 sm:$0xff]  }
  0x43   : > { %v1317_v15 = vld [vmem:[%s1866_s5 + $0x144] ss:$8 sps:$4 sm:$0xff]   ;;  %v1325_v16 = vld [vmem:[%s1866_s5 + $0x30] ss:$8 sps:$4 sm:$0xff]   ;;  %s1646_s13 = sld [smem:[#allocation3 + %s1460_s1]]  ;;  %p384_p12 = scmp.lt.s32.totalorder %s1464_s18, 1 }
  0x44   : > { %894 = vmatpush1.bf16.msra.mxu0 %v1302_v3  ;;  %v1320_v17 = vld [vmem:[%s1866_s5 + $0x140] ss:$8 sps:$4 sm:$0xff]   ;;  %v1327_v18 = vld [vmem:[%s1866_s5 + $0x44] ss:$8 sps:$4 sm:$0xff]   ;;  %s1655_s0 = sld [smem:[#allocation4 + %s1460_s1]]  ;;  %p407_p13 = scmp.lt.s32.totalorder %s1460_s1, 7 }
  0x45   : > { %895 = vmatprep.subr.bf16.mxu0 %v1305_v5  ;;  %853 = vmatpush1.bf16.msra.mxu1 %v1313_v10  ;;  %v1323_v19 = vld [vmem:[%s1866_s5 + $0x154] ss:$8 sps:$4 sm:$0xff]   ;;  %v1326_v20 = vld [vmem:[%s1866_s5 + $0x150] ss:$8 sps:$4 sm:$0xff]   ;;  %v1331_v21 = vld [vmem:[%s1866_s5 + $0x40] ss:$8 sps:$4 sm:$0xff]  }
  0x46   : > { %854 = vmatprep.subr.bf16.mxu1 %v1315_v11  ;;  %v1333_v22 = vld [vmem:[%s1866_s5 + $0x54] ss:$8 sps:$4 sm:$0xff]   ;;  %v1329_v23 = vld [vmem:[%s1866_s5 + $0x164] ss:$8 sps:$4 sm:$0xff]   ;;  %s1891_s18 = smov (!%p384_p12, %s1464_s18), 1  ;;  %s425_s10 = sshra.s32 %s1460_s1, 7 }
  0x47   : > { %s1678_s14 = scalar_select %p407_p13, %s1460_s1, 7  ;;  %v1337_v24 = vld [vmem:[%s1866_s5 + $0x50] ss:$8 sps:$4 sm:$0xff]   ;;  %v1332_v25 = vld [vmem:[%s1866_s5 + $0x160] ss:$8 sps:$4 sm:$0xff]   ;;  %vm936_vm0 = vcmask 1041408  }
  0x48   : > { %896 = vmatpush1.bf16.msra.mxu0 %v1308_v8  ;;  %v1339_v26 = vld [vmem:[%s1866_s5 + $0x64] ss:$8 sps:$4 sm:$0xff]   ;;  %v1335_v27 = vld [vmem:[%s1866_s5 + $0x174] ss:$8 sps:$4 sm:$0xff]   ;;  %s1157_s29 = sshll.u32 %s1891_s18, 5  ;;  %s1232_s27 = sshll.u32 %s425_s10, 7 }
  0x49   : > { %897 = vmatprep.subr.bf16.mxu0 %v1311_v9  ;;  %855 = vmatpush1.bf16.msra.mxu1 %v1319_v13  ;;  %p386_p0 = scmp.lt.s32.totalorder %s1646_s13, 3  ;;  %s1156_s30 = sshll.u32 %s1678_s14, 2  ;;  %v1338_v28 = vld [vmem:[%s1866_s5 + $0x170] ss:$8 sps:$4 sm:$0xff]   ;;  %v1343_v29 = vld [vmem:[%s1866_s5 + $0x60] ss:$8 sps:$4 sm:$0xff]  }
  0x4a   : > { %856 = vmatprep.subr.bf16.mxu1 %v1321_v14  ;;  %p397_p1 = scmp.lt.s32.totalorder %s1655_s0, 3  ;;  %v1345_v30 = vld [vmem:[%s1866_s5 + $0x74] ss:$8 sps:$4 sm:$0xff]   ;;  %v1341_v31 = vld [vmem:[%s1866_s5 + $0x184] ss:$8 sps:$4 sm:$0xff]   ;;  %s411_s12 = sadd.s32 %s1157_s29, %s1156_s30  ;;  %vm932_vm1 = vcmask 31744  }
  0x4b   : > { %s1893_s13 = smov (!%p386_p0, %s1646_s13), 3  ;;  %v1349_v32 = vld [vmem:[%s1866_s5 + $0x70] ss:$8 sps:$4 sm:$0xff]   ;;  %s1151_s15 = sshll.u32 %s1891_s18, 3  ;;  %v1344_v33 = vld [vmem:[%s1866_s5 + $0x180] ss:$8 sps:$4 sm:$0xff]  }
  0x4c   : > { %898 = vmatpush1.bf16.msra.mxu0 %v1314_v12  ;;  %s1895_s0 = smov (!%p397_p1, %s1655_s0), 3  ;;  %v1351_v34 = vld [vmem:[%s1866_s5 + $0x84] ss:$8 sps:$4 sm:$0xff]   ;;  %s1233_s25 = sadd.s32 128, %s1232_s27  ;;  %v1347_v35 = vld [vmem:[%s1866_s5 + $0x194] ss:$8 sps:$4 sm:$0xff]  }
  0x4d   : > { %899 = vmatprep.subr.bf16.mxu0 %v1317_v15  ;;  %857 = vmatpush1.bf16.msra.mxu1 %v1325_v16  ;;  %s430_s26 = sand.u32 127, %s1460_s1  ;;  %s1150_s29 = sshll.u32 %s1893_s13, 1  ;;  %v1350_v36 = vld [vmem:[%s1866_s5 + $0x190] ss:$8 sps:$4 sm:$0xff]   ;;  %v1355_v37 = vld [vmem:[%s1866_s5 + $0x80] ss:$8 sps:$4 sm:$0xff]  }
  0x4e   : > { %858 = vmatprep.subr.bf16.mxu1 %v1327_v18  ;;  %s1153_s30 = sshll.u32 %s1895_s0, 1  ;;  %s1158_s17 = sshll.u32 %s411_s12, 3  ;;  %v1357_v38 = vld [vmem:[%s1866_s5 + $0x94] ss:$8 sps:$4 sm:$0xff]   ;;  %v1353_v39 = vld [vmem:[%s1866_s5 + $0x1a4] ss:$8 sps:$4 sm:$0xff]  }
  0x4f   : > { %s431_s27 = sadd.s32 %s1233_s25, %s430_s26  ;;  %s390_s24 = sadd.s32 %s1151_s15, %s1150_s29  ;;  %v1361_v40 = vld [vmem:[%s1866_s5 + $0x90] ss:$8 sps:$4 sm:$0xff]   ;;  %v1356_v41 = vld [vmem:[%s1866_s5 + $0x1a0] ss:$8 sps:$4 sm:$0xff]   ;;  %v1359_v42 = vld [vmem:[%s1866_s5 + $0x1b4] ss:$8 sps:$4 sm:$0xff]  }
  0x50   : > { %900 = vmatpush1.bf16.msra.mxu0 %v1320_v17  ;;  %s401_s13 = sadd.s32 %s1153_s30, %s1151_s15  ;;  %s1743_s28 = sld [smem:[#allocation5 + %s1460_s1]]  ;;  %v1363_v43 = vld [vmem:[%s1866_s5 + $0xa4] ss:$8 sps:$4 sm:$0xff]   ;;  %v1367_v46 = vld [vmem:[%s1866_s5 + $0xa0] ss:$8 sps:$4 sm:$0xff]  }
  0x51   : > { %901 = vmatprep.subr.bf16.mxu0 %v1323_v19  ;;  %859 = vmatpush1.bf16.msra.mxu1 %v1331_v21  ;;  %s1748_s12 = scalar_lea.vmem %s1865_s4, %s1158_s17  ;;  %s1750_s25 = sld [smem:[#allocation5 + %s431_s27]]  ;;  %v1362_v47 = vld [vmem:[%s1866_s5 + $0x1b0] ss:$8 sps:$4 sm:$0xff]   ;;  %v1369_v48 = vld [vmem:[%s1866_s5 + $0xb4] ss:$8 sps:$4 sm:$0xff]   ;;  %v1481_v19 = vmov 0   ;;  %v520_v21 = vlaneseq }
  0x52   : > { %860 = vmatprep.subr.bf16.mxu1 %v1333_v22  ;;  %s1152_s15 = sshll.u32 %s390_s24, 2  ;;  %s1155_s29 = sshll.u32 %s401_s13, 2  ;;  %v449_v44 = vld [vmem:[%s1748_s12 + $0x18] sm:$0xff]  ;;  %v1365_v49 = vld [vmem:[%s1866_s5 + $0x1c4] ss:$8 sps:$4 sm:$0xff]   ;;  %v448_v10 = vld [vmem:[%s1748_s12 + $0x10] sm:$0xff] }
  0x53   : > { %v453_v45 = vpack.c.bf16 %v449_v44, %v449_v44  ;;  %s392_s11 = scalar_lea.vmem %s1863_s2, %s1152_s15  ;;  %s403_s26 = scalar_lea.vmem %s1864_s3, %s1155_s29  ;;  %v447_v50 = vld [vmem:[%s1748_s12 + $0x8] sm:$0xff]  ;;  %v1373_v56 = vld [vmem:[%s1866_s5 + $0xb0] ss:$8 sps:$4 sm:$0xff]   ;;  %v1371_v59 = vld [vmem:[%s1866_s5 + $0x1d4] ss:$8 sps:$4 sm:$0xff]   ;;  %v452_v14 = vpack.c.bf16 %v448_v10, %v448_v10  ;;  %v521_v22 = vshrl.u32 %v520_v21, 7 }
  0x54   : > { %902 = vmatpush1.bf16.msra.mxu0 %v1326_v20  ;;  %v433_v51 = vld [vmem:[%s392_s11] sm:$0xff]  ;;  %v451_v55 = vpack.c.bf16 %v447_v50, %v447_v50  ;;  %v1374_v63 = vld [vmem:[%s1866_s5 + $0x1d0] ss:$8 sps:$4 sm:$0xff]   ;;  %v1381_v0 = vld [vmem:[%s1866_s5 + $0xd4] ss:$8 sps:$4 sm:$0xff]   ;;  %s1159_s27 = sshll.u32 %s1678_s14, 1 }
  0x55   : > { %903 = vmatprep.subr.bf16.mxu0 %v1329_v23  ;;  %861 = vmatpush1.bf16.msra.mxu1 %v1337_v24  ;;  %v436_v53 = vld [vmem:[%s403_s26] sm:$0xff]  ;;  %v1385_v3 = vld [vmem:[%s1866_s5 + $0xd0] ss:$8 sps:$4 sm:$0xff]   ;;  %v1383_v6 = vld [vmem:[%s1866_s5 + $0x1f4] ss:$8 sps:$4 sm:$0xff]   ;;  %v522_v23 = vsub.s32 0, %v521_v22 }
  0x56   : > { %862 = vmatprep.subr.bf16.mxu1 %v1339_v26  ;;  %923 = vmatprep.mubr.bf16.mxu0 %v453_v45  ;;  %v434_v52 = vstv %s1743_s28  ;;  %v1368_v57 = vld [vmem:[%s1866_s5 + $0x1c0] ss:$8 sps:$4 sm:$0xff]   ;;  %v1375_v58 = vld [vmem:[%s1866_s5 + $0xc4] ss:$8 sps:$4 sm:$0xff]   ;;  %v1386_v9 = vld [vmem:[%s1866_s5 + $0x1f0] ss:$8 sps:$4 sm:$0xff]  }
  0x57   : > { %v437_v54 = vstv %s1750_s25  ;;  %v435_v60 = vmul.f32 %v434_v52, %v433_v51  ;;  %882 = vmatprep.mubr.bf16.mxu1 %v451_v55  ;;  %v1379_v62 = vld [vmem:[%s1866_s5 + $0xc0] ss:$8 sps:$4 sm:$0xff]   ;;  %v1377_v1 = vld [vmem:[%s1866_s5 + $0x1e4] ss:$8 sps:$4 sm:$0xff]   ;;  %v1390_v11 = vld [vmem:[%s1866_s5 + $0xf4] ss:$8 sps:$4 sm:$0xff]  }
  0x58   : > { %904 = vmatpush1.bf16.msra.mxu0 %v1332_v25  ;;  %v438_v61 = vmul.f32 %v437_v54, %v436_v53  ;;  %v1380_v4 = vld [vmem:[%s1866_s5 + $0x1e0] ss:$8 sps:$4 sm:$0xff]   ;;  %v1387_v5 = vld [vmem:[%s1866_s5 + $0xe4] ss:$8 sps:$4 sm:$0xff]   ;;  %v1392_v15 = vld [vmem:[%s1866_s5 + $0xf0] ss:$8 sps:$4 sm:$0xff]  }
  0x59   : > { %905 = vmatprep.subr.bf16.mxu0 %v1335_v27  ;;  %863 = vmatpush1.bf16.msra.mxu1 %v1343_v29  ;;  %v1389_v8 = vld [vmem:[%s1866_s5 + $0xe0] ss:$8 sps:$4 sm:$0xff]   ;;  %v526_v25 = vsub.s32 1, %v521_v22  ;;  %s1160_s15 = sshll.u32 %s1891_s18, 4 }
  0x5a   : > { %864 = vmatprep.subr.bf16.mxu1 %v1345_v30  ;;  %v439_v2 = vadd.f32 %v438_v61, %v435_v60  ;;  %v446_v16 = vld [vmem:[%s1748_s12] sm:$0xff]  ;;  %s420_s29 = sadd.s32 %s1160_s15, %s1159_s27 }
  0x5b   : > { %v450_v18 = vpack.c.bf16 %v446_v16, %v446_v16  ;;  %v445_v20 = vld [vmem:[%s1869_s8] sm:$0xf]  ;;  %s1161_s24 = sshll.u32 %s420_s29, 2 }
  0x5c   : > { %906 = vmatpush1.bf16.msra.mxu0 %v1338_v28  ;;  %v441_v7 = vcombine.high %v439_v2, %v439_v2  ;;  %v443_v13 = vpack.c.bf16 %v439_v2, %v439_v2  ;;  %v518_v24 = vld [vmem:[%s1867_s6] sm:$0x3]  ;;  %s422_s10 = scalar_lea.vmem %s1870_s9, %s1161_s24 }
  0x5d   : > { %907 = vmatprep.subr.bf16.mxu0 %v1341_v31  ;;  %865 = vmatpush1.bf16.msra.mxu1 %v1349_v32  ;;  %v523_v28 = vrot.slane %v518_v24, %v522_v23  ;;  %v527_v30 = vrot.slane %v518_v24, %v526_v25 }
  0x5e   : > { %866 = vmatprep.subr.bf16.mxu1 %v1351_v34  ;;  %v444_v12 = vpack.c.bf16 %v441_v7, %v441_v7  ;;  %v938_v17 = vsel %vm936_vm0, %v443_v13, 0 }
  0x60   : > { %908 = vmatpush1.bf16.msra.mxu0 %v1344_v33 }
  0x61   : > { %909 = vmatprep.subr.bf16.mxu0 %v1347_v35  ;;  %867 = vmatpush1.bf16.msra.mxu1 %v1355_v37 }
  0x62   : > { %868 = vmatprep.subr.bf16.mxu1 %v1357_v38 }
  0x64   : > { %910 = vmatpush1.bf16.msra.mxu0 %v1350_v36 }
  0x65   : > { %911 = vmatprep.subr.bf16.mxu0 %v1353_v39  ;;  %869 = vmatpush1.bf16.msra.mxu1 %v1361_v40 }
  0x66   : > { %870 = vmatprep.subr.bf16.mxu1 %v1363_v43 }
  0x68   : > { %912 = vmatpush1.bf16.msra.mxu0 %v1356_v41 }
  0x69   : > { %913 = vmatprep.subr.bf16.mxu0 %v1359_v42  ;;  %871 = vmatpush1.bf16.msra.mxu1 %v1367_v46 }
  0x6a   : > { %872 = vmatprep.subr.bf16.mxu1 %v1369_v48 }
  0x6c   : > { %914 = vmatpush1.bf16.msra.mxu0 %v1362_v47 }
  0x6d   : > { %915 = vmatprep.subr.bf16.mxu0 %v1365_v49  ;;  %873 = vmatpush1.bf16.msra.mxu1 %v1373_v56 }
  0x6e   : > { %874 = vmatprep.subr.bf16.mxu1 %v1375_v58 }
  0x70   : > { %916 = vmatpush1.bf16.msra.mxu0 %v1368_v57 }
  0x71   : > { %917 = vmatprep.subr.bf16.mxu0 %v1371_v59  ;;  %875 = vmatpush1.bf16.msra.mxu1 %v1379_v62 }
  0x72   : > { %876 = vmatprep.subr.bf16.mxu1 %v1381_v0 }
  0x74   : > { %918 = vmatpush1.bf16.msra.mxu0 %v1374_v63 }
  0x75   : > { %919 = vmatprep.subr.bf16.mxu0 %v1377_v1  ;;  %877 = vmatpush1.bf16.msra.mxu1 %v1385_v3 }
  0x76   : > { %878 = vmatprep.subr.bf16.mxu1 %v1387_v5 }
  0x78   : > { %920 = vmatpush1.bf16.msra.mxu0 %v1380_v4 }
  0x79   : > { %921 = vmatprep.subr.bf16.mxu0 %v1383_v6  ;;  %879 = vmatpush1.bf16.msra.mxu1 %v1389_v8 }
  0x7a   : > { %880 = vmatprep.subr.bf16.mxu1 %v1390_v11 }
  0x7c   : > { %922 = vmatpush1.bf16.msra.mxu0 %v1386_v9 }
  0x7d   : > { %1227 = vmatprep.subr.msk.bf16.mxu0 %vm936_vm0, %v444_v12  ;;  %881 = vmatpush1.bf16.msra.mxu1 %v1392_v15 }
  0x7f   : > { %924 = vmatmul.mubr.bf16.vlgmr.msra.gmra.mrb[0].mxu0 %v452_v14 }
  0x80   : > { %944 = vmatpush1.bf16.msra.mxu0 %v938_v17  ;;  %975 = vmatprep.mubr.bf16.mxu0 %v1481_v19 }
  0x81   : > { %883 = vmatmul.mubr.bf16.vlgmr.msra.gmra.mrb[0].mxu1 %v450_v18 }
  0x8b   : > { %1228 = vmatmul.mubr.msk.bf16.vlgmr.msra.gmra.mrb[0].mxu0 %vm932_vm1, %v445_v20 }
 0x154   : > { %v884_v26 = vpop.f32.mrb[0].mxu1 }
 0x155   : > { %v886_v27 = vpop.f32.mrb[1].mxu1  ;;  %v885_v32 = vadd.f32 %v884_v26, %v523_v28 }
 0x156   : > { %v888_v29 = vpop.f32.mrb[2].mxu1  ;;  %v887_v33 = vadd.f32 %v886_v27, %v527_v30 }
 0x157   : > { %v889_v31 = vpop.f32.mrb[3].mxu1 }
 0x15e   : > { %v977_v34 = vpop.f32.mrb[0].mxu0 }
 0x15f   : > { %v1236_v35 = vadd.f32 %v977_v34, %v885_v32  ;;  %v979_v36 = vpop.f32.mrb[1].mxu0 }
 0x160   : > { %v1238_v37 = vadd.f32 %v979_v36, %v887_v33  ;;  %v981_v38 = vpop.f32.mrb[2].mxu0 }
 0x161   : > { %v982_v39 = vpop.f32.mrb[3].mxu0 }
 0x162   : > { %v1234_v40 = vpack.c.bf16 %v1238_v37, %v1236_v35 }
 0x164   : > { %992 = vst [vmem:[%s422_s10] sm:$0xff] %v1234_v40 }
 0x165 PF: > { %s30_s21 = sadd.s32 1, %s1476_s21   ;;  %s1878_s14 = sld [smem:[#allocation9_spill]] }
 0x166   : > { %p27_p2 = scmp.ge.s32.totalorder %s30_s21, 18   ;;  %s1879_s28 = sld [smem:[#allocation10_spill]] }
 0x167   : > { %s1880_s1 = smov %s1468_s19  ;;  %s1881_s18 = smov %s1472_s20 }
 0x168   :  { %29 = sbr.rel (!%p27_p2) target bundleno = 29 (0x1d), region = 89 }
 0x16b   : > { %s1882_s19 = smov %s1878_s14 }
 0x16c   : > { %s1883_s20 = smov %s1879_s28 }
 0x16f   :  { %1022 = vsyncpa [#allocation6], 1 }
 0x170   :  { %1024 = vsyncpa [#allocation6 + $0x1], 1 }

// kernel: fpn_forward.7
= control target key start
LH: loop header
LB: loop body
LE: loop exit
PB: predicated region body
PF: predicated region fallthrough
CT: control target
= control target key end

     0   :  { %8 = vsyncpa [#allocation3], 0  ;;  %s1470_s0 = inlined_call_operand.vmem [shape: f32[8,1024], index: 0, kind: input, shape index: {}]   ;;  %s1471_s1 = inlined_call_operand.hbm [shape: bf16[1024,256], index: 1, kind: input, shape index: {}]   ;;  %s1472_s2 = inlined_call_operand.hbm [shape: f32[1,256], index: 2, kind: input, shape index: {}]   ;;  %s1473_s3 = inlined_call_operand.vmem [shape: f32[8,256], index: 3, kind: output, shape index: {}]  }
   0x1   :  { %9 = vsyncpa [#allocation5], 0  ;;  %s1392_s12 = smov [#allocation2]   ;;  %s1344_s16 = scalar_lea.hbm %s1471_s1, 16384 }
   0x2   :  { %s17_s13 = sshll.u32 %s1392_s12, 4  ;;  %p1345_p0 = scmp.ne.s32.totalorder %s1471_s1, %s1344_s16  ;;  %s18_s13 = int_to_ptr.vmem [resolvable:$true] %s17_s13 }
   0x3   :  { %p1348_p1 = scmp.lt.u32.totalorder %s1344_s16, %s1471_s1 }
   0x5   :  { %p1350_p2 = pnand %p1348_p1, %p1345_p0 }
   0x7   :  { %1353 = shalt.err (!%p1350_p2)
}
   0x8   :  { %s1354_s21 = scalar_lea.vmem %s18_s13, 16384  ;;  %p1359_p4 = scmp.lt.s32.totalorder %s18_s13, %s18_s13 }
   0x9   :  { %p1355_p3 = scmp.ne.s32.totalorder %s18_s13, %s1354_s21  ;;  %p1360_p5 = scmp.lt.s32.totalorder %s1354_s21, %s1354_s21 }
   0xb   :  { %p1361_p6 = por %p1360_p5, %p1359_p4 }
   0xd   :  { %p1362_p7 = pnand %p1361_p6, %p1355_p3 }
   0xf   :  { %1365 = shalt.err (!%p1362_p7)
}
  0x10   :  { %s1393_s22 = smov 128   ;;  %s1394_s23 = smov 8  }
  0x11   :  { %23 = dma.hbm_to_vmem [thread:$0]  %s1471_s1, 16384, %s18_s13, [#allocation3], %s1393_s22, %s1393_s22, %s1394_s23  }
  0x12   :  { %s1395_s26 = smov [#allocation4]   ;;  %s1366_s30 = scalar_lea.hbm %s1472_s2, 32 }
  0x13   :  { %s30_s27 = sshll.u32 %s1395_s26, 4  ;;  %p1367_p8 = scmp.ne.s32.totalorder %s1472_s2, %s1366_s30  ;;  %s31_s27 = int_to_ptr.vmem [resolvable:$true] %s30_s27 }
  0x14   :  { %p1370_p9 = scmp.lt.u32.totalorder %s1366_s30, %s1472_s2 }
  0x16   :  { %p1372_p10 = pnand %p1370_p9, %p1367_p8 }
  0x18   :  { %1375 = shalt.err (!%p1372_p10)
}
  0x19   :  { %s1376_s8 = scalar_lea.vmem %s31_s27, 32  ;;  %p1381_p12 = scmp.lt.s32.totalorder %s31_s27, %s31_s27 }
  0x1a   :  { %p1377_p11 = scmp.ne.s32.totalorder %s31_s27, %s1376_s8  ;;  %p1382_p13 = scmp.lt.s32.totalorder %s1376_s8, %s1376_s8 }
  0x1c   :  { %p1383_p0 = por %p1382_p13, %p1381_p12 }
  0x1e   :  { %p1384_p1 = pnand %p1383_p0, %p1377_p11 }
  0x20   :  { %1387 = shalt.err (!%p1384_p1)
}
  0x21   :  { %33 = dma.hbm_to_vmem [thread:$0]  %s1472_s2, 32, %s31_s27, [#allocation5]  }
  0x22   :  { %1388 = dma.done.wait [#allocation3], 16384  }
  0x23   :  { %1389 = vsyncadd [#allocation3], 4294950912 }
  0x24   :  { %1390 = dma.done.wait [#allocation5], 32  }
  0x25   :  { %1391 = vsyncadd [#allocation5], 4294967264  ;;  %v1152_v0 = vld [vmem:[#allocation2 + $0x4] ss:$8 sps:$4 sm:$0xff]   ;;  %v1156_v2 = vld [vmem:[#allocation2] ss:$8 sps:$4 sm:$0xff]  }
  0x26   :  { %v1154_v1 = vld [vmem:[#allocation2 + $0x204] ss:$8 sps:$4 sm:$0xff]   ;;  %836 = vmatprep.subr.bf16.mxu1 %v1152_v0  ;;  %v1157_v3 = vld [vmem:[#allocation2 + $0x200] ss:$8 sps:$4 sm:$0xff]   ;;  %v1158_v4 = vld [vmem:[#allocation2 + $0x14] ss:$8 sps:$4 sm:$0xff]  }
  0x27   :  { %918 = vmatprep.subr.bf16.mxu0 %v1154_v1  ;;  %837 = vmatpush1.bf16.msra.mxu1 %v1156_v2  ;;  %v1160_v5 = vld [vmem:[#allocation2 + $0x214] ss:$8 sps:$4 sm:$0xff]   ;;  %v1162_v6 = vld [vmem:[#allocation2 + $0x10] ss:$8 sps:$4 sm:$0xff]   ;;  %v1164_v8 = vld [vmem:[#allocation2 + $0x24] ss:$8 sps:$4 sm:$0xff]  }
  0x28   :  { %919 = vmatpush1.bf16.msra.mxu0 %v1157_v3  ;;  %838 = vmatprep.subr.bf16.mxu1 %v1158_v4  ;;  %v1163_v7 = vld [vmem:[#allocation2 + $0x210] ss:$8 sps:$4 sm:$0xff]   ;;  %v1166_v9 = vld [vmem:[#allocation2 + $0x224] ss:$8 sps:$4 sm:$0xff]   ;;  %v1168_v10 = vld [vmem:[#allocation2 + $0x20] ss:$8 sps:$4 sm:$0xff]  }
  0x29   :  { %920 = vmatprep.subr.bf16.mxu0 %v1160_v5  ;;  %v1169_v11 = vld [vmem:[#allocation2 + $0x220] ss:$8 sps:$4 sm:$0xff]   ;;  %v1170_v12 = vld [vmem:[#allocation2 + $0x34] ss:$8 sps:$4 sm:$0xff]   ;;  %v1174_v14 = vld [vmem:[#allocation2 + $0x30] ss:$8 sps:$4 sm:$0xff]  }
  0x2a   :  { %v1172_v13 = vld [vmem:[#allocation2 + $0x234] ss:$8 sps:$4 sm:$0xff]   ;;  %v1175_v15 = vld [vmem:[#allocation2 + $0x230] ss:$8 sps:$4 sm:$0xff]   ;;  %v1176_v16 = vld [vmem:[#allocation2 + $0x44] ss:$8 sps:$4 sm:$0xff]  }
  0x2b   :  { %839 = vmatpush1.bf16.msra.mxu1 %v1162_v6  ;;  %v1178_v17 = vld [vmem:[#allocation2 + $0x244] ss:$8 sps:$4 sm:$0xff]   ;;  %v1180_v18 = vld [vmem:[#allocation2 + $0x40] ss:$8 sps:$4 sm:$0xff]   ;;  %v1182_v20 = vld [vmem:[#allocation2 + $0x54] ss:$8 sps:$4 sm:$0xff]  }
  0x2c   :  { %921 = vmatpush1.bf16.msra.mxu0 %v1163_v7  ;;  %840 = vmatprep.subr.bf16.mxu1 %v1164_v8  ;;  %v1181_v19 = vld [vmem:[#allocation2 + $0x240] ss:$8 sps:$4 sm:$0xff]   ;;  %v1184_v21 = vld [vmem:[#allocation2 + $0x254] ss:$8 sps:$4 sm:$0xff]   ;;  %v1186_v22 = vld [vmem:[#allocation2 + $0x50] ss:$8 sps:$4 sm:$0xff]  }
  0x2d   :  { %922 = vmatprep.subr.bf16.mxu0 %v1166_v9  ;;  %v1187_v23 = vld [vmem:[#allocation2 + $0x250] ss:$8 sps:$4 sm:$0xff]   ;;  %v1188_v24 = vld [vmem:[#allocation2 + $0x64] ss:$8 sps:$4 sm:$0xff]   ;;  %v1192_v26 = vld [vmem:[#allocation2 + $0x60] ss:$8 sps:$4 sm:$0xff]  }
  0x2e   :  { %v1190_v25 = vld [vmem:[#allocation2 + $0x264] ss:$8 sps:$4 sm:$0xff]   ;;  %v1193_v27 = vld [vmem:[#allocation2 + $0x260] ss:$8 sps:$4 sm:$0xff]   ;;  %v1194_v28 = vld [vmem:[#allocation2 + $0x74] ss:$8 sps:$4 sm:$0xff]  }
  0x2f   :  { %841 = vmatpush1.bf16.msra.mxu1 %v1168_v10  ;;  %v1196_v29 = vld [vmem:[#allocation2 + $0x274] ss:$8 sps:$4 sm:$0xff]   ;;  %v1198_v30 = vld [vmem:[#allocation2 + $0x70] ss:$8 sps:$4 sm:$0xff]   ;;  %v1200_v32 = vld [vmem:[#allocation2 + $0x84] ss:$8 sps:$4 sm:$0xff]  }
  0x30   :  { %923 = vmatpush1.bf16.msra.mxu0 %v1169_v11  ;;  %842 = vmatprep.subr.bf16.mxu1 %v1170_v12  ;;  %v1199_v31 = vld [vmem:[#allocation2 + $0x270] ss:$8 sps:$4 sm:$0xff]   ;;  %v1202_v33 = vld [vmem:[#allocation2 + $0x284] ss:$8 sps:$4 sm:$0xff]   ;;  %v1204_v34 = vld [vmem:[#allocation2 + $0x80] ss:$8 sps:$4 sm:$0xff]  }
  0x31   :  { %924 = vmatprep.subr.bf16.mxu0 %v1172_v13  ;;  %v1205_v35 = vld [vmem:[#allocation2 + $0x280] ss:$8 sps:$4 sm:$0xff]   ;;  %v1206_v36 = vld [vmem:[#allocation2 + $0x94] ss:$8 sps:$4 sm:$0xff]   ;;  %v1210_v38 = vld [vmem:[#allocation2 + $0x90] ss:$8 sps:$4 sm:$0xff]  }
  0x32   :  { %v1208_v37 = vld [vmem:[#allocation2 + $0x294] ss:$8 sps:$4 sm:$0xff]   ;;  %v1211_v39 = vld [vmem:[#allocation2 + $0x290] ss:$8 sps:$4 sm:$0xff]   ;;  %v1212_v40 = vld [vmem:[#allocation2 + $0xa4] ss:$8 sps:$4 sm:$0xff]  }
  0x33   :  { %843 = vmatpush1.bf16.msra.mxu1 %v1174_v14  ;;  %v1214_v41 = vld [vmem:[#allocation2 + $0x2a4] ss:$8 sps:$4 sm:$0xff]   ;;  %v1216_v42 = vld [vmem:[#allocation2 + $0xa0] ss:$8 sps:$4 sm:$0xff]   ;;  %v1218_v44 = vld [vmem:[#allocation2 + $0xb4] ss:$8 sps:$4 sm:$0xff]  }
  0x34   :  { %925 = vmatpush1.bf16.msra.mxu0 %v1175_v15  ;;  %844 = vmatprep.subr.bf16.mxu1 %v1176_v16  ;;  %v1217_v43 = vld [vmem:[#allocation2 + $0x2a0] ss:$8 sps:$4 sm:$0xff]   ;;  %v1220_v45 = vld [vmem:[#allocation2 + $0x2b4] ss:$8 sps:$4 sm:$0xff]   ;;  %v1222_v47 = vld [vmem:[#allocation2 + $0xb0] ss:$8 sps:$4 sm:$0xff]  }
  0x35   :  { %926 = vmatprep.subr.bf16.mxu0 %v1178_v17  ;;  %v41_v46 = vld [vmem:[%s1470_s0 + $0x8] sm:$0xff]  ;;  %v1223_v49 = vld [vmem:[#allocation2 + $0x2b0] ss:$8 sps:$4 sm:$0xff]   ;;  %v1230_v56 = vld [vmem:[#allocation2 + $0xd4] ss:$8 sps:$4 sm:$0xff]  }
  0x36   :  { %v49_v48 = vpack.c.bf16 %v41_v46, %v41_v46  ;;  %v45_v50 = vld [vmem:[%s1470_s0 + $0x28] sm:$0xff]  ;;  %v1232_v57 = vld [vmem:[#allocation2 + $0x2d4] ss:$8 sps:$4 sm:$0xff]   ;;  %v1234_v58 = vld [vmem:[#allocation2 + $0xd0] ss:$8 sps:$4 sm:$0xff]  }
  0x37   :  { %845 = vmatpush1.bf16.msra.mxu1 %v1180_v18  ;;  %v1224_v51 = vld [vmem:[#allocation2 + $0xc4] ss:$8 sps:$4 sm:$0xff]   ;;  %v53_v53 = vpack.c.bf16 %v45_v50, %v45_v50  ;;  %v1228_v54 = vld [vmem:[#allocation2 + $0xc0] ss:$8 sps:$4 sm:$0xff]   ;;  %v1235_v59 = vld [vmem:[#allocation2 + $0x2d0] ss:$8 sps:$4 sm:$0xff]  }
  0x38   :  { %927 = vmatpush1.bf16.msra.mxu0 %v1181_v19  ;;  %846 = vmatprep.subr.bf16.mxu1 %v1182_v20  ;;  %v1226_v52 = vld [vmem:[#allocation2 + $0x2c4] ss:$8 sps:$4 sm:$0xff]   ;;  %v1229_v55 = vld [vmem:[#allocation2 + $0x2c0] ss:$8 sps:$4 sm:$0xff]   ;;  %v1242_v0 = vld [vmem:[#allocation2 + $0xf4] ss:$8 sps:$4 sm:$0xff]  }
  0x39   :  { %928 = vmatprep.subr.bf16.mxu0 %v1184_v21  ;;  %868 = vmatprep.mubr.bf16.mxu1 %v49_v48  ;;  %v1236_v60 = vld [vmem:[#allocation2 + $0xe4] ss:$8 sps:$4 sm:$0xff]   ;;  %v1240_v62 = vld [vmem:[#allocation2 + $0xe0] ss:$8 sps:$4 sm:$0xff]   ;;  %v1244_v1 = vld [vmem:[#allocation2 + $0x2f4] ss:$8 sps:$4 sm:$0xff]  }
  0x3a   :  { %950 = vmatprep.mubr.bf16.mxu0 %v53_v53  ;;  %v1238_v61 = vld [vmem:[#allocation2 + $0x2e4] ss:$8 sps:$4 sm:$0xff]   ;;  %v1241_v63 = vld [vmem:[#allocation2 + $0x2e0] ss:$8 sps:$4 sm:$0xff]   ;;  %v1246_v2 = vld [vmem:[#allocation2 + $0xf0] ss:$8 sps:$4 sm:$0xff]  }
  0x3b   :  { %847 = vmatpush1.bf16.msra.mxu1 %v1186_v22  ;;  %v1247_v3 = vld [vmem:[#allocation2 + $0x2f0] ss:$8 sps:$4 sm:$0xff]   ;;  %v1250_v4 = vld [vmem:[#allocation2 + $0x104] ss:$8 sps:$4 sm:$0xff]   ;;  %v1248_v8 = vld [vmem:[#allocation2 + $0x100] ss:$8 sps:$4 sm:$0xff]  }
  0x3c   :  { %929 = vmatpush1.bf16.msra.mxu0 %v1187_v23  ;;  %848 = vmatprep.subr.bf16.mxu1 %v1188_v24  ;;  %v40_v5 = vld [vmem:[%s1470_s0] sm:$0xff]  ;;  %v1256_v12 = vld [vmem:[#allocation2 + $0x114] ss:$8 sps:$4 sm:$0xff]   ;;  %v1254_v14 = vld [vmem:[#allocation2 + $0x110] ss:$8 sps:$4 sm:$0xff]  }
  0x3d   :  { %930 = vmatprep.subr.bf16.mxu0 %v1190_v25  ;;  %v44_v6 = vld [vmem:[%s1470_s0 + $0x20] sm:$0xff]  ;;  %v48_v10 = vpack.c.bf16 %v40_v5, %v40_v5  ;;  %v1259_v13 = vld [vmem:[#allocation2 + $0x314] ss:$8 sps:$4 sm:$0xff]   ;;  %v1257_v15 = vld [vmem:[#allocation2 + $0x310] ss:$8 sps:$4 sm:$0xff]  }
  0x3e   :  { %v1253_v7 = vld [vmem:[#allocation2 + $0x304] ss:$8 sps:$4 sm:$0xff]   ;;  %v1251_v9 = vld [vmem:[#allocation2 + $0x300] ss:$8 sps:$4 sm:$0xff]   ;;  %v52_v11 = vpack.c.bf16 %v44_v6, %v44_v6  ;;  %v1268_v20 = vld [vmem:[#allocation2 + $0x134] ss:$8 sps:$4 sm:$0xff]  }
  0x3f   :  { %849 = vmatpush1.bf16.msra.mxu1 %v1192_v26  ;;  %v1262_v16 = vld [vmem:[#allocation2 + $0x124] ss:$8 sps:$4 sm:$0xff]   ;;  %v1260_v18 = vld [vmem:[#allocation2 + $0x120] ss:$8 sps:$4 sm:$0xff]   ;;  %v1271_v21 = vld [vmem:[#allocation2 + $0x334] ss:$8 sps:$4 sm:$0xff]  }
  0x40   :  { %931 = vmatpush1.bf16.msra.mxu0 %v1193_v27  ;;  %850 = vmatprep.subr.bf16.mxu1 %v1194_v28  ;;  %v1265_v17 = vld [vmem:[#allocation2 + $0x324] ss:$8 sps:$4 sm:$0xff]   ;;  %v1263_v19 = vld [vmem:[#allocation2 + $0x320] ss:$8 sps:$4 sm:$0xff]   ;;  %v1266_v22 = vld [vmem:[#allocation2 + $0x130] ss:$8 sps:$4 sm:$0xff]  }
  0x41   :  { %932 = vmatprep.subr.bf16.mxu0 %v1196_v29  ;;  %v1269_v23 = vld [vmem:[#allocation2 + $0x330] ss:$8 sps:$4 sm:$0xff]   ;;  %v1274_v24 = vld [vmem:[#allocation2 + $0x144] ss:$8 sps:$4 sm:$0xff]   ;;  %v1272_v26 = vld [vmem:[#allocation2 + $0x140] ss:$8 sps:$4 sm:$0xff]  }
  0x42   :  { %v1277_v25 = vld [vmem:[#allocation2 + $0x344] ss:$8 sps:$4 sm:$0xff]   ;;  %v1275_v27 = vld [vmem:[#allocation2 + $0x340] ss:$8 sps:$4 sm:$0xff]   ;;  %v1280_v28 = vld [vmem:[#allocation2 + $0x154] ss:$8 sps:$4 sm:$0xff]  }
  0x43   :  { %851 = vmatpush1.bf16.msra.mxu1 %v1198_v30  ;;  %v1283_v29 = vld [vmem:[#allocation2 + $0x354] ss:$8 sps:$4 sm:$0xff]   ;;  %v1278_v30 = vld [vmem:[#allocation2 + $0x150] ss:$8 sps:$4 sm:$0xff]   ;;  %v1296_v46 = vld [vmem:[#allocation2 + $0x180] ss:$8 sps:$4 sm:$0xff]  }
  0x44   :  { %933 = vmatpush1.bf16.msra.mxu0 %v1199_v31  ;;  %852 = vmatprep.subr.bf16.mxu1 %v1200_v32  ;;  %v1281_v31 = vld [vmem:[#allocation2 + $0x350] ss:$8 sps:$4 sm:$0xff]   ;;  %v1286_v32 = vld [vmem:[#allocation2 + $0x164] ss:$8 sps:$4 sm:$0xff]   ;;  %v1304_v48 = vld [vmem:[#allocation2 + $0x194] ss:$8 sps:$4 sm:$0xff]  }
  0x45   :  { %934 = vmatprep.subr.bf16.mxu0 %v1202_v33  ;;  %v1289_v33 = vld [vmem:[#allocation2 + $0x364] ss:$8 sps:$4 sm:$0xff]   ;;  %v1302_v50 = vld [vmem:[#allocation2 + $0x190] ss:$8 sps:$4 sm:$0xff]   ;;  %v1332_v6 = vld [vmem:[#allocation2 + $0x1e0] ss:$8 sps:$4 sm:$0xff]  }
  0x46   :  { %v1313_v53 = vld [vmem:[#allocation2 + $0x3a4] ss:$8 sps:$4 sm:$0xff]  }
  0x47   :  { %853 = vmatpush1.bf16.msra.mxu1 %v1204_v34  ;;  %v43_v34 = vld [vmem:[%s1470_s0 + $0x18] sm:$0xff]  ;;  %v1337_v5 = vld [vmem:[#allocation2 + $0x3e4] ss:$8 sps:$4 sm:$0xff]  }
  0x48   :  { %935 = vmatpush1.bf16.msra.mxu0 %v1205_v35  ;;  %854 = vmatprep.subr.bf16.mxu1 %v1206_v36  ;;  %v51_v35 = vpack.c.bf16 %v43_v34, %v43_v34  ;;  %v47_v36 = vld [vmem:[%s1470_s0 + $0x38] sm:$0xff] }
  0x49   :  { %936 = vmatprep.subr.bf16.mxu0 %v1208_v37  ;;  %v1284_v37 = vld [vmem:[#allocation2 + $0x160] ss:$8 sps:$4 sm:$0xff]  }
  0x4b   :  { %855 = vmatpush1.bf16.msra.mxu1 %v1210_v38  ;;  %v1287_v38 = vld [vmem:[#allocation2 + $0x360] ss:$8 sps:$4 sm:$0xff]  }
  0x4c   :  { %937 = vmatpush1.bf16.msra.mxu0 %v1211_v39  ;;  %856 = vmatprep.subr.bf16.mxu1 %v1212_v40  ;;  %v55_v39 = vpack.c.bf16 %v47_v36, %v47_v36  ;;  %v1292_v40 = vld [vmem:[#allocation2 + $0x174] ss:$8 sps:$4 sm:$0xff]  }
  0x4d   :  { %938 = vmatprep.subr.bf16.mxu0 %v1214_v41  ;;  %v1295_v41 = vld [vmem:[#allocation2 + $0x374] ss:$8 sps:$4 sm:$0xff]  }
  0x4f   :  { %857 = vmatpush1.bf16.msra.mxu1 %v1216_v42  ;;  %v1290_v42 = vld [vmem:[#allocation2 + $0x170] ss:$8 sps:$4 sm:$0xff]  }
  0x50   :  { %939 = vmatpush1.bf16.msra.mxu0 %v1217_v43  ;;  %858 = vmatprep.subr.bf16.mxu1 %v1218_v44  ;;  %v1293_v43 = vld [vmem:[#allocation2 + $0x370] ss:$8 sps:$4 sm:$0xff]   ;;  %v1298_v44 = vld [vmem:[#allocation2 + $0x184] ss:$8 sps:$4 sm:$0xff]  }
  0x51   :  { %940 = vmatprep.subr.bf16.mxu0 %v1220_v45  ;;  %v1301_v45 = vld [vmem:[#allocation2 + $0x384] ss:$8 sps:$4 sm:$0xff]  }
  0x53   :  { %859 = vmatpush1.bf16.msra.mxu1 %v1222_v47  ;;  %v1299_v47 = vld [vmem:[#allocation2 + $0x380] ss:$8 sps:$4 sm:$0xff]  }
  0x54   :  { %941 = vmatpush1.bf16.msra.mxu0 %v1223_v49  ;;  %860 = vmatprep.subr.bf16.mxu1 %v1224_v51  ;;  %v1307_v49 = vld [vmem:[#allocation2 + $0x394] ss:$8 sps:$4 sm:$0xff]   ;;  %v1305_v51 = vld [vmem:[#allocation2 + $0x390] ss:$8 sps:$4 sm:$0xff]  }
  0x55   :  { %942 = vmatprep.subr.bf16.mxu0 %v1226_v52  ;;  %v1310_v52 = vld [vmem:[#allocation2 + $0x1a4] ss:$8 sps:$4 sm:$0xff]  }
  0x57   :  { %861 = vmatpush1.bf16.msra.mxu1 %v1228_v54  ;;  %v1308_v54 = vld [vmem:[#allocation2 + $0x1a0] ss:$8 sps:$4 sm:$0xff]  }
  0x58   :  { %943 = vmatpush1.bf16.msra.mxu0 %v1229_v55  ;;  %862 = vmatprep.subr.bf16.mxu1 %v1230_v56  ;;  %v1311_v55 = vld [vmem:[#allocation2 + $0x3a0] ss:$8 sps:$4 sm:$0xff]   ;;  %v1316_v56 = vld [vmem:[#allocation2 + $0x1b4] ss:$8 sps:$4 sm:$0xff]  }
  0x59   :  { %944 = vmatprep.subr.bf16.mxu0 %v1232_v57  ;;  %v1319_v57 = vld [vmem:[#allocation2 + $0x3b4] ss:$8 sps:$4 sm:$0xff]  }
  0x5b   :  { %863 = vmatpush1.bf16.msra.mxu1 %v1234_v58  ;;  %v1314_v58 = vld [vmem:[#allocation2 + $0x1b0] ss:$8 sps:$4 sm:$0xff]  }
  0x5c   :  { %945 = vmatpush1.bf16.msra.mxu0 %v1235_v59  ;;  %864 = vmatprep.subr.bf16.mxu1 %v1236_v60  ;;  %v1317_v59 = vld [vmem:[#allocation2 + $0x3b0] ss:$8 sps:$4 sm:$0xff]   ;;  %v1322_v60 = vld [vmem:[#allocation2 + $0x1c4] ss:$8 sps:$4 sm:$0xff]  }
  0x5d   :  { %946 = vmatprep.subr.bf16.mxu0 %v1238_v61  ;;  %v1325_v61 = vld [vmem:[#allocation2 + $0x3c4] ss:$8 sps:$4 sm:$0xff]  }
  0x5f   :  { %865 = vmatpush1.bf16.msra.mxu1 %v1240_v62  ;;  %v1320_v62 = vld [vmem:[#allocation2 + $0x1c0] ss:$8 sps:$4 sm:$0xff]  }
  0x60   :  { %947 = vmatpush1.bf16.msra.mxu0 %v1241_v63  ;;  %866 = vmatprep.subr.bf16.mxu1 %v1242_v0  ;;  %v1323_v63 = vld [vmem:[#allocation2 + $0x3c0] ss:$8 sps:$4 sm:$0xff]   ;;  %v1328_v0 = vld [vmem:[#allocation2 + $0x1d4] ss:$8 sps:$4 sm:$0xff]  }
  0x61   :  { %948 = vmatprep.subr.bf16.mxu0 %v1244_v1  ;;  %v1331_v1 = vld [vmem:[#allocation2 + $0x3d4] ss:$8 sps:$4 sm:$0xff]  }
  0x63   :  { %867 = vmatpush1.bf16.msra.mxu1 %v1246_v2  ;;  %v1326_v2 = vld [vmem:[#allocation2 + $0x1d0] ss:$8 sps:$4 sm:$0xff]  }
  0x64   :  { %949 = vmatpush1.bf16.msra.mxu0 %v1247_v3  ;;  %877 = vmatprep.subr.bf16.mxu1 %v1250_v4  ;;  %v1329_v3 = vld [vmem:[#allocation2 + $0x3d0] ss:$8 sps:$4 sm:$0xff]   ;;  %v1334_v4 = vld [vmem:[#allocation2 + $0x1e4] ss:$8 sps:$4 sm:$0xff]  }
  0x65   :  { %959 = vmatprep.subr.bf16.mxu0 %v1253_v7  ;;  %v1335_v7 = vld [vmem:[#allocation2 + $0x3e0] ss:$8 sps:$4 sm:$0xff]  }
  0x66   :  { %869 = vmatmul.mubr.bf16.vlgmr.msra.gmra.mrb[0].mxu1 %v48_v10  ;;  %v1338_v10 = vld [vmem:[#allocation2 + $0x1f0] ss:$8 sps:$4 sm:$0xff]  }
  0x67   :  { %951 = vmatmul.mubr.bf16.vlgmr.msra.gmra.mrb[0].mxu0 %v52_v11  ;;  %878 = vmatpush1.bf16.msra.mxu1 %v1248_v8  ;;  %v1340_v8 = vld [vmem:[#allocation2 + $0x1f4] ss:$8 sps:$4 sm:$0xff]   ;;  %v1341_v11 = vld [vmem:[#allocation2 + $0x3f0] ss:$8 sps:$4 sm:$0xff]  }
  0x68   :  { %960 = vmatpush1.bf16.msra.mxu0 %v1251_v9  ;;  %879 = vmatprep.subr.bf16.mxu1 %v1256_v12  ;;  %v1343_v9 = vld [vmem:[#allocation2 + $0x3f4] ss:$8 sps:$4 sm:$0xff]  }
  0x69   :  { %961 = vmatprep.subr.bf16.mxu0 %v1259_v13  ;;  %909 = vmatprep.mubr.bf16.mxu1 %v51_v35  ;;  %v42_v12 = vld [vmem:[%s1470_s0 + $0x10] sm:$0xff] }
  0x6a   :  { %991 = vmatprep.mubr.bf16.mxu0 %v55_v39  ;;  %v46_v13 = vld [vmem:[%s1470_s0 + $0x30] sm:$0xff] }
  0x6b   :  { %880 = vmatpush1.bf16.msra.mxu1 %v1254_v14  ;;  %v50_v14 = vpack.c.bf16 %v42_v12, %v42_v12 }
  0x6c   :  { %962 = vmatpush1.bf16.msra.mxu0 %v1257_v15  ;;  %881 = vmatprep.subr.bf16.mxu1 %v1262_v16  ;;  %v54_v15 = vpack.c.bf16 %v46_v13, %v46_v13  ;;  %v186_v16 = vlaneseq }
  0x6d   :  { %963 = vmatprep.subr.bf16.mxu0 %v1265_v17 }
  0x6e   :  { %v187_v17 = vshrl.u32 %v186_v16, 7 }
  0x6f   :  { %882 = vmatpush1.bf16.msra.mxu1 %v1260_v18 }
  0x70   :  { %964 = vmatpush1.bf16.msra.mxu0 %v1263_v19  ;;  %883 = vmatprep.subr.bf16.mxu1 %v1268_v20  ;;  %v188_v18 = vsub.s32 0, %v187_v17  ;;  %v184_v19 = vld [vmem:[#allocation4] sm:$0x3]  ;;  %v192_v20 = vsub.s32 1, %v187_v17 }
  0x71   :  { %965 = vmatprep.subr.bf16.mxu0 %v1271_v21 }
  0x72   :  { %v189_v21 = vrot.slane %v184_v19, %v188_v18 }
  0x73   :  { %884 = vmatpush1.bf16.msra.mxu1 %v1266_v22  ;;  %v193_v22 = vrot.slane %v184_v19, %v192_v20 }
  0x74   :  { %966 = vmatpush1.bf16.msra.mxu0 %v1269_v23  ;;  %885 = vmatprep.subr.bf16.mxu1 %v1274_v24 }
  0x75   :  { %967 = vmatprep.subr.bf16.mxu0 %v1277_v25 }
  0x77   :  { %886 = vmatpush1.bf16.msra.mxu1 %v1272_v26 }
  0x78   :  { %968 = vmatpush1.bf16.msra.mxu0 %v1275_v27  ;;  %887 = vmatprep.subr.bf16.mxu1 %v1280_v28 }
  0x79   :  { %969 = vmatprep.subr.bf16.mxu0 %v1283_v29 }
  0x7b   :  { %888 = vmatpush1.bf16.msra.mxu1 %v1278_v30 }
  0x7c   :  { %970 = vmatpush1.bf16.msra.mxu0 %v1281_v31  ;;  %889 = vmatprep.subr.bf16.mxu1 %v1286_v32 }
  0x7d   :  { %971 = vmatprep.subr.bf16.mxu0 %v1289_v33 }
  0x7f   :  { %890 = vmatpush1.bf16.msra.mxu1 %v1284_v37 }
  0x80   :  { %972 = vmatpush1.bf16.msra.mxu0 %v1287_v38  ;;  %891 = vmatprep.subr.bf16.mxu1 %v1292_v40 }
  0x81   :  { %973 = vmatprep.subr.bf16.mxu0 %v1295_v41 }
  0x83   :  { %892 = vmatpush1.bf16.msra.mxu1 %v1290_v42 }
  0x84   :  { %974 = vmatpush1.bf16.msra.mxu0 %v1293_v43  ;;  %893 = vmatprep.subr.bf16.mxu1 %v1298_v44 }
  0x85   :  { %975 = vmatprep.subr.bf16.mxu0 %v1301_v45 }
  0x87   :  { %894 = vmatpush1.bf16.msra.mxu1 %v1296_v46 }
  0x88   :  { %976 = vmatpush1.bf16.msra.mxu0 %v1299_v47  ;;  %895 = vmatprep.subr.bf16.mxu1 %v1304_v48 }
  0x89   :  { %977 = vmatprep.subr.bf16.mxu0 %v1307_v49 }
  0x8b   :  { %896 = vmatpush1.bf16.msra.mxu1 %v1302_v50 }
  0x8c   :  { %978 = vmatpush1.bf16.msra.mxu0 %v1305_v51  ;;  %897 = vmatprep.subr.bf16.mxu1 %v1310_v52 }
  0x8d   :  { %979 = vmatprep.subr.bf16.mxu0 %v1313_v53 }
  0x8f   :  { %898 = vmatpush1.bf16.msra.mxu1 %v1308_v54 }
  0x90   :  { %980 = vmatpush1.bf16.msra.mxu0 %v1311_v55  ;;  %899 = vmatprep.subr.bf16.mxu1 %v1316_v56 }
  0x91   :  { %981 = vmatprep.subr.bf16.mxu0 %v1319_v57 }
  0x93   :  { %900 = vmatpush1.bf16.msra.mxu1 %v1314_v58 }
  0x94   :  { %982 = vmatpush1.bf16.msra.mxu0 %v1317_v59  ;;  %901 = vmatprep.subr.bf16.mxu1 %v1322_v60 }
  0x95   :  { %983 = vmatprep.subr.bf16.mxu0 %v1325_v61 }
  0x97   :  { %902 = vmatpush1.bf16.msra.mxu1 %v1320_v62 }
  0x98   :  { %984 = vmatpush1.bf16.msra.mxu0 %v1323_v63  ;;  %903 = vmatprep.subr.bf16.mxu1 %v1328_v0 }
  0x99   :  { %985 = vmatprep.subr.bf16.mxu0 %v1331_v1 }
  0x9b   :  { %904 = vmatpush1.bf16.msra.mxu1 %v1326_v2 }
  0x9c   :  { %986 = vmatpush1.bf16.msra.mxu0 %v1329_v3  ;;  %905 = vmatprep.subr.bf16.mxu1 %v1334_v4 }
  0x9d   :  { %987 = vmatprep.subr.bf16.mxu0 %v1337_v5 }
  0x9f   :  { %906 = vmatpush1.bf16.msra.mxu1 %v1332_v6 }
  0xa0   :  { %988 = vmatpush1.bf16.msra.mxu0 %v1335_v7  ;;  %907 = vmatprep.subr.bf16.mxu1 %v1340_v8 }
  0xa1   :  { %989 = vmatprep.subr.bf16.mxu0 %v1343_v9 }
  0xa3   :  { %908 = vmatpush1.bf16.msra.mxu1 %v1338_v10 }
  0xa4   :  { %990 = vmatpush1.bf16.msra.mxu0 %v1341_v11 }
  0xa6   :  { %910 = vmatmul.mubr.bf16.vlgmr.msra.gmra.mrb[0].mxu1 %v50_v14 }
  0xa7   :  { %992 = vmatmul.mubr.bf16.vlgmr.msra.gmra.mrb[0].mxu0 %v54_v15 }
 0x179   :  { %v911_v23 = vpop.f32.mrb[0].mxu1 }
 0x17a   :  { %v993_v24 = vpop.f32.mrb[0].mxu0  ;;  %v1136_v25 = vadd.f32 %v911_v23, %v189_v21  ;;  %v913_v26 = vpop.f32.mrb[1].mxu1 }
 0x17b   :  { %v995_v27 = vpop.f32.mrb[1].mxu0  ;;  %v1138_v28 = vadd.f32 %v913_v26, %v193_v22  ;;  %v915_v29 = vpop.f32.mrb[2].mxu1 }
 0x17c   :  { %v997_v30 = vpop.f32.mrb[2].mxu0  ;;  %v1137_v31 = vadd.f32 %v1136_v25, %v993_v24  ;;  %v916_v32 = vpop.f32.mrb[3].mxu1 }
 0x17d   :  { %v998_v33 = vpop.f32.mrb[3].mxu0  ;;  %v1139_v34 = vadd.f32 %v1138_v28, %v995_v27 }
 0x17e   :  { %1000 = vst [vmem:[%s1473_s3] sm:$0xff] %v1137_v31 }
 0x17f   :  { %1001 = vst [vmem:[%s1473_s3 + $0x8] sm:$0xff] %v1139_v34 }
 0x180   :  { %1006 = vsyncpa [#allocation3], 1 }
 0x181   :  { %1007 = vsyncpa [#allocation5], 1 }

// kernel: fpn_forward.8
= control target key start
LH: loop header
LB: loop body
LE: loop exit
PB: predicated region body
PF: predicated region fallthrough
CT: control target
= control target key end

     0   :  { %s2182_s0 = inlined_call_operand.hbm [shape: s32[4], index: 0, kind: input, shape index: {}]   ;;  %s2183_s2 = inlined_call_operand.vmem [shape: f32[2,2,2,256], index: 2, kind: input, shape index: {}, may-alias: {2,3}]   ;;  %s2184_s3 = inlined_call_operand.vmem [shape: f32[2,2,2,256], index: 3, kind: input, shape index: {}, may-alias: {2,3}]   ;;  %s2185_s4 = inlined_call_operand.hbm [shape: f32[2,4,4,512], index: 4, kind: input, shape index: {}]   ;;  %s2186_s5 = inlined_call_operand.hbm [shape: bf16[512,256], index: 5, kind: input, shape index: {}]   ;;  %s2187_s6 = inlined_call_operand.hbm [shape: f32[1,256], index: 6, kind: input, shape index: {}]   ;;  %s2188_s7 = inlined_call_operand.hbm [shape: f32[2,4], index: 7, kind: input, shape index: {}]   ;;  %s2189_s8 = inlined_call_operand.hbm [shape: bf16[4,2], index: 8, kind: input, shape index: {}]   ;;  %s2190_s9 = inlined_call_operand.vmem [shape: bf16[2,4,4,256], index: 9, kind: output, shape index: {}]   ;;  %s2191_s1 = inlined_call_operand.vmem [shape: s32[4], index: 1, kind: input, shape index: {}]  }
   0x1   :  { %2195 = sst [smem:[#allocation19_spill]] %s2184_s3  ;;  %s1562_s11 = scalar_lea.hbm %s2182_s0, 16 }
   0x2   :  { %2196 = sst [smem:[#allocation20_spill]] %s2186_s5  ;;  %p1563_p0 = scmp.ne.s32.totalorder %s2182_s0, %s1562_s11 }
   0x3   :  { %2197 = sst [smem:[#allocation21_spill]] %s2187_s6  ;;  %p1566_p1 = scmp.lt.u32.totalorder %s1562_s11, %s2182_s0 }
   0x4   :  { %2198 = sst [smem:[#allocation22_spill]] %s2188_s7 }
   0x5   :  { %2199 = sst [smem:[#allocation23_spill]] %s2189_s8  ;;  %p1568_p2 = pnand %p1566_p1, %p1563_p0 }
   0x6   :  { %2200 = sst [smem:[#allocation24_spill]] %s2190_s9 }
   0x7   :  { %1571 = shalt.err (!%p1568_p2)  }
   0x8   :  { %s1793_s16 = smov [#allocation3]   ;;  %s16_s21 = sshll.u32 %s2191_s1, 4  ;;  %s17_s21 = int_to_ptr.vmem [resolvable:$true] %s16_s21 }
   0x9   :  { %15 = dma.hbm_to_smem %s2182_s0, 16, %s1793_s16, [#allocation2] }
   0xa   :  { %s1572_s22 = scalar_lea.vmem %s17_s21, 16  ;;  %p1577_p4 = scmp.lt.s32.totalorder %s17_s21, %s17_s21 }
   0xb   :  { %p1573_p3 = scmp.ne.s32.totalorder %s17_s21, %s1572_s22  ;;  %p1578_p5 = scmp.lt.s32.totalorder %s1572_s22, %s1572_s22 }
   0xd   :  { %p1579_p6 = por %p1578_p5, %p1577_p4 }
   0xf   :  { %p1580_p7 = pnand %p1579_p6, %p1573_p3 }
  0x11   :  { %1583 = shalt.err (!%p1580_p7)  }
  0x12   :  { %s1794_s23 = smov [#allocation4]  }
  0x13   :  { %19 = dma.vmem_to_smem %s17_s21, 16, %s1794_s23, [#allocation2] }
  0x14   :  { %1743 = dma.done.wait [#allocation2], 32 }
  0x15   :  { %1744 = vsyncadd [#allocation2], 4294967264 }
  0x16   :  { %21 = sfence }
  0x17   :  { %22 = vsyncpa [#allocation6], 0 }
  0x18   :  { %24 = vsyncpa [#allocation6 + $0x1], 0 }
  0x19   :  { %25 = vsyncpa [#allocation9], 0 }
  0x1a   :  { %26 = vsyncpa [#allocation7], 0 }
  0x1b   :  { %27 = vsyncpa [#allocation13], 0  ;;  %s1869_s0 = smov 0   ;;  %s1871_s1 = smov 0  }
  0x1c   :  { %s1873_s24 = smov 0   ;;  %s1875_s25 = smov 0  }
  0x1d   :  { %s1877_s26 = smov 0   ;;  %s1879_s27 = smov 0  }
  0x1e   :  { %s1881_s28 = smov 0   ;;  %s1883_s29 = smov 0  }
  0x1f LB: > { %s1238_s30 = sadd.s32 4294967295, %s1791_s29   ;;  %p1240_p8 = scmp.ge.s32.totalorder %s1791_s29, 1  ;;  %s1791_s29 = sphi %s1883_s29, %s33_s29   ;;  %s1787_s28 = sphi %s1881_s28, %s2223_s28   ;;  %s1783_s27 = sphi %s1879_s27, %s2222_s27   ;;  %s1779_s26 = sphi %s1877_s26, %s2221_s26   ;;  %s1775_s25 = sphi %s1875_s25, %s2220_s25   ;;  %s1771_s24 = sphi %s1873_s24, %s2219_s24   ;;  %s1767_s1 = sphi %s1871_s1, %s2218_s1   ;;  %s1763_s0 = sphi %s1869_s0, %s2217_s0  }
  0x20   : > { %p1911_p9 = scmp.eq.s32.totalorder %s1238_s30, 0  ;;  %p250_p10 = scmp.lt.s32.totalorder %s1791_s29, 9 }
  0x21   : > { %s1795_s12 = smov [#allocation8]   ;;  %s1796_s15 = smov [#allocation10]  }
  0x22   : > { %s2201_s10 = scalar_select %p1911_p9, 1, 0 }
  0x23   : > { %p1916_p11 = pnand %p1240_p8, %p250_p10  ;;  %s262_s13 = sshll.u32 %s1795_s12, 4  ;;  %s263_s13 = int_to_ptr.vmem [resolvable:$true] %s262_s13 }
  0x24   : > { %s276_s16 = sshll.u32 %s1796_s15, 4  ;;  %s2204_s5 = sld [smem:[#allocation20_spill]]  ;;  %s1928_s16 = int_to_ptr.vmem [resolvable:$true] %s276_s16 }
  0x25   : > { %s2202_s11 = scalar_select %p1916_p11, 1, 0 }
  0x26   : > { %p1364_p12 = pneg %p1916_p11 }
  0x28   : > { %p1924_p13 = pnand %p1364_p12, %p1911_p9 }
  0x2a   : > { %s1584_s19 = scalar_lea.hbm %s2204_s5, 8192  ;;  %p1938_p1 = pneg %p1924_p13 }
  0x2b   : > { %p1585_p0 = scmp.ne.s32.totalorder %s2204_s5, %s1584_s19  ;;  %p1591_p4 = scmp.lt.u32.totalorder %s1584_s19, %s2204_s5 }
  0x2d   : > { %p1587_p2 = pnand %p1938_p1, %p1585_p0 }
  0x2f   : > { %p1588_p3 = pneg %p1587_p2 }
  0x31   : > { %p1593_p5 = pnand %p1591_p4, %p1588_p3 }
  0x33   : > { %1596 = shalt.err (!%p1593_p5)
}
  0x34   : > { %s1597_s12 = scalar_lea.vmem %s263_s13, 8192  ;;  %p1605_p10 = scmp.lt.s32.totalorder %s263_s13, %s263_s13 }
  0x35   : > { %p1598_p6 = scmp.ne.s32.totalorder %s263_s13, %s1597_s12  ;;  %p1606_p12 = scmp.lt.s32.totalorder %s1597_s12, %s1597_s12 }
  0x37   : > { %p1600_p7 = pnand %p1598_p6, %p1938_p1  ;;  %p1607_p11 = por %p1606_p12, %p1605_p10 }
  0x39   : > { %p1601_p8 = pneg %p1600_p7 }
  0x3b   : > { %p1608_p9 = pnand %p1607_p11, %p1601_p8 }
  0x3d   : > { %1611 = shalt.err (!%p1608_p9)
}
  0x3e   : > { %s1797_s15 = smov 128   ;;  %s1798_s17 = smov 8  }
  0x3f   : > { %1367 = dma.hbm_to_vmem [thread:$0]  (!%p1924_p13), %s2204_s5, 8192, %s263_s13, [#allocation9], %s1797_s15, %s1797_s15, %s1798_s17  }
  0x40   : > { %s2206_s6 = sld [smem:[#allocation21_spill]] }
  0x46   : > { %s1612_s23 = scalar_lea.hbm %s2206_s6, 32 }
  0x47   : > { %p1613_p0 = scmp.ne.s32.totalorder %s2206_s6, %s1612_s23  ;;  %p1619_p2 = scmp.lt.u32.totalorder %s1612_s23, %s2206_s6 }
  0x49   : > { %p1615_p11 = pnand %p1613_p0, %p1938_p1 }
  0x4b   : > { %p1616_p9 = pneg %p1615_p11 }
  0x4d   : > { %p1621_p3 = pnand %p1619_p2, %p1616_p9 }
  0x4f   : > { %1624 = shalt.err (!%p1621_p3)
}
  0x50   : > { %s1625_s13 = scalar_lea.vmem %s1928_s16, 32  ;;  %p1633_p7 = scmp.lt.s32.totalorder %s1928_s16, %s1928_s16 }
  0x51   : > { %p1626_p4 = scmp.ne.s32.totalorder %s1928_s16, %s1625_s13  ;;  %p1634_p8 = scmp.lt.s32.totalorder %s1625_s13, %s1625_s13 }
  0x53   : > { %p1628_p5 = pnand %p1626_p4, %p1938_p1  ;;  %p1635_p10 = por %p1634_p8, %p1633_p7 }
  0x55   : > { %p1629_p6 = pneg %p1628_p5 }
  0x57   : > { %p1636_p12 = pnand %p1635_p10, %p1629_p6 }
  0x59   : > { %1639 = shalt.err (!%p1636_p12)
}
  0x5a   : > { %1370 = dma.hbm_to_vmem [thread:$0]  (!%p1924_p13), %s2206_s6, 32, %s1928_s16, [#allocation9]  }
  0x5b   : > { %s2207_s7 = sld [smem:[#allocation22_spill]] }
  0x61   : > { %s1640_s18 = scalar_lea.hbm %s2207_s7, 32 }
  0x62   : > { %p1641_p0 = scmp.ne.s32.totalorder %s2207_s7, %s1640_s18  ;;  %p1647_p2 = scmp.lt.u32.totalorder %s1640_s18, %s2207_s7 }
  0x64   : > { %p1643_p11 = pnand %p1641_p0, %p1938_p1 }
  0x66   : > { %p1644_p9 = pneg %p1643_p11 }
  0x68   : > { %p1649_p3 = pnand %p1647_p2, %p1644_p9 }
  0x6a   : > { %1652 = shalt.err (!%p1649_p3)
}
  0x6b   : > { %s1799_s30 = smov [#allocation11]   ;;  %s1800_s13 = smov [#allocation12]  }
  0x6c   : > { %1373 = dma.hbm_to_smem (!%p1924_p13), %s2207_s7, 32, %s1799_s30, [#allocation7]  }
  0x6d   : > { %s296_s3 = sshll.u32 %s1800_s13, 4  ;;  %s2208_s8 = sld [smem:[#allocation23_spill]]  ;;  %s297_s3 = int_to_ptr.vmem [resolvable:$true] %s296_s3 }
  0x73   : > { %s1653_s17 = scalar_lea.hbm %s2208_s8, 32 }
  0x74   : > { %p1654_p4 = scmp.ne.s32.totalorder %s2208_s8, %s1653_s17  ;;  %p1660_p7 = scmp.lt.u32.totalorder %s1653_s17, %s2208_s8 }
  0x76   : > { %p1656_p5 = pnand %p1654_p4, %p1938_p1 }
  0x78   : > { %p1657_p6 = pneg %p1656_p5 }
  0x7a   : > { %p1662_p8 = pnand %p1660_p7, %p1657_p6 }
  0x7c   : > { %1665 = shalt.err (!%p1662_p8)
}
  0x7d   : > { %s1666_s23 = scalar_lea.vmem %s297_s3, 32  ;;  %p1674_p11 = scmp.lt.s32.totalorder %s297_s3, %s297_s3 }
  0x7e   : > { %p1667_p10 = scmp.ne.s32.totalorder %s297_s3, %s1666_s23  ;;  %p1675_p9 = scmp.lt.s32.totalorder %s1666_s23, %s1666_s23 }
  0x80   : > { %p1669_p12 = pnand %p1667_p10, %p1938_p1  ;;  %p1676_p2 = por %p1675_p9, %p1674_p11 }
  0x82   : > { %p1670_p0 = pneg %p1669_p12 }
  0x84   : > { %p1677_p3 = pnand %p1676_p2, %p1670_p0 }
  0x86   : > { %1680 = shalt.err (!%p1677_p3)
}
  0x87   : > { %1376 = dma.hbm_to_vmem [thread:$0]  (!%p1924_p13), %s2208_s8, 32, %s297_s3, [#allocation13]  }
  0x88   : > { %s42_s22 = sadd.s32 1, %s1783_s27  ;;  %s45_s14 = sadd.s32 1, %s1787_s28 }
  0x89   : > { %p43_p1 = scmp.ge.s32.totalorder %s42_s22, 4  ;;  %s114_s12 = sadd.s32 1, %s1771_s24 }
  0x8a   : > { %p121_p4 = scmp.ne.s32.totalorder %s1771_s24, %s1767_s1  ;;  %p122_p5 = scmp.eq.s32.totalorder %s1791_s29, 0 }
  0x8b   : > { %s2225_s22 = smov (%p43_p1, %s42_s22), 0  ;;  %s2227_s14 = smov (!%p43_p1, %s45_s14), %s1787_s28 }
  0x8c   : > { %s110_s13 = ssub.s32 %s1783_s27, %s2225_s22  ;;  %p2022_p6 = por %p122_p5, %p121_p4 }
  0x8d   : > { %p47_p13 = scmp.ge.s32.totalorder %s2227_s14, 2  ;;  %p127_p7 = scmp.ne.s32.totalorder %s1767_s1, %s1763_s0 }
  0x8e   : > { %p1385_p8 = scmp.lt.s32.totalorder %s1791_s29, 8  ;;  %s335_s3 = sand.u32 1, %s1771_s24  }
  0x8f   : > { %s2229_s14 = smov (%p47_p13, %s2227_s14), 0  ;;  %p2210_p10 = scmp.ne.s32.totalorder %s2201_s10, 0 }
  0x90   : > { %s109_s17 = ssub.s32 %s1787_s28, %s2229_s14  ;;  %s1246_s19 = sshll.u32 %s335_s3, 4 }
  0x91   : > { %p2034_p12 = por %p2210_p10, %p127_p7  ;;  %s111_s20 = sor.u32 %s110_s13, %s109_s17 }
  0x92   : > { %p112_p0 = scmp.eq.s32.totalorder %s111_s20, 0  ;;  %s1247_s18 = sshll.u32 %s1783_s27, 2 }
  0x93   : > { %s1248_s21 = sshll.u32 %s1787_s28, 4  ;;  %s339_s23 = scalar_lea.vmem [#allocation5], %s1246_s19 }
  0x94   : > { %s349_s0 = sshll.u32 %s339_s23, 4  ;;  %s345_s16 = sadd.s32 %s1248_s21, %s1247_s18  ;;  %s2045_s0 = int_to_ptr.vmem [resolvable:$true] %s349_s0 }
  0x95   : > { %s2043_s30 = scalar_select %p112_p0, %s1771_s24, %s114_s12  }
  0x96   : > { %s1249_s5 = sshll.u32 %s345_s16, 6  ;;  %p2051_p11 = pnand %p1385_p8, %p2022_p6 }
  0x97   : > { %s2058_s13 = scalar_lea.hbm %s2185_s4, %s1249_s5  ;;  %s336_s12 = scalar_lea.sflag [#allocation6], %s335_s3 }
  0x98   : > { %s1681_s17 = scalar_lea.hbm %s2058_s13, 256  ;;  %p1683_p2 = pneg %p2051_p11 }
  0x99   : > { %p1682_p9 = scmp.ne.s32.totalorder %s2058_s13, %s1681_s17  ;;  %s1686_s7 = scalar_lea.hbm %s2185_s4, 2048 }
  0x9a   : > { %p1687_p4 = scmp.lt.u32.totalorder %s2058_s13, %s2185_s4  ;;  %p1688_p5 = scmp.lt.u32.totalorder %s1686_s7, %s1681_s17 }
  0x9b   : > { %p1684_p3 = pnand %p1683_p2, %p1682_p9  ;;  %p1690_p13 = scmp.lt.u32.totalorder %s1681_s17, %s2058_s13 }
  0x9c   : > { %p1689_p6 = por %p1688_p5, %p1687_p4 }
  0x9d   : > { %p1685_p1 = pneg %p1684_p3 }
  0x9e   : > { %p1691_p7 = por %p1690_p13, %p1689_p6 }
  0xa0   : > { %p1692_p8 = pnand %p1691_p7, %p1685_p1 }
  0xa2   : > { %1695 = shalt.err (!%p1692_p8)
}
  0xa3   : > { %s1696_s3 = scalar_lea.vmem %s2045_s0, 256  ;;  %s1801_s20 = smov [#allocation5]  }
  0xa4   : > { %p1697_p10 = scmp.ne.s32.totalorder %s2045_s0, %s1696_s3  ;;  %s1701_s18 = sshll.u32 %s1801_s20, 4  ;;  %s1702_s18 = int_to_ptr.vmem [resolvable:$false] %s1701_s18 }
  0xa5   : > { %s1703_s21 = scalar_lea.vmem %s1702_s18, 512  ;;  %p1704_p3 = scmp.lt.s32.totalorder %s2045_s0, %s1702_s18 }
  0xa6   : > { %p1699_p0 = pnand %p1697_p10, %p1683_p2  ;;  %p1705_p4 = scmp.lt.s32.totalorder %s1703_s21, %s1696_s3 }
  0xa8   : > { %p1700_p9 = pneg %p1699_p0  ;;  %p1706_p5 = por %p1705_p4, %p1704_p3 }
  0xaa   : > { %p1707_p6 = pnand %p1706_p5, %p1700_p9 }
  0xac   : > { %1710 = shalt.err (!%p1707_p6)
}
  0xad   : > { %1380 = dma.hbm_to_vmem [thread:$0]  (!%p2051_p11), %s2058_s13, 256, %s2045_s0, %s336_s12  }
  0xae   : > { %p2213_p1 = scmp.ne.s32.totalorder %s2202_s11, 0 }
  0xaf   : > { %s360_s23 = sand.u32 (!%p2213_p1), 1, %s1767_s1  }
  0xb0   : > { %358 = sbr.rel (%p2213_p1) target bundleno = 488 (0x1e8), region = 48  ;;  %s2088_s16 = sshll.u32 (!%p2213_p1), %s360_s23, 4 }
  0xb1   : > { %s361_s17 = scalar_lea.sflag (!%p2213_p1), [#allocation6], %s360_s23  ;;  %s364_s9 = scalar_lea.vmem (!%p2213_p1), [#allocation5], %s2088_s16 }
  0xb7   : > { %1746 = dma.done.wait (%p2034_p12), %s361_s17, 256  }
  0xb8   : > { %1748 = vsyncadd (%p2034_p12), %s361_s17, 4294967040  ;;  %p2214_p2 = scmp.ne.s32.totalorder %s2201_s10, 0 }
  0xba   : > { %1750 = dma.done.wait (%p2214_p2), [#allocation9], 8224  }
  0xbb   : > { %1752 = vsyncadd (%p2214_p2), [#allocation9], 4294959072 }
  0xbc   : > { %1754 = dma.done.wait (%p2214_p2), [#allocation7], 32  }
  0xbd   : > { %1756 = vsyncadd (%p2214_p2), [#allocation7], 4294967264 }
  0xbe   : > { %1758 = dma.done.wait (%p2214_p2), [#allocation13], 32  }
  0xbf   : > { %1760 = vsyncadd (%p2214_p2), [#allocation13], 4294967264 }
  0xc0   : > { %385 = sfence }
  0xc1   : > { %v1464_v0 = vld [vmem:[#allocation8 + $0x104] ss:$8 sps:$4 sm:$0xff]   ;;  %v1466_v1 = vld [vmem:[#allocation8 + $0x100] ss:$8 sps:$4 sm:$0xff]   ;;  %v1467_v2 = vld [vmem:[#allocation8 + $0x114] ss:$8 sps:$4 sm:$0xff]   ;;  %v488_v44 = vlaneseq }
  0xc2   : > { %947 = vmatprep.subr.bf16.mxu0 %v1464_v0  ;;  %v1469_v3 = vld [vmem:[#allocation8 + $0x110] ss:$8 sps:$4 sm:$0xff]   ;;  %v1470_v4 = vld [vmem:[#allocation8 + $0x4] ss:$8 sps:$4 sm:$0xff]   ;;  %v1474_v6 = vld [vmem:[#allocation8] ss:$8 sps:$4 sm:$0xff]  }
  0xc3   : > { %948 = vmatpush1.bf16.msra.mxu0 %v1466_v1  ;;  %v1472_v5 = vld [vmem:[#allocation8 + $0x124] ss:$8 sps:$4 sm:$0xff]   ;;  %906 = vmatprep.subr.bf16.mxu1 %v1470_v4  ;;  %v1476_v7 = vld [vmem:[#allocation8 + $0x14] ss:$8 sps:$4 sm:$0xff]   ;;  %v1475_v8 = vld [vmem:[#allocation8 + $0x120] ss:$8 sps:$4 sm:$0xff]  }
  0xc4   : > { %949 = vmatprep.subr.bf16.mxu0 %v1467_v2  ;;  %907 = vmatpush1.bf16.msra.mxu1 %v1474_v6  ;;  %v1478_v9 = vld [vmem:[#allocation8 + $0x134] ss:$8 sps:$4 sm:$0xff]   ;;  %v1480_v10 = vld [vmem:[#allocation8 + $0x10] ss:$8 sps:$4 sm:$0xff]   ;;  %v1482_v11 = vld [vmem:[#allocation8 + $0x24] ss:$8 sps:$4 sm:$0xff]  }
  0xc5   : > { %908 = vmatprep.subr.bf16.mxu1 %v1476_v7  ;;  %v1481_v12 = vld [vmem:[#allocation8 + $0x130] ss:$8 sps:$4 sm:$0xff]   ;;  %v1486_v13 = vld [vmem:[#allocation8 + $0x20] ss:$8 sps:$4 sm:$0xff]   ;;  %v1488_v14 = vld [vmem:[#allocation8 + $0x34] ss:$8 sps:$4 sm:$0xff]  }
  0xc6   : > { %v1484_v15 = vld [vmem:[#allocation8 + $0x144] ss:$8 sps:$4 sm:$0xff]   ;;  %s2108_s6 = sld [smem:[#allocation3 + %s1775_s25]]  ;;  %v1492_v16 = vld [vmem:[#allocation8 + $0x30] ss:$8 sps:$4 sm:$0xff]   ;;  %p437_p12 = scmp.lt.s32.totalorder %s1779_s26, 1 }
  0xc7   : > { %950 = vmatpush1.bf16.msra.mxu0 %v1469_v3  ;;  %s2111_s10 = sld [smem:[#allocation4 + %s1775_s25]]  ;;  %v1487_v17 = vld [vmem:[#allocation8 + $0x140] ss:$8 sps:$4 sm:$0xff]   ;;  %v1494_v18 = vld [vmem:[#allocation8 + $0x44] ss:$8 sps:$4 sm:$0xff]   ;;  %s469_s11 = sshra.s32 %s1775_s25, 7 }
  0xc8   : > { %951 = vmatprep.subr.bf16.mxu0 %v1472_v5  ;;  %909 = vmatpush1.bf16.msra.mxu1 %v1480_v10  ;;  %v1490_v19 = vld [vmem:[#allocation8 + $0x154] ss:$8 sps:$4 sm:$0xff]   ;;  %v1493_v20 = vld [vmem:[#allocation8 + $0x150] ss:$8 sps:$4 sm:$0xff]   ;;  %v1498_v21 = vld [vmem:[#allocation8 + $0x40] ss:$8 sps:$4 sm:$0xff]  }
  0xc9   : > { %910 = vmatprep.subr.bf16.mxu1 %v1482_v11  ;;  %v1500_v22 = vld [vmem:[#allocation8 + $0x54] ss:$8 sps:$4 sm:$0xff]   ;;  %v1496_v23 = vld [vmem:[#allocation8 + $0x164] ss:$8 sps:$4 sm:$0xff]   ;;  %v1504_v24 = vld [vmem:[#allocation8 + $0x50] ss:$8 sps:$4 sm:$0xff]  }
  0xca   : > { %s2231_s26 = smov (!%p437_p12, %s1779_s26), 1  ;;  %v1499_v25 = vld [vmem:[#allocation8 + $0x160] ss:$8 sps:$4 sm:$0xff]   ;;  %v1506_v26 = vld [vmem:[#allocation8 + $0x64] ss:$8 sps:$4 sm:$0xff]   ;;  %s1336_s15 = sshll.u32 %s469_s11, 7 }
  0xcb   : > { %952 = vmatpush1.bf16.msra.mxu0 %v1475_v8  ;;  %v1502_v27 = vld [vmem:[#allocation8 + $0x174] ss:$8 sps:$4 sm:$0xff]   ;;  %v1505_v28 = vld [vmem:[#allocation8 + $0x170] ss:$8 sps:$4 sm:$0xff]   ;;  %v1510_v29 = vld [vmem:[#allocation8 + $0x60] ss:$8 sps:$4 sm:$0xff]  }
  0xcc   : > { %953 = vmatprep.subr.bf16.mxu0 %v1478_v9  ;;  %911 = vmatpush1.bf16.msra.mxu1 %v1486_v13  ;;  %p439_p11 = scmp.lt.s32.totalorder %s2108_s6, 1  ;;  %v1512_v30 = vld [vmem:[#allocation8 + $0x74] ss:$8 sps:$4 sm:$0xff]   ;;  %s1337_s0 = sadd.s32 128, %s1336_s15  ;;  %v1508_v31 = vld [vmem:[#allocation8 + $0x184] ss:$8 sps:$4 sm:$0xff]  }
  0xcd   : > { %912 = vmatprep.subr.bf16.mxu1 %v1488_v14  ;;  %p450_p13 = scmp.lt.s32.totalorder %s2111_s10, 1  ;;  %s474_s13 = sand.u32 127, %s1775_s25  ;;  %v1516_v32 = vld [vmem:[#allocation8 + $0x70] ss:$8 sps:$4 sm:$0xff]   ;;  %v1511_v33 = vld [vmem:[#allocation8 + $0x180] ss:$8 sps:$4 sm:$0xff]  }
  0xce   : > { %s2233_s6 = smov (!%p439_p11, %s2108_s6), 1  ;;  %s1257_s12 = sshll.u32 %s2231_s26, 2  ;;  %v1518_v34 = vld [vmem:[#allocation8 + $0x84] ss:$8 sps:$4 sm:$0xff]   ;;  %v1514_v35 = vld [vmem:[#allocation8 + $0x194] ss:$8 sps:$4 sm:$0xff]  }
  0xcf   : > { %954 = vmatpush1.bf16.msra.mxu0 %v1481_v12  ;;  %s2235_s10 = smov (!%p450_p13, %s2111_s10), 1  ;;  %s1256_s19 = sshll.u32 %s2233_s6, 1  ;;  %v1517_v36 = vld [vmem:[#allocation8 + $0x190] ss:$8 sps:$4 sm:$0xff]   ;;  %v1522_v37 = vld [vmem:[#allocation8 + $0x80] ss:$8 sps:$4 sm:$0xff]  }
  0xd0   : > { %955 = vmatprep.subr.bf16.mxu0 %v1484_v15  ;;  %913 = vmatpush1.bf16.msra.mxu1 %v1492_v16  ;;  %s1259_s7 = sshll.u32 %s2235_s10, 1  ;;  %s475_s8 = sadd.s32 %s1337_s0, %s474_s13  ;;  %v1524_v38 = vld [vmem:[#allocation8 + $0x94] ss:$8 sps:$4 sm:$0xff]   ;;  %v1520_v39 = vld [vmem:[#allocation8 + $0x1a4] ss:$8 sps:$4 sm:$0xff]   ;;  %v2143_v57 = vshrl.u32 %v488_v44, 7 }
  0xd1   : > { %914 = vmatprep.subr.bf16.mxu1 %v1494_v18  ;;  %s443_s5 = sadd.s32 %s1257_s12, %s1256_s19  ;;  %s454_s3 = sadd.s32 %s1259_s7, %s1257_s12  ;;  %v1528_v40 = vld [vmem:[#allocation8 + $0x90] ss:$8 sps:$4 sm:$0xff]   ;;  %v1523_v41 = vld [vmem:[#allocation8 + $0x1a0] ss:$8 sps:$4 sm:$0xff]   ;;  %v1526_v42 = vld [vmem:[#allocation8 + $0x1b4] ss:$8 sps:$4 sm:$0xff]  }
  0xd2   : > { %s2125_s20 = sld [smem:[#allocation11 + %s1775_s25]]  ;;  %s1258_s21 = sshll.u32 %s443_s5, 1  ;;  %v1530_v43 = vld [vmem:[#allocation8 + $0xa4] ss:$8 sps:$4 sm:$0xff]   ;;  %v1802_v46 = vmov 1983009808  }
  0xd3   : > { %956 = vmatpush1.bf16.msra.mxu0 %v1487_v17  ;;  %s2127_s18 = sld [smem:[#allocation11 + %s475_s8]]  ;;  %s1261_s23 = sshll.u32 %s454_s3, 1  ;;  %v2137_v45 = vld [vmem:[%s364_s9 + $0x8] sm:$0xff]  ;;  %v486_v47 = vunpack.c.l.s4 %v1802_v46  ;;  %v498_v58 = vld [vmem:[%s364_s9] sm:$0xff]  ;;  %vm992_vm0 = vcmask 1040384   ;;  %vm988_vm1 = vcmask 15360  }
  0xd4   : > { %957 = vmatprep.subr.bf16.mxu0 %v1490_v19  ;;  %915 = vmatpush1.bf16.msra.mxu1 %v1498_v21  ;;  %s445_s10 = scalar_lea.vmem %s2183_s2, %s1258_s21  ;;  %s2215_s0 = sld [smem:[#allocation19_spill]]  ;;  %v503_v48 = vcombine.high %v2137_v45, %v2137_v45  ;;  %v1534_v53 = vld [vmem:[#allocation8 + $0xa0] ss:$8 sps:$4 sm:$0xff]   ;;  %v1529_v54 = vld [vmem:[#allocation8 + $0x1b0] ss:$8 sps:$4 sm:$0xff]   ;;  %v502_v63 = vcombine.high %v498_v58, %v498_v58 }
  0xd5   : > { %916 = vmatprep.subr.bf16.mxu1 %v1500_v22  ;;  %v477_v49 = vld [vmem:[%s445_s10] sm:$0xf]  ;;  %v1536_v55 = vld [vmem:[#allocation8 + $0xb4] ss:$8 sps:$4 sm:$0xff]   ;;  %v1532_v59 = vld [vmem:[#allocation8 + $0x1c4] ss:$8 sps:$4 sm:$0xff]   ;;  %v487_v62 = vunpack.c.0.s8 %v486_v47  ;;  %v508_v22 = vpack.c.bf16 %v2137_v45, %v2137_v45 }
  0xd6   : > { %v509_v56 = vpack.c.bf16 %v503_v48, %v503_v48  ;;  %v1540_v0 = vld [vmem:[#allocation8 + $0xb0] ss:$8 sps:$4 sm:$0xff]   ;;  %v507_v1 = vpack.c.bf16 %v502_v63, %v502_v63  ;;  %v1535_v2 = vld [vmem:[#allocation8 + $0x1c0] ss:$8 sps:$4 sm:$0xff]   ;;  %v1542_v3 = vld [vmem:[#allocation8 + $0xc4] ss:$8 sps:$4 sm:$0xff]  }
  0xd7   : > { %958 = vmatpush1.bf16.msra.mxu0 %v1493_v20  ;;  %v1538_v4 = vld [vmem:[#allocation8 + $0x1d4] ss:$8 sps:$4 sm:$0xff]   ;;  %v490_v6 = vsub.s32 %v487_v62, %v2143_v57  ;;  %v1546_v7 = vld [vmem:[#allocation8 + $0xc0] ss:$8 sps:$4 sm:$0xff]   ;;  %v1541_v8 = vld [vmem:[#allocation8 + $0x1d0] ss:$8 sps:$4 sm:$0xff]  }
  0xd8   : > { %959 = vmatprep.subr.bf16.mxu0 %v1496_v23  ;;  %917 = vmatpush1.bf16.msra.mxu1 %v1504_v24  ;;  %v478_v50 = vstv %s2125_s20  ;;  %v1548_v9 = vld [vmem:[#allocation8 + $0xd4] ss:$8 sps:$4 sm:$0xff]   ;;  %v1544_v10 = vld [vmem:[#allocation8 + $0x1e4] ss:$8 sps:$4 sm:$0xff]   ;;  %v1552_v12 = vld [vmem:[#allocation8 + $0xd0] ss:$8 sps:$4 sm:$0xff]  }
  0xd9   : > { %918 = vmatprep.subr.bf16.mxu1 %v1506_v26  ;;  %v481_v52 = vstv %s2127_s18  ;;  %v479_v60 = vmul.f32 %v478_v50, %v477_v49  ;;  %979 = vmatprep.mubr.bf16.mxu0 %v509_v56  ;;  %v1547_v13 = vld [vmem:[#allocation8 + $0x1e0] ss:$8 sps:$4 sm:$0xff]   ;;  %v1555_v14 = vld [vmem:[#allocation8 + $0xe4] ss:$8 sps:$4 sm:$0xff]   ;;  %v1550_v15 = vld [vmem:[#allocation8 + $0x1f4] ss:$8 sps:$4 sm:$0xff]  }
  0xda   : > { %s456_s13 = scalar_lea.vmem %s2215_s0, %s1261_s23  ;;  %938 = vmatprep.mubr.bf16.mxu1 %v507_v1  ;;  %v1557_v17 = vld [vmem:[#allocation8 + $0xe0] ss:$8 sps:$4 sm:$0xff]   ;;  %v1553_v18 = vld [vmem:[#allocation8 + $0x1f0] ss:$8 sps:$4 sm:$0xff]   ;;  %v1558_v19 = vld [vmem:[#allocation8 + $0xf4] ss:$8 sps:$4 sm:$0xff]  }
  0xdb   : > { %960 = vmatpush1.bf16.msra.mxu0 %v1499_v25  ;;  %v480_v51 = vld [vmem:[%s456_s13] sm:$0xf]  ;;  %v1560_v23 = vld [vmem:[#allocation8 + $0xf0] ss:$8 sps:$4 sm:$0xff]   ;;  %v506_v25 = vpack.c.bf16 %v498_v58, %v498_v58  ;;  %v1803_v26 = vmov 0   ;;  %p460_p7 = scmp.lt.s32.totalorder %s1775_s25, 3 }
  0xdc   : > { %961 = vmatprep.subr.bf16.mxu0 %v1502_v27  ;;  %919 = vmatpush1.bf16.msra.mxu1 %v1510_v29  ;;  %v482_v61 = vmul.f32 %v481_v52, %v480_v51  ;;  %v497_v27 = vld [vmem:[#allocation12] sm:$0x3]  ;;  %v574_v29 = vld [vmem:[#allocation10] sm:$0x3]  ;;  %s1263_s9 = sshll.u32 %s2231_s26, 3  ;;  %s2216_s5 = sld [smem:[#allocation24_spill]] }
  0xdd   : > { %920 = vmatprep.subr.bf16.mxu1 %v1512_v30  ;;  %v582_v30 = vsub.s32 1, %v2143_v57  ;;  %s2237_s25 = smov (!%p460_p7, %s1775_s25), 3 }
  0xde   : > { %v483_v5 = vadd.f32 %v482_v61, %v479_v60  ;;  %s1262_s16 = sshll.u32 %s2237_s25, 1 }
  0xdf   : > { %962 = vmatpush1.bf16.msra.mxu0 %v1505_v28  ;;  %v578_v28 = vsub.s32 0, %v2143_v57  ;;  %s464_s12 = sadd.s32 %s1263_s9, %s1262_s16 }
  0xe0   : > { %963 = vmatprep.subr.bf16.mxu0 %v1508_v31  ;;  %921 = vmatpush1.bf16.msra.mxu1 %v1516_v32  ;;  %v491_v11 = vrot.slane %v483_v5, %v490_v6  ;;  %s1264_s19 = sshll.u32 %s464_s12, 1 }
  0xe1   : > { %922 = vmatprep.subr.bf16.mxu1 %v1518_v34 }
  0xe2   : > { %v492_v16 = vcombine.high %v491_v11, %v491_v11  ;;  %v495_v21 = vpack.c.bf16 %v491_v11, %v491_v11  ;;  %s466_s3 = scalar_lea.vmem %s2216_s5, %s1264_s19 }
  0xe3   : > { %964 = vmatpush1.bf16.msra.mxu0 %v1511_v33  ;;  %v579_v33 = vrot.slane %v574_v29, %v578_v28 }
  0xe4   : > { %965 = vmatprep.subr.bf16.mxu0 %v1514_v35  ;;  %923 = vmatpush1.bf16.msra.mxu1 %v1522_v37  ;;  %v496_v20 = vpack.c.bf16 %v492_v16, %v492_v16  ;;  %v994_v24 = vsel %vm992_vm0, %v495_v21, 0  ;;  %v583_v35 = vrot.slane %v574_v29, %v582_v30 }
  0xe5   : > { %924 = vmatprep.subr.bf16.mxu1 %v1524_v38 }
  0xe7   : > { %966 = vmatpush1.bf16.msra.mxu0 %v1517_v36 }
  0xe8   : > { %967 = vmatprep.subr.bf16.mxu0 %v1520_v39  ;;  %925 = vmatpush1.bf16.msra.mxu1 %v1528_v40 }
  0xe9   : > { %926 = vmatprep.subr.bf16.mxu1 %v1530_v43 }
  0xeb   : > { %968 = vmatpush1.bf16.msra.mxu0 %v1523_v41 }
  0xec   : > { %969 = vmatprep.subr.bf16.mxu0 %v1526_v42  ;;  %927 = vmatpush1.bf16.msra.mxu1 %v1534_v53 }
  0xed   : > { %928 = vmatprep.subr.bf16.mxu1 %v1536_v55 }
  0xef   : > { %970 = vmatpush1.bf16.msra.mxu0 %v1529_v54 }
  0xf0   : > { %971 = vmatprep.subr.bf16.mxu0 %v1532_v59  ;;  %929 = vmatpush1.bf16.msra.mxu1 %v1540_v0 }
  0xf1   : > { %930 = vmatprep.subr.bf16.mxu1 %v1542_v3 }
  0xf3   : > { %972 = vmatpush1.bf16.msra.mxu0 %v1535_v2 }
  0xf4   : > { %973 = vmatprep.subr.bf16.mxu0 %v1538_v4  ;;  %931 = vmatpush1.bf16.msra.mxu1 %v1546_v7 }
  0xf5   : > { %932 = vmatprep.subr.bf16.mxu1 %v1548_v9 }
  0xf7   : > { %974 = vmatpush1.bf16.msra.mxu0 %v1541_v8 }
  0xf8   : > { %975 = vmatprep.subr.bf16.mxu0 %v1544_v10  ;;  %933 = vmatpush1.bf16.msra.mxu1 %v1552_v12 }
  0xf9   : > { %934 = vmatprep.subr.bf16.mxu1 %v1555_v14 }
  0xfb   : > { %976 = vmatpush1.bf16.msra.mxu0 %v1547_v13 }
  0xfc   : > { %977 = vmatprep.subr.bf16.mxu0 %v1550_v15  ;;  %935 = vmatpush1.bf16.msra.mxu1 %v1557_v17 }
  0xfd   : > { %936 = vmatprep.subr.bf16.mxu1 %v1558_v19 }
  0xff   : > { %978 = vmatpush1.bf16.msra.mxu0 %v1553_v18 }
 0x100   : > { %1330 = vmatprep.subr.msk.bf16.mxu0 %vm992_vm0, %v496_v20  ;;  %937 = vmatpush1.bf16.msra.mxu1 %v1560_v23 }
 0x102   : > { %980 = vmatmul.mubr.bf16.vlgmr.msra.gmra.mrb[0].mxu0 %v508_v22 }
 0x103   : > { %1000 = vmatpush1.bf16.msra.mxu0 %v994_v24  ;;  %1031 = vmatprep.mubr.bf16.mxu0 %v1803_v26 }
 0x104   : > { %939 = vmatmul.mubr.bf16.vlgmr.msra.gmra.mrb[0].mxu1 %v506_v25 }
 0x10e   : > { %1331 = vmatmul.mubr.msk.bf16.vlgmr.msra.gmra.mrb[0].mxu0 %vm988_vm1, %v497_v27 }
 0x1d7   : > { %v940_v31 = vpop.f32.mrb[0].mxu1 }
 0x1d8   : > { %v942_v32 = vpop.f32.mrb[1].mxu1  ;;  %v941_v37 = vadd.f32 %v940_v31, %v579_v33 }
 0x1d9   : > { %v944_v34 = vpop.f32.mrb[2].mxu1  ;;  %v943_v38 = vadd.f32 %v942_v32, %v583_v35 }
 0x1da   : > { %v945_v36 = vpop.f32.mrb[3].mxu1 }
 0x1e1   : > { %v1033_v39 = vpop.f32.mrb[0].mxu0 }
 0x1e2   : > { %v1339_v40 = vadd.f32 %v1033_v39, %v941_v37  ;;  %v1035_v41 = vpop.f32.mrb[1].mxu0 }
 0x1e3   : > { %v1341_v42 = vadd.f32 %v1035_v41, %v943_v38  ;;  %v1037_v43 = vpop.f32.mrb[2].mxu0 }
 0x1e4   : > { %v1038_v44 = vpop.f32.mrb[3].mxu0 }
 0x1e5   : > { %v1332_v45 = vpack.c.bf16 %v1341_v42, %v1339_v40 }
 0x1e7   : > { %1333 = vst.sshfl [vmem:[%s466_s3] sm:$0x33 pattern:$0x76325410] %v1332_v45 }
 0x1e8 PF: > { %s33_s29 = sadd.s32 1, %s1791_s29   ;;  %s2217_s0 = smov %s1767_s1 }
 0x1e9   : > { %p30_p8 = scmp.ge.s32.totalorder %s33_s29, 10   ;;  %s2218_s1 = smov %s1771_s24 }
 0x1ea   : > { %s2219_s24 = smov %s2043_s30  ;;  %s2220_s25 = smov %s1783_s27 }
 0x1eb   : > { %s2221_s26 = smov %s1787_s28  ;;  %s2222_s27 = smov %s2225_s22 }
 0x1ec   : > { %s2223_s28 = smov %s2229_s14  ;;  %32 = sbr.rel (!%p30_p8) target bundleno = 31 (0x1f), region = 111 }
 0x1f3   :  { %1083 = vsyncpa [#allocation6], 1 }
 0x1f4   :  { %1085 = vsyncpa [#allocation6 + $0x1], 1 }
 0x1f5   :  { %1086 = vsyncpa [#allocation9], 1 }
 0x1f6   :  { %1087 = vsyncpa [#allocation13], 1 }
 0x1f7   :  { %1088 = vsyncpa [#allocation7], 1 }
 0x1f8   :  { %1090 = vsyncpa [#allocation7 + $0x1], 1 }

// kernel: fpn_forward.12
= control target key start
LH: loop header
LB: loop body
LE: loop exit
PB: predicated region body
PF: predicated region fallthrough
CT: control target
= control target key end

     0   :  { %s942_s0 = inlined_call_operand.vmem [shape: s32[16], index: 0, kind: input, shape index: {}]   ;;  %s943_s2 = inlined_call_operand.vmem [shape: f32[2,8,8,256], index: 2, kind: input, shape index: {}, may-alias: {2,3}]   ;;  %s944_s3 = inlined_call_operand.vmem [shape: f32[2,8,8,256], index: 3, kind: input, shape index: {}, may-alias: {2,3}]   ;;  %s945_s4 = inlined_call_operand.vmem [shape: f32[2,16], index: 4, kind: input, shape index: {}]   ;;  %s946_s5 = inlined_call_operand.vmem [shape: bf16[16,8], index: 5, kind: input, shape index: {}]   ;;  %s947_s6 = inlined_call_operand.vmem [shape: f32[2,16,16,256], index: 6, kind: input, shape index: {}]   ;;  %s948_s7 = inlined_call_operand.vmem [shape: bf16[2,16,16,256], index: 7, kind: output, shape index: {}]   ;;  %s949_s1 = inlined_call_operand.vmem [shape: s32[16], index: 1, kind: input, shape index: {}]  }
   0x1   :  { %950 = sst [smem:[#allocation9_spill]] %s945_s4  ;;  %s12_s26 = sshll.u32 %s942_s0, 4  ;;  %s13_s26 = int_to_ptr.vmem [resolvable:$true] %s12_s26 }
   0x2   :  { %s16_s29 = sshll.u32 %s949_s1, 4  ;;  %s708_s30 = scalar_lea.vmem %s13_s26, 16  ;;  %s17_s29 = int_to_ptr.vmem [resolvable:$true] %s16_s29 }
   0x3   :  { %p709_p0 = scmp.ne.s32.totalorder %s13_s26, %s708_s30  ;;  %p713_p1 = scmp.lt.s32.totalorder %s13_s26, %s13_s26 }
   0x4   :  { %p714_p2 = scmp.lt.s32.totalorder %s708_s30, %s708_s30 }
   0x6   :  { %p715_p3 = por %p714_p2, %p713_p1 }
   0x8   :  { %p716_p4 = pnand %p715_p3, %p709_p0 }
   0xa   :  { %719 = shalt.err (!%p716_p4)  }
   0xb   :  { %s793_s8 = smov [#allocation3]   ;;  %s720_s9 = scalar_lea.vmem %s17_s29, 16 }
   0xc   :  { %15 = dma.vmem_to_smem %s13_s26, 16, %s793_s8, [#allocation2] }
   0xd   :  { %p721_p5 = scmp.ne.s32.totalorder %s17_s29, %s720_s9  ;;  %p725_p6 = scmp.lt.s32.totalorder %s17_s29, %s17_s29 }
   0xe   :  { %p726_p7 = scmp.lt.s32.totalorder %s720_s9, %s720_s9 }
  0x10   :  { %p727_p8 = por %p726_p7, %p725_p6 }
  0x12   :  { %p728_p9 = pnand %p727_p8, %p721_p5 }
  0x14   :  { %731 = shalt.err (!%p728_p9)  }
  0x15   :  { %s794_s0 = smov [#allocation4]  }
  0x16   :  { %19 = dma.vmem_to_smem %s17_s29, 16, %s794_s0, [#allocation2] }
  0x17   :  { %767 = dma.done.wait [#allocation2], 32 }
  0x18   :  { %768 = vsyncadd [#allocation2], 4294967264 }
  0x19   :  { %21 = sfence }
  0x1a   :  { %22 = vsyncpa [#allocation6], 0  ;;  %s843_s1 = smov 0   ;;  %s845_s10 = smov 0  }
  0x1b   :  { %s847_s11 = smov 0   ;;  %s849_s12 = smov 0  }
  0x1c   :  { %s851_s13 = smov 0  }
  0x1d LB: > { %s622_s14 = sadd.s32 4294967295, %s791_s13   ;;  %s37_s15 = sadd.s32 1, %s783_s11  ;;  %s791_s13 = sphi %s851_s13, %s28_s13   ;;  %s787_s12 = sphi %s849_s12, %s957_s12   ;;  %s783_s11 = sphi %s847_s11, %s956_s11   ;;  %s779_s10 = sphi %s845_s10, %s955_s10   ;;  %s775_s1 = sphi %s843_s1, %s954_s1  }
  0x1e   : > { %p38_p10 = scmp.ge.s32.totalorder %s37_s15, 16  ;;  %s40_s16 = sadd.s32 1, %s787_s12 }
  0x1f   : > { %p624_p11 = scmp.ge.s32.totalorder %s791_s13, 1  ;;  %p203_p12 = scmp.lt.s32.totalorder %s791_s13, 33 }
  0x20   : > { %s959_s15 = smov (%p38_p10, %s37_s15), 0  ;;  %s961_s16 = smov (!%p38_p10, %s40_s16), %s787_s12 }
  0x21   : > { %p876_p13 = pnand %p624_p11, %p203_p12  ;;  %p42_p0 = scmp.ge.s32.totalorder %s961_s16, 2 }
  0x22   : > { %p880_p1 = scmp.eq.s32.totalorder %s622_s14, 0  ;;  %s953_s4 = sld [smem:[#allocation9_spill]] }
  0x23   : > { %p657_p2 = pneg %p876_p13  ;;  %s963_s16 = smov (%p42_p0, %s961_s16), 0 }
  0x25   : > { %p658_p3 = pnand %p880_p1, %p657_p2 }
  0x27   : > { %p734_p5 = pneg %p658_p3 }
  0x28   : > { %s216_s21 = sshll.u32 %s953_s4, 4  ;;  %s217_s21 = int_to_ptr.vmem [resolvable:$true] %s216_s21 }
  0x29   : > { %s732_s22 = scalar_lea.vmem %s217_s21, 32  ;;  %p740_p8 = scmp.lt.s32.totalorder %s217_s21, %s217_s21 }
  0x2a   : > { %p733_p4 = scmp.ne.s32.totalorder %s217_s21, %s732_s22  ;;  %p741_p9 = scmp.lt.s32.totalorder %s732_s22, %s732_s22 }
  0x2c   : > { %p735_p6 = pnand %p734_p5, %p733_p4  ;;  %p742_p10 = por %p741_p9, %p740_p8 }
  0x2e   : > { %p736_p7 = pneg %p735_p6 }
  0x30   : > { %p743_p11 = pnand %p742_p10, %p736_p7 }
  0x32   : > { %746 = shalt.err (!%p743_p11)
}
  0x33   : > { %s795_s23 = smov [#allocation5]   ;;  %272 = sbr.rel (%p876_p13) target bundleno = 306 (0x132), region = 40 }
  0x34   : > { %660 = dma.vmem_to_smem (!%p658_p3), %s217_s21, 32, %s795_s23, [#allocation6]  }
  0x3a   : > { %770 = dma.done.wait (%p880_p1), [#allocation6], 32  }
  0x3b   : > { %772 = vsyncadd (%p880_p1), [#allocation6], 4294967264 }
  0x3c   : > { %278 = sfence }
  0x3d   : > { %s329_s24 = sld [smem:[#allocation3 + %s775_s1]]  ;;  %p330_p12 = scmp.lt.s32.totalorder %s779_s10, 1  ;;  %v796_v0 = vmov 0   ;;  %vm408_vm0 = vcmask 1043456   ;;  %v707_v16 = vld [vmem:[%s946_s5] sm:$0xff]   ;;  %vm404_vm1 = vcmask 64512  }
  0x3e   : > { %s340_s25 = sld [smem:[#allocation4 + %s775_s1]]  ;;  %447 = vmatprep.mubr.bf16.mxu0 %v796_v0  ;;  %s371_s26 = sshra.s32 %s775_s1, 7 }
  0x3f   : > { %s965_s10 = smov (!%p330_p12, %s779_s10), 1  ;;  %s376_s27 = sand.u32 127, %s775_s1 }
  0x40   : > { %s370_s28 = sld [smem:[#allocation5 + %s775_s1]]  ;;  %s649_s29 = sshll.u32 %s371_s26, 7 }
  0x41   : > { %s630_s30 = sshll.u32 %s965_s10, 4  ;;  %s650_s8 = sadd.s32 128, %s649_s29 }
  0x42   : > { %s377_s9 = sadd.s32 %s650_s8, %s376_s27  ;;  %p353_p1 = scmp.lt.s32.totalorder %s775_s1, 15 }
  0x43   : > { %p332_p13 = scmp.lt.s32.totalorder %s329_s24, 7  ;;  %s378_s0 = sld [smem:[#allocation5 + %s377_s9]] }
  0x44   : > { %p343_p0 = scmp.lt.s32.totalorder %s340_s25, 7  ;;  %s971_s1 = smov (!%p353_p1, %s775_s1), 15 }
  0x45   : > { %s967_s24 = smov (!%p332_p13, %s329_s24), 7 }
  0x46   : > { %s969_s25 = smov (!%p343_p0, %s340_s25), 7  ;;  %s629_s14 = sshll.u32 %s967_s24, 1  ;;  %v381_v1 = vstv %s370_s28 }
  0x47   : > { %s336_s17 = sadd.s32 %s630_s30, %s629_s14  ;;  %s632_s18 = sshll.u32 %s969_s25, 1 }
  0x48   : > { %s631_s19 = sshll.u32 %s336_s17, 3  ;;  %s347_s20 = sadd.s32 %s632_s18, %s630_s30 }
  0x49   : > { %s338_s23 = scalar_lea.vmem %s943_s2, %s631_s19  ;;  %s634_s4 = sshll.u32 %s347_s20, 3  ;;  %v386_v2 = vstv %s378_s0 }
  0x4a   : > { %s349_s27 = scalar_lea.vmem %s944_s3, %s634_s4  ;;  %v380_v3 = vld [vmem:[%s338_s23 + $0x8] sm:$0xff]  ;;  %v379_v4 = vld [vmem:[%s338_s23] sm:$0xff]  ;;  %s635_s25 = sshll.u32 %s971_s1, 2 }
  0x4b   : > { %v383_v5 = vmul.f32 %v381_v1, %v380_v3  ;;  %v385_v6 = vld [vmem:[%s349_s27 + $0x8] sm:$0xff]  ;;  %v382_v7 = vmul.f32 %v381_v1, %v379_v4  ;;  %v384_v8 = vld [vmem:[%s349_s27] sm:$0xff]  ;;  %s636_s28 = sshll.u32 %s965_s10, 6 }
  0x4c   : > { %v388_v9 = vmul.f32 %v386_v2, %v385_v6  ;;  %v387_v10 = vmul.f32 %v386_v2, %v384_v8  ;;  %s357_s30 = sadd.s32 %s636_s28, %s635_s25 }
  0x4d   : > { %s637_s8 = sshll.u32 %s357_s30, 3  ;;  %s640_s17 = sshll.u32 %s357_s30, 2 }
  0x4e   : > { %v390_v11 = vadd.f32 %v388_v9, %v383_v5  ;;  %v389_v12 = vadd.f32 %v387_v10, %v382_v7  ;;  %s359_s14 = scalar_lea.vmem %s947_s6, %s637_s8  ;;  %s368_s1 = scalar_lea.vmem %s948_s7, %s640_s17 }
  0x4f   : > { %v395_v17 = vld [vmem:[%s359_s14] sm:$0xff]  ;;  %v396_v18 = vld [vmem:[%s359_s14 + $0x8] sm:$0xff]  ;;  %v397_v20 = vld [vmem:[%s359_s14 + $0x10] sm:$0xff] }
  0x50   : > { %v392_v13 = vpack.c.bf16 %v390_v11, %v390_v11  ;;  %v391_v14 = vpack.c.bf16 %v389_v12, %v389_v12  ;;  %v398_v23 = vld [vmem:[%s359_s14 + $0x18] sm:$0xff] }
  0x52   : > { %643 = vmatprep.subr.msk.bf16.mxu0 %vm408_vm0, %v392_v13  ;;  %v410_v15 = vsel %vm408_vm0, %v391_v14, 0 }
  0x53   : > { %416 = vmatpush1.bf16.msra.mxu0 %v410_v15 }
  0x56   : > { %644 = vmatmul.mubr.msk.bf16.vlgmr.msra.gmra.mrb[0].mxu0 %vm404_vm1, %v707_v16 }
 0x129   : > { %v449_v19 = vpop.f32.mrb[0].mxu0 }
 0x12a   : > { %v450_v21 = vadd.f32 %v449_v19, %v395_v17  ;;  %v451_v22 = vpop.f32.mrb[1].mxu0 }
 0x12b   : > { %v452_v24 = vadd.f32 %v451_v22, %v396_v18  ;;  %v453_v25 = vpop.f32.mrb[2].mxu0 }
 0x12c   : > { %v454_v26 = vadd.f32 %v453_v25, %v397_v20  ;;  %v455_v27 = vpop.f32.mrb[3].mxu0 }
 0x12d   : > { %v651_v28 = vpack.c.bf16 %v452_v24, %v450_v21  ;;  %v456_v29 = vadd.f32 %v455_v27, %v398_v23 }
 0x12f   : > { %470 = vst [vmem:[%s368_s1] sm:$0xff] %v651_v28  ;;  %v652_v30 = vpack.c.bf16 %v456_v29, %v454_v26 }
 0x131   : > { %471 = vst [vmem:[%s368_s1 + $0x8] sm:$0xff] %v652_v30 }
 0x132 PF: > { %s28_s13 = sadd.s32 1, %s791_s13   ;;  %s954_s1 = smov %s783_s11 }
 0x133   : > { %p25_p2 = scmp.ge.s32.totalorder %s28_s13, 34   ;;  %s955_s10 = smov %s787_s12 }
 0x134   : > { %s956_s11 = smov %s959_s15  ;;  %s957_s12 = smov %s963_s16 }
 0x135   :  { %27 = sbr.rel (!%p25_p2) target bundleno = 29 (0x1d), region = 81 }
 0x13c   :  { %501 = vsyncpa [#allocation6], 1 }
 0x13d   :  { %503 = vsyncpa [#allocation6 + $0x1], 1 }

// kernel: fpn_forward.9
= control target key start
LH: loop header
LB: loop body
LE: loop exit
PB: predicated region body
PF: predicated region fallthrough
CT: control target
= control target key end

     0   :  { %10 = vsyncpa [#allocation3], 0  ;;  %s3902_s0 = inlined_call_operand.vmem [shape: bf16[2,6,6,256], index: 0, kind: input, shape index: {}, may-alias: {0,1,2}]   ;;  %s3903_s1 = inlined_call_operand.vmem [shape: bf16[2,6,6,256], index: 1, kind: input, shape index: {}, may-alias: {0,1,2}]   ;;  %s3904_s2 = inlined_call_operand.vmem [shape: bf16[2,6,6,256], index: 2, kind: input, shape index: {}, may-alias: {0,1,2}]   ;;  %s3905_s3 = inlined_call_operand.hbm [shape: bf16[3,3,256,256], index: 3, kind: input, shape index: {}]   ;;  %s3906_s4 = inlined_call_operand.hbm [shape: f32[1,256], index: 4, kind: input, shape index: {}]   ;;  %s3907_s5 = inlined_call_operand.vmem [shape: f32[2,4,4,256], index: 5, kind: output, shape index: {}]  }
   0x1   :  { %11 = vsyncpa [#allocation5], 0  ;;  %s3707_s18 = smov 0   ;;  %s3709_s19 = smov 0  }
   0x2   :  { %s3711_s20 = smov 0   ;;  %s3713_s21 = smov 0  }
   0x3   :  { %s3715_s22 = smov 0  }
   0x4 LB: > { %s2753_s23 = sadd.s32 4294967295, %s3671_s22   ;;  %s26_s24 = sadd.s32 1, %s3663_s20  ;;  %s3671_s22 = sphi %s3715_s22, %s17_s22   ;;  %s3667_s21 = sphi %s3713_s21, %s3919_s21   ;;  %s3663_s20 = sphi %s3711_s20, %s3918_s20   ;;  %s3659_s19 = sphi %s3709_s19, %s3917_s19   ;;  %s3655_s18 = sphi %s3707_s18, %s3916_s18  }
   0x5   : > { %p27_p0 = scmp.ge.s32.totalorder %s26_s24, 4  ;;  %s29_s25 = sadd.s32 1, %s3667_s21 }
   0x6   : > { %p2755_p1 = scmp.ge.s32.totalorder %s3671_s22, 1  ;;  %p192_p2 = scmp.lt.s32.totalorder %s3671_s22, 9 }
   0x7   : > { %s3921_s24 = smov (%p27_p0, %s26_s24), 0  ;;  %s3923_s25 = smov (!%p27_p0, %s29_s25), %s3667_s21 }
   0x8   : > { %p3740_p3 = pnand %p2755_p1, %p192_p2  ;;  %p31_p4 = scmp.ge.s32.totalorder %s3923_s25, 2 }
   0x9   : > { %p3744_p5 = scmp.eq.s32.totalorder %s2753_s23, 0  ;;  %s3673_s28 = smov [#allocation2]  }
   0xa   : > { %s3911_s26 = scalar_select %p3740_p3, 1, 0 }
   0xb   : > { %s3912_s27 = scalar_select %p3744_p5, 1, 0 }
   0xc   : > { %p3076_p6 = pneg %p3740_p3  ;;  %s3925_s25 = smov (%p31_p4, %s3923_s25), 0 }
   0xd   : > { %s204_s29 = sshll.u32 %s3673_s28, 4  ;;  %s3569_s8 = scalar_lea.hbm %s3905_s3, 36864  ;;  %s205_s29 = int_to_ptr.vmem [resolvable:$true] %s204_s29 }
   0xe   : > { %p3754_p7 = pnand %p3744_p5, %p3076_p6  ;;  %p3570_p8 = scmp.ne.s32.totalorder %s3905_s3, %s3569_s8 }
   0xf   : > { %p3576_p12 = scmp.lt.u32.totalorder %s3569_s8, %s3905_s3 }
  0x10   : > { %p3571_p9 = pneg %p3754_p7 }
  0x12   : > { %p3572_p10 = pnand %p3571_p9, %p3570_p8 }
  0x14   : > { %p3573_p11 = pneg %p3572_p10 }
  0x16   : > { %p3578_p13 = pnand %p3576_p12, %p3573_p11 }
  0x18   : > { %3581 = shalt.err (!%p3578_p13)
}
  0x19   : > { %s3582_s13 = scalar_lea.vmem %s205_s29, 36864  ;;  %p3590_p4 = scmp.lt.s32.totalorder %s205_s29, %s205_s29 }
  0x1a   : > { %p3583_p0 = scmp.ne.s32.totalorder %s205_s29, %s3582_s13  ;;  %p3591_p6 = scmp.lt.s32.totalorder %s3582_s13, %s3582_s13 }
  0x1c   : > { %p3585_p1 = pnand %p3583_p0, %p3571_p9  ;;  %p3592_p5 = por %p3591_p6, %p3590_p4 }
  0x1e   : > { %p3586_p2 = pneg %p3585_p1 }
  0x20   : > { %p3593_p3 = pnand %p3592_p5, %p3586_p2 }
  0x22   : > { %3596 = shalt.err (!%p3593_p3)
}
  0x23   : > { %s3674_s14 = smov 128   ;;  %s3675_s15 = smov 8  }
  0x24   : > { %3079 = dma.hbm_to_vmem [thread:$0]  (!%p3754_p7), %s3905_s3, 36864, %s205_s29, [#allocation3], %s3674_s14, %s3674_s14, %s3675_s15  }
  0x25   : > { %s3676_s23 = smov [#allocation4]   ;;  %s3597_s8 = scalar_lea.hbm %s3906_s4, 32 }
  0x26   : > { %s218_s28 = sshll.u32 %s3676_s23, 4  ;;  %p3598_p3 = scmp.ne.s32.totalorder %s3906_s4, %s3597_s8  ;;  %s219_s28 = int_to_ptr.vmem [resolvable:$true] %s218_s28 }
  0x27   : > { %p3604_p10 = scmp.lt.u32.totalorder %s3597_s8, %s3906_s4 }
  0x28   : > { %p3600_p5 = pnand %p3598_p3, %p3571_p9 }
  0x2a   : > { %p3601_p8 = pneg %p3600_p5 }
  0x2c   : > { %p3606_p11 = pnand %p3604_p10, %p3601_p8 }
  0x2e   : > { %3609 = shalt.err (!%p3606_p11)
}
  0x2f   : > { %s3610_s29 = scalar_lea.vmem %s219_s28, 32  ;;  %p3618_p1 = scmp.lt.s32.totalorder %s219_s28, %s219_s28 }
  0x30   : > { %p3611_p12 = scmp.ne.s32.totalorder %s219_s28, %s3610_s29  ;;  %p3619_p2 = scmp.lt.s32.totalorder %s3610_s29, %s3610_s29 }
  0x32   : > { %p3613_p13 = pnand %p3611_p12, %p3571_p9  ;;  %p3620_p4 = por %p3619_p2, %p3618_p1 }
  0x34   : > { %p3614_p0 = pneg %p3613_p13 }
  0x36   : > { %p3621_p6 = pnand %p3620_p4, %p3614_p0 }
  0x38   : > { %3624 = shalt.err (!%p3621_p6)
}
  0x39   : > { %3082 = dma.hbm_to_vmem [thread:$0]  (!%p3754_p7), %s3906_s4, 32, %s219_s28, [#allocation5]  }
  0x3a   : > { %p3914_p3 = scmp.ne.s32.totalorder %s3911_s26, 0 }
  0x3b   : > { %p3915_p5 = scmp.ne.s32.totalorder (!%p3914_p3), %s3912_s27, 0 }
  0x3c   : > { %271 = sbr.rel (%p3914_p3) target bundleno = 611 (0x263), region = 40 }
  0x43   : > { %3646 = dma.done.wait (%p3915_p5), [#allocation3], 36864  }
  0x44   : > { %3648 = vsyncadd (%p3915_p5), [#allocation3], 4294930432 }
  0x45   : > { %3650 = dma.done.wait (%p3915_p5), [#allocation5], 32  }
  0x46   : > { %3652 = vsyncadd (%p3915_p5), [#allocation5], 4294967264  ;;  %v3131_v0 = vld [vmem:[#allocation2 + $0x104] ss:$8 sps:$4 sm:$0xff]   ;;  %v3135_v2 = vld [vmem:[#allocation2 + $0x100] ss:$8 sps:$4 sm:$0xff]  }
  0x47   : > { %v3133_v1 = vld [vmem:[#allocation2 + $0x4] ss:$8 sps:$4 sm:$0xff]   ;;  %618 = vmatprep.subr.bf16.mxu0 %v3131_v0  ;;  %v3136_v3 = vld [vmem:[#allocation2] ss:$8 sps:$4 sm:$0xff]   ;;  %v3137_v4 = vld [vmem:[#allocation2 + $0x114] ss:$8 sps:$4 sm:$0xff]  }
  0x48   : > { %821 = vmatprep.subr.bf16.mxu1 %v3133_v1  ;;  %619 = vmatpush1.bf16.msra.mxu0 %v3135_v2  ;;  %v3139_v5 = vld [vmem:[#allocation2 + $0x14] ss:$8 sps:$4 sm:$0xff]   ;;  %v3141_v6 = vld [vmem:[#allocation2 + $0x110] ss:$8 sps:$4 sm:$0xff]   ;;  %v3143_v8 = vld [vmem:[#allocation2 + $0x124] ss:$8 sps:$4 sm:$0xff]  }
  0x49   : > { %822 = vmatpush1.bf16.msra.mxu1 %v3136_v3  ;;  %620 = vmatprep.subr.bf16.mxu0 %v3137_v4  ;;  %v3142_v7 = vld [vmem:[#allocation2 + $0x10] ss:$8 sps:$4 sm:$0xff]   ;;  %v3145_v9 = vld [vmem:[#allocation2 + $0x24] ss:$8 sps:$4 sm:$0xff]   ;;  %v3147_v10 = vld [vmem:[#allocation2 + $0x120] ss:$8 sps:$4 sm:$0xff]  }
  0x4a   : > { %823 = vmatprep.subr.bf16.mxu1 %v3139_v5  ;;  %v3148_v11 = vld [vmem:[#allocation2 + $0x20] ss:$8 sps:$4 sm:$0xff]   ;;  %v3149_v12 = vld [vmem:[#allocation2 + $0x134] ss:$8 sps:$4 sm:$0xff]   ;;  %v3153_v14 = vld [vmem:[#allocation2 + $0x130] ss:$8 sps:$4 sm:$0xff]  }
  0x4b   : > { %v3151_v13 = vld [vmem:[#allocation2 + $0x34] ss:$8 sps:$4 sm:$0xff]   ;;  %v3154_v15 = vld [vmem:[#allocation2 + $0x30] ss:$8 sps:$4 sm:$0xff]   ;;  %v3155_v16 = vld [vmem:[#allocation2 + $0x144] ss:$8 sps:$4 sm:$0xff]  }
  0x4c   : > { %621 = vmatpush1.bf16.msra.mxu0 %v3141_v6  ;;  %v3157_v17 = vld [vmem:[#allocation2 + $0x44] ss:$8 sps:$4 sm:$0xff]   ;;  %v3159_v18 = vld [vmem:[#allocation2 + $0x140] ss:$8 sps:$4 sm:$0xff]   ;;  %v3161_v20 = vld [vmem:[#allocation2 + $0x154] ss:$8 sps:$4 sm:$0xff]  }
  0x4d   : > { %824 = vmatpush1.bf16.msra.mxu1 %v3142_v7  ;;  %622 = vmatprep.subr.bf16.mxu0 %v3143_v8  ;;  %v3160_v19 = vld [vmem:[#allocation2 + $0x40] ss:$8 sps:$4 sm:$0xff]   ;;  %v3163_v21 = vld [vmem:[#allocation2 + $0x54] ss:$8 sps:$4 sm:$0xff]   ;;  %v3165_v22 = vld [vmem:[#allocation2 + $0x150] ss:$8 sps:$4 sm:$0xff]  }
  0x4e   : > { %825 = vmatprep.subr.bf16.mxu1 %v3145_v9  ;;  %v3166_v23 = vld [vmem:[#allocation2 + $0x50] ss:$8 sps:$4 sm:$0xff]   ;;  %v3167_v24 = vld [vmem:[#allocation2 + $0x164] ss:$8 sps:$4 sm:$0xff]   ;;  %p331_p7 = scmp.lt.s32.totalorder %s3659_s19, 1  ;;  %p333_p9 = scmp.lt.s32.totalorder %s3655_s18, 5 }
  0x4f   : > { %v3169_v25 = vld [vmem:[#allocation2 + $0x64] ss:$8 sps:$4 sm:$0xff]   ;;  %v3171_v26 = vld [vmem:[#allocation2 + $0x160] ss:$8 sps:$4 sm:$0xff]   ;;  %v3173_v28 = vld [vmem:[#allocation2 + $0x174] ss:$8 sps:$4 sm:$0xff]  }
  0x50   : > { %623 = vmatpush1.bf16.msra.mxu0 %v3147_v10  ;;  %v3172_v27 = vld [vmem:[#allocation2 + $0x60] ss:$8 sps:$4 sm:$0xff]   ;;  %v3175_v29 = vld [vmem:[#allocation2 + $0x74] ss:$8 sps:$4 sm:$0xff]   ;;  %s3927_s19 = smov (!%p331_p7, %s3659_s19), 1  ;;  %s340_s6 = sadd.s32 1, %s3655_s18 }
  0x51   : > { %826 = vmatpush1.bf16.msra.mxu1 %v3148_v11  ;;  %624 = vmatprep.subr.bf16.mxu0 %v3149_v12  ;;  %s334_s26 = scalar_select %p333_p9, %s3655_s18, 5  ;;  %v3177_v30 = vld [vmem:[#allocation2 + $0x170] ss:$8 sps:$4 sm:$0xff]   ;;  %v3179_v32 = vld [vmem:[#allocation2 + $0x184] ss:$8 sps:$4 sm:$0xff]  }
  0x52   : > { %827 = vmatprep.subr.bf16.mxu1 %v3151_v13  ;;  %v3178_v31 = vld [vmem:[#allocation2 + $0x70] ss:$8 sps:$4 sm:$0xff]   ;;  %v3181_v33 = vld [vmem:[#allocation2 + $0x84] ss:$8 sps:$4 sm:$0xff]   ;;  %s3817_s27 = smul.u32 12, %s3927_s19  ;;  %p343_p8 = scmp.lt.s32.totalorder %s340_s6, 5 }
  0x53   : > { %s2762_s30 = sshll.u32 %s334_s26, 1  ;;  %v3183_v34 = vld [vmem:[#allocation2 + $0x180] ss:$8 sps:$4 sm:$0xff]   ;;  %v3185_v36 = vld [vmem:[#allocation2 + $0x194] ss:$8 sps:$4 sm:$0xff]   ;;  %s351_s29 = sadd.s32 2, %s3655_s18 }
  0x54   : > { %625 = vmatpush1.bf16.msra.mxu0 %v3153_v14  ;;  %v3184_v35 = vld [vmem:[#allocation2 + $0x80] ss:$8 sps:$4 sm:$0xff]   ;;  %v3187_v37 = vld [vmem:[#allocation2 + $0x94] ss:$8 sps:$4 sm:$0xff]   ;;  %s337_s15 = sadd.s32 %s3817_s27, %s2762_s30  ;;  %v3189_v38 = vld [vmem:[#allocation2 + $0x190] ss:$8 sps:$4 sm:$0xff]  }
  0x55   : > { %828 = vmatpush1.bf16.msra.mxu1 %v3154_v15  ;;  %626 = vmatprep.subr.bf16.mxu0 %v3155_v16  ;;  %v3190_v39 = vld [vmem:[#allocation2 + $0x90] ss:$8 sps:$4 sm:$0xff]   ;;  %v3191_v40 = vld [vmem:[#allocation2 + $0x1a4] ss:$8 sps:$4 sm:$0xff]   ;;  %s2763_s16 = sshll.u32 %s337_s15, 2  ;;  %s3929_s6 = smov (!%p343_p8, %s340_s6), 5 }
  0x56   : > { %829 = vmatprep.subr.bf16.mxu1 %v3157_v17  ;;  %v3193_v41 = vld [vmem:[#allocation2 + $0xa4] ss:$8 sps:$4 sm:$0xff]   ;;  %v3195_v42 = vld [vmem:[#allocation2 + $0x1a0] ss:$8 sps:$4 sm:$0xff]   ;;  %s339_s28 = scalar_lea.vmem %s3902_s0, %s2763_s16  ;;  %v3197_v44 = vld [vmem:[#allocation2 + $0x1b4] ss:$8 sps:$4 sm:$0xff]  }
  0x57   : > { %v3196_v43 = vld [vmem:[#allocation2 + $0xa0] ss:$8 sps:$4 sm:$0xff]   ;;  %v3199_v45 = vld [vmem:[#allocation2 + $0xb4] ss:$8 sps:$4 sm:$0xff]   ;;  %v3201_v47 = vld [vmem:[#allocation2 + $0x1b0] ss:$8 sps:$4 sm:$0xff]  }
  0x58   : > { %627 = vmatpush1.bf16.msra.mxu0 %v3159_v18  ;;  %v371_v46 = vld [vmem:[%s339_s28] sm:$0x77]  ;;  %v3202_v49 = vld [vmem:[#allocation2 + $0xb0] ss:$8 sps:$4 sm:$0xff]   ;;  %v3209_v57 = vld [vmem:[#allocation2 + $0x1d4] ss:$8 sps:$4 sm:$0xff]  }
  0x59   : > { %830 = vmatpush1.bf16.msra.mxu1 %v3160_v19  ;;  %628 = vmatprep.subr.bf16.mxu0 %v3161_v20  ;;  %v3823_v48 = vcombine.high %v371_v46, %v371_v46  ;;  %v3203_v50 = vld [vmem:[#allocation2 + $0x1c4] ss:$8 sps:$4 sm:$0xff]   ;;  %v3207_v54 = vld [vmem:[#allocation2 + $0x1c0] ss:$8 sps:$4 sm:$0xff]   ;;  %v3211_v58 = vld [vmem:[#allocation2 + $0xd4] ss:$8 sps:$4 sm:$0xff]   ;;  %v3828_v62 = vcombine.low %v371_v46, %v371_v46 }
  0x5a   : > { %831 = vmatprep.subr.bf16.mxu1 %v3163_v21  ;;  %v3205_v51 = vld [vmem:[#allocation2 + $0xc4] ss:$8 sps:$4 sm:$0xff]   ;;  %v3208_v55 = vld [vmem:[#allocation2 + $0xc0] ss:$8 sps:$4 sm:$0xff]   ;;  %v3213_v60 = vld [vmem:[#allocation2 + $0x1d0] ss:$8 sps:$4 sm:$0xff]  }
  0x5b   : > { %v450_v52 = vshrl.u32 %v3823_v48, 16  ;;  %v452_v53 = vshll.u32 %v3823_v48, 16  ;;  %853 = vmatprep.mubr.bf16.mxu1 %v3823_v48  ;;  %v3214_v61 = vld [vmem:[#allocation2 + $0xd0] ss:$8 sps:$4 sm:$0xff]   ;;  %v3215_v63 = vld [vmem:[#allocation2 + $0x1e4] ss:$8 sps:$4 sm:$0xff]  }
  0x5c   : > { %629 = vmatpush1.bf16.msra.mxu0 %v3165_v22  ;;  %v3217_v0 = vld [vmem:[#allocation2 + $0xe4] ss:$8 sps:$4 sm:$0xff]   ;;  %v3219_v1 = vld [vmem:[#allocation2 + $0x1e0] ss:$8 sps:$4 sm:$0xff]   ;;  %v445_v3 = vshll.u32 %v3828_v62, 16  ;;  %v443_v8 = vshrl.u32 %v3828_v62, 16 }
  0x5d   : > { %832 = vmatpush1.bf16.msra.mxu1 %v3166_v23  ;;  %630 = vmatprep.subr.bf16.mxu0 %v3167_v24  ;;  %v454_v56 = vrot.slane %v452_v53, 1  ;;  %v3220_v2 = vld [vmem:[#allocation2 + $0xe0] ss:$8 sps:$4 sm:$0xff]   ;;  %v3221_v4 = vld [vmem:[#allocation2 + $0x1f4] ss:$8 sps:$4 sm:$0xff]   ;;  %v896_v17 = vrot.slane %v3823_v48, 1 }
  0x5e   : > { %833 = vmatprep.subr.bf16.mxu1 %v3169_v25  ;;  %v3223_v5 = vld [vmem:[#allocation2 + $0xf4] ss:$8 sps:$4 sm:$0xff]   ;;  %v3225_v6 = vld [vmem:[#allocation2 + $0x1f0] ss:$8 sps:$4 sm:$0xff]   ;;  %v447_v9 = vrot.slane %v445_v3, 1  ;;  %s2764_s7 = sshll.u32 %s3929_s6, 1 }
  0x5f   : > { %v455_v59 = vor.u32 %v454_v56, %v450_v52  ;;  %v3226_v7 = vld [vmem:[#allocation2 + $0xf0] ss:$8 sps:$4 sm:$0xff]   ;;  %v3231_v10 = vld [vmem:[#allocation2 + $0x204] ss:$8 sps:$4 sm:$0xff]   ;;  %v3229_v13 = vld [vmem:[#allocation2 + $0x200] ss:$8 sps:$4 sm:$0xff]   ;;  %s347_s8 = sadd.s32 %s3817_s27, %s2764_s7 }
  0x60   : > { %631 = vmatpush1.bf16.msra.mxu0 %v3171_v26  ;;  %v3234_v11 = vld [vmem:[#allocation2 + $0x304] ss:$8 sps:$4 sm:$0xff]   ;;  %v448_v12 = vor.u32 %v447_v9, %v443_v8  ;;  %v3232_v14 = vld [vmem:[#allocation2 + $0x300] ss:$8 sps:$4 sm:$0xff]   ;;  %v3237_v15 = vld [vmem:[#allocation2 + $0x214] ss:$8 sps:$4 sm:$0xff]  }
  0x61   : > { %834 = vmatpush1.bf16.msra.mxu1 %v3172_v27  ;;  %632 = vmatprep.subr.bf16.mxu0 %v3173_v28  ;;  %v3240_v16 = vld [vmem:[#allocation2 + $0x314] ss:$8 sps:$4 sm:$0xff]   ;;  %v3235_v18 = vld [vmem:[#allocation2 + $0x210] ss:$8 sps:$4 sm:$0xff]   ;;  %v3243_v20 = vld [vmem:[#allocation2 + $0x224] ss:$8 sps:$4 sm:$0xff]  }
  0x62   : > { %835 = vmatprep.subr.bf16.mxu1 %v3175_v29  ;;  %650 = vmatprep.mubr.bf16.mxu0 %v455_v59  ;;  %v3238_v19 = vld [vmem:[#allocation2 + $0x310] ss:$8 sps:$4 sm:$0xff]   ;;  %v3246_v21 = vld [vmem:[#allocation2 + $0x324] ss:$8 sps:$4 sm:$0xff]   ;;  %v3241_v22 = vld [vmem:[#allocation2 + $0x220] ss:$8 sps:$4 sm:$0xff]  }
  0x63   : > { %v3244_v23 = vld [vmem:[#allocation2 + $0x320] ss:$8 sps:$4 sm:$0xff]   ;;  %v3249_v24 = vld [vmem:[#allocation2 + $0x234] ss:$8 sps:$4 sm:$0xff]   ;;  %v3247_v26 = vld [vmem:[#allocation2 + $0x230] ss:$8 sps:$4 sm:$0xff]  }
  0x64   : > { %633 = vmatpush1.bf16.msra.mxu0 %v3177_v30  ;;  %v3252_v25 = vld [vmem:[#allocation2 + $0x334] ss:$8 sps:$4 sm:$0xff]   ;;  %v3250_v27 = vld [vmem:[#allocation2 + $0x330] ss:$8 sps:$4 sm:$0xff]   ;;  %v3255_v28 = vld [vmem:[#allocation2 + $0x244] ss:$8 sps:$4 sm:$0xff]  }
  0x65   : > { %836 = vmatpush1.bf16.msra.mxu1 %v3178_v31  ;;  %634 = vmatprep.subr.bf16.mxu0 %v3179_v32  ;;  %v3258_v29 = vld [vmem:[#allocation2 + $0x344] ss:$8 sps:$4 sm:$0xff]   ;;  %v3253_v30 = vld [vmem:[#allocation2 + $0x240] ss:$8 sps:$4 sm:$0xff]   ;;  %v3261_v32 = vld [vmem:[#allocation2 + $0x254] ss:$8 sps:$4 sm:$0xff]  }
  0x66   : > { %837 = vmatprep.subr.bf16.mxu1 %v3181_v33  ;;  %v3256_v31 = vld [vmem:[#allocation2 + $0x340] ss:$8 sps:$4 sm:$0xff]   ;;  %v3264_v33 = vld [vmem:[#allocation2 + $0x354] ss:$8 sps:$4 sm:$0xff]   ;;  %s2765_s9 = sshll.u32 %s347_s8, 2  ;;  %p354_p10 = scmp.lt.s32.totalorder %s351_s29, 5 }
  0x67   : > { %s349_s12 = scalar_lea.vmem %s3903_s1, %s2765_s9  ;;  %v3279_v46 = vld [vmem:[#allocation2 + $0x284] ss:$8 sps:$4 sm:$0xff]   ;;  %v3277_v48 = vld [vmem:[#allocation2 + $0x280] ss:$8 sps:$4 sm:$0xff]   ;;  %v3283_v52 = vld [vmem:[#allocation2 + $0x290] ss:$8 sps:$4 sm:$0xff]  }
  0x68   : > { %635 = vmatpush1.bf16.msra.mxu0 %v3183_v34  ;;  %v3259_v34 = vld [vmem:[#allocation2 + $0x250] ss:$8 sps:$4 sm:$0xff]   ;;  %v3289_v56 = vld [vmem:[#allocation2 + $0x2a0] ss:$8 sps:$4 sm:$0xff]   ;;  %v3300_v59 = vld [vmem:[#allocation2 + $0x3b4] ss:$8 sps:$4 sm:$0xff]  }
  0x69   : > { %838 = vmatpush1.bf16.msra.mxu1 %v3184_v35  ;;  %636 = vmatprep.subr.bf16.mxu0 %v3185_v36  ;;  %v3262_v35 = vld [vmem:[#allocation2 + $0x350] ss:$8 sps:$4 sm:$0xff]   ;;  %v3267_v36 = vld [vmem:[#allocation2 + $0x264] ss:$8 sps:$4 sm:$0xff]   ;;  %v3309_v3 = vld [vmem:[#allocation2 + $0x2d4] ss:$8 sps:$4 sm:$0xff]  }
  0x6a   : > { %839 = vmatprep.subr.bf16.mxu1 %v3187_v37  ;;  %v3270_v37 = vld [vmem:[#allocation2 + $0x364] ss:$8 sps:$4 sm:$0xff]   ;;  %v3286_v53 = vld [vmem:[#allocation2 + $0x390] ss:$8 sps:$4 sm:$0xff]   ;;  %v3313_v9 = vld [vmem:[#allocation2 + $0x2e0] ss:$8 sps:$4 sm:$0xff]  }
  0x6b   : > { %v3318_v8 = vld [vmem:[#allocation2 + $0x3e4] ss:$8 sps:$4 sm:$0xff]   ;;  %s3931_s29 = smov (!%p354_p10, %s351_s29), 5  ;;  %p364_p11 = scmp.lt.s32.totalorder %s3655_s18, 3 }
  0x6c   : > { %637 = vmatpush1.bf16.msra.mxu0 %v3189_v38  ;;  %v3265_v38 = vld [vmem:[#allocation2 + $0x260] ss:$8 sps:$4 sm:$0xff]   ;;  %s2766_s13 = sshll.u32 %s3931_s29, 1  ;;  %s2769_s17 = sshll.u32 %s3927_s19, 3 }
  0x6d   : > { %840 = vmatpush1.bf16.msra.mxu1 %v3190_v39  ;;  %638 = vmatprep.subr.bf16.mxu0 %v3191_v40  ;;  %v3268_v39 = vld [vmem:[#allocation2 + $0x360] ss:$8 sps:$4 sm:$0xff]   ;;  %s358_s14 = sadd.s32 %s3817_s27, %s2766_s13  ;;  %s3933_s18 = smov (!%p364_p11, %s3655_s18), 3 }
  0x6e   : > { %841 = vmatprep.subr.bf16.mxu1 %v3193_v41  ;;  %v3839_v40 = vld [vmem:[%s349_s12] sm:$0x77]  ;;  %v3273_v41 = vld [vmem:[#allocation2 + $0x274] ss:$8 sps:$4 sm:$0xff]   ;;  %s2767_s26 = sshll.u32 %s358_s14, 2  ;;  %s2768_s27 = sshll.u32 %s3933_s18, 1 }
  0x6f   : > { %s360_s16 = scalar_lea.vmem %s3904_s2, %s2767_s26  ;;  %s368_s23 = sadd.s32 %s2769_s17, %s2768_s27 }
  0x70   : > { %639 = vmatpush1.bf16.msra.mxu0 %v3195_v42  ;;  %v3276_v42 = vld [vmem:[#allocation2 + $0x374] ss:$8 sps:$4 sm:$0xff]   ;;  %s2770_s28 = sshll.u32 %s368_s23, 2 }
  0x71   : > { %842 = vmatpush1.bf16.msra.mxu1 %v3196_v43  ;;  %640 = vmatprep.subr.bf16.mxu0 %v3197_v44  ;;  %v3843_v43 = vcombine.high %v3839_v40, %v3839_v40  ;;  %v3271_v44 = vld [vmem:[#allocation2 + $0x270] ss:$8 sps:$4 sm:$0xff]   ;;  %s370_s8 = scalar_lea.vmem %s3907_s5, %s2770_s28 }
  0x72   : > { %843 = vmatprep.subr.bf16.mxu1 %v3199_v45  ;;  %v3274_v45 = vld [vmem:[#allocation2 + $0x370] ss:$8 sps:$4 sm:$0xff]  }
  0x74   : > { %641 = vmatpush1.bf16.msra.mxu0 %v3201_v47  ;;  %v3282_v47 = vld [vmem:[#allocation2 + $0x384] ss:$8 sps:$4 sm:$0xff]  }
  0x75   : > { %844 = vmatpush1.bf16.msra.mxu1 %v3202_v49  ;;  %642 = vmatprep.subr.bf16.mxu0 %v3203_v50  ;;  %v3280_v49 = vld [vmem:[#allocation2 + $0x380] ss:$8 sps:$4 sm:$0xff]   ;;  %v3285_v50 = vld [vmem:[#allocation2 + $0x294] ss:$8 sps:$4 sm:$0xff]  }
  0x76   : > { %845 = vmatprep.subr.bf16.mxu1 %v3205_v51  ;;  %v3288_v51 = vld [vmem:[#allocation2 + $0x394] ss:$8 sps:$4 sm:$0xff]  }
  0x78   : > { %643 = vmatpush1.bf16.msra.mxu0 %v3207_v54  ;;  %v3291_v54 = vld [vmem:[#allocation2 + $0x2a4] ss:$8 sps:$4 sm:$0xff]  }
  0x79   : > { %846 = vmatpush1.bf16.msra.mxu1 %v3208_v55  ;;  %644 = vmatprep.subr.bf16.mxu0 %v3209_v57  ;;  %v3294_v55 = vld [vmem:[#allocation2 + $0x3a4] ss:$8 sps:$4 sm:$0xff]   ;;  %v3292_v57 = vld [vmem:[#allocation2 + $0x3a0] ss:$8 sps:$4 sm:$0xff]  }
  0x7a   : > { %847 = vmatprep.subr.bf16.mxu1 %v3211_v58  ;;  %v3297_v58 = vld [vmem:[#allocation2 + $0x2b4] ss:$8 sps:$4 sm:$0xff]  }
  0x7c   : > { %645 = vmatpush1.bf16.msra.mxu0 %v3213_v60  ;;  %v3295_v60 = vld [vmem:[#allocation2 + $0x2b0] ss:$8 sps:$4 sm:$0xff]  }
  0x7d   : > { %848 = vmatpush1.bf16.msra.mxu1 %v3214_v61  ;;  %646 = vmatprep.subr.bf16.mxu0 %v3215_v63  ;;  %v3298_v61 = vld [vmem:[#allocation2 + $0x3b0] ss:$8 sps:$4 sm:$0xff]   ;;  %v3303_v63 = vld [vmem:[#allocation2 + $0x2c4] ss:$8 sps:$4 sm:$0xff]  }
  0x7e   : > { %849 = vmatprep.subr.bf16.mxu1 %v3217_v0  ;;  %v3306_v0 = vld [vmem:[#allocation2 + $0x3c4] ss:$8 sps:$4 sm:$0xff]  }
  0x80   : > { %647 = vmatpush1.bf16.msra.mxu0 %v3219_v1  ;;  %v3301_v1 = vld [vmem:[#allocation2 + $0x2c0] ss:$8 sps:$4 sm:$0xff]  }
  0x81   : > { %850 = vmatpush1.bf16.msra.mxu1 %v3220_v2  ;;  %648 = vmatprep.subr.bf16.mxu0 %v3221_v4  ;;  %v3304_v2 = vld [vmem:[#allocation2 + $0x3c0] ss:$8 sps:$4 sm:$0xff]   ;;  %v3312_v4 = vld [vmem:[#allocation2 + $0x3d4] ss:$8 sps:$4 sm:$0xff]  }
  0x82   : > { %851 = vmatprep.subr.bf16.mxu1 %v3223_v5  ;;  %v3307_v5 = vld [vmem:[#allocation2 + $0x2d0] ss:$8 sps:$4 sm:$0xff]  }
  0x84   : > { %649 = vmatpush1.bf16.msra.mxu0 %v3225_v6  ;;  %v3310_v6 = vld [vmem:[#allocation2 + $0x3d0] ss:$8 sps:$4 sm:$0xff]  }
  0x85   : > { %852 = vmatpush1.bf16.msra.mxu1 %v3226_v7  ;;  %1059 = vmatprep.subr.bf16.mxu0 %v3231_v10  ;;  %v3315_v7 = vld [vmem:[#allocation2 + $0x2e4] ss:$8 sps:$4 sm:$0xff]   ;;  %v3316_v10 = vld [vmem:[#allocation2 + $0x3e0] ss:$8 sps:$4 sm:$0xff]  }
  0x86   : > { %1303 = vmatprep.subr.bf16.mxu1 %v3234_v11  ;;  %v3321_v11 = vld [vmem:[#allocation2 + $0x2f4] ss:$8 sps:$4 sm:$0xff]  }
  0x87   : > { %651 = vmatmul.mubr.bf16.vlgmr.msra.gmra.mrb[0].mxu0 %v448_v12  ;;  %v3324_v12 = vld [vmem:[#allocation2 + $0x3f4] ss:$8 sps:$4 sm:$0xff]  }
  0x88   : > { %854 = vmatmul.mubr.bf16.vlgmr.msra.gmra.mrb[0].mxu1 %v3828_v62  ;;  %1060 = vmatpush1.bf16.msra.mxu0 %v3229_v13  ;;  %v1389_v13 = vshll.u32 %v3843_v43, 16 }
  0x89   : > { %1304 = vmatpush1.bf16.msra.mxu1 %v3232_v14  ;;  %1061 = vmatprep.subr.bf16.mxu0 %v3237_v15  ;;  %v3319_v14 = vld [vmem:[#allocation2 + $0x2f0] ss:$8 sps:$4 sm:$0xff]  }
  0x8a   : > { %1305 = vmatprep.subr.bf16.mxu1 %v3240_v16  ;;  %1091 = vmatprep.mubr.bf16.mxu0 %v896_v17  ;;  %v3322_v15 = vld [vmem:[#allocation2 + $0x3f0] ss:$8 sps:$4 sm:$0xff]   ;;  %v3327_v16 = vld [vmem:[#allocation2 + $0x404] ss:$8 sps:$4 sm:$0xff]  }
  0x8b   : > { %1335 = vmatprep.mubr.bf16.mxu1 %v3843_v43  ;;  %v3332_v17 = vld [vmem:[#allocation2 + $0x504] ss:$8 sps:$4 sm:$0xff]  }
  0x8c   : > { %1062 = vmatpush1.bf16.msra.mxu0 %v3235_v18  ;;  %v1387_v18 = vshrl.u32 %v3843_v43, 16 }
  0x8d   : > { %1306 = vmatpush1.bf16.msra.mxu1 %v3238_v19  ;;  %1063 = vmatprep.subr.bf16.mxu0 %v3243_v20  ;;  %v1391_v19 = vrot.slane %v1389_v13, 1  ;;  %v895_v20 = vrot.slane %v3828_v62, 1  ;;  %v3336_v62 = vld [vmem:[#allocation2 + $0x510] ss:$8 sps:$4 sm:$0xff]  }
  0x8e   : > { %1307 = vmatprep.subr.bf16.mxu1 %v3246_v21  ;;  %v3325_v21 = vld [vmem:[#allocation2 + $0x400] ss:$8 sps:$4 sm:$0xff]   ;;  %v3408_v13 = vld [vmem:[#allocation2 + $0x5d0] ss:$8 sps:$4 sm:$0xff]  }
  0x90   : > { %1064 = vmatpush1.bf16.msra.mxu0 %v3241_v22  ;;  %v3851_v22 = vcombine.low %v3839_v40, %v3839_v40  ;;  %v3354_v40 = vld [vmem:[#allocation2 + $0x540] ss:$8 sps:$4 sm:$0xff]  }
  0x91   : > { %1308 = vmatpush1.bf16.msra.mxu1 %v3244_v23  ;;  %1065 = vmatprep.subr.bf16.mxu0 %v3249_v24  ;;  %v3330_v23 = vld [vmem:[#allocation2 + $0x500] ss:$8 sps:$4 sm:$0xff]   ;;  %v3335_v24 = vld [vmem:[#allocation2 + $0x414] ss:$8 sps:$4 sm:$0xff]  }
  0x92   : > { %1309 = vmatprep.subr.bf16.mxu1 %v3252_v25  ;;  %v3338_v25 = vld [vmem:[#allocation2 + $0x514] ss:$8 sps:$4 sm:$0xff]  }
  0x94   : > { %1066 = vmatpush1.bf16.msra.mxu0 %v3247_v26  ;;  %v1392_v26 = vor.u32 %v1391_v19, %v1387_v18  ;;  %v3411_v18 = vld [vmem:[#allocation2 + $0x4e0] ss:$8 sps:$4 sm:$0xff]  }
  0x95   : > { %1310 = vmatpush1.bf16.msra.mxu1 %v3250_v27  ;;  %1067 = vmatprep.subr.bf16.mxu0 %v3255_v28  ;;  %v1632_v27 = vrot.slane %v3843_v43, 1  ;;  %v3333_v28 = vld [vmem:[#allocation2 + $0x410] ss:$8 sps:$4 sm:$0xff]   ;;  %v3414_v19 = vld [vmem:[#allocation2 + $0x5e0] ss:$8 sps:$4 sm:$0xff]  }
  0x96   : > { %1311 = vmatprep.subr.bf16.mxu1 %v3258_v29  ;;  %v3341_v29 = vld [vmem:[#allocation2 + $0x424] ss:$8 sps:$4 sm:$0xff]   ;;  %v3357_v43 = vld [vmem:[#allocation2 + $0x450] ss:$8 sps:$4 sm:$0xff]  }
  0x98   : > { %1068 = vmatpush1.bf16.msra.mxu0 %v3253_v30  ;;  %v3344_v30 = vld [vmem:[#allocation2 + $0x524] ss:$8 sps:$4 sm:$0xff]  }
  0x99   : > { %1312 = vmatpush1.bf16.msra.mxu1 %v3256_v31  ;;  %1069 = vmatprep.subr.bf16.mxu0 %v3261_v32  ;;  %v3339_v31 = vld [vmem:[#allocation2 + $0x420] ss:$8 sps:$4 sm:$0xff]  }
  0x9a   : > { %1313 = vmatprep.subr.bf16.mxu1 %v3264_v33  ;;  %v3342_v32 = vld [vmem:[#allocation2 + $0x520] ss:$8 sps:$4 sm:$0xff]   ;;  %v3347_v33 = vld [vmem:[#allocation2 + $0x434] ss:$8 sps:$4 sm:$0xff]  }
  0x9c   : > { %1070 = vmatpush1.bf16.msra.mxu0 %v3259_v34  ;;  %v3350_v34 = vld [vmem:[#allocation2 + $0x534] ss:$8 sps:$4 sm:$0xff]  }
  0x9d   : > { %1314 = vmatpush1.bf16.msra.mxu1 %v3262_v35  ;;  %1071 = vmatprep.subr.bf16.mxu0 %v3267_v36  ;;  %v3345_v35 = vld [vmem:[#allocation2 + $0x430] ss:$8 sps:$4 sm:$0xff]  }
  0x9e   : > { %1315 = vmatprep.subr.bf16.mxu1 %v3270_v37  ;;  %v3348_v36 = vld [vmem:[#allocation2 + $0x530] ss:$8 sps:$4 sm:$0xff]   ;;  %v3353_v37 = vld [vmem:[#allocation2 + $0x444] ss:$8 sps:$4 sm:$0xff]  }
  0xa0   : > { %1072 = vmatpush1.bf16.msra.mxu0 %v3265_v38  ;;  %v3356_v38 = vld [vmem:[#allocation2 + $0x544] ss:$8 sps:$4 sm:$0xff]  }
  0xa1   : > { %1316 = vmatpush1.bf16.msra.mxu1 %v3268_v39  ;;  %1073 = vmatprep.subr.bf16.mxu0 %v3273_v41  ;;  %v3351_v39 = vld [vmem:[#allocation2 + $0x440] ss:$8 sps:$4 sm:$0xff]   ;;  %v3359_v41 = vld [vmem:[#allocation2 + $0x454] ss:$8 sps:$4 sm:$0xff]  }
  0xa2   : > { %1317 = vmatprep.subr.bf16.mxu1 %v3276_v42  ;;  %v3362_v42 = vld [vmem:[#allocation2 + $0x554] ss:$8 sps:$4 sm:$0xff]  }
  0xa4   : > { %1074 = vmatpush1.bf16.msra.mxu0 %v3271_v44  ;;  %v3360_v44 = vld [vmem:[#allocation2 + $0x550] ss:$8 sps:$4 sm:$0xff]  }
  0xa5   : > { %1318 = vmatpush1.bf16.msra.mxu1 %v3274_v45  ;;  %1075 = vmatprep.subr.bf16.mxu0 %v3279_v46  ;;  %v3365_v45 = vld [vmem:[#allocation2 + $0x464] ss:$8 sps:$4 sm:$0xff]  }
  0xa6   : > { %1319 = vmatprep.subr.bf16.mxu1 %v3282_v47  ;;  %v3368_v46 = vld [vmem:[#allocation2 + $0x564] ss:$8 sps:$4 sm:$0xff]   ;;  %v3363_v47 = vld [vmem:[#allocation2 + $0x460] ss:$8 sps:$4 sm:$0xff]  }
  0xa8   : > { %1076 = vmatpush1.bf16.msra.mxu0 %v3277_v48  ;;  %v3366_v48 = vld [vmem:[#allocation2 + $0x560] ss:$8 sps:$4 sm:$0xff]  }
  0xa9   : > { %1320 = vmatpush1.bf16.msra.mxu1 %v3280_v49  ;;  %1077 = vmatprep.subr.bf16.mxu0 %v3285_v50  ;;  %v3371_v49 = vld [vmem:[#allocation2 + $0x474] ss:$8 sps:$4 sm:$0xff]  }
  0xaa   : > { %1321 = vmatprep.subr.bf16.mxu1 %v3288_v51  ;;  %v3374_v50 = vld [vmem:[#allocation2 + $0x574] ss:$8 sps:$4 sm:$0xff]   ;;  %v3369_v51 = vld [vmem:[#allocation2 + $0x470] ss:$8 sps:$4 sm:$0xff]  }
  0xac   : > { %1078 = vmatpush1.bf16.msra.mxu0 %v3283_v52  ;;  %v3372_v52 = vld [vmem:[#allocation2 + $0x570] ss:$8 sps:$4 sm:$0xff]  }
  0xad   : > { %1322 = vmatpush1.bf16.msra.mxu1 %v3286_v53  ;;  %1079 = vmatprep.subr.bf16.mxu0 %v3291_v54  ;;  %v3377_v53 = vld [vmem:[#allocation2 + $0x484] ss:$8 sps:$4 sm:$0xff]  }
  0xae   : > { %1323 = vmatprep.subr.bf16.mxu1 %v3294_v55  ;;  %v3380_v54 = vld [vmem:[#allocation2 + $0x584] ss:$8 sps:$4 sm:$0xff]   ;;  %v3375_v55 = vld [vmem:[#allocation2 + $0x480] ss:$8 sps:$4 sm:$0xff]  }
  0xb0   : > { %1080 = vmatpush1.bf16.msra.mxu0 %v3289_v56  ;;  %v3378_v56 = vld [vmem:[#allocation2 + $0x580] ss:$8 sps:$4 sm:$0xff]  }
  0xb1   : > { %1324 = vmatpush1.bf16.msra.mxu1 %v3292_v57  ;;  %1081 = vmatprep.subr.bf16.mxu0 %v3297_v58  ;;  %v3383_v57 = vld [vmem:[#allocation2 + $0x494] ss:$8 sps:$4 sm:$0xff]  }
  0xb2   : > { %1325 = vmatprep.subr.bf16.mxu1 %v3300_v59  ;;  %v3386_v58 = vld [vmem:[#allocation2 + $0x594] ss:$8 sps:$4 sm:$0xff]   ;;  %v3381_v59 = vld [vmem:[#allocation2 + $0x490] ss:$8 sps:$4 sm:$0xff]  }
  0xb4   : > { %1082 = vmatpush1.bf16.msra.mxu0 %v3295_v60  ;;  %v3384_v60 = vld [vmem:[#allocation2 + $0x590] ss:$8 sps:$4 sm:$0xff]  }
  0xb5   : > { %1326 = vmatpush1.bf16.msra.mxu1 %v3298_v61  ;;  %1083 = vmatprep.subr.bf16.mxu0 %v3303_v63  ;;  %v3389_v61 = vld [vmem:[#allocation2 + $0x4a4] ss:$8 sps:$4 sm:$0xff]  }
  0xb6   : > { %1327 = vmatprep.subr.bf16.mxu1 %v3306_v0  ;;  %v3392_v63 = vld [vmem:[#allocation2 + $0x5a4] ss:$8 sps:$4 sm:$0xff]   ;;  %v3387_v0 = vld [vmem:[#allocation2 + $0x4a0] ss:$8 sps:$4 sm:$0xff]  }
  0xb8   : > { %1084 = vmatpush1.bf16.msra.mxu0 %v3301_v1  ;;  %v3390_v1 = vld [vmem:[#allocation2 + $0x5a0] ss:$8 sps:$4 sm:$0xff]  }
  0xb9   : > { %1328 = vmatpush1.bf16.msra.mxu1 %v3304_v2  ;;  %1085 = vmatprep.subr.bf16.mxu0 %v3309_v3  ;;  %v3395_v2 = vld [vmem:[#allocation2 + $0x4b4] ss:$8 sps:$4 sm:$0xff]  }
  0xba   : > { %1329 = vmatprep.subr.bf16.mxu1 %v3312_v4  ;;  %v3398_v3 = vld [vmem:[#allocation2 + $0x5b4] ss:$8 sps:$4 sm:$0xff]   ;;  %v3393_v4 = vld [vmem:[#allocation2 + $0x4b0] ss:$8 sps:$4 sm:$0xff]  }
  0xbc   : > { %1086 = vmatpush1.bf16.msra.mxu0 %v3307_v5  ;;  %v3396_v5 = vld [vmem:[#allocation2 + $0x5b0] ss:$8 sps:$4 sm:$0xff]  }
  0xbd   : > { %1330 = vmatpush1.bf16.msra.mxu1 %v3310_v6  ;;  %1087 = vmatprep.subr.bf16.mxu0 %v3315_v7  ;;  %v3401_v6 = vld [vmem:[#allocation2 + $0x4c4] ss:$8 sps:$4 sm:$0xff]  }
  0xbe   : > { %1331 = vmatprep.subr.bf16.mxu1 %v3318_v8  ;;  %v3404_v7 = vld [vmem:[#allocation2 + $0x5c4] ss:$8 sps:$4 sm:$0xff]   ;;  %v3399_v8 = vld [vmem:[#allocation2 + $0x4c0] ss:$8 sps:$4 sm:$0xff]  }
  0xc0   : > { %1088 = vmatpush1.bf16.msra.mxu0 %v3313_v9  ;;  %v3402_v9 = vld [vmem:[#allocation2 + $0x5c0] ss:$8 sps:$4 sm:$0xff]  }
  0xc1   : > { %1332 = vmatpush1.bf16.msra.mxu1 %v3316_v10  ;;  %1089 = vmatprep.subr.bf16.mxu0 %v3321_v11  ;;  %v3407_v10 = vld [vmem:[#allocation2 + $0x4d4] ss:$8 sps:$4 sm:$0xff]  }
  0xc2   : > { %1333 = vmatprep.subr.bf16.mxu1 %v3324_v12  ;;  %v3410_v11 = vld [vmem:[#allocation2 + $0x5d4] ss:$8 sps:$4 sm:$0xff]   ;;  %v3405_v12 = vld [vmem:[#allocation2 + $0x4d0] ss:$8 sps:$4 sm:$0xff]  }
  0xc4   : > { %1090 = vmatpush1.bf16.msra.mxu0 %v3319_v14  ;;  %v3860_v14 = vld [vmem:[%s360_s16] sm:$0x77] }
  0xc5   : > { %1334 = vmatpush1.bf16.msra.mxu1 %v3322_v15  ;;  %1555 = vmatprep.subr.bf16.mxu0 %v3327_v16  ;;  %v3413_v15 = vld [vmem:[#allocation2 + $0x4e4] ss:$8 sps:$4 sm:$0xff]  }
  0xc6   : > { %1795 = vmatprep.subr.bf16.mxu1 %v3332_v17  ;;  %v3416_v16 = vld [vmem:[#allocation2 + $0x5e4] ss:$8 sps:$4 sm:$0xff]   ;;  %v3864_v17 = vcombine.high %v3860_v14, %v3860_v14 }
  0xc7   : > { %1092 = vmatmul.mubr.bf16.vlgmr.msra.gmra.mrb[4].mxu0 %v895_v20  ;;  %v1382_v20 = vshll.u32 %v3851_v22, 16 }
  0xc8   : > { %1336 = vmatmul.mubr.bf16.vlgmr.msra.gmra.mrb[4].mxu1 %v3851_v22  ;;  %1556 = vmatpush1.bf16.msra.mxu0 %v3325_v21  ;;  %v3419_v21 = vld [vmem:[#allocation2 + $0x4f4] ss:$8 sps:$4 sm:$0xff]  }
  0xc9   : > { %1796 = vmatpush1.bf16.msra.mxu1 %v3330_v23  ;;  %1557 = vmatprep.subr.bf16.mxu0 %v3335_v24  ;;  %v3422_v23 = vld [vmem:[#allocation2 + $0x5f4] ss:$8 sps:$4 sm:$0xff]   ;;  %v1380_v24 = vshrl.u32 %v3851_v22, 16 }
  0xca   : > { %1797 = vmatprep.subr.bf16.mxu1 %v3338_v25  ;;  %1587 = vmatprep.mubr.bf16.mxu0 %v1392_v26  ;;  %v2125_v25 = vshll.u32 %v3864_v17, 16  ;;  %v3417_v26 = vld [vmem:[#allocation2 + $0x4f0] ss:$8 sps:$4 sm:$0xff]  }
  0xcb   : > { %1827 = vmatprep.mubr.bf16.mxu1 %v1632_v27  ;;  %v3420_v27 = vld [vmem:[#allocation2 + $0x5f0] ss:$8 sps:$4 sm:$0xff]  }
  0xcc   : > { %1558 = vmatpush1.bf16.msra.mxu0 %v3333_v28  ;;  %v1384_v28 = vrot.slane %v1382_v20, 1  ;;  %v3500_v20 = vld [vmem:[#allocation2 + $0x7c4] ss:$8 sps:$4 sm:$0xff]  }
  0xcd   : > { %1798 = vmatpush1.bf16.msra.mxu1 %v3336_v62  ;;  %1559 = vmatprep.subr.bf16.mxu0 %v3341_v29  ;;  %v3425_v62 = vld [vmem:[#allocation2 + $0x604] ss:$8 sps:$4 sm:$0xff]  }
  0xce   : > { %1799 = vmatprep.subr.bf16.mxu1 %v3344_v30  ;;  %v3428_v29 = vld [vmem:[#allocation2 + $0x704] ss:$8 sps:$4 sm:$0xff]   ;;  %v2123_v30 = vshrl.u32 %v3864_v17, 16 }
  0xd0   : > { %1560 = vmatpush1.bf16.msra.mxu0 %v3339_v31  ;;  %v2127_v31 = vrot.slane %v2125_v25, 1  ;;  %v3506_v25 = vld [vmem:[#allocation2 + $0x7d4] ss:$8 sps:$4 sm:$0xff]  }
  0xd1   : > { %1800 = vmatpush1.bf16.msra.mxu1 %v3342_v32  ;;  %1561 = vmatprep.subr.bf16.mxu0 %v3347_v33  ;;  %v1385_v32 = vor.u32 %v1384_v28, %v1380_v24  ;;  %v3423_v33 = vld [vmem:[#allocation2 + $0x600] ss:$8 sps:$4 sm:$0xff]   ;;  %v3503_v24 = vld [vmem:[#allocation2 + $0x6d4] ss:$8 sps:$4 sm:$0xff]   ;;  %v3504_v28 = vld [vmem:[#allocation2 + $0x7d0] ss:$8 sps:$4 sm:$0xff]  }
  0xd2   : > { %1801 = vmatprep.subr.bf16.mxu1 %v3350_v34  ;;  %v1631_v34 = vrot.slane %v3851_v22, 1  ;;  %v3435_v22 = vld [vmem:[#allocation2 + $0x620] ss:$8 sps:$4 sm:$0xff]  }
  0xd4   : > { %1562 = vmatpush1.bf16.msra.mxu0 %v3345_v35  ;;  %v3426_v35 = vld [vmem:[#allocation2 + $0x700] ss:$8 sps:$4 sm:$0xff]  }
  0xd5   : > { %1802 = vmatpush1.bf16.msra.mxu1 %v3348_v36  ;;  %1563 = vmatprep.subr.bf16.mxu0 %v3353_v37  ;;  %v3431_v36 = vld [vmem:[#allocation2 + $0x614] ss:$8 sps:$4 sm:$0xff]  }
  0xd6   : > { %1803 = vmatprep.subr.bf16.mxu1 %v3356_v38  ;;  %v3434_v37 = vld [vmem:[#allocation2 + $0x714] ss:$8 sps:$4 sm:$0xff]   ;;  %v2128_v38 = vor.u32 %v2127_v31, %v2123_v30  ;;  %v3507_v31 = vld [vmem:[#allocation2 + $0x6e0] ss:$8 sps:$4 sm:$0xff]  }
  0xd8   : > { %1564 = vmatpush1.bf16.msra.mxu0 %v3351_v39  ;;  %v3429_v39 = vld [vmem:[#allocation2 + $0x610] ss:$8 sps:$4 sm:$0xff]  }
  0xd9   : > { %1804 = vmatpush1.bf16.msra.mxu1 %v3354_v40  ;;  %1565 = vmatprep.subr.bf16.mxu0 %v3359_v41  ;;  %v3432_v40 = vld [vmem:[#allocation2 + $0x710] ss:$8 sps:$4 sm:$0xff]   ;;  %v3437_v41 = vld [vmem:[#allocation2 + $0x624] ss:$8 sps:$4 sm:$0xff]  }
  0xda   : > { %1805 = vmatprep.subr.bf16.mxu1 %v3362_v42  ;;  %v3440_v42 = vld [vmem:[#allocation2 + $0x724] ss:$8 sps:$4 sm:$0xff]  }
  0xdc   : > { %1566 = vmatpush1.bf16.msra.mxu0 %v3357_v43  ;;  %v3438_v43 = vld [vmem:[#allocation2 + $0x720] ss:$8 sps:$4 sm:$0xff]  }
  0xdd   : > { %1806 = vmatpush1.bf16.msra.mxu1 %v3360_v44  ;;  %1567 = vmatprep.subr.bf16.mxu0 %v3365_v45  ;;  %v3443_v44 = vld [vmem:[#allocation2 + $0x634] ss:$8 sps:$4 sm:$0xff]  }
  0xde   : > { %1807 = vmatprep.subr.bf16.mxu1 %v3368_v46  ;;  %v3446_v45 = vld [vmem:[#allocation2 + $0x734] ss:$8 sps:$4 sm:$0xff]   ;;  %v3441_v46 = vld [vmem:[#allocation2 + $0x630] ss:$8 sps:$4 sm:$0xff]  }
  0xe0   : > { %1568 = vmatpush1.bf16.msra.mxu0 %v3363_v47  ;;  %v3444_v47 = vld [vmem:[#allocation2 + $0x730] ss:$8 sps:$4 sm:$0xff]  }
  0xe1   : > { %1808 = vmatpush1.bf16.msra.mxu1 %v3366_v48  ;;  %1569 = vmatprep.subr.bf16.mxu0 %v3371_v49  ;;  %v3449_v48 = vld [vmem:[#allocation2 + $0x644] ss:$8 sps:$4 sm:$0xff]  }
  0xe2   : > { %1809 = vmatprep.subr.bf16.mxu1 %v3374_v50  ;;  %v3452_v49 = vld [vmem:[#allocation2 + $0x744] ss:$8 sps:$4 sm:$0xff]   ;;  %v3447_v50 = vld [vmem:[#allocation2 + $0x640] ss:$8 sps:$4 sm:$0xff]  }
  0xe4   : > { %1570 = vmatpush1.bf16.msra.mxu0 %v3369_v51  ;;  %v3450_v51 = vld [vmem:[#allocation2 + $0x740] ss:$8 sps:$4 sm:$0xff]  }
  0xe5   : > { %1810 = vmatpush1.bf16.msra.mxu1 %v3372_v52  ;;  %1571 = vmatprep.subr.bf16.mxu0 %v3377_v53  ;;  %v3455_v52 = vld [vmem:[#allocation2 + $0x654] ss:$8 sps:$4 sm:$0xff]  }
  0xe6   : > { %1811 = vmatprep.subr.bf16.mxu1 %v3380_v54  ;;  %v3458_v53 = vld [vmem:[#allocation2 + $0x754] ss:$8 sps:$4 sm:$0xff]   ;;  %v3453_v54 = vld [vmem:[#allocation2 + $0x650] ss:$8 sps:$4 sm:$0xff]  }
  0xe8   : > { %1572 = vmatpush1.bf16.msra.mxu0 %v3375_v55  ;;  %v3456_v55 = vld [vmem:[#allocation2 + $0x750] ss:$8 sps:$4 sm:$0xff]  }
  0xe9   : > { %1812 = vmatpush1.bf16.msra.mxu1 %v3378_v56  ;;  %1573 = vmatprep.subr.bf16.mxu0 %v3383_v57  ;;  %v3461_v56 = vld [vmem:[#allocation2 + $0x664] ss:$8 sps:$4 sm:$0xff]  }
  0xea   : > { %1813 = vmatprep.subr.bf16.mxu1 %v3386_v58  ;;  %v3464_v57 = vld [vmem:[#allocation2 + $0x764] ss:$8 sps:$4 sm:$0xff]   ;;  %v3459_v58 = vld [vmem:[#allocation2 + $0x660] ss:$8 sps:$4 sm:$0xff]  }
  0xec   : > { %1574 = vmatpush1.bf16.msra.mxu0 %v3381_v59  ;;  %v3462_v59 = vld [vmem:[#allocation2 + $0x760] ss:$8 sps:$4 sm:$0xff]  }
  0xed   : > { %1814 = vmatpush1.bf16.msra.mxu1 %v3384_v60  ;;  %1575 = vmatprep.subr.bf16.mxu0 %v3389_v61  ;;  %v3467_v60 = vld [vmem:[#allocation2 + $0x674] ss:$8 sps:$4 sm:$0xff]  }
  0xee   : > { %1815 = vmatprep.subr.bf16.mxu1 %v3392_v63  ;;  %v3470_v61 = vld [vmem:[#allocation2 + $0x774] ss:$8 sps:$4 sm:$0xff]   ;;  %v3465_v63 = vld [vmem:[#allocation2 + $0x670] ss:$8 sps:$4 sm:$0xff]  }
  0xf0   : > { %1576 = vmatpush1.bf16.msra.mxu0 %v3387_v0  ;;  %v3468_v0 = vld [vmem:[#allocation2 + $0x770] ss:$8 sps:$4 sm:$0xff]  }
  0xf1   : > { %1816 = vmatpush1.bf16.msra.mxu1 %v3390_v1  ;;  %1577 = vmatprep.subr.bf16.mxu0 %v3395_v2  ;;  %v3473_v1 = vld [vmem:[#allocation2 + $0x684] ss:$8 sps:$4 sm:$0xff]  }
  0xf2   : > { %1817 = vmatprep.subr.bf16.mxu1 %v3398_v3  ;;  %v3476_v2 = vld [vmem:[#allocation2 + $0x784] ss:$8 sps:$4 sm:$0xff]   ;;  %v3471_v3 = vld [vmem:[#allocation2 + $0x680] ss:$8 sps:$4 sm:$0xff]  }
  0xf4   : > { %1578 = vmatpush1.bf16.msra.mxu0 %v3393_v4  ;;  %v3474_v4 = vld [vmem:[#allocation2 + $0x780] ss:$8 sps:$4 sm:$0xff]  }
  0xf5   : > { %1818 = vmatpush1.bf16.msra.mxu1 %v3396_v5  ;;  %1579 = vmatprep.subr.bf16.mxu0 %v3401_v6  ;;  %v3479_v5 = vld [vmem:[#allocation2 + $0x694] ss:$8 sps:$4 sm:$0xff]  }
  0xf6   : > { %1819 = vmatprep.subr.bf16.mxu1 %v3404_v7  ;;  %v3482_v6 = vld [vmem:[#allocation2 + $0x794] ss:$8 sps:$4 sm:$0xff]   ;;  %v3477_v7 = vld [vmem:[#allocation2 + $0x690] ss:$8 sps:$4 sm:$0xff]  }
  0xf8   : > { %1580 = vmatpush1.bf16.msra.mxu0 %v3399_v8  ;;  %v3480_v8 = vld [vmem:[#allocation2 + $0x790] ss:$8 sps:$4 sm:$0xff]  }
  0xf9   : > { %1820 = vmatpush1.bf16.msra.mxu1 %v3402_v9  ;;  %1581 = vmatprep.subr.bf16.mxu0 %v3407_v10  ;;  %v3485_v9 = vld [vmem:[#allocation2 + $0x6a4] ss:$8 sps:$4 sm:$0xff]  }
  0xfa   : > { %1821 = vmatprep.subr.bf16.mxu1 %v3410_v11  ;;  %v3488_v10 = vld [vmem:[#allocation2 + $0x7a4] ss:$8 sps:$4 sm:$0xff]   ;;  %v3483_v11 = vld [vmem:[#allocation2 + $0x6a0] ss:$8 sps:$4 sm:$0xff]  }
  0xfc   : > { %1582 = vmatpush1.bf16.msra.mxu0 %v3405_v12  ;;  %v3486_v12 = vld [vmem:[#allocation2 + $0x7a0] ss:$8 sps:$4 sm:$0xff]  }
  0xfd   : > { %1822 = vmatpush1.bf16.msra.mxu1 %v3408_v13  ;;  %1583 = vmatprep.subr.bf16.mxu0 %v3413_v15  ;;  %v3491_v13 = vld [vmem:[#allocation2 + $0x6b4] ss:$8 sps:$4 sm:$0xff]  }
  0xfe   : > { %1823 = vmatprep.subr.bf16.mxu1 %v3416_v16  ;;  %v3494_v15 = vld [vmem:[#allocation2 + $0x7b4] ss:$8 sps:$4 sm:$0xff]   ;;  %v3489_v16 = vld [vmem:[#allocation2 + $0x6b0] ss:$8 sps:$4 sm:$0xff]  }
 0x100   : > { %1584 = vmatpush1.bf16.msra.mxu0 %v3411_v18  ;;  %v3492_v18 = vld [vmem:[#allocation2 + $0x7b0] ss:$8 sps:$4 sm:$0xff]  }
 0x101   : > { %1824 = vmatpush1.bf16.msra.mxu1 %v3414_v19  ;;  %1585 = vmatprep.subr.bf16.mxu0 %v3419_v21  ;;  %v3497_v19 = vld [vmem:[#allocation2 + $0x6c4] ss:$8 sps:$4 sm:$0xff]   ;;  %v3495_v21 = vld [vmem:[#allocation2 + $0x6c0] ss:$8 sps:$4 sm:$0xff]  }
 0x102   : > { %1825 = vmatprep.subr.bf16.mxu1 %v3422_v23  ;;  %v3498_v23 = vld [vmem:[#allocation2 + $0x7c0] ss:$8 sps:$4 sm:$0xff]  }
 0x104   : > { %1586 = vmatpush1.bf16.msra.mxu0 %v3417_v26  ;;  %v3874_v26 = vcombine.low %v3860_v14, %v3860_v14 }
 0x105   : > { %1826 = vmatpush1.bf16.msra.mxu1 %v3420_v27  ;;  %2039 = vmatprep.subr.bf16.mxu0 %v3425_v62  ;;  %v3501_v27 = vld [vmem:[#allocation2 + $0x6d0] ss:$8 sps:$4 sm:$0xff]   ;;  %v3509_v62 = vld [vmem:[#allocation2 + $0x6e4] ss:$8 sps:$4 sm:$0xff]  }
 0x106   : > { %2291 = vmatprep.subr.bf16.mxu1 %v3428_v29  ;;  %v3512_v29 = vld [vmem:[#allocation2 + $0x7e4] ss:$8 sps:$4 sm:$0xff]   ;;  %v2118_v30 = vshll.u32 %v3874_v26, 16  ;;  %v2116_v14 = vshrl.u32 %v3874_v26, 16 }
 0x107   : > { %1588 = vmatmul.mubr.bf16.vlgmr.msra.gmra.mrb[8].mxu0 %v1385_v32  ;;  %v3510_v32 = vld [vmem:[#allocation2 + $0x7e0] ss:$8 sps:$4 sm:$0xff]  }
 0x108   : > { %1828 = vmatmul.mubr.bf16.vlgmr.msra.gmra.mrb[8].mxu1 %v1631_v34  ;;  %2040 = vmatpush1.bf16.msra.mxu0 %v3423_v33  ;;  %v3515_v33 = vld [vmem:[#allocation2 + $0x6f4] ss:$8 sps:$4 sm:$0xff]  }
 0x109   : > { %2292 = vmatpush1.bf16.msra.mxu1 %v3426_v35  ;;  %2041 = vmatprep.subr.bf16.mxu0 %v3431_v36  ;;  %v3518_v34 = vld [vmem:[#allocation2 + $0x7f4] ss:$8 sps:$4 sm:$0xff]   ;;  %v2120_v35 = vrot.slane %v2118_v30, 1  ;;  %v3513_v36 = vld [vmem:[#allocation2 + $0x6f0] ss:$8 sps:$4 sm:$0xff]  }
 0x10a   : > { %2293 = vmatprep.subr.bf16.mxu1 %v3434_v37  ;;  %2071 = vmatprep.mubr.bf16.mxu0 %v3864_v17  ;;  %v3516_v37 = vld [vmem:[#allocation2 + $0x7f0] ss:$8 sps:$4 sm:$0xff]  }
 0x10b   : > { %2323 = vmatprep.mubr.bf16.mxu1 %v2128_v38  ;;  %v3523_v38 = vld [vmem:[#allocation2 + $0x804] ss:$8 sps:$4 sm:$0xff]  }
 0x10c   : > { %2042 = vmatpush1.bf16.msra.mxu0 %v3429_v39  ;;  %v2121_v39 = vor.u32 %v2120_v35, %v2116_v14 }
 0x10d   : > { %2294 = vmatpush1.bf16.msra.mxu1 %v3432_v40  ;;  %2043 = vmatprep.subr.bf16.mxu0 %v3437_v41  ;;  %v3521_v40 = vld [vmem:[#allocation2 + $0x800] ss:$8 sps:$4 sm:$0xff]   ;;  %v2368_v41 = vrot.slane %v3864_v17, 1 }
 0x10e   : > { %2295 = vmatprep.subr.bf16.mxu1 %v3440_v42  ;;  %v3526_v42 = vld [vmem:[#allocation2 + $0x814] ss:$8 sps:$4 sm:$0xff]   ;;  %v3533_v17 = vld [vmem:[#allocation2 + $0x840] ss:$8 sps:$4 sm:$0xff]  }
 0x110   : > { %2044 = vmatpush1.bf16.msra.mxu0 %v3435_v22  ;;  %v3524_v22 = vld [vmem:[#allocation2 + $0x810] ss:$8 sps:$4 sm:$0xff]  }
 0x111   : > { %2296 = vmatpush1.bf16.msra.mxu1 %v3438_v43  ;;  %2045 = vmatprep.subr.bf16.mxu0 %v3443_v44  ;;  %v3529_v43 = vld [vmem:[#allocation2 + $0x824] ss:$8 sps:$4 sm:$0xff]   ;;  %v3527_v44 = vld [vmem:[#allocation2 + $0x820] ss:$8 sps:$4 sm:$0xff]  }
 0x112   : > { %2297 = vmatprep.subr.bf16.mxu1 %v3446_v45  ;;  %v3532_v45 = vld [vmem:[#allocation2 + $0x834] ss:$8 sps:$4 sm:$0xff]  }
 0x114   : > { %2046 = vmatpush1.bf16.msra.mxu0 %v3441_v46  ;;  %v3530_v46 = vld [vmem:[#allocation2 + $0x830] ss:$8 sps:$4 sm:$0xff]  }
 0x115   : > { %2298 = vmatpush1.bf16.msra.mxu1 %v3444_v47  ;;  %2047 = vmatprep.subr.bf16.mxu0 %v3449_v48  ;;  %v3535_v47 = vld [vmem:[#allocation2 + $0x844] ss:$8 sps:$4 sm:$0xff]   ;;  %v3538_v48 = vld [vmem:[#allocation2 + $0x854] ss:$8 sps:$4 sm:$0xff]  }
 0x116   : > { %2299 = vmatprep.subr.bf16.mxu1 %v3452_v49  ;;  %v3536_v49 = vld [vmem:[#allocation2 + $0x850] ss:$8 sps:$4 sm:$0xff]  }
 0x118   : > { %2048 = vmatpush1.bf16.msra.mxu0 %v3447_v50  ;;  %v3541_v50 = vld [vmem:[#allocation2 + $0x864] ss:$8 sps:$4 sm:$0xff]  }
 0x119   : > { %2300 = vmatpush1.bf16.msra.mxu1 %v3450_v51  ;;  %2049 = vmatprep.subr.bf16.mxu0 %v3455_v52 }
 0x11a   : > { %2301 = vmatprep.subr.bf16.mxu1 %v3458_v53 }
 0x11c   : > { %2050 = vmatpush1.bf16.msra.mxu0 %v3453_v54 }
 0x11d   : > { %2302 = vmatpush1.bf16.msra.mxu1 %v3456_v55  ;;  %2051 = vmatprep.subr.bf16.mxu0 %v3461_v56 }
 0x11e   : > { %2303 = vmatprep.subr.bf16.mxu1 %v3464_v57 }
 0x120   : > { %2052 = vmatpush1.bf16.msra.mxu0 %v3459_v58  ;;  %v3539_v58 = vld [vmem:[#allocation2 + $0x860] ss:$8 sps:$4 sm:$0xff]  }
 0x121   : > { %2304 = vmatpush1.bf16.msra.mxu1 %v3462_v59  ;;  %2053 = vmatprep.subr.bf16.mxu0 %v3467_v60 }
 0x122   : > { %2305 = vmatprep.subr.bf16.mxu1 %v3470_v61  ;;  %v3544_v61 = vld [vmem:[#allocation2 + $0x874] ss:$8 sps:$4 sm:$0xff]  }
 0x124   : > { %2054 = vmatpush1.bf16.msra.mxu0 %v3465_v63 }
 0x125   : > { %2306 = vmatpush1.bf16.msra.mxu1 %v3468_v0  ;;  %2055 = vmatprep.subr.bf16.mxu0 %v3473_v1  ;;  %v3542_v0 = vld [vmem:[#allocation2 + $0x870] ss:$8 sps:$4 sm:$0xff]   ;;  %v3547_v1 = vld [vmem:[#allocation2 + $0x884] ss:$8 sps:$4 sm:$0xff]  }
 0x126   : > { %2307 = vmatprep.subr.bf16.mxu1 %v3476_v2  ;;  %v3545_v2 = vld [vmem:[#allocation2 + $0x880] ss:$8 sps:$4 sm:$0xff]  }
 0x128   : > { %2056 = vmatpush1.bf16.msra.mxu0 %v3471_v3  ;;  %v3550_v3 = vld [vmem:[#allocation2 + $0x894] ss:$8 sps:$4 sm:$0xff]  }
 0x129   : > { %2308 = vmatpush1.bf16.msra.mxu1 %v3474_v4  ;;  %2057 = vmatprep.subr.bf16.mxu0 %v3479_v5  ;;  %v3548_v4 = vld [vmem:[#allocation2 + $0x890] ss:$8 sps:$4 sm:$0xff]   ;;  %v3553_v5 = vld [vmem:[#allocation2 + $0x8a4] ss:$8 sps:$4 sm:$0xff]  }
 0x12a   : > { %2309 = vmatprep.subr.bf16.mxu1 %v3482_v6  ;;  %v3551_v6 = vld [vmem:[#allocation2 + $0x8a0] ss:$8 sps:$4 sm:$0xff]  }
 0x12c   : > { %2058 = vmatpush1.bf16.msra.mxu0 %v3477_v7  ;;  %v3556_v7 = vld [vmem:[#allocation2 + $0x8b4] ss:$8 sps:$4 sm:$0xff]  }
 0x12d   : > { %2310 = vmatpush1.bf16.msra.mxu1 %v3480_v8  ;;  %2059 = vmatprep.subr.bf16.mxu0 %v3485_v9  ;;  %v3554_v8 = vld [vmem:[#allocation2 + $0x8b0] ss:$8 sps:$4 sm:$0xff]   ;;  %v3559_v9 = vld [vmem:[#allocation2 + $0x8c4] ss:$8 sps:$4 sm:$0xff]  }
 0x12e   : > { %2311 = vmatprep.subr.bf16.mxu1 %v3488_v10  ;;  %v3557_v10 = vld [vmem:[#allocation2 + $0x8c0] ss:$8 sps:$4 sm:$0xff]  }
 0x130   : > { %2060 = vmatpush1.bf16.msra.mxu0 %v3483_v11  ;;  %v3562_v11 = vld [vmem:[#allocation2 + $0x8d4] ss:$8 sps:$4 sm:$0xff]  }
 0x131   : > { %2312 = vmatpush1.bf16.msra.mxu1 %v3486_v12  ;;  %2061 = vmatprep.subr.bf16.mxu0 %v3491_v13  ;;  %v3560_v12 = vld [vmem:[#allocation2 + $0x8d0] ss:$8 sps:$4 sm:$0xff]   ;;  %v3565_v13 = vld [vmem:[#allocation2 + $0x8e4] ss:$8 sps:$4 sm:$0xff]  }
 0x132   : > { %2313 = vmatprep.subr.bf16.mxu1 %v3494_v15  ;;  %v3563_v15 = vld [vmem:[#allocation2 + $0x8e0] ss:$8 sps:$4 sm:$0xff]  }
 0x134   : > { %2062 = vmatpush1.bf16.msra.mxu0 %v3489_v16  ;;  %v3568_v16 = vld [vmem:[#allocation2 + $0x8f4] ss:$8 sps:$4 sm:$0xff]  }
 0x135   : > { %2314 = vmatpush1.bf16.msra.mxu1 %v3492_v18  ;;  %2063 = vmatprep.subr.bf16.mxu0 %v3497_v19  ;;  %v3566_v18 = vld [vmem:[#allocation2 + $0x8f0] ss:$8 sps:$4 sm:$0xff]   ;;  %v2367_v19 = vrot.slane %v3874_v26, 1 }
 0x136   : > { %2315 = vmatprep.subr.bf16.mxu1 %v3500_v20 }
 0x138   : > { %2064 = vmatpush1.bf16.msra.mxu0 %v3495_v21 }
 0x139   : > { %2316 = vmatpush1.bf16.msra.mxu1 %v3498_v23  ;;  %2065 = vmatprep.subr.bf16.mxu0 %v3503_v24 }
 0x13a   : > { %2317 = vmatprep.subr.bf16.mxu1 %v3506_v25 }
 0x13c   : > { %2066 = vmatpush1.bf16.msra.mxu0 %v3501_v27 }
 0x13d   : > { %2318 = vmatpush1.bf16.msra.mxu1 %v3504_v28  ;;  %2067 = vmatprep.subr.bf16.mxu0 %v3509_v62 }
 0x13e   : > { %2319 = vmatprep.subr.bf16.mxu1 %v3512_v29 }
 0x140   : > { %2068 = vmatpush1.bf16.msra.mxu0 %v3507_v31 }
 0x141   : > { %2320 = vmatpush1.bf16.msra.mxu1 %v3510_v32  ;;  %2069 = vmatprep.subr.bf16.mxu0 %v3515_v33 }
 0x142   : > { %2321 = vmatprep.subr.bf16.mxu1 %v3518_v34 }
 0x144   : > { %2070 = vmatpush1.bf16.msra.mxu0 %v3513_v36 }
 0x145   : > { %2322 = vmatpush1.bf16.msra.mxu1 %v3516_v37  ;;  %2531 = vmatprep.subr.bf16.mxu0 %v3523_v38 }
 0x147   : > { %2072 = vmatmul.mubr.bf16.vlgmr.msra.gmra.mrb[12].mxu0 %v3874_v26 }
 0x148   : > { %2324 = vmatmul.mubr.bf16.vlgmr.msra.gmra.mrb[12].mxu1 %v2121_v39  ;;  %2532 = vmatpush1.bf16.msra.mxu0 %v3521_v40 }
 0x149   : > { %2563 = vmatprep.mubr.bf16.mxu0 %v2368_v41  ;;  %2533 = vmatprep.subr.bf16.mxu0 %v3526_v42 }
 0x14c   : > { %2534 = vmatpush1.bf16.msra.mxu0 %v3524_v22 }
 0x14d   : > { %2535 = vmatprep.subr.bf16.mxu0 %v3529_v43 }
 0x150   : > { %2536 = vmatpush1.bf16.msra.mxu0 %v3527_v44 }
 0x151   : > { %2537 = vmatprep.subr.bf16.mxu0 %v3532_v45 }
 0x154   : > { %2538 = vmatpush1.bf16.msra.mxu0 %v3530_v46 }
 0x155   : > { %2539 = vmatprep.subr.bf16.mxu0 %v3535_v47 }
 0x158   : > { %2540 = vmatpush1.bf16.msra.mxu0 %v3533_v17 }
 0x159   : > { %2541 = vmatprep.subr.bf16.mxu0 %v3538_v48 }
 0x15a   : > { %v652_v51 = vpop.f32.mrb[0].mxu0 }
 0x15b   : > { %v855_v52 = vpop.f32.mrb[0].mxu1  ;;  %v654_v54 = vpop.f32.mrb[1].mxu0 }
 0x15c   : > { %v856_v53 = vadd.f32 %v855_v52, %v652_v51  ;;  %v857_v55 = vpop.f32.mrb[1].mxu1  ;;  %v656_v57 = vpop.f32.mrb[2].mxu0  ;;  %2542 = vmatpush1.bf16.msra.mxu0 %v3536_v49 }
 0x15d   : > { %v858_v56 = vadd.f32 %v857_v55, %v654_v54  ;;  %v859_v59 = vpop.f32.mrb[2].mxu1  ;;  %v657_v60 = vpop.f32.mrb[3].mxu0  ;;  %2543 = vmatprep.subr.bf16.mxu0 %v3541_v50 }
 0x15e   : > { %v860_v63 = vpop.f32.mrb[3].mxu1 }
 0x160   : > { %2544 = vmatpush1.bf16.msra.mxu0 %v3539_v58 }
 0x161   : > { %2545 = vmatprep.subr.bf16.mxu0 %v3544_v61 }
 0x164   : > { %2546 = vmatpush1.bf16.msra.mxu0 %v3542_v0 }
 0x165   : > { %2547 = vmatprep.subr.bf16.mxu0 %v3547_v1 }
 0x168   : > { %2548 = vmatpush1.bf16.msra.mxu0 %v3545_v2 }
 0x169   : > { %2549 = vmatprep.subr.bf16.mxu0 %v3550_v3 }
 0x16c   : > { %2550 = vmatpush1.bf16.msra.mxu0 %v3548_v4 }
 0x16d   : > { %2551 = vmatprep.subr.bf16.mxu0 %v3553_v5 }
 0x170   : > { %2552 = vmatpush1.bf16.msra.mxu0 %v3551_v6 }
 0x171   : > { %2553 = vmatprep.subr.bf16.mxu0 %v3556_v7 }
 0x174   : > { %2554 = vmatpush1.bf16.msra.mxu0 %v3554_v8 }
 0x175   : > { %2555 = vmatprep.subr.bf16.mxu0 %v3559_v9 }
 0x178   : > { %2556 = vmatpush1.bf16.msra.mxu0 %v3557_v10 }
 0x179   : > { %2557 = vmatprep.subr.bf16.mxu0 %v3562_v11 }
 0x17c   : > { %2558 = vmatpush1.bf16.msra.mxu0 %v3560_v12 }
 0x17d   : > { %2559 = vmatprep.subr.bf16.mxu0 %v3565_v13 }
 0x180   : > { %2560 = vmatpush1.bf16.msra.mxu0 %v3563_v15 }
 0x181   : > { %2561 = vmatprep.subr.bf16.mxu0 %v3568_v16 }
 0x184   : > { %2562 = vmatpush1.bf16.msra.mxu0 %v3566_v18 }
 0x187   : > { %2564 = vmatmul.mubr.bf16.vlgmr.msra.gmra.mrb[16].mxu0 %v2367_v19 }
 0x19a   : > { %v1093_v20 = vpop.f32.mrb[4].mxu0 }
 0x19b   : > { %v1337_v21 = vpop.f32.mrb[4].mxu1  ;;  %v1100_v23 = vadd.f32 %v1093_v20, %v856_v53  ;;  %v1095_v24 = vpop.f32.mrb[5].mxu0  ;;  %v2576_v53 = vlaneseq }
 0x19c   : > { %v1339_v25 = vpop.f32.mrb[5].mxu1  ;;  %v1101_v27 = vadd.f32 %v1095_v24, %v858_v56  ;;  %v1097_v28 = vpop.f32.mrb[6].mxu0  ;;  %v2574_v56 = vld [vmem:[#allocation4] sm:$0x3] }
 0x19d   : > { %v1341_v62 = vpop.f32.mrb[6].mxu1  ;;  %v1344_v29 = vadd.f32 %v1337_v21, %v1100_v23  ;;  %v1098_v30 = vpop.f32.mrb[7].mxu0  ;;  %v2577_v54 = vshrl.u32 %v2576_v53, 7 }
 0x19e   : > { %v1342_v31 = vpop.f32.mrb[7].mxu1  ;;  %v1345_v32 = vadd.f32 %v1339_v25, %v1101_v27 }
 0x19f   : > { %v2578_v55 = vsub.s32 0, %v2577_v54  ;;  %v2582_v57 = vsub.s32 1, %v2577_v54 }
 0x1a1   : > { %v2579_v58 = vrot.slane %v2574_v56, %v2578_v55  ;;  %v2583_v60 = vrot.slane %v2574_v56, %v2582_v57 }
 0x1da   : > { %v1589_v33 = vpop.f32.mrb[8].mxu0 }
 0x1db   : > { %v1829_v34 = vpop.f32.mrb[8].mxu1  ;;  %v1596_v14 = vadd.f32 %v1589_v33, %v1344_v29  ;;  %v1591_v35 = vpop.f32.mrb[9].mxu0 }
 0x1dc   : > { %v1831_v36 = vpop.f32.mrb[9].mxu1  ;;  %v1597_v26 = vadd.f32 %v1591_v35, %v1345_v32  ;;  %v1593_v37 = vpop.f32.mrb[10].mxu0 }
 0x1dd   : > { %v1833_v38 = vpop.f32.mrb[10].mxu1  ;;  %v1836_v39 = vadd.f32 %v1829_v34, %v1596_v14  ;;  %v1594_v40 = vpop.f32.mrb[11].mxu0 }
 0x1de   : > { %v1834_v41 = vpop.f32.mrb[11].mxu1  ;;  %v1837_v42 = vadd.f32 %v1831_v36, %v1597_v26 }
 0x21a   : > { %v2073_v22 = vpop.f32.mrb[12].mxu0 }
 0x21b   : > { %v2325_v43 = vpop.f32.mrb[12].mxu1  ;;  %v2080_v44 = vadd.f32 %v2073_v22, %v1836_v39  ;;  %v2075_v45 = vpop.f32.mrb[13].mxu0 }
 0x21c   : > { %v2327_v46 = vpop.f32.mrb[13].mxu1  ;;  %v2081_v47 = vadd.f32 %v2075_v45, %v1837_v42  ;;  %v2077_v17 = vpop.f32.mrb[14].mxu0 }
 0x21d   : > { %v2329_v48 = vpop.f32.mrb[14].mxu1  ;;  %v2332_v49 = vadd.f32 %v2325_v43, %v2080_v44  ;;  %v2078_v50 = vpop.f32.mrb[15].mxu0 }
 0x21e   : > { %v2330_v51 = vpop.f32.mrb[15].mxu1  ;;  %v2333_v52 = vadd.f32 %v2327_v46, %v2081_v47 }
 0x25a   : > { %v2565_v59 = vpop.f32.mrb[16].mxu0 }
 0x25b   : > { %v2572_v61 = vadd.f32 %v2565_v59, %v2332_v49  ;;  %v2567_v63 = vpop.f32.mrb[17].mxu0 }
 0x25c   : > { %v2573_v0 = vadd.f32 %v2567_v63, %v2333_v52  ;;  %v2569_v1 = vpop.f32.mrb[18].mxu0 }
 0x25d   : > { %v2586_v2 = vadd.f32 %v2579_v58, %v2572_v61  ;;  %v2570_v3 = vpop.f32.mrb[19].mxu0 }
 0x25e   : > { %v2587_v4 = vadd.f32 %v2583_v60, %v2573_v0 }
 0x260   : > { %v2590_v5 = vcombine.low %v2586_v2, %v2587_v4 }
 0x262   : > { %2592 = vst [vmem:[%s370_s8] sm:$0xff] %v2590_v5 }
 0x263 PF: > { %s17_s22 = sadd.s32 1, %s3671_s22   ;;  %s3916_s18 = smov %s3663_s20 }
 0x264   : > { %p14_p12 = scmp.ge.s32.totalorder %s17_s22, 10   ;;  %s3917_s19 = smov %s3667_s21 }
 0x265   : > { %s3918_s20 = smov %s3921_s24  ;;  %s3919_s21 = smov %s3925_s25 }
 0x266   :  { %16 = sbr.rel (!%p14_p12) target bundleno = 4 (0x4), region = 93 }
 0x26d   :  { %2622 = vsyncpa [#allocation3], 1 }
 0x26e   :  { %2624 = vsyncpa [#allocation3 + $0x1], 1 }
 0x26f   :  { %2625 = vsyncpa [#allocation5], 1 }

// kernel: fpn_forward.11
= control target key start
LH: loop header
LB: loop body
LE: loop exit
PB: predicated region body
PF: predicated region fallthrough
CT: control target
= control target key end

     0   :  { %s3844_s18 = smov 0   ;;  %s3846_s19 = smov 0   ;;  %s4845_s0 = inlined_call_operand.vmem [shape: bf16[2,10,10,256], index: 0, kind: input, shape index: {}, may-alias: {0,1,2}]   ;;  %s4846_s1 = inlined_call_operand.vmem [shape: bf16[2,10,10,256], index: 1, kind: input, shape index: {}, may-alias: {0,1,2}]   ;;  %s4847_s2 = inlined_call_operand.vmem [shape: bf16[2,10,10,256], index: 2, kind: input, shape index: {}, may-alias: {0,1,2}]   ;;  %s4848_s3 = inlined_call_operand.vmem [shape: bf16[3,3,256,256], index: 3, kind: input, shape index: {}]   ;;  %s4849_s4 = inlined_call_operand.vmem [shape: f32[1,256], index: 4, kind: input, shape index: {}]   ;;  %s4850_s5 = inlined_call_operand.vmem [shape: f32[2,8,8,256], index: 5, kind: output, shape index: {}]  }
   0x1   :  { %s3848_s20 = smov 0   ;;  %s3850_s21 = smov 0  }
   0x2   :  { %s3852_s22 = smov 0  }
   0x3 LB: > { %s24_s23 = sadd.s32 1, %s3804_s20  ;;  %s27_s24 = sadd.s32 1, %s3808_s21  ;;  %s3812_s22 = sphi %s3852_s22, %s15_s22   ;;  %s3808_s21 = sphi %s3850_s21, %s4854_s21   ;;  %s3804_s20 = sphi %s3848_s20, %s4853_s20   ;;  %s3800_s19 = sphi %s3846_s19, %s4852_s19   ;;  %s3796_s18 = sphi %s3844_s18, %s4851_s18  }
   0x4   : > { %p25_p0 = scmp.ge.s32.totalorder %s24_s23, 8  ;;  %p2721_p1 = scmp.ge.s32.totalorder %s3812_s22, 1 }
   0x5   : > { %p247_p2 = scmp.lt.s32.totalorder %s3812_s22, 17 }
   0x6   : > { %s4856_s23 = smov (%p25_p0, %s24_s23), 0  ;;  %s4858_s24 = smov (!%p25_p0, %s27_s24), %s3808_s21 }
   0x7   : > { %p248_p3 = pnand %p2721_p1, %p247_p2  ;;  %p29_p4 = scmp.ge.s32.totalorder %s4858_s24, 2 }
   0x8   : > { %v3330_v0 = vld [vmem:[%s4848_s3 + $0x104] ss:$8 sps:$4 sm:$0xff] (!%p248_p3)   ;;  %v3334_v2 = vld [vmem:[%s4848_s3 + $0x100] ss:$8 sps:$4 sm:$0xff] (!%p248_p3)   ;;  %v3336_v4 = vld [vmem:[%s4848_s3 + $0x114] ss:$8 sps:$4 sm:$0xff] (!%p248_p3)  }
   0x9   : > { %s4860_s24 = smov (%p29_p4, %s4858_s24), 0  ;;  %251 = sbr.rel (%p248_p3) target bundleno = 548 (0x224), region = 40 }
   0xa   : > { %v3332_v1 = vld [vmem:[%s4848_s3 + $0x4] ss:$8 sps:$4 sm:$0xff] (!%p248_p3)   ;;  %594 = vmatprep.subr.bf16.mxu0 (!%p248_p3), %v3330_v0  ;;  %v3335_v3 = vld [vmem:[%s4848_s3] ss:$8 sps:$4 sm:$0xff] (!%p248_p3)   ;;  %v3338_v5 = vld [vmem:[%s4848_s3 + $0x14] ss:$8 sps:$4 sm:$0xff] (!%p248_p3)  }
   0xb   : > { %799 = vmatprep.subr.bf16.mxu1 (!%p248_p3), %v3332_v1  ;;  %595 = vmatpush1.bf16.msra.mxu0 (!%p248_p3), %v3334_v2  ;;  %v3340_v6 = vld [vmem:[%s4848_s3 + $0x110] ss:$8 sps:$4 sm:$0xff] (!%p248_p3)   ;;  %v3342_v8 = vld [vmem:[%s4848_s3 + $0x124] ss:$8 sps:$4 sm:$0xff] (!%p248_p3)   ;;  %v3346_v10 = vld [vmem:[%s4848_s3 + $0x120] ss:$8 sps:$4 sm:$0xff] (!%p248_p3)  }
   0xc   : > { %800 = vmatpush1.bf16.msra.mxu1 (!%p248_p3), %v3335_v3  ;;  %596 = vmatprep.subr.bf16.mxu0 (!%p248_p3), %v3336_v4  ;;  %v3341_v7 = vld [vmem:[%s4848_s3 + $0x10] ss:$8 sps:$4 sm:$0xff] (!%p248_p3)   ;;  %v3344_v9 = vld [vmem:[%s4848_s3 + $0x24] ss:$8 sps:$4 sm:$0xff] (!%p248_p3)   ;;  %v3347_v11 = vld [vmem:[%s4848_s3 + $0x20] ss:$8 sps:$4 sm:$0xff] (!%p248_p3)  }
   0xd   : > { %801 = vmatprep.subr.bf16.mxu1 (!%p248_p3), %v3338_v5  ;;  %v3348_v12 = vld [vmem:[%s4848_s3 + $0x134] ss:$8 sps:$4 sm:$0xff] (!%p248_p3)   ;;  %v3352_v14 = vld [vmem:[%s4848_s3 + $0x130] ss:$8 sps:$4 sm:$0xff] (!%p248_p3)   ;;  %v3354_v16 = vld [vmem:[%s4848_s3 + $0x144] ss:$8 sps:$4 sm:$0xff] (!%p248_p3)  }
   0xe   : > { %v3350_v13 = vld [vmem:[%s4848_s3 + $0x34] ss:$8 sps:$4 sm:$0xff] (!%p248_p3)   ;;  %v3353_v15 = vld [vmem:[%s4848_s3 + $0x30] ss:$8 sps:$4 sm:$0xff] (!%p248_p3)   ;;  %v3356_v17 = vld [vmem:[%s4848_s3 + $0x44] ss:$8 sps:$4 sm:$0xff] (!%p248_p3)  }
   0xf   : > { %597 = vmatpush1.bf16.msra.mxu0 (!%p248_p3), %v3340_v6  ;;  %v3358_v18 = vld [vmem:[%s4848_s3 + $0x140] ss:$8 sps:$4 sm:$0xff] (!%p248_p3)   ;;  %v3360_v20 = vld [vmem:[%s4848_s3 + $0x154] ss:$8 sps:$4 sm:$0xff] (!%p248_p3)   ;;  %v3364_v22 = vld [vmem:[%s4848_s3 + $0x150] ss:$8 sps:$4 sm:$0xff] (!%p248_p3)  }
  0x10   : > { %802 = vmatpush1.bf16.msra.mxu1 %v3341_v7  ;;  %598 = vmatprep.subr.bf16.mxu0 %v3342_v8  ;;  %v3359_v19 = vld [vmem:[%s4848_s3 + $0x40] ss:$8 sps:$4 sm:$0xff]   ;;  %v3362_v21 = vld [vmem:[%s4848_s3 + $0x54] ss:$8 sps:$4 sm:$0xff]   ;;  %v3365_v23 = vld [vmem:[%s4848_s3 + $0x50] ss:$8 sps:$4 sm:$0xff]  }
  0x11   : > { %803 = vmatprep.subr.bf16.mxu1 %v3344_v9  ;;  %v3366_v24 = vld [vmem:[%s4848_s3 + $0x164] ss:$8 sps:$4 sm:$0xff]   ;;  %p303_p5 = scmp.lt.s32.totalorder %s3800_s19, 1  ;;  %p305_p6 = scmp.lt.s32.totalorder %s3796_s18, 9  ;;  %v3370_v26 = vld [vmem:[%s4848_s3 + $0x160] ss:$8 sps:$4 sm:$0xff]  }
  0x12   : > { %v3368_v25 = vld [vmem:[%s4848_s3 + $0x64] ss:$8 sps:$4 sm:$0xff]   ;;  %v3371_v27 = vld [vmem:[%s4848_s3 + $0x60] ss:$8 sps:$4 sm:$0xff]   ;;  %v3372_v28 = vld [vmem:[%s4848_s3 + $0x174] ss:$8 sps:$4 sm:$0xff]  }
  0x13   : > { %599 = vmatpush1.bf16.msra.mxu0 %v3346_v10  ;;  %v3374_v29 = vld [vmem:[%s4848_s3 + $0x74] ss:$8 sps:$4 sm:$0xff]   ;;  %s4862_s19 = smov (!%p303_p5, %s3800_s19), 1  ;;  %v3376_v30 = vld [vmem:[%s4848_s3 + $0x170] ss:$8 sps:$4 sm:$0xff]   ;;  %s323_s12 = sadd.s32 2, %s3796_s18 }
  0x14   : > { %804 = vmatpush1.bf16.msra.mxu1 %v3347_v11  ;;  %600 = vmatprep.subr.bf16.mxu0 %v3348_v12  ;;  %s306_s6 = scalar_select %p305_p6, %s3796_s18, 9  ;;  %v3377_v31 = vld [vmem:[%s4848_s3 + $0x70] ss:$8 sps:$4 sm:$0xff]   ;;  %v3378_v32 = vld [vmem:[%s4848_s3 + $0x184] ss:$8 sps:$4 sm:$0xff]  }
  0x15   : > { %805 = vmatprep.subr.bf16.mxu1 %v3350_v13  ;;  %v3380_v33 = vld [vmem:[%s4848_s3 + $0x84] ss:$8 sps:$4 sm:$0xff]   ;;  %s3987_s15 = smul.u32 40, %s4862_s19  ;;  %v3382_v34 = vld [vmem:[%s4848_s3 + $0x180] ss:$8 sps:$4 sm:$0xff]   ;;  %p326_p8 = scmp.lt.s32.totalorder %s323_s12, 9 }
  0x16   : > { %s2722_s16 = sshll.u32 %s306_s6, 2  ;;  %v3383_v35 = vld [vmem:[%s4848_s3 + $0x80] ss:$8 sps:$4 sm:$0xff]   ;;  %v3384_v36 = vld [vmem:[%s4848_s3 + $0x194] ss:$8 sps:$4 sm:$0xff]   ;;  %p336_p9 = scmp.lt.s32.totalorder %s3796_s18, 7 }
  0x17   : > { %601 = vmatpush1.bf16.msra.mxu0 %v3352_v14  ;;  %v3386_v37 = vld [vmem:[%s4848_s3 + $0x94] ss:$8 sps:$4 sm:$0xff]   ;;  %s309_s6 = sadd.s32 %s3987_s15, %s2722_s16  ;;  %v3388_v38 = vld [vmem:[%s4848_s3 + $0x190] ss:$8 sps:$4 sm:$0xff]   ;;  %v3390_v40 = vld [vmem:[%s4848_s3 + $0x1a4] ss:$8 sps:$4 sm:$0xff]  }
  0x18   : > { %806 = vmatpush1.bf16.msra.mxu1 %v3353_v15  ;;  %602 = vmatprep.subr.bf16.mxu0 %v3354_v16  ;;  %v3389_v39 = vld [vmem:[%s4848_s3 + $0x90] ss:$8 sps:$4 sm:$0xff]   ;;  %s2723_s14 = sshll.u32 %s309_s6, 2  ;;  %v3392_v41 = vld [vmem:[%s4848_s3 + $0xa4] ss:$8 sps:$4 sm:$0xff]   ;;  %s4866_s12 = smov (!%p326_p8, %s323_s12), 9 }
  0x19   : > { %807 = vmatprep.subr.bf16.mxu1 %v3356_v17  ;;  %v3394_v42 = vld [vmem:[%s4848_s3 + $0x1a0] ss:$8 sps:$4 sm:$0xff]   ;;  %s311_s7 = scalar_lea.vmem %s4845_s0, %s2723_s14  ;;  %v3396_v44 = vld [vmem:[%s4848_s3 + $0x1b4] ss:$8 sps:$4 sm:$0xff]   ;;  %v3400_v49 = vld [vmem:[%s4848_s3 + $0x1b0] ss:$8 sps:$4 sm:$0xff]  }
  0x1a   : > { %v3395_v43 = vld [vmem:[%s4848_s3 + $0xa0] ss:$8 sps:$4 sm:$0xff]   ;;  %v3398_v45 = vld [vmem:[%s4848_s3 + $0xb4] ss:$8 sps:$4 sm:$0xff]   ;;  %v3401_v50 = vld [vmem:[%s4848_s3 + $0xb0] ss:$8 sps:$4 sm:$0xff]  }
  0x1b   : > { %603 = vmatpush1.bf16.msra.mxu0 %v3358_v18  ;;  %v4029_v46 = vld [vmem:[%s311_s7] sm:$0xff]  ;;  %v344_v47 = vld [vmem:[%s311_s7 + $0x8] sm:$0x11]  ;;  %v3408_v59 = vld [vmem:[%s4848_s3 + $0x1d4] ss:$8 sps:$4 sm:$0xff]   ;;  %s312_s7 = sadd.s32 1, %s3796_s18 }
  0x1c   : > { %808 = vmatpush1.bf16.msra.mxu1 %v3359_v19  ;;  %604 = vmatprep.subr.bf16.mxu0 %v3360_v20  ;;  %v2798_v48 = vcombine.high %v4029_v46, %v4029_v46  ;;  %v4040_v51 = vcombine.high %v4029_v46, %v344_v47  ;;  %v3402_v52 = vld [vmem:[%s4848_s3 + $0x1c4] ss:$8 sps:$4 sm:$0xff]   ;;  %v3406_v56 = vld [vmem:[%s4848_s3 + $0x1c0] ss:$8 sps:$4 sm:$0xff]   ;;  %v3410_v60 = vld [vmem:[%s4848_s3 + $0xd4] ss:$8 sps:$4 sm:$0xff]   ;;  %v4066_v63 = vcombine.low %v4029_v46, %v344_v47 }
  0x1d   : > { %809 = vmatprep.subr.bf16.mxu1 %v3362_v21  ;;  %v3404_v53 = vld [vmem:[%s4848_s3 + $0xc4] ss:$8 sps:$4 sm:$0xff]   ;;  %v3407_v57 = vld [vmem:[%s4848_s3 + $0xc0] ss:$8 sps:$4 sm:$0xff]   ;;  %v3412_v62 = vld [vmem:[%s4848_s3 + $0x1d0] ss:$8 sps:$4 sm:$0xff]   ;;  %v2797_v15 = vcombine.low %v4029_v46, %v4029_v46 }
  0x1e   : > { %v426_v54 = vshrl.u32 %v4040_v51, 16  ;;  %v428_v55 = vshll.u32 %v4040_v51, 16  ;;  %831 = vmatprep.mubr.bf16.mxu1 %v2798_v48  ;;  %v3413_v0 = vld [vmem:[%s4848_s3 + $0xd0] ss:$8 sps:$4 sm:$0xff]   ;;  %v3414_v1 = vld [vmem:[%s4848_s3 + $0x1e4] ss:$8 sps:$4 sm:$0xff]  }
  0x1f   : > { %605 = vmatpush1.bf16.msra.mxu0 %v3364_v22  ;;  %v3416_v2 = vld [vmem:[%s4848_s3 + $0xe4] ss:$8 sps:$4 sm:$0xff]   ;;  %v3418_v3 = vld [vmem:[%s4848_s3 + $0x1e0] ss:$8 sps:$4 sm:$0xff]   ;;  %v421_v4 = vshll.u32 %v4066_v63, 16  ;;  %v419_v9 = vshrl.u32 %v4066_v63, 16 }
  0x20   : > { %810 = vmatpush1.bf16.msra.mxu1 %v3365_v23  ;;  %606 = vmatprep.subr.bf16.mxu0 %v3366_v24  ;;  %v430_v58 = vrot.slane %v428_v55, 1  ;;  %v3419_v5 = vld [vmem:[%s4848_s3 + $0xe0] ss:$8 sps:$4 sm:$0xff]   ;;  %v3420_v6 = vld [vmem:[%s4848_s3 + $0x1f4] ss:$8 sps:$4 sm:$0xff]   ;;  %v874_v20 = vrot.slane %v4040_v51, 1 }
  0x21   : > { %811 = vmatprep.subr.bf16.mxu1 %v3368_v25  ;;  %v3422_v7 = vld [vmem:[%s4848_s3 + $0xf4] ss:$8 sps:$4 sm:$0xff]   ;;  %v3424_v8 = vld [vmem:[%s4848_s3 + $0x1f0] ss:$8 sps:$4 sm:$0xff]   ;;  %v423_v10 = vrot.slane %v421_v4, 1  ;;  %p315_p7 = scmp.lt.s32.totalorder %s312_s7, 9 }
  0x22   : > { %v431_v61 = vor.u32 %v430_v58, %v426_v54  ;;  %v3425_v11 = vld [vmem:[%s4848_s3 + $0xf0] ss:$8 sps:$4 sm:$0xff]   ;;  %v3432_v12 = vld [vmem:[%s4848_s3 + $0x204] ss:$8 sps:$4 sm:$0xff]   ;;  %v3430_v16 = vld [vmem:[%s4848_s3 + $0x200] ss:$8 sps:$4 sm:$0xff]  }
  0x23   : > { %607 = vmatpush1.bf16.msra.mxu0 %v3370_v26  ;;  %v3435_v13 = vld [vmem:[%s4848_s3 + $0x304] ss:$8 sps:$4 sm:$0xff]   ;;  %v424_v14 = vor.u32 %v423_v10, %v419_v9  ;;  %v3433_v17 = vld [vmem:[%s4848_s3 + $0x300] ss:$8 sps:$4 sm:$0xff]   ;;  %v3438_v18 = vld [vmem:[%s4848_s3 + $0x214] ss:$8 sps:$4 sm:$0xff]  }
  0x24   : > { %812 = vmatpush1.bf16.msra.mxu1 %v3371_v27  ;;  %608 = vmatprep.subr.bf16.mxu0 %v3372_v28  ;;  %v3441_v19 = vld [vmem:[%s4848_s3 + $0x314] ss:$8 sps:$4 sm:$0xff]   ;;  %v3436_v21 = vld [vmem:[%s4848_s3 + $0x210] ss:$8 sps:$4 sm:$0xff]   ;;  %v3444_v23 = vld [vmem:[%s4848_s3 + $0x224] ss:$8 sps:$4 sm:$0xff]  }
  0x25   : > { %813 = vmatprep.subr.bf16.mxu1 %v3374_v29  ;;  %626 = vmatprep.mubr.bf16.mxu0 %v431_v61  ;;  %v3439_v22 = vld [vmem:[%s4848_s3 + $0x310] ss:$8 sps:$4 sm:$0xff]   ;;  %v3447_v24 = vld [vmem:[%s4848_s3 + $0x324] ss:$8 sps:$4 sm:$0xff]   ;;  %v3442_v25 = vld [vmem:[%s4848_s3 + $0x220] ss:$8 sps:$4 sm:$0xff]  }
  0x26   : > { %s4864_s7 = smov (!%p315_p7, %s312_s7), 9  ;;  %v3445_v26 = vld [vmem:[%s4848_s3 + $0x320] ss:$8 sps:$4 sm:$0xff]   ;;  %v3450_v27 = vld [vmem:[%s4848_s3 + $0x234] ss:$8 sps:$4 sm:$0xff]   ;;  %s4868_s18 = smov (!%p336_p9, %s3796_s18), 7 }
  0x27   : > { %609 = vmatpush1.bf16.msra.mxu0 %v3376_v30  ;;  %v3453_v28 = vld [vmem:[%s4848_s3 + $0x334] ss:$8 sps:$4 sm:$0xff]   ;;  %v3448_v29 = vld [vmem:[%s4848_s3 + $0x230] ss:$8 sps:$4 sm:$0xff]   ;;  %s2724_s11 = sshll.u32 %s4864_s7, 2  ;;  %s2728_s8 = sshll.u32 %s4868_s18, 1 }
  0x28   : > { %814 = vmatpush1.bf16.msra.mxu1 %v3377_v31  ;;  %610 = vmatprep.subr.bf16.mxu0 %v3378_v32  ;;  %v3451_v30 = vld [vmem:[%s4848_s3 + $0x330] ss:$8 sps:$4 sm:$0xff]   ;;  %v3456_v31 = vld [vmem:[%s4848_s3 + $0x244] ss:$8 sps:$4 sm:$0xff]   ;;  %s319_s26 = sadd.s32 %s3987_s15, %s2724_s11  ;;  %v3477_v46 = vld [vmem:[%s4848_s3 + $0x374] ss:$8 sps:$4 sm:$0xff]  }
  0x29   : > { %815 = vmatprep.subr.bf16.mxu1 %v3380_v33  ;;  %v3459_v32 = vld [vmem:[%s4848_s3 + $0x344] ss:$8 sps:$4 sm:$0xff]   ;;  %v3454_v33 = vld [vmem:[%s4848_s3 + $0x240] ss:$8 sps:$4 sm:$0xff]   ;;  %s2725_s10 = sshll.u32 %s319_s26, 2  ;;  %s2726_s26 = sshll.u32 %s4866_s12, 2 }
  0x2a   : > { %s4180_s28 = scalar_lea.vmem %s4846_s1, %s2725_s10  ;;  %v3472_v47 = vld [vmem:[%s4848_s3 + $0x270] ss:$8 sps:$4 sm:$0xff]   ;;  %v3478_v51 = vld [vmem:[%s4848_s3 + $0x280] ss:$8 sps:$4 sm:$0xff]   ;;  %v3489_v54 = vld [vmem:[%s4848_s3 + $0x394] ss:$8 sps:$4 sm:$0xff]   ;;  %s330_s9 = sadd.s32 %s3987_s15, %s2726_s26 }
  0x2b   : > { %611 = vmatpush1.bf16.msra.mxu0 %v3382_v34  ;;  %v3457_v34 = vld [vmem:[%s4848_s3 + $0x340] ss:$8 sps:$4 sm:$0xff]   ;;  %v3475_v48 = vld [vmem:[%s4848_s3 + $0x370] ss:$8 sps:$4 sm:$0xff]   ;;  %v3495_v58 = vld [vmem:[%s4848_s3 + $0x3a4] ss:$8 sps:$4 sm:$0xff]  }
  0x2c   : > { %816 = vmatpush1.bf16.msra.mxu1 %v3383_v35  ;;  %612 = vmatprep.subr.bf16.mxu0 %v3384_v36  ;;  %v3462_v35 = vld [vmem:[%s4848_s3 + $0x254] ss:$8 sps:$4 sm:$0xff]   ;;  %v3484_v55 = vld [vmem:[%s4848_s3 + $0x290] ss:$8 sps:$4 sm:$0xff]   ;;  %v3502_v4 = vld [vmem:[%s4848_s3 + $0x2c0] ss:$8 sps:$4 sm:$0xff]  }
  0x2d   : > { %817 = vmatprep.subr.bf16.mxu1 %v3386_v37  ;;  %v3465_v36 = vld [vmem:[%s4848_s3 + $0x354] ss:$8 sps:$4 sm:$0xff]   ;;  %v3460_v37 = vld [vmem:[%s4848_s3 + $0x250] ss:$8 sps:$4 sm:$0xff]   ;;  %v4278_v9 = vld [vmem:[%s4180_s28 + $0x8] sm:$0x11] }
  0x2e   : > { %v3498_v61 = vld [vmem:[%s4848_s3 + $0x2b4] ss:$8 sps:$4 sm:$0xff]   ;;  %v3511_v10 = vld [vmem:[%s4848_s3 + $0x3d0] ss:$8 sps:$4 sm:$0xff]   ;;  %s2727_s15 = sshll.u32 %s330_s9, 2 }
  0x2f   : > { %613 = vmatpush1.bf16.msra.mxu0 %v3388_v38  ;;  %v3463_v38 = vld [vmem:[%s4848_s3 + $0x350] ss:$8 sps:$4 sm:$0xff]   ;;  %s332_s12 = scalar_lea.vmem %s4847_s2, %s2727_s15 }
  0x30   : > { %818 = vmatpush1.bf16.msra.mxu1 %v3389_v39  ;;  %614 = vmatprep.subr.bf16.mxu0 %v3390_v40  ;;  %v3468_v39 = vld [vmem:[%s4848_s3 + $0x264] ss:$8 sps:$4 sm:$0xff]  }
  0x31   : > { %819 = vmatprep.subr.bf16.mxu1 %v3392_v41  ;;  %v3471_v40 = vld [vmem:[%s4848_s3 + $0x364] ss:$8 sps:$4 sm:$0xff]   ;;  %v3466_v41 = vld [vmem:[%s4848_s3 + $0x260] ss:$8 sps:$4 sm:$0xff]  }
  0x33   : > { %615 = vmatpush1.bf16.msra.mxu0 %v3394_v42  ;;  %v4189_v42 = vld [vmem:[%s4180_s28] sm:$0xff] }
  0x34   : > { %820 = vmatpush1.bf16.msra.mxu1 %v3395_v43  ;;  %616 = vmatprep.subr.bf16.mxu0 %v3396_v44  ;;  %v3469_v43 = vld [vmem:[%s4848_s3 + $0x360] ss:$8 sps:$4 sm:$0xff]   ;;  %v2928_v44 = vcombine.high %v4189_v42, %v4189_v42 }
  0x35   : > { %821 = vmatprep.subr.bf16.mxu1 %v3398_v45  ;;  %v3474_v45 = vld [vmem:[%s4848_s3 + $0x274] ss:$8 sps:$4 sm:$0xff]  }
  0x37   : > { %617 = vmatpush1.bf16.msra.mxu0 %v3400_v49  ;;  %v3480_v49 = vld [vmem:[%s4848_s3 + $0x284] ss:$8 sps:$4 sm:$0xff]  }
  0x38   : > { %822 = vmatpush1.bf16.msra.mxu1 %v3401_v50  ;;  %618 = vmatprep.subr.bf16.mxu0 %v3402_v52  ;;  %v3483_v50 = vld [vmem:[%s4848_s3 + $0x384] ss:$8 sps:$4 sm:$0xff]   ;;  %v3481_v52 = vld [vmem:[%s4848_s3 + $0x380] ss:$8 sps:$4 sm:$0xff]  }
  0x39   : > { %823 = vmatprep.subr.bf16.mxu1 %v3404_v53  ;;  %v3486_v53 = vld [vmem:[%s4848_s3 + $0x294] ss:$8 sps:$4 sm:$0xff]  }
  0x3b   : > { %619 = vmatpush1.bf16.msra.mxu0 %v3406_v56  ;;  %v3487_v56 = vld [vmem:[%s4848_s3 + $0x390] ss:$8 sps:$4 sm:$0xff]  }
  0x3c   : > { %824 = vmatpush1.bf16.msra.mxu1 %v3407_v57  ;;  %620 = vmatprep.subr.bf16.mxu0 %v3408_v59  ;;  %v3492_v57 = vld [vmem:[%s4848_s3 + $0x2a4] ss:$8 sps:$4 sm:$0xff]   ;;  %v3490_v59 = vld [vmem:[%s4848_s3 + $0x2a0] ss:$8 sps:$4 sm:$0xff]  }
  0x3d   : > { %825 = vmatprep.subr.bf16.mxu1 %v3410_v60  ;;  %v3493_v60 = vld [vmem:[%s4848_s3 + $0x3a0] ss:$8 sps:$4 sm:$0xff]  }
  0x3f   : > { %621 = vmatpush1.bf16.msra.mxu0 %v3412_v62  ;;  %v3501_v62 = vld [vmem:[%s4848_s3 + $0x3b4] ss:$8 sps:$4 sm:$0xff]  }
  0x40   : > { %826 = vmatpush1.bf16.msra.mxu1 %v3413_v0  ;;  %622 = vmatprep.subr.bf16.mxu0 %v3414_v1  ;;  %v3496_v0 = vld [vmem:[%s4848_s3 + $0x2b0] ss:$8 sps:$4 sm:$0xff]  }
  0x41   : > { %827 = vmatprep.subr.bf16.mxu1 %v3416_v2  ;;  %v3499_v1 = vld [vmem:[%s4848_s3 + $0x3b0] ss:$8 sps:$4 sm:$0xff]   ;;  %v3504_v2 = vld [vmem:[%s4848_s3 + $0x2c4] ss:$8 sps:$4 sm:$0xff]  }
  0x43   : > { %623 = vmatpush1.bf16.msra.mxu0 %v3418_v3  ;;  %v3507_v3 = vld [vmem:[%s4848_s3 + $0x3c4] ss:$8 sps:$4 sm:$0xff]  }
  0x44   : > { %828 = vmatpush1.bf16.msra.mxu1 %v3419_v5  ;;  %624 = vmatprep.subr.bf16.mxu0 %v3420_v6  ;;  %v3505_v5 = vld [vmem:[%s4848_s3 + $0x3c0] ss:$8 sps:$4 sm:$0xff]   ;;  %v3510_v6 = vld [vmem:[%s4848_s3 + $0x2d4] ss:$8 sps:$4 sm:$0xff]  }
  0x45   : > { %829 = vmatprep.subr.bf16.mxu1 %v3422_v7  ;;  %v3513_v7 = vld [vmem:[%s4848_s3 + $0x3d4] ss:$8 sps:$4 sm:$0xff]  }
  0x47   : > { %625 = vmatpush1.bf16.msra.mxu0 %v3424_v8  ;;  %v3508_v8 = vld [vmem:[%s4848_s3 + $0x2d0] ss:$8 sps:$4 sm:$0xff]  }
  0x48   : > { %830 = vmatpush1.bf16.msra.mxu1 %v3425_v11  ;;  %1037 = vmatprep.subr.bf16.mxu0 %v3432_v12  ;;  %v3516_v11 = vld [vmem:[%s4848_s3 + $0x2e4] ss:$8 sps:$4 sm:$0xff]  }
  0x49   : > { %1282 = vmatprep.subr.bf16.mxu1 %v3435_v13  ;;  %v3519_v12 = vld [vmem:[%s4848_s3 + $0x3e4] ss:$8 sps:$4 sm:$0xff]   ;;  %v2994_v13 = vcombine.high %v4189_v42, %v4278_v9 }
  0x4a   : > { %627 = vmatmul.mubr.bf16.vlgmr.msra.gmra.mrb[0].mxu0 %v424_v14  ;;  %v3514_v14 = vld [vmem:[%s4848_s3 + $0x2e0] ss:$8 sps:$4 sm:$0xff]  }
  0x4b   : > { %832 = vmatmul.mubr.bf16.vlgmr.msra.gmra.mrb[0].mxu1 %v2797_v15  ;;  %1038 = vmatpush1.bf16.msra.mxu0 %v3430_v16  ;;  %v3517_v15 = vld [vmem:[%s4848_s3 + $0x3e0] ss:$8 sps:$4 sm:$0xff]   ;;  %v3522_v16 = vld [vmem:[%s4848_s3 + $0x2f4] ss:$8 sps:$4 sm:$0xff]  }
  0x4c   : > { %1283 = vmatpush1.bf16.msra.mxu1 %v3433_v17  ;;  %1039 = vmatprep.subr.bf16.mxu0 %v3438_v18  ;;  %v3525_v17 = vld [vmem:[%s4848_s3 + $0x3f4] ss:$8 sps:$4 sm:$0xff]   ;;  %v1373_v18 = vshll.u32 %v2994_v13, 16 }
  0x4d   : > { %1284 = vmatprep.subr.bf16.mxu1 %v3441_v19  ;;  %1069 = vmatprep.mubr.bf16.mxu0 %v874_v20  ;;  %v3520_v19 = vld [vmem:[%s4848_s3 + $0x2f0] ss:$8 sps:$4 sm:$0xff]  }
  0x4e   : > { %1314 = vmatprep.mubr.bf16.mxu1 %v2928_v44  ;;  %v3523_v20 = vld [vmem:[%s4848_s3 + $0x3f0] ss:$8 sps:$4 sm:$0xff]   ;;  %v3558_v44 = vld [vmem:[%s4848_s3 + $0x544] ss:$8 sps:$4 sm:$0xff]  }
  0x4f   : > { %1040 = vmatpush1.bf16.msra.mxu0 %v3436_v21  ;;  %v3528_v21 = vld [vmem:[%s4848_s3 + $0x404] ss:$8 sps:$4 sm:$0xff]  }
  0x50   : > { %1285 = vmatpush1.bf16.msra.mxu1 %v3439_v22  ;;  %1041 = vmatprep.subr.bf16.mxu0 %v3444_v23  ;;  %v3534_v22 = vld [vmem:[%s4848_s3 + $0x504] ss:$8 sps:$4 sm:$0xff]   ;;  %v1371_v23 = vshrl.u32 %v2994_v13, 16 }
  0x51   : > { %1286 = vmatprep.subr.bf16.mxu1 %v3447_v24  ;;  %v1375_v24 = vrot.slane %v1373_v18, 1  ;;  %v3612_v18 = vld [vmem:[%s4848_s3 + $0x5d4] ss:$8 sps:$4 sm:$0xff]  }
  0x53   : > { %1042 = vmatpush1.bf16.msra.mxu0 %v3442_v25  ;;  %v873_v25 = vrot.slane %v4066_v63, 1  ;;  %v3540_v63 = vld [vmem:[%s4848_s3 + $0x514] ss:$8 sps:$4 sm:$0xff]  }
  0x54   : > { %1287 = vmatpush1.bf16.msra.mxu1 %v3445_v26  ;;  %1043 = vmatprep.subr.bf16.mxu0 %v3450_v27  ;;  %v3526_v26 = vld [vmem:[%s4848_s3 + $0x400] ss:$8 sps:$4 sm:$0xff]   ;;  %v2927_v27 = vcombine.low %v4189_v42, %v4189_v42 }
  0x55   : > { %1288 = vmatprep.subr.bf16.mxu1 %v3453_v28  ;;  %v3532_v28 = vld [vmem:[%s4848_s3 + $0x500] ss:$8 sps:$4 sm:$0xff]  }
  0x57   : > { %1044 = vmatpush1.bf16.msra.mxu0 %v3448_v29  ;;  %v3537_v29 = vld [vmem:[%s4848_s3 + $0x414] ss:$8 sps:$4 sm:$0xff]  }
  0x58   : > { %1289 = vmatpush1.bf16.msra.mxu1 %v3451_v30  ;;  %1045 = vmatprep.subr.bf16.mxu0 %v3456_v31  ;;  %v1376_v30 = vor.u32 %v1375_v24, %v1371_v23  ;;  %v1616_v31 = vrot.slane %v2994_v13, 1  ;;  %v3603_v13 = vld [vmem:[%s4848_s3 + $0x4c4] ss:$8 sps:$4 sm:$0xff]  }
  0x59   : > { %1290 = vmatprep.subr.bf16.mxu1 %v3459_v32  ;;  %v3535_v32 = vld [vmem:[%s4848_s3 + $0x410] ss:$8 sps:$4 sm:$0xff]   ;;  %v4489_v23 = vld [vmem:[%s332_s12 + $0x8] sm:$0x11] }
  0x5a   : > { %v3615_v24 = vld [vmem:[%s4848_s3 + $0x4e4] ss:$8 sps:$4 sm:$0xff]  }
  0x5b   : > { %1046 = vmatpush1.bf16.msra.mxu0 %v3454_v33  ;;  %v3538_v33 = vld [vmem:[%s4848_s3 + $0x510] ss:$8 sps:$4 sm:$0xff]  }
  0x5c   : > { %1291 = vmatpush1.bf16.msra.mxu1 %v3457_v34  ;;  %1047 = vmatprep.subr.bf16.mxu0 %v3462_v35  ;;  %v3543_v34 = vld [vmem:[%s4848_s3 + $0x424] ss:$8 sps:$4 sm:$0xff]  }
  0x5d   : > { %1292 = vmatprep.subr.bf16.mxu1 %v3465_v36  ;;  %v3546_v35 = vld [vmem:[%s4848_s3 + $0x524] ss:$8 sps:$4 sm:$0xff]   ;;  %v3541_v36 = vld [vmem:[%s4848_s3 + $0x420] ss:$8 sps:$4 sm:$0xff]  }
  0x5f   : > { %1048 = vmatpush1.bf16.msra.mxu0 %v3460_v37  ;;  %v3544_v37 = vld [vmem:[%s4848_s3 + $0x520] ss:$8 sps:$4 sm:$0xff]  }
  0x60   : > { %1293 = vmatpush1.bf16.msra.mxu1 %v3463_v38  ;;  %1049 = vmatprep.subr.bf16.mxu0 %v3468_v39  ;;  %v3549_v38 = vld [vmem:[%s4848_s3 + $0x434] ss:$8 sps:$4 sm:$0xff]  }
  0x61   : > { %1294 = vmatprep.subr.bf16.mxu1 %v3471_v40  ;;  %v3552_v39 = vld [vmem:[%s4848_s3 + $0x534] ss:$8 sps:$4 sm:$0xff]   ;;  %v3547_v40 = vld [vmem:[%s4848_s3 + $0x430] ss:$8 sps:$4 sm:$0xff]  }
  0x63   : > { %1050 = vmatpush1.bf16.msra.mxu0 %v3466_v41  ;;  %v3550_v41 = vld [vmem:[%s4848_s3 + $0x530] ss:$8 sps:$4 sm:$0xff]  }
  0x64   : > { %1295 = vmatpush1.bf16.msra.mxu1 %v3469_v43  ;;  %1051 = vmatprep.subr.bf16.mxu0 %v3474_v45  ;;  %v3555_v43 = vld [vmem:[%s4848_s3 + $0x444] ss:$8 sps:$4 sm:$0xff]   ;;  %v3553_v45 = vld [vmem:[%s4848_s3 + $0x440] ss:$8 sps:$4 sm:$0xff]  }
  0x65   : > { %1296 = vmatprep.subr.bf16.mxu1 %v3477_v46  ;;  %v3556_v46 = vld [vmem:[%s4848_s3 + $0x540] ss:$8 sps:$4 sm:$0xff]  }
  0x67   : > { %1052 = vmatpush1.bf16.msra.mxu0 %v3472_v47  ;;  %v3561_v47 = vld [vmem:[%s4848_s3 + $0x454] ss:$8 sps:$4 sm:$0xff]  }
  0x68   : > { %1297 = vmatpush1.bf16.msra.mxu1 %v3475_v48  ;;  %1053 = vmatprep.subr.bf16.mxu0 %v3480_v49  ;;  %v3564_v48 = vld [vmem:[%s4848_s3 + $0x554] ss:$8 sps:$4 sm:$0xff]   ;;  %v3559_v49 = vld [vmem:[%s4848_s3 + $0x450] ss:$8 sps:$4 sm:$0xff]  }
  0x69   : > { %1298 = vmatprep.subr.bf16.mxu1 %v3483_v50  ;;  %v3562_v50 = vld [vmem:[%s4848_s3 + $0x550] ss:$8 sps:$4 sm:$0xff]  }
  0x6b   : > { %1054 = vmatpush1.bf16.msra.mxu0 %v3478_v51  ;;  %v3567_v51 = vld [vmem:[%s4848_s3 + $0x464] ss:$8 sps:$4 sm:$0xff]  }
  0x6c   : > { %1299 = vmatpush1.bf16.msra.mxu1 %v3481_v52  ;;  %1055 = vmatprep.subr.bf16.mxu0 %v3486_v53  ;;  %v3570_v52 = vld [vmem:[%s4848_s3 + $0x564] ss:$8 sps:$4 sm:$0xff]   ;;  %v3565_v53 = vld [vmem:[%s4848_s3 + $0x460] ss:$8 sps:$4 sm:$0xff]  }
  0x6d   : > { %1300 = vmatprep.subr.bf16.mxu1 %v3489_v54  ;;  %v3568_v54 = vld [vmem:[%s4848_s3 + $0x560] ss:$8 sps:$4 sm:$0xff]  }
  0x6f   : > { %1056 = vmatpush1.bf16.msra.mxu0 %v3484_v55  ;;  %v3573_v55 = vld [vmem:[%s4848_s3 + $0x474] ss:$8 sps:$4 sm:$0xff]  }
  0x70   : > { %1301 = vmatpush1.bf16.msra.mxu1 %v3487_v56  ;;  %1057 = vmatprep.subr.bf16.mxu0 %v3492_v57  ;;  %v3576_v56 = vld [vmem:[%s4848_s3 + $0x574] ss:$8 sps:$4 sm:$0xff]   ;;  %v3571_v57 = vld [vmem:[%s4848_s3 + $0x470] ss:$8 sps:$4 sm:$0xff]  }
  0x71   : > { %1302 = vmatprep.subr.bf16.mxu1 %v3495_v58  ;;  %v3574_v58 = vld [vmem:[%s4848_s3 + $0x570] ss:$8 sps:$4 sm:$0xff]  }
  0x73   : > { %1058 = vmatpush1.bf16.msra.mxu0 %v3490_v59  ;;  %v3579_v59 = vld [vmem:[%s4848_s3 + $0x484] ss:$8 sps:$4 sm:$0xff]  }
  0x74   : > { %1303 = vmatpush1.bf16.msra.mxu1 %v3493_v60  ;;  %1059 = vmatprep.subr.bf16.mxu0 %v3498_v61  ;;  %v3582_v60 = vld [vmem:[%s4848_s3 + $0x584] ss:$8 sps:$4 sm:$0xff]   ;;  %v3577_v61 = vld [vmem:[%s4848_s3 + $0x480] ss:$8 sps:$4 sm:$0xff]  }
  0x75   : > { %1304 = vmatprep.subr.bf16.mxu1 %v3501_v62  ;;  %v3580_v62 = vld [vmem:[%s4848_s3 + $0x580] ss:$8 sps:$4 sm:$0xff]  }
  0x77   : > { %1060 = vmatpush1.bf16.msra.mxu0 %v3496_v0  ;;  %v3585_v0 = vld [vmem:[%s4848_s3 + $0x494] ss:$8 sps:$4 sm:$0xff]  }
  0x78   : > { %1305 = vmatpush1.bf16.msra.mxu1 %v3499_v1  ;;  %1061 = vmatprep.subr.bf16.mxu0 %v3504_v2  ;;  %v3588_v1 = vld [vmem:[%s4848_s3 + $0x594] ss:$8 sps:$4 sm:$0xff]   ;;  %v3583_v2 = vld [vmem:[%s4848_s3 + $0x490] ss:$8 sps:$4 sm:$0xff]  }
  0x79   : > { %1306 = vmatprep.subr.bf16.mxu1 %v3507_v3  ;;  %v3586_v3 = vld [vmem:[%s4848_s3 + $0x590] ss:$8 sps:$4 sm:$0xff]  }
  0x7b   : > { %1062 = vmatpush1.bf16.msra.mxu0 %v3502_v4  ;;  %v3591_v4 = vld [vmem:[%s4848_s3 + $0x4a4] ss:$8 sps:$4 sm:$0xff]  }
  0x7c   : > { %1307 = vmatpush1.bf16.msra.mxu1 %v3505_v5  ;;  %1063 = vmatprep.subr.bf16.mxu0 %v3510_v6  ;;  %v3594_v5 = vld [vmem:[%s4848_s3 + $0x5a4] ss:$8 sps:$4 sm:$0xff]   ;;  %v3589_v6 = vld [vmem:[%s4848_s3 + $0x4a0] ss:$8 sps:$4 sm:$0xff]  }
  0x7d   : > { %1308 = vmatprep.subr.bf16.mxu1 %v3513_v7  ;;  %v3592_v7 = vld [vmem:[%s4848_s3 + $0x5a0] ss:$8 sps:$4 sm:$0xff]  }
  0x7f   : > { %1064 = vmatpush1.bf16.msra.mxu0 %v3508_v8  ;;  %v3597_v8 = vld [vmem:[%s4848_s3 + $0x4b4] ss:$8 sps:$4 sm:$0xff]  }
  0x80   : > { %1309 = vmatpush1.bf16.msra.mxu1 %v3511_v10  ;;  %1065 = vmatprep.subr.bf16.mxu0 %v3516_v11  ;;  %v3600_v10 = vld [vmem:[%s4848_s3 + $0x5b4] ss:$8 sps:$4 sm:$0xff]   ;;  %v3595_v11 = vld [vmem:[%s4848_s3 + $0x4b0] ss:$8 sps:$4 sm:$0xff]  }
  0x81   : > { %1310 = vmatprep.subr.bf16.mxu1 %v3519_v12  ;;  %v3598_v12 = vld [vmem:[%s4848_s3 + $0x5b0] ss:$8 sps:$4 sm:$0xff]  }
  0x83   : > { %1066 = vmatpush1.bf16.msra.mxu0 %v3514_v14  ;;  %v3606_v14 = vld [vmem:[%s4848_s3 + $0x5c4] ss:$8 sps:$4 sm:$0xff]  }
  0x84   : > { %1311 = vmatpush1.bf16.msra.mxu1 %v3517_v15  ;;  %1067 = vmatprep.subr.bf16.mxu0 %v3522_v16  ;;  %v3601_v15 = vld [vmem:[%s4848_s3 + $0x4c0] ss:$8 sps:$4 sm:$0xff]  }
  0x85   : > { %1312 = vmatprep.subr.bf16.mxu1 %v3525_v17  ;;  %v3604_v16 = vld [vmem:[%s4848_s3 + $0x5c0] ss:$8 sps:$4 sm:$0xff]   ;;  %v3609_v17 = vld [vmem:[%s4848_s3 + $0x4d4] ss:$8 sps:$4 sm:$0xff]  }
  0x87   : > { %1068 = vmatpush1.bf16.msra.mxu0 %v3520_v19  ;;  %v3607_v19 = vld [vmem:[%s4848_s3 + $0x4d0] ss:$8 sps:$4 sm:$0xff]  }
  0x88   : > { %1313 = vmatpush1.bf16.msra.mxu1 %v3523_v20  ;;  %1539 = vmatprep.subr.bf16.mxu0 %v3528_v21  ;;  %v3610_v20 = vld [vmem:[%s4848_s3 + $0x5d0] ss:$8 sps:$4 sm:$0xff]   ;;  %v2993_v21 = vcombine.low %v4189_v42, %v4278_v9  ;;  %v3613_v42 = vld [vmem:[%s4848_s3 + $0x4e0] ss:$8 sps:$4 sm:$0xff]  }
  0x89   : > { %1779 = vmatprep.subr.bf16.mxu1 %v3534_v22  ;;  %v4487_v22 = vld [vmem:[%s332_s12] sm:$0xff]  ;;  %s2729_s12 = sshll.u32 %s4862_s19, 4 }
  0x8a   : > { %1070 = vmatmul.mubr.bf16.vlgmr.msra.gmra.mrb[4].mxu0 %v873_v25  ;;  %v3618_v25 = vld [vmem:[%s4848_s3 + $0x5e4] ss:$8 sps:$4 sm:$0xff]   ;;  %v3616_v9 = vld [vmem:[%s4848_s3 + $0x5e0] ss:$8 sps:$4 sm:$0xff]   ;;  %s340_s9 = sadd.s32 %s2729_s12, %s2728_s8 }
  0x8b   : > { %1315 = vmatmul.mubr.bf16.vlgmr.msra.gmra.mrb[4].mxu1 %v2927_v27  ;;  %1540 = vmatpush1.bf16.msra.mxu0 %v3526_v26  ;;  %v4499_v26 = vcombine.high %v4487_v22, %v4489_v23  ;;  %v1366_v27 = vshll.u32 %v2993_v21, 16  ;;  %s2730_s13 = sshll.u32 %s340_s9, 3 }
  0x8c   : > { %1780 = vmatpush1.bf16.msra.mxu1 %v3532_v28  ;;  %1541 = vmatprep.subr.bf16.mxu0 %v3537_v29  ;;  %v3621_v28 = vld [vmem:[%s4848_s3 + $0x4f4] ss:$8 sps:$4 sm:$0xff]   ;;  %s342_s25 = scalar_lea.vmem %s4850_s5, %s2730_s13 }
  0x8d   : > { %1781 = vmatprep.subr.bf16.mxu1 %v3540_v63  ;;  %1571 = vmatprep.mubr.bf16.mxu0 %v1376_v30  ;;  %v3624_v29 = vld [vmem:[%s4848_s3 + $0x5f4] ss:$8 sps:$4 sm:$0xff]   ;;  %v1364_v63 = vshrl.u32 %v2993_v21, 16  ;;  %v2115_v30 = vshll.u32 %v4499_v26, 16 }
  0x8e   : > { %1811 = vmatprep.mubr.bf16.mxu1 %v1616_v31  ;;  %v3619_v31 = vld [vmem:[%s4848_s3 + $0x4f0] ss:$8 sps:$4 sm:$0xff]  }
  0x8f   : > { %1542 = vmatpush1.bf16.msra.mxu0 %v3535_v32  ;;  %v3622_v32 = vld [vmem:[%s4848_s3 + $0x5f0] ss:$8 sps:$4 sm:$0xff]  }
  0x90   : > { %1782 = vmatpush1.bf16.msra.mxu1 %v3538_v33  ;;  %1543 = vmatprep.subr.bf16.mxu0 %v3543_v34  ;;  %v1368_v33 = vrot.slane %v1366_v27, 1  ;;  %v3628_v34 = vld [vmem:[%s4848_s3 + $0x604] ss:$8 sps:$4 sm:$0xff]   ;;  %v3695_v27 = vld [vmem:[%s4848_s3 + $0x7b0] ss:$8 sps:$4 sm:$0xff]  }
  0x91   : > { %1783 = vmatprep.subr.bf16.mxu1 %v3546_v35  ;;  %v3631_v35 = vld [vmem:[%s4848_s3 + $0x704] ss:$8 sps:$4 sm:$0xff]  }
  0x93   : > { %1544 = vmatpush1.bf16.msra.mxu0 %v3541_v36  ;;  %v2113_v36 = vshrl.u32 %v4499_v26, 16 }
  0x94   : > { %1784 = vmatpush1.bf16.msra.mxu1 %v3544_v37  ;;  %1545 = vmatprep.subr.bf16.mxu0 %v3549_v38  ;;  %v2117_v37 = vrot.slane %v2115_v30, 1  ;;  %v1369_v38 = vor.u32 %v1368_v33, %v1364_v63  ;;  %v3698_v63 = vld [vmem:[%s4848_s3 + $0x6c0] ss:$8 sps:$4 sm:$0xff]   ;;  %v4687_v33 = vcombine.low %v4487_v22, %v4489_v23  ;;  %v3715_v23 = vld [vmem:[%s4848_s3 + $0x7e4] ss:$8 sps:$4 sm:$0xff]  }
  0x95   : > { %1785 = vmatprep.subr.bf16.mxu1 %v3552_v39  ;;  %v3626_v39 = vld [vmem:[%s4848_s3 + $0x600] ss:$8 sps:$4 sm:$0xff]  }
  0x96   : > { %v3701_v30 = vld [vmem:[%s4848_s3 + $0x7c0] ss:$8 sps:$4 sm:$0xff]  }
  0x97   : > { %1546 = vmatpush1.bf16.msra.mxu0 %v3547_v40  ;;  %v1615_v40 = vrot.slane %v2993_v21, 1  ;;  %v3686_v21 = vld [vmem:[%s4848_s3 + $0x6a0] ss:$8 sps:$4 sm:$0xff]  }
  0x98   : > { %1786 = vmatpush1.bf16.msra.mxu1 %v3550_v41  ;;  %1547 = vmatprep.subr.bf16.mxu0 %v3555_v43  ;;  %v3629_v41 = vld [vmem:[%s4848_s3 + $0x700] ss:$8 sps:$4 sm:$0xff]   ;;  %v3634_v43 = vld [vmem:[%s4848_s3 + $0x614] ss:$8 sps:$4 sm:$0xff]  }
  0x99   : > { %1787 = vmatprep.subr.bf16.mxu1 %v3558_v44  ;;  %v3637_v44 = vld [vmem:[%s4848_s3 + $0x714] ss:$8 sps:$4 sm:$0xff]  }
  0x9b   : > { %1548 = vmatpush1.bf16.msra.mxu0 %v3553_v45  ;;  %v3124_v45 = vcombine.high %v4487_v22, %v4487_v22 }
  0x9c   : > { %1788 = vmatpush1.bf16.msra.mxu1 %v3556_v46  ;;  %1549 = vmatprep.subr.bf16.mxu0 %v3561_v47  ;;  %v2118_v46 = vor.u32 %v2117_v37, %v2113_v36  ;;  %v3632_v47 = vld [vmem:[%s4848_s3 + $0x610] ss:$8 sps:$4 sm:$0xff]   ;;  %v3712_v36 = vld [vmem:[%s4848_s3 + $0x6e4] ss:$8 sps:$4 sm:$0xff]   ;;  %v2108_v37 = vshll.u32 %v4687_v33, 16 }
  0x9d   : > { %1789 = vmatprep.subr.bf16.mxu1 %v3564_v48  ;;  %v3635_v48 = vld [vmem:[%s4848_s3 + $0x710] ss:$8 sps:$4 sm:$0xff]  }
  0x9f   : > { %1550 = vmatpush1.bf16.msra.mxu0 %v3559_v49  ;;  %v3640_v49 = vld [vmem:[%s4848_s3 + $0x624] ss:$8 sps:$4 sm:$0xff]  }
  0xa0   : > { %1790 = vmatpush1.bf16.msra.mxu1 %v3562_v50  ;;  %1551 = vmatprep.subr.bf16.mxu0 %v3567_v51  ;;  %v3643_v50 = vld [vmem:[%s4848_s3 + $0x724] ss:$8 sps:$4 sm:$0xff]   ;;  %v3638_v51 = vld [vmem:[%s4848_s3 + $0x620] ss:$8 sps:$4 sm:$0xff]  }
  0xa1   : > { %1791 = vmatprep.subr.bf16.mxu1 %v3570_v52  ;;  %v3641_v52 = vld [vmem:[%s4848_s3 + $0x720] ss:$8 sps:$4 sm:$0xff]  }
  0xa3   : > { %1552 = vmatpush1.bf16.msra.mxu0 %v3565_v53  ;;  %v3646_v53 = vld [vmem:[%s4848_s3 + $0x634] ss:$8 sps:$4 sm:$0xff]  }
  0xa4   : > { %1792 = vmatpush1.bf16.msra.mxu1 %v3568_v54  ;;  %1553 = vmatprep.subr.bf16.mxu0 %v3573_v55  ;;  %v3649_v54 = vld [vmem:[%s4848_s3 + $0x734] ss:$8 sps:$4 sm:$0xff]   ;;  %v3644_v55 = vld [vmem:[%s4848_s3 + $0x630] ss:$8 sps:$4 sm:$0xff]  }
  0xa5   : > { %1793 = vmatprep.subr.bf16.mxu1 %v3576_v56  ;;  %v3647_v56 = vld [vmem:[%s4848_s3 + $0x730] ss:$8 sps:$4 sm:$0xff]  }
  0xa7   : > { %1554 = vmatpush1.bf16.msra.mxu0 %v3571_v57  ;;  %v3652_v57 = vld [vmem:[%s4848_s3 + $0x644] ss:$8 sps:$4 sm:$0xff]  }
  0xa8   : > { %1794 = vmatpush1.bf16.msra.mxu1 %v3574_v58  ;;  %1555 = vmatprep.subr.bf16.mxu0 %v3579_v59  ;;  %v3655_v58 = vld [vmem:[%s4848_s3 + $0x744] ss:$8 sps:$4 sm:$0xff]   ;;  %v3650_v59 = vld [vmem:[%s4848_s3 + $0x640] ss:$8 sps:$4 sm:$0xff]  }
  0xa9   : > { %1795 = vmatprep.subr.bf16.mxu1 %v3582_v60  ;;  %v3653_v60 = vld [vmem:[%s4848_s3 + $0x740] ss:$8 sps:$4 sm:$0xff]  }
  0xab   : > { %1556 = vmatpush1.bf16.msra.mxu0 %v3577_v61  ;;  %v3658_v61 = vld [vmem:[%s4848_s3 + $0x654] ss:$8 sps:$4 sm:$0xff]  }
  0xac   : > { %1796 = vmatpush1.bf16.msra.mxu1 %v3580_v62  ;;  %1557 = vmatprep.subr.bf16.mxu0 %v3585_v0  ;;  %v3661_v62 = vld [vmem:[%s4848_s3 + $0x754] ss:$8 sps:$4 sm:$0xff]   ;;  %v3656_v0 = vld [vmem:[%s4848_s3 + $0x650] ss:$8 sps:$4 sm:$0xff]  }
  0xad   : > { %1797 = vmatprep.subr.bf16.mxu1 %v3588_v1  ;;  %v3659_v1 = vld [vmem:[%s4848_s3 + $0x750] ss:$8 sps:$4 sm:$0xff]  }
  0xaf   : > { %1558 = vmatpush1.bf16.msra.mxu0 %v3583_v2  ;;  %v3664_v2 = vld [vmem:[%s4848_s3 + $0x664] ss:$8 sps:$4 sm:$0xff]  }
  0xb0   : > { %1798 = vmatpush1.bf16.msra.mxu1 %v3586_v3  ;;  %1559 = vmatprep.subr.bf16.mxu0 %v3591_v4  ;;  %v3667_v3 = vld [vmem:[%s4848_s3 + $0x764] ss:$8 sps:$4 sm:$0xff]   ;;  %v3662_v4 = vld [vmem:[%s4848_s3 + $0x660] ss:$8 sps:$4 sm:$0xff]  }
  0xb1   : > { %1799 = vmatprep.subr.bf16.mxu1 %v3594_v5  ;;  %v3665_v5 = vld [vmem:[%s4848_s3 + $0x760] ss:$8 sps:$4 sm:$0xff]  }
  0xb3   : > { %1560 = vmatpush1.bf16.msra.mxu0 %v3589_v6  ;;  %v3670_v6 = vld [vmem:[%s4848_s3 + $0x674] ss:$8 sps:$4 sm:$0xff]  }
  0xb4   : > { %1800 = vmatpush1.bf16.msra.mxu1 %v3592_v7  ;;  %1561 = vmatprep.subr.bf16.mxu0 %v3597_v8  ;;  %v3673_v7 = vld [vmem:[%s4848_s3 + $0x774] ss:$8 sps:$4 sm:$0xff]   ;;  %v3668_v8 = vld [vmem:[%s4848_s3 + $0x670] ss:$8 sps:$4 sm:$0xff]  }
  0xb5   : > { %1801 = vmatprep.subr.bf16.mxu1 %v3600_v10  ;;  %v3671_v10 = vld [vmem:[%s4848_s3 + $0x770] ss:$8 sps:$4 sm:$0xff]  }
  0xb7   : > { %1562 = vmatpush1.bf16.msra.mxu0 %v3595_v11  ;;  %v3676_v11 = vld [vmem:[%s4848_s3 + $0x684] ss:$8 sps:$4 sm:$0xff]  }
  0xb8   : > { %1802 = vmatpush1.bf16.msra.mxu1 %v3598_v12  ;;  %1563 = vmatprep.subr.bf16.mxu0 %v3603_v13  ;;  %v3679_v12 = vld [vmem:[%s4848_s3 + $0x784] ss:$8 sps:$4 sm:$0xff]   ;;  %v3674_v13 = vld [vmem:[%s4848_s3 + $0x680] ss:$8 sps:$4 sm:$0xff]  }
  0xb9   : > { %1803 = vmatprep.subr.bf16.mxu1 %v3606_v14  ;;  %v3677_v14 = vld [vmem:[%s4848_s3 + $0x780] ss:$8 sps:$4 sm:$0xff]  }
  0xbb   : > { %1564 = vmatpush1.bf16.msra.mxu0 %v3601_v15  ;;  %v3682_v15 = vld [vmem:[%s4848_s3 + $0x694] ss:$8 sps:$4 sm:$0xff]  }
  0xbc   : > { %1804 = vmatpush1.bf16.msra.mxu1 %v3604_v16  ;;  %1565 = vmatprep.subr.bf16.mxu0 %v3609_v17  ;;  %v3685_v16 = vld [vmem:[%s4848_s3 + $0x794] ss:$8 sps:$4 sm:$0xff]   ;;  %v3680_v17 = vld [vmem:[%s4848_s3 + $0x690] ss:$8 sps:$4 sm:$0xff]  }
  0xbd   : > { %1805 = vmatprep.subr.bf16.mxu1 %v3612_v18  ;;  %v3683_v18 = vld [vmem:[%s4848_s3 + $0x790] ss:$8 sps:$4 sm:$0xff]  }
  0xbf   : > { %1566 = vmatpush1.bf16.msra.mxu0 %v3607_v19  ;;  %v3688_v19 = vld [vmem:[%s4848_s3 + $0x6a4] ss:$8 sps:$4 sm:$0xff]  }
  0xc0   : > { %1806 = vmatpush1.bf16.msra.mxu1 %v3610_v20  ;;  %1567 = vmatprep.subr.bf16.mxu0 %v3615_v24  ;;  %v3691_v20 = vld [vmem:[%s4848_s3 + $0x7a4] ss:$8 sps:$4 sm:$0xff]   ;;  %v3689_v24 = vld [vmem:[%s4848_s3 + $0x7a0] ss:$8 sps:$4 sm:$0xff]  }
  0xc1   : > { %1807 = vmatprep.subr.bf16.mxu1 %v3618_v25  ;;  %v3694_v25 = vld [vmem:[%s4848_s3 + $0x6b4] ss:$8 sps:$4 sm:$0xff]  }
  0xc3   : > { %1568 = vmatpush1.bf16.msra.mxu0 %v3613_v42  ;;  %v3697_v42 = vld [vmem:[%s4848_s3 + $0x7b4] ss:$8 sps:$4 sm:$0xff]  }
  0xc4   : > { %1808 = vmatpush1.bf16.msra.mxu1 %v3616_v9  ;;  %1569 = vmatprep.subr.bf16.mxu0 %v3621_v28  ;;  %v3692_v9 = vld [vmem:[%s4848_s3 + $0x6b0] ss:$8 sps:$4 sm:$0xff]   ;;  %v3700_v28 = vld [vmem:[%s4848_s3 + $0x6c4] ss:$8 sps:$4 sm:$0xff]  }
  0xc5   : > { %1809 = vmatprep.subr.bf16.mxu1 %v3624_v29  ;;  %v3703_v29 = vld [vmem:[%s4848_s3 + $0x7c4] ss:$8 sps:$4 sm:$0xff]  }
  0xc7   : > { %1570 = vmatpush1.bf16.msra.mxu0 %v3619_v31  ;;  %v3706_v31 = vld [vmem:[%s4848_s3 + $0x6d4] ss:$8 sps:$4 sm:$0xff]  }
  0xc8   : > { %1810 = vmatpush1.bf16.msra.mxu1 %v3622_v32  ;;  %2024 = vmatprep.subr.bf16.mxu0 %v3628_v34  ;;  %v3709_v32 = vld [vmem:[%s4848_s3 + $0x7d4] ss:$8 sps:$4 sm:$0xff]   ;;  %v3704_v34 = vld [vmem:[%s4848_s3 + $0x6d0] ss:$8 sps:$4 sm:$0xff]  }
  0xc9   : > { %2281 = vmatprep.subr.bf16.mxu1 %v3631_v35  ;;  %v3707_v35 = vld [vmem:[%s4848_s3 + $0x7d0] ss:$8 sps:$4 sm:$0xff]  }
  0xca   : > { %1572 = vmatmul.mubr.bf16.vlgmr.msra.gmra.mrb[8].mxu0 %v1369_v38  ;;  %v3710_v38 = vld [vmem:[%s4848_s3 + $0x6e0] ss:$8 sps:$4 sm:$0xff]  }
  0xcb   : > { %1812 = vmatmul.mubr.bf16.vlgmr.msra.gmra.mrb[8].mxu1 %v1615_v40  ;;  %2025 = vmatpush1.bf16.msra.mxu0 %v3626_v39  ;;  %v3713_v39 = vld [vmem:[%s4848_s3 + $0x7e0] ss:$8 sps:$4 sm:$0xff]   ;;  %v3718_v40 = vld [vmem:[%s4848_s3 + $0x6f4] ss:$8 sps:$4 sm:$0xff]  }
  0xcc   : > { %2282 = vmatpush1.bf16.msra.mxu1 %v3629_v41  ;;  %2026 = vmatprep.subr.bf16.mxu0 %v3634_v43  ;;  %v3721_v41 = vld [vmem:[%s4848_s3 + $0x7f4] ss:$8 sps:$4 sm:$0xff]   ;;  %v2106_v43 = vshrl.u32 %v4687_v33, 16 }
  0xcd   : > { %2283 = vmatprep.subr.bf16.mxu1 %v3637_v44  ;;  %2056 = vmatprep.mubr.bf16.mxu0 %v3124_v45  ;;  %v2110_v44 = vrot.slane %v2108_v37, 1  ;;  %v3716_v45 = vld [vmem:[%s4848_s3 + $0x6f0] ss:$8 sps:$4 sm:$0xff]  }
  0xce   : > { %2313 = vmatprep.mubr.bf16.mxu1 %v2118_v46  ;;  %v3719_v46 = vld [vmem:[%s4848_s3 + $0x7f0] ss:$8 sps:$4 sm:$0xff]  }
  0xcf   : > { %2027 = vmatpush1.bf16.msra.mxu0 %v3632_v47  ;;  %v3727_v47 = vld [vmem:[%s4848_s3 + $0x804] ss:$8 sps:$4 sm:$0xff]  }
  0xd0   : > { %2284 = vmatpush1.bf16.msra.mxu1 %v3635_v48  ;;  %2028 = vmatprep.subr.bf16.mxu0 %v3640_v49  ;;  %v3123_v48 = vcombine.low %v4487_v22, %v4487_v22  ;;  %v2111_v49 = vor.u32 %v2110_v44, %v2106_v43  ;;  %v3729_v22 = vld [vmem:[%s4848_s3 + $0x810] ss:$8 sps:$4 sm:$0xff]  }
  0xd1   : > { %2285 = vmatprep.subr.bf16.mxu1 %v3643_v50  ;;  %v3725_v50 = vld [vmem:[%s4848_s3 + $0x800] ss:$8 sps:$4 sm:$0xff]  }
  0xd3   : > { %2029 = vmatpush1.bf16.msra.mxu0 %v3638_v51  ;;  %v2358_v51 = vrot.slane %v4499_v26, 1  ;;  %v3732_v26 = vld [vmem:[%s4848_s3 + $0x820] ss:$8 sps:$4 sm:$0xff]  }
  0xd4   : > { %2286 = vmatpush1.bf16.msra.mxu1 %v3641_v52  ;;  %2030 = vmatprep.subr.bf16.mxu0 %v3646_v53  ;;  %v3731_v52 = vld [vmem:[%s4848_s3 + $0x814] ss:$8 sps:$4 sm:$0xff]   ;;  %v3734_v53 = vld [vmem:[%s4848_s3 + $0x824] ss:$8 sps:$4 sm:$0xff]  }
  0xd5   : > { %2287 = vmatprep.subr.bf16.mxu1 %v3649_v54  ;;  %v3737_v54 = vld [vmem:[%s4848_s3 + $0x834] ss:$8 sps:$4 sm:$0xff]  }
  0xd7   : > { %2031 = vmatpush1.bf16.msra.mxu0 %v3644_v55  ;;  %v3735_v55 = vld [vmem:[%s4848_s3 + $0x830] ss:$8 sps:$4 sm:$0xff]  }
  0xd8   : > { %2288 = vmatpush1.bf16.msra.mxu1 %v3647_v56  ;;  %2032 = vmatprep.subr.bf16.mxu0 %v3652_v57  ;;  %v3740_v56 = vld [vmem:[%s4848_s3 + $0x844] ss:$8 sps:$4 sm:$0xff]   ;;  %v3738_v57 = vld [vmem:[%s4848_s3 + $0x840] ss:$8 sps:$4 sm:$0xff]  }
  0xd9   : > { %2289 = vmatprep.subr.bf16.mxu1 %v3655_v58  ;;  %v3743_v58 = vld [vmem:[%s4848_s3 + $0x854] ss:$8 sps:$4 sm:$0xff]  }
  0xdb   : > { %2033 = vmatpush1.bf16.msra.mxu0 %v3650_v59  ;;  %v3741_v59 = vld [vmem:[%s4848_s3 + $0x850] ss:$8 sps:$4 sm:$0xff]  }
  0xdc   : > { %2290 = vmatpush1.bf16.msra.mxu1 %v3653_v60  ;;  %2034 = vmatprep.subr.bf16.mxu0 %v3658_v61  ;;  %v3746_v60 = vld [vmem:[%s4848_s3 + $0x864] ss:$8 sps:$4 sm:$0xff]  }
  0xdd   : > { %2291 = vmatprep.subr.bf16.mxu1 %v3661_v62 }
  0xdf   : > { %2035 = vmatpush1.bf16.msra.mxu0 %v3656_v0 }
  0xe0   : > { %2292 = vmatpush1.bf16.msra.mxu1 %v3659_v1  ;;  %2036 = vmatprep.subr.bf16.mxu0 %v3664_v2 }
  0xe1   : > { %2293 = vmatprep.subr.bf16.mxu1 %v3667_v3 }
  0xe3   : > { %2037 = vmatpush1.bf16.msra.mxu0 %v3662_v4 }
  0xe4   : > { %2294 = vmatpush1.bf16.msra.mxu1 %v3665_v5  ;;  %2038 = vmatprep.subr.bf16.mxu0 %v3670_v6  ;;  %v3744_v5 = vld [vmem:[%s4848_s3 + $0x860] ss:$8 sps:$4 sm:$0xff]  }
  0xe5   : > { %2295 = vmatprep.subr.bf16.mxu1 %v3673_v7 }
  0xe7   : > { %2039 = vmatpush1.bf16.msra.mxu0 %v3668_v8  ;;  %v3749_v8 = vld [vmem:[%s4848_s3 + $0x874] ss:$8 sps:$4 sm:$0xff]  }
  0xe8   : > { %2296 = vmatpush1.bf16.msra.mxu1 %v3671_v10  ;;  %2040 = vmatprep.subr.bf16.mxu0 %v3676_v11  ;;  %v3747_v11 = vld [vmem:[%s4848_s3 + $0x870] ss:$8 sps:$4 sm:$0xff]  }
  0xe9   : > { %2297 = vmatprep.subr.bf16.mxu1 %v3679_v12  ;;  %v3752_v12 = vld [vmem:[%s4848_s3 + $0x884] ss:$8 sps:$4 sm:$0xff]  }
  0xeb   : > { %2041 = vmatpush1.bf16.msra.mxu0 %v3674_v13  ;;  %v3750_v13 = vld [vmem:[%s4848_s3 + $0x880] ss:$8 sps:$4 sm:$0xff]  }
  0xec   : > { %2298 = vmatpush1.bf16.msra.mxu1 %v3677_v14  ;;  %2042 = vmatprep.subr.bf16.mxu0 %v3682_v15  ;;  %v3755_v14 = vld [vmem:[%s4848_s3 + $0x894] ss:$8 sps:$4 sm:$0xff]   ;;  %v3753_v15 = vld [vmem:[%s4848_s3 + $0x890] ss:$8 sps:$4 sm:$0xff]  }
  0xed   : > { %2299 = vmatprep.subr.bf16.mxu1 %v3685_v16  ;;  %v3758_v16 = vld [vmem:[%s4848_s3 + $0x8a4] ss:$8 sps:$4 sm:$0xff]  }
  0xef   : > { %2043 = vmatpush1.bf16.msra.mxu0 %v3680_v17  ;;  %v3756_v17 = vld [vmem:[%s4848_s3 + $0x8a0] ss:$8 sps:$4 sm:$0xff]  }
  0xf0   : > { %2300 = vmatpush1.bf16.msra.mxu1 %v3683_v18  ;;  %2044 = vmatprep.subr.bf16.mxu0 %v3688_v19  ;;  %v3761_v18 = vld [vmem:[%s4848_s3 + $0x8b4] ss:$8 sps:$4 sm:$0xff]   ;;  %v3759_v19 = vld [vmem:[%s4848_s3 + $0x8b0] ss:$8 sps:$4 sm:$0xff]  }
  0xf1   : > { %2301 = vmatprep.subr.bf16.mxu1 %v3691_v20  ;;  %v3764_v20 = vld [vmem:[%s4848_s3 + $0x8c4] ss:$8 sps:$4 sm:$0xff]  }
  0xf3   : > { %2045 = vmatpush1.bf16.msra.mxu0 %v3686_v21  ;;  %v3762_v21 = vld [vmem:[%s4848_s3 + $0x8c0] ss:$8 sps:$4 sm:$0xff]  }
  0xf4   : > { %2302 = vmatpush1.bf16.msra.mxu1 %v3689_v24  ;;  %2046 = vmatprep.subr.bf16.mxu0 %v3694_v25  ;;  %v3767_v24 = vld [vmem:[%s4848_s3 + $0x8d4] ss:$8 sps:$4 sm:$0xff]   ;;  %v3765_v25 = vld [vmem:[%s4848_s3 + $0x8d0] ss:$8 sps:$4 sm:$0xff]  }
  0xf5   : > { %2303 = vmatprep.subr.bf16.mxu1 %v3697_v42  ;;  %v3770_v42 = vld [vmem:[%s4848_s3 + $0x8e4] ss:$8 sps:$4 sm:$0xff]  }
  0xf7   : > { %2047 = vmatpush1.bf16.msra.mxu0 %v3692_v9  ;;  %v3768_v9 = vld [vmem:[%s4848_s3 + $0x8e0] ss:$8 sps:$4 sm:$0xff]  }
  0xf8   : > { %2304 = vmatpush1.bf16.msra.mxu1 %v3695_v27  ;;  %2048 = vmatprep.subr.bf16.mxu0 %v3700_v28  ;;  %v3773_v27 = vld [vmem:[%s4848_s3 + $0x8f4] ss:$8 sps:$4 sm:$0xff]   ;;  %v3771_v28 = vld [vmem:[%s4848_s3 + $0x8f0] ss:$8 sps:$4 sm:$0xff]  }
  0xf9   : > { %2305 = vmatprep.subr.bf16.mxu1 %v3703_v29  ;;  %v2357_v29 = vrot.slane %v4687_v33, 1 }
  0xfb   : > { %2049 = vmatpush1.bf16.msra.mxu0 %v3698_v63 }
  0xfc   : > { %2306 = vmatpush1.bf16.msra.mxu1 %v3701_v30  ;;  %2050 = vmatprep.subr.bf16.mxu0 %v3706_v31 }
  0xfd   : > { %2307 = vmatprep.subr.bf16.mxu1 %v3709_v32 }
  0xff   : > { %2051 = vmatpush1.bf16.msra.mxu0 %v3704_v34 }
 0x100   : > { %2308 = vmatpush1.bf16.msra.mxu1 %v3707_v35  ;;  %2052 = vmatprep.subr.bf16.mxu0 %v3712_v36 }
 0x101   : > { %2309 = vmatprep.subr.bf16.mxu1 %v3715_v23 }
 0x103   : > { %2053 = vmatpush1.bf16.msra.mxu0 %v3710_v38 }
 0x104   : > { %2310 = vmatpush1.bf16.msra.mxu1 %v3713_v39  ;;  %2054 = vmatprep.subr.bf16.mxu0 %v3718_v40 }
 0x105   : > { %2311 = vmatprep.subr.bf16.mxu1 %v3721_v41 }
 0x107   : > { %2055 = vmatpush1.bf16.msra.mxu0 %v3716_v45 }
 0x108   : > { %2312 = vmatpush1.bf16.msra.mxu1 %v3719_v46  ;;  %2521 = vmatprep.subr.bf16.mxu0 %v3727_v47 }
 0x10a   : > { %2057 = vmatmul.mubr.bf16.vlgmr.msra.gmra.mrb[12].mxu0 %v3123_v48 }
 0x10b   : > { %2314 = vmatmul.mubr.bf16.vlgmr.msra.gmra.mrb[12].mxu1 %v2111_v49  ;;  %2522 = vmatpush1.bf16.msra.mxu0 %v3725_v50 }
 0x10c   : > { %2553 = vmatprep.mubr.bf16.mxu0 %v2358_v51  ;;  %2523 = vmatprep.subr.bf16.mxu0 %v3731_v52 }
 0x10f   : > { %2524 = vmatpush1.bf16.msra.mxu0 %v3729_v22 }
 0x110   : > { %2525 = vmatprep.subr.bf16.mxu0 %v3734_v53 }
 0x113   : > { %2526 = vmatpush1.bf16.msra.mxu0 %v3732_v26 }
 0x114   : > { %2527 = vmatprep.subr.bf16.mxu0 %v3737_v54 }
 0x117   : > { %2528 = vmatpush1.bf16.msra.mxu0 %v3735_v55 }
 0x118   : > { %2529 = vmatprep.subr.bf16.mxu0 %v3740_v56 }
 0x11b   : > { %2530 = vmatpush1.bf16.msra.mxu0 %v3738_v57 }
 0x11c   : > { %2531 = vmatprep.subr.bf16.mxu0 %v3743_v58 }
 0x11d   : > { %v628_v61 = vpop.f32.mrb[0].mxu0 }
 0x11e   : > { %v833_v62 = vpop.f32.mrb[0].mxu1  ;;  %v630_v1 = vpop.f32.mrb[1].mxu0 }
 0x11f   : > { %v834_v0 = vadd.f32 %v833_v62, %v628_v61  ;;  %v835_v2 = vpop.f32.mrb[1].mxu1  ;;  %v632_v4 = vpop.f32.mrb[2].mxu0  ;;  %2532 = vmatpush1.bf16.msra.mxu0 %v3741_v59 }
 0x120   : > { %v836_v3 = vadd.f32 %v835_v2, %v630_v1  ;;  %v837_v6 = vpop.f32.mrb[2].mxu1  ;;  %v633_v7 = vpop.f32.mrb[3].mxu0  ;;  %2533 = vmatprep.subr.bf16.mxu0 %v3746_v60 }
 0x121   : > { %v838_v10 = vpop.f32.mrb[3].mxu1 }
 0x123   : > { %2534 = vmatpush1.bf16.msra.mxu0 %v3744_v5 }
 0x124   : > { %2535 = vmatprep.subr.bf16.mxu0 %v3749_v8 }
 0x127   : > { %2536 = vmatpush1.bf16.msra.mxu0 %v3747_v11 }
 0x128   : > { %2537 = vmatprep.subr.bf16.mxu0 %v3752_v12 }
 0x12b   : > { %2538 = vmatpush1.bf16.msra.mxu0 %v3750_v13 }
 0x12c   : > { %2539 = vmatprep.subr.bf16.mxu0 %v3755_v14 }
 0x12f   : > { %2540 = vmatpush1.bf16.msra.mxu0 %v3753_v15 }
 0x130   : > { %2541 = vmatprep.subr.bf16.mxu0 %v3758_v16 }
 0x133   : > { %2542 = vmatpush1.bf16.msra.mxu0 %v3756_v17 }
 0x134   : > { %2543 = vmatprep.subr.bf16.mxu0 %v3761_v18 }
 0x137   : > { %2544 = vmatpush1.bf16.msra.mxu0 %v3759_v19 }
 0x138   : > { %2545 = vmatprep.subr.bf16.mxu0 %v3764_v20 }
 0x13b   : > { %2546 = vmatpush1.bf16.msra.mxu0 %v3762_v21 }
 0x13c   : > { %2547 = vmatprep.subr.bf16.mxu0 %v3767_v24 }
 0x13f   : > { %2548 = vmatpush1.bf16.msra.mxu0 %v3765_v25 }
 0x140   : > { %2549 = vmatprep.subr.bf16.mxu0 %v3770_v42 }
 0x143   : > { %2550 = vmatpush1.bf16.msra.mxu0 %v3768_v9 }
 0x144   : > { %2551 = vmatprep.subr.bf16.mxu0 %v3773_v27 }
 0x147   : > { %2552 = vmatpush1.bf16.msra.mxu0 %v3771_v28 }
 0x14a   : > { %2554 = vmatmul.mubr.bf16.vlgmr.msra.gmra.mrb[16].mxu0 %v2357_v29 }
 0x15d   : > { %v1071_v63 = vpop.f32.mrb[4].mxu0 }
 0x15e   : > { %v1316_v30 = vpop.f32.mrb[4].mxu1  ;;  %v1078_v31 = vadd.f32 %v1071_v63, %v834_v0  ;;  %v1073_v32 = vpop.f32.mrb[5].mxu0  ;;  %v2566_v0 = vlaneseq }
 0x15f   : > { %v1318_v34 = vpop.f32.mrb[5].mxu1  ;;  %v1079_v35 = vadd.f32 %v1073_v32, %v836_v3  ;;  %v1075_v36 = vpop.f32.mrb[6].mxu0  ;;  %v2564_v3 = vld [vmem:[%s4849_s4] sm:$0x3] }
 0x160   : > { %v1320_v23 = vpop.f32.mrb[6].mxu1  ;;  %v1323_v37 = vadd.f32 %v1316_v30, %v1078_v31  ;;  %v1076_v38 = vpop.f32.mrb[7].mxu0  ;;  %v2567_v1 = vshrl.u32 %v2566_v0, 7 }
 0x161   : > { %v1321_v39 = vpop.f32.mrb[7].mxu1  ;;  %v1324_v40 = vadd.f32 %v1318_v34, %v1079_v35 }
 0x162   : > { %v2568_v2 = vsub.s32 0, %v2567_v1  ;;  %v2572_v4 = vsub.s32 1, %v2567_v1 }
 0x164   : > { %v2569_v5 = vrot.slane %v2564_v3, %v2568_v2  ;;  %v2573_v7 = vrot.slane %v2564_v3, %v2572_v4 }
 0x19d   : > { %v1573_v41 = vpop.f32.mrb[8].mxu0 }
 0x19e   : > { %v1813_v43 = vpop.f32.mrb[8].mxu1  ;;  %v1580_v44 = vadd.f32 %v1573_v41, %v1323_v37  ;;  %v1575_v45 = vpop.f32.mrb[9].mxu0 }
 0x19f   : > { %v1815_v46 = vpop.f32.mrb[9].mxu1  ;;  %v1581_v33 = vadd.f32 %v1575_v45, %v1324_v40  ;;  %v1577_v47 = vpop.f32.mrb[10].mxu0 }
 0x1a0   : > { %v1817_v48 = vpop.f32.mrb[10].mxu1  ;;  %v1820_v49 = vadd.f32 %v1813_v43, %v1580_v44  ;;  %v1578_v50 = vpop.f32.mrb[11].mxu0 }
 0x1a1   : > { %v1818_v51 = vpop.f32.mrb[11].mxu1  ;;  %v1821_v52 = vadd.f32 %v1815_v46, %v1581_v33 }
 0x1dd   : > { %v2058_v22 = vpop.f32.mrb[12].mxu0 }
 0x1de   : > { %v2315_v53 = vpop.f32.mrb[12].mxu1  ;;  %v2065_v26 = vadd.f32 %v2058_v22, %v1820_v49  ;;  %v2060_v54 = vpop.f32.mrb[13].mxu0 }
 0x1df   : > { %v2317_v55 = vpop.f32.mrb[13].mxu1  ;;  %v2066_v56 = vadd.f32 %v2060_v54, %v1821_v52  ;;  %v2062_v57 = vpop.f32.mrb[14].mxu0 }
 0x1e0   : > { %v2319_v58 = vpop.f32.mrb[14].mxu1  ;;  %v2322_v59 = vadd.f32 %v2315_v53, %v2065_v26  ;;  %v2063_v60 = vpop.f32.mrb[15].mxu0 }
 0x1e1   : > { %v2320_v61 = vpop.f32.mrb[15].mxu1  ;;  %v2323_v62 = vadd.f32 %v2317_v55, %v2066_v56 }
 0x21d   : > { %v2555_v6 = vpop.f32.mrb[16].mxu0 }
 0x21e   : > { %v2562_v8 = vadd.f32 %v2555_v6, %v2322_v59  ;;  %v2557_v10 = vpop.f32.mrb[17].mxu0 }
 0x21f   : > { %v2563_v11 = vadd.f32 %v2557_v10, %v2323_v62  ;;  %v2559_v12 = vpop.f32.mrb[18].mxu0 }
 0x220   : > { %v2576_v13 = vadd.f32 %v2569_v5, %v2562_v8  ;;  %v2560_v14 = vpop.f32.mrb[19].mxu0 }
 0x221   : > { %v2577_v15 = vadd.f32 %v2573_v7, %v2563_v11 }
 0x222   : > { %2578 = vst [vmem:[%s342_s25] sm:$0xff] %v2576_v13 }
 0x223   : > { %2579 = vst [vmem:[%s342_s25 + $0x8] sm:$0xff] %v2577_v15 }
 0x224 PF: > { %s15_s22 = sadd.s32 1, %s3812_s22   ;;  %s4851_s18 = smov %s3804_s20 }
 0x225   : > { %p12_p10 = scmp.ge.s32.totalorder %s15_s22, 18   ;;  %s4852_s19 = smov %s3808_s21 }
 0x226   : > { %s4853_s20 = smov %s4856_s23  ;;  %s4854_s21 = smov %s4860_s24 }
 0x227   :  { %14 = sbr.rel (!%p12_p10) target bundleno = 3 (0x3), region = 84 }

// kernel: fpn_forward.13
= control target key start
LH: loop header
LB: loop body
LE: loop exit
PB: predicated region body
PF: predicated region fallthrough
CT: control target
= control target key end

     0   :  { %10 = vsyncpa [#allocation3], 0  ;;  %s5180_s0 = inlined_call_operand.vmem [shape: bf16[2,18,18,256], index: 0, kind: input, shape index: {}, may-alias: {0,1,2}]   ;;  %s5181_s1 = inlined_call_operand.vmem [shape: bf16[2,18,18,256], index: 1, kind: input, shape index: {}, may-alias: {0,1,2}]   ;;  %s5182_s2 = inlined_call_operand.vmem [shape: bf16[2,18,18,256], index: 2, kind: input, shape index: {}, may-alias: {0,1,2}]   ;;  %s5183_s3 = inlined_call_operand.vmem [shape: bf16[3,3,256,256], index: 3, kind: input, shape index: {}]   ;;  %s5184_s4 = inlined_call_operand.vmem [shape: f32[1,256], index: 4, kind: input, shape index: {}]   ;;  %s5185_s5 = inlined_call_operand.hbm [shape: f32[2,16,16,256], index: 5, kind: output, shape index: {}]  }
   0x1   :  { %12 = vsyncpa [#allocation3 + $0x1], 0  ;;  %s4064_s18 = smov 0   ;;  %s4066_s19 = smov 0  }
   0x2   :  { %s4068_s20 = smov 0   ;;  %s4070_s21 = smov 0  }
   0x3   :  { %s4072_s22 = smov 0   ;;  %s4074_s23 = smov 0  }
   0x4   :  { %s4076_s24 = smov 0   ;;  %s4078_s25 = smov 0  }
   0x5 LB: > { %5189 = sst [smem:[#allocation5_spill]] %s4025_s24  ;;  %s2805_s26 = sadd.s32 4294967295, %s4029_s25   ;;  %s4029_s25 = sphi %s4078_s25, %s18_s25   ;;  %s4025_s24 = sphi %s4076_s24, %s5196_s24   ;;  %s4021_s23 = sphi %s4074_s23, %s5201_s23   ;;  %s4017_s22 = sphi %s4072_s22, %s5194_s22   ;;  %s4013_s21 = sphi %s4070_s21, %s5200_s21   ;;  %s4009_s20 = sphi %s4068_s20, %s5199_s20   ;;  %s4005_s19 = sphi %s4066_s19, %s5198_s19   ;;  %s4001_s18 = sphi %s4064_s18, %s5197_s18  }
   0x6   : > { %s2806_s27 = sadd.s32 4294967294, %s4029_s25   ;;  %s27_s28 = sadd.s32 1, %s4021_s23 }
   0x7   : > { %p28_p0 = scmp.ge.s32.totalorder %s27_s28, 16  ;;  %s30_s29 = sadd.s32 1, %s4025_s24 }
   0x8   : > { %p179_p1 = scmp.ne.s32.totalorder %s4009_s20, %s4005_s19  ;;  %p180_p2 = scmp.eq.s32.totalorder %s2805_s26, 31 }
   0x9   : > { %s5203_s28 = smov (%p28_p0, %s27_s28), 0  ;;  %s5205_s29 = smov (!%p28_p0, %s30_s29), %s4025_s24 }
   0xa   : > { %5190 = sst [smem:[#allocation6_spill]] %s5203_s28  ;;  %s165_s30 = ssub.s32 %s4021_s23, %s5203_s28 }
   0xb   : > { %p4115_p3 = por %p180_p2, %p179_p1  ;;  %p32_p4 = scmp.ge.s32.totalorder %s5205_s29, 2 }
   0xc   : > { %p185_p5 = scmp.ne.s32.totalorder %s4005_s19, %s4001_s18  ;;  %p186_p6 = scmp.eq.s32.totalorder %s2806_s27, 31 }
   0xd   : > { %p2809_p7 = scmp.ge.s32.totalorder %s4029_s25, 1  ;;  %s5207_s29 = smov (%p32_p4, %s5205_s29), 0 }
   0xe   : > { %5192 = sst [smem:[#allocation7_spill]] %s5207_s29  ;;  %p4124_p8 = por %p186_p6, %p185_p5 }
   0xf   : > { %p250_p9 = scmp.lt.s32.totalorder %s4029_s25, 33  ;;  %s164_s8 = ssub.s32 %s4025_s24, %s5207_s29 }
  0x10   : > { %s169_s9 = sadd.s32 1, %s4009_s20  ;;  %s166_s10 = sor.u32 %s165_s30, %s164_s8 }
  0x11   : > { %p251_p10 = pnand %p2809_p7, %p250_p9  ;;  %p167_p11 = scmp.eq.s32.totalorder %s166_s10, 0 }
  0x12   : > { %v3485_v0 = vld [vmem:[%s5183_s3 + $0x104] ss:$8 sps:$4 sm:$0xff] (!%p251_p10)   ;;  %v3489_v2 = vld [vmem:[%s5183_s3 + $0x100] ss:$8 sps:$4 sm:$0xff] (!%p251_p10)   ;;  %v3491_v4 = vld [vmem:[%s5183_s3 + $0x114] ss:$8 sps:$4 sm:$0xff] (!%p251_p10)  }
  0x13   : > { %s4133_s11 = scalar_select %p167_p11, %s4009_s20, %s169_s9  }
  0x14   : > { %254 = sbr.rel (%p251_p10) target bundleno = 575 (0x23f), region = 40  ;;  %v3487_v1 = vld [vmem:[%s5183_s3 + $0x404] ss:$8 sps:$4 sm:$0xff] (!%p251_p10)   ;;  %601 = vmatprep.subr.bf16.mxu1 (!%p251_p10), %v3485_v0  ;;  %v3490_v3 = vld [vmem:[%s5183_s3 + $0x400] ss:$8 sps:$4 sm:$0xff] (!%p251_p10)   ;;  %p302_p12 = scmp.lt.s32.totalorder (!%p251_p10), %s4017_s22, 1 }
  0x15   : > { %1575 = vmatprep.subr.bf16.mxu0 (!%p251_p10), %v3487_v1  ;;  %602 = vmatpush1.bf16.msra.mxu1 (!%p251_p10), %v3489_v2  ;;  %v3493_v5 = vld [vmem:[%s5183_s3 + $0x414] ss:$8 sps:$4 sm:$0xff] (!%p251_p10)   ;;  %v3495_v6 = vld [vmem:[%s5183_s3 + $0x110] ss:$8 sps:$4 sm:$0xff] (!%p251_p10)   ;;  %v3497_v8 = vld [vmem:[%s5183_s3 + $0x124] ss:$8 sps:$4 sm:$0xff] (!%p251_p10)  }
  0x16   : > { %1576 = vmatpush1.bf16.msra.mxu0 (!%p251_p10), %v3490_v3  ;;  %603 = vmatprep.subr.bf16.mxu1 (!%p251_p10), %v3491_v4  ;;  %v3496_v7 = vld [vmem:[%s5183_s3 + $0x410] ss:$8 sps:$4 sm:$0xff] (!%p251_p10)   ;;  %v3499_v9 = vld [vmem:[%s5183_s3 + $0x424] ss:$8 sps:$4 sm:$0xff] (!%p251_p10)   ;;  %v3501_v10 = vld [vmem:[%s5183_s3 + $0x120] ss:$8 sps:$4 sm:$0xff] (!%p251_p10)  }
  0x17   : > { %1577 = vmatprep.subr.bf16.mxu0 (!%p251_p10), %v3493_v5  ;;  %v3502_v11 = vld [vmem:[%s5183_s3 + $0x420] ss:$8 sps:$4 sm:$0xff] (!%p251_p10)   ;;  %v3503_v12 = vld [vmem:[%s5183_s3 + $0x134] ss:$8 sps:$4 sm:$0xff] (!%p251_p10)   ;;  %v3507_v14 = vld [vmem:[%s5183_s3 + $0x130] ss:$8 sps:$4 sm:$0xff] (!%p251_p10)  }
  0x18   : > { %v3505_v13 = vld [vmem:[%s5183_s3 + $0x434] ss:$8 sps:$4 sm:$0xff] (!%p251_p10)   ;;  %v3508_v15 = vld [vmem:[%s5183_s3 + $0x430] ss:$8 sps:$4 sm:$0xff] (!%p251_p10)   ;;  %v3509_v16 = vld [vmem:[%s5183_s3 + $0x144] ss:$8 sps:$4 sm:$0xff] (!%p251_p10)  }
  0x19   : > { %604 = vmatpush1.bf16.msra.mxu1 (!%p251_p10), %v3495_v6  ;;  %v3511_v17 = vld [vmem:[%s5183_s3 + $0x444] ss:$8 sps:$4 sm:$0xff] (!%p251_p10)   ;;  %v3513_v18 = vld [vmem:[%s5183_s3 + $0x140] ss:$8 sps:$4 sm:$0xff] (!%p251_p10)   ;;  %v3515_v20 = vld [vmem:[%s5183_s3 + $0x154] ss:$8 sps:$4 sm:$0xff] (!%p251_p10)  }
  0x1a   : > { %1578 = vmatpush1.bf16.msra.mxu0 (!%p251_p10), %v3496_v7  ;;  %605 = vmatprep.subr.bf16.mxu1 (!%p251_p10), %v3497_v8  ;;  %v3514_v19 = vld [vmem:[%s5183_s3 + $0x440] ss:$8 sps:$4 sm:$0xff] (!%p251_p10)   ;;  %v3517_v21 = vld [vmem:[%s5183_s3 + $0x454] ss:$8 sps:$4 sm:$0xff] (!%p251_p10)   ;;  %v3519_v22 = vld [vmem:[%s5183_s3 + $0x150] ss:$8 sps:$4 sm:$0xff] (!%p251_p10)  }
  0x1b   : > { %1579 = vmatprep.subr.bf16.mxu0 %v3499_v9  ;;  %v3520_v23 = vld [vmem:[%s5183_s3 + $0x450] ss:$8 sps:$4 sm:$0xff]   ;;  %v3521_v24 = vld [vmem:[%s5183_s3 + $0x164] ss:$8 sps:$4 sm:$0xff]   ;;  %p304_p13 = scmp.lt.s32.totalorder %s4013_s21, 17  ;;  %s311_s16 = sadd.s32 1, %s4013_s21 }
  0x1c   : > { %v3523_v25 = vld [vmem:[%s5183_s3 + $0x464] ss:$8 sps:$4 sm:$0xff]   ;;  %v3525_v26 = vld [vmem:[%s5183_s3 + $0x160] ss:$8 sps:$4 sm:$0xff]   ;;  %v3527_v28 = vld [vmem:[%s5183_s3 + $0x174] ss:$8 sps:$4 sm:$0xff]  }
  0x1d   : > { %606 = vmatpush1.bf16.msra.mxu1 %v3501_v10  ;;  %v3526_v27 = vld [vmem:[%s5183_s3 + $0x460] ss:$8 sps:$4 sm:$0xff]   ;;  %s303_s10 = scalar_select %p302_p12, %s4017_s22, 1  ;;  %v3529_v29 = vld [vmem:[%s5183_s3 + $0x474] ss:$8 sps:$4 sm:$0xff]   ;;  %vm882_vm1 = vcmask 1046528  }
  0x1e   : > { %1580 = vmatpush1.bf16.msra.mxu0 %v3502_v11  ;;  %607 = vmatprep.subr.bf16.mxu1 %v3503_v12  ;;  %p314_p0 = scmp.lt.s32.totalorder %s311_s16, 17  ;;  %v3531_v30 = vld [vmem:[%s5183_s3 + $0x170] ss:$8 sps:$4 sm:$0xff]   ;;  %v3533_v32 = vld [vmem:[%s5183_s3 + $0x184] ss:$8 sps:$4 sm:$0xff]   ;;  %s322_s30 = sadd.s32 2, %s4013_s21 }
  0x1f   : > { %1581 = vmatprep.subr.bf16.mxu0 %v3505_v13  ;;  %s305_s14 = scalar_select %p304_p13, %s4013_s21, 17  ;;  %v3532_v31 = vld [vmem:[%s5183_s3 + $0x470] ss:$8 sps:$4 sm:$0xff]   ;;  %v3535_v33 = vld [vmem:[%s5183_s3 + $0x484] ss:$8 sps:$4 sm:$0xff]  }
  0x20   : > { %s4239_s9 = smul.u32 108, %s303_s10  ;;  %s5209_s16 = smov (!%p314_p0, %s311_s16), 17  ;;  %v3537_v34 = vld [vmem:[%s5183_s3 + $0x180] ss:$8 sps:$4 sm:$0xff]   ;;  %v3539_v36 = vld [vmem:[%s5183_s3 + $0x194] ss:$8 sps:$4 sm:$0xff]  }
  0x21   : > { %608 = vmatpush1.bf16.msra.mxu1 %v3507_v14  ;;  %s3408_s15 = smul.u32 6, %s305_s14  ;;  %v3538_v35 = vld [vmem:[%s5183_s3 + $0x480] ss:$8 sps:$4 sm:$0xff]   ;;  %v3541_v37 = vld [vmem:[%s5183_s3 + $0x494] ss:$8 sps:$4 sm:$0xff]   ;;  %p325_p1 = scmp.lt.s32.totalorder %s322_s30, 17 }
  0x22   : > { %1582 = vmatpush1.bf16.msra.mxu0 %v3508_v15  ;;  %609 = vmatprep.subr.bf16.mxu1 %v3509_v16  ;;  %s3410_s14 = smul.u32 6, %s5209_s16  ;;  %v3543_v38 = vld [vmem:[%s5183_s3 + $0x190] ss:$8 sps:$4 sm:$0xff]   ;;  %v3545_v40 = vld [vmem:[%s5183_s3 + $0x1a4] ss:$8 sps:$4 sm:$0xff]   ;;  %s3372_s12 = sshll.u32 %s4017_s22, 6 }
  0x23   : > { %1583 = vmatprep.subr.bf16.mxu0 %v3511_v17  ;;  %s308_s29 = sadd.s32 %s4239_s9, %s3408_s15  ;;  %v3544_v39 = vld [vmem:[%s5183_s3 + $0x490] ss:$8 sps:$4 sm:$0xff]   ;;  %v3547_v41 = vld [vmem:[%s5183_s3 + $0x4a4] ss:$8 sps:$4 sm:$0xff]   ;;  %v3549_v42 = vld [vmem:[%s5183_s3 + $0x1a0] ss:$8 sps:$4 sm:$0xff]  }
  0x24   : > { %s2811_s16 = sshll.u32 %s308_s29, 2  ;;  %s318_s15 = sadd.s32 %s3410_s14, %s4239_s9  ;;  %v3550_v43 = vld [vmem:[%s5183_s3 + $0x4a0] ss:$8 sps:$4 sm:$0xff]   ;;  %v3551_v44 = vld [vmem:[%s5183_s3 + $0x1b4] ss:$8 sps:$4 sm:$0xff]  }
  0x25   : > { %610 = vmatpush1.bf16.msra.mxu1 %v3513_v18  ;;  %s4282_s8 = scalar_lea.vmem %s5180_s0, %s2811_s16  ;;  %s2812_s14 = sshll.u32 %s318_s15, 2  ;;  %v3553_v45 = vld [vmem:[%s5183_s3 + $0x4b4] ss:$8 sps:$4 sm:$0xff]   ;;  %v3555_v46 = vld [vmem:[%s5183_s3 + $0x1b0] ss:$8 sps:$4 sm:$0xff]  }
  0x26   : > { %1584 = vmatpush1.bf16.msra.mxu0 %v3514_v19  ;;  %611 = vmatprep.subr.bf16.mxu1 %v3515_v20  ;;  %v3556_v47 = vld [vmem:[%s5183_s3 + $0x4b0] ss:$8 sps:$4 sm:$0xff]   ;;  %s4297_s27 = scalar_lea.vmem %s5181_s1, %s2812_s14  ;;  %v4300_v49 = vld [vmem:[%s4282_s8 + $0x4] ss:$8 sps:$4 sm:$0xff]   ;;  %vm414_vm0 = vsmask.f32 7424 }
  0x27   : > { %1585 = vmatprep.subr.bf16.mxu0 %v3517_v21  ;;  %v335_v48 = vld [vmem:[%s4282_s8 + $0x10] sm:$0x11]  ;;  %v3557_v51 = vld [vmem:[%s5183_s3 + $0x1c4] ss:$8 sps:$4 sm:$0xff]   ;;  %v3561_v53 = vld [vmem:[%s5183_s3 + $0x1c0] ss:$8 sps:$4 sm:$0xff]  }
  0x28   : > { %v4302_v50 = vcombine.high %v335_v48, %v335_v48  ;;  %v3559_v52 = vld [vmem:[%s5183_s3 + $0x4c4] ss:$8 sps:$4 sm:$0xff]   ;;  %v3562_v54 = vld [vmem:[%s5183_s3 + $0x4c0] ss:$8 sps:$4 sm:$0xff]   ;;  %v428_v55 = vshrl.u32 %v4300_v49, 16  ;;  %v430_v56 = vshll.u32 %v4300_v49, 16  ;;  %v4343_v10 = vcombine.low %v335_v48, %v335_v48 }
  0x29   : > { %612 = vmatpush1.bf16.msra.mxu1 %v3519_v22  ;;  %v1100_v58 = vld [vmem:[%s4297_s27 + $0x10] sm:$0x11]  ;;  %v4324_v60 = vld [vmem:[%s4282_s8] ss:$8 sps:$4 sm:$0xff]   ;;  %v4327_v61 = vld [vmem:[%s4297_s27 + $0x4] ss:$8 sps:$4 sm:$0xff]  }
  0x2a   : > { %1586 = vmatpush1.bf16.msra.mxu0 %v3520_v23  ;;  %613 = vmatprep.subr.bf16.mxu1 %v3521_v24  ;;  %v435_v57 = vshll.u32 %v4302_v50, 16  ;;  %v3563_v59 = vld [vmem:[%s5183_s3 + $0x1d4] ss:$8 sps:$4 sm:$0xff]   ;;  %v4329_v62 = vcombine.high %v1100_v58, %v1100_v58  ;;  %v432_v63 = vrot.slane %v430_v56, 1  ;;  %v4332_v1 = vld [vmem:[%s4297_s27] ss:$8 sps:$4 sm:$0xff]   ;;  %v4350_v14 = vcombine.low %v1100_v58, %v1100_v58 }
  0x2b   : > { %1587 = vmatprep.subr.bf16.mxu0 %v3523_v25  ;;  %v3565_v2 = vld [vmem:[%s5183_s3 + $0x4d4] ss:$8 sps:$4 sm:$0xff]   ;;  %v1402_v3 = vshrl.u32 %v4327_v61, 16  ;;  %v1404_v4 = vshll.u32 %v4327_v61, 16  ;;  %v3567_v7 = vld [vmem:[%s5183_s3 + $0x1d0] ss:$8 sps:$4 sm:$0xff]  }
  0x2c   : > { %v437_v0 = vrot.slane %v435_v57, 1  ;;  %v1409_v5 = vshll.u32 %v4329_v62, 16  ;;  %v433_v6 = vor.u32 %v432_v63, %v428_v55  ;;  %v3568_v11 = vld [vmem:[%s5183_s3 + $0x4d0] ss:$8 sps:$4 sm:$0xff]   ;;  %v418_v13 = vshll.u32 %v4324_v60, 16  ;;  %s5211_s30 = smov (!%p325_p1, %s322_s30), 17 }
  0x2d   : > { %614 = vmatpush1.bf16.msra.mxu1 %v3525_v26  ;;  %v1406_v8 = vrot.slane %v1404_v4, 1  ;;  %v1392_v15 = vshll.u32 %v4332_v1, 16  ;;  %v3569_v16 = vld [vmem:[%s5183_s3 + $0x1e4] ss:$8 sps:$4 sm:$0xff]   ;;  %v3573_v19 = vld [vmem:[%s5183_s3 + $0x1e0] ss:$8 sps:$4 sm:$0xff]  }
  0x2e   : > { %1588 = vmatpush1.bf16.msra.mxu0 %v3526_v27  ;;  %615 = vmatprep.subr.bf16.mxu1 %v3527_v28  ;;  %v1411_v9 = vrot.slane %v1409_v5, 1  ;;  %v438_v12 = vsel %vm414_vm0, %v433_v6, %v437_v0  ;;  %v3571_v17 = vld [vmem:[%s5183_s3 + $0x4e4] ss:$8 sps:$4 sm:$0xff]   ;;  %v3574_v20 = vld [vmem:[%s5183_s3 + $0x4e0] ss:$8 sps:$4 sm:$0xff]   ;;  %v416_v23 = vshrl.u32 %v4324_v60, 16 }
  0x2f   : > { %1589 = vmatprep.subr.bf16.mxu0 %v3529_v29  ;;  %v1407_v18 = vor.u32 %v1406_v8, %v1402_v3  ;;  %633 = vmatprep.mubr.bf16.mxu1 %v438_v12  ;;  %v3575_v21 = vld [vmem:[%s5183_s3 + $0x1f4] ss:$8 sps:$4 sm:$0xff]   ;;  %v423_v24 = vshll.u32 %v4343_v10, 16  ;;  %v420_v25 = vrot.slane %v418_v13, 1  ;;  %v1390_v26 = vshrl.u32 %v4332_v1, 16  ;;  %s3411_s29 = smul.u32 6, %s5211_s30 }
  0x30   : > { %v1394_v27 = vrot.slane %v1392_v15, 1  ;;  %v1397_v28 = vshll.u32 %v4350_v14, 16  ;;  %v3577_v29 = vld [vmem:[%s5183_s3 + $0x4f4] ss:$8 sps:$4 sm:$0xff]   ;;  %v3597_v48 = vld [vmem:[%s5183_s3 + $0x10] ss:$8 sps:$4 sm:$0xff]  }
  0x31   : > { %616 = vmatpush1.bf16.msra.mxu1 %v3531_v30  ;;  %v1412_v22 = vsel %vm414_vm0, %v1407_v18, %v1411_v9  ;;  %v3579_v30 = vld [vmem:[%s5183_s3 + $0x1f0] ss:$8 sps:$4 sm:$0xff]   ;;  %v3603_v55 = vld [vmem:[%s5183_s3 + $0x20] ss:$8 sps:$4 sm:$0xff]   ;;  %v3611_v57 = vld [vmem:[%s5183_s3 + $0x34] ss:$8 sps:$4 sm:$0xff]   ;;  %s329_s26 = sadd.s32 %s3411_s29, %s4239_s9 }
  0x32   : > { %1590 = vmatpush1.bf16.msra.mxu0 %v3532_v31  ;;  %617 = vmatprep.subr.bf16.mxu1 %v3533_v32  ;;  %v3580_v31 = vld [vmem:[%s5183_s3 + $0x4f0] ss:$8 sps:$4 sm:$0xff]   ;;  %v3587_v32 = vld [vmem:[%s5183_s3 + $0x4] ss:$8 sps:$4 sm:$0xff]   ;;  %v3606_v56 = vld [vmem:[%s5183_s3 + $0x520] ss:$8 sps:$4 sm:$0xff]  }
  0x33   : > { %1591 = vmatprep.subr.bf16.mxu0 %v3535_v33  ;;  %1607 = vmatprep.mubr.bf16.mxu0 %v1412_v22  ;;  %v421_v33 = vor.u32 %v420_v25, %v416_v23  ;;  %v3609_v58 = vld [vmem:[%s5183_s3 + $0x30] ss:$8 sps:$4 sm:$0xff]   ;;  %v3615_v63 = vld [vmem:[%s5183_s3 + $0x40] ss:$8 sps:$4 sm:$0xff]   ;;  %v3626_v3 = vld [vmem:[%s5183_s3 + $0x554] ss:$8 sps:$4 sm:$0xff]  }
  0x34   : > { %v3618_v0 = vld [vmem:[%s5183_s3 + $0x540] ss:$8 sps:$4 sm:$0xff]   ;;  %v3621_v4 = vld [vmem:[%s5183_s3 + $0x50] ss:$8 sps:$4 sm:$0xff]   ;;  %v3629_v6 = vld [vmem:[%s5183_s3 + $0x64] ss:$8 sps:$4 sm:$0xff]  }
  0x35   : > { %618 = vmatpush1.bf16.msra.mxu1 %v3537_v34  ;;  %v425_v34 = vrot.slane %v423_v24, 1  ;;  %v3624_v5 = vld [vmem:[%s5183_s3 + $0x550] ss:$8 sps:$4 sm:$0xff]   ;;  %v3627_v8 = vld [vmem:[%s5183_s3 + $0x60] ss:$8 sps:$4 sm:$0xff]   ;;  %s2813_s29 = sshll.u32 %s329_s26, 2 }
  0x36   : > { %1592 = vmatpush1.bf16.msra.mxu0 %v3538_v35  ;;  %619 = vmatprep.subr.bf16.mxu1 %v3539_v36  ;;  %v1395_v35 = vor.u32 %v1394_v27, %v1390_v26  ;;  %v1399_v36 = vrot.slane %v1397_v28, 1  ;;  %v3630_v9 = vld [vmem:[%s5183_s3 + $0x560] ss:$8 sps:$4 sm:$0xff]   ;;  %v3638_v12 = vld [vmem:[%s5183_s3 + $0x574] ss:$8 sps:$4 sm:$0xff]   ;;  %s4621_s26 = scalar_lea.vmem %s5182_s2, %s2813_s29  ;;  %s3371_s14 = sshll.u32 %s4013_s21, 2 }
  0x37   : > { %1593 = vmatprep.subr.bf16.mxu0 %v3541_v37  ;;  %v3594_v37 = vld [vmem:[%s5183_s3 + $0x504] ss:$8 sps:$4 sm:$0xff]   ;;  %v3633_v13 = vld [vmem:[%s5183_s3 + $0x70] ss:$8 sps:$4 sm:$0xff]   ;;  %v3639_v18 = vld [vmem:[%s5183_s3 + $0x80] ss:$8 sps:$4 sm:$0xff]   ;;  %s2675_s28 = sadd.s32 %s3372_s12, %s3371_s14 }
  0x38   : > { %v3636_v15 = vld [vmem:[%s5183_s3 + $0x570] ss:$8 sps:$4 sm:$0xff]   ;;  %v3653_v24 = vld [vmem:[%s5183_s3 + $0xa4] ss:$8 sps:$4 sm:$0xff]   ;;  %v3651_v26 = vld [vmem:[%s5183_s3 + $0xa0] ss:$8 sps:$4 sm:$0xff]  }
  0x39   : > { %620 = vmatpush1.bf16.msra.mxu1 %v3543_v38  ;;  %v3585_v38 = vld [vmem:[%s5183_s3] ss:$8 sps:$4 sm:$0xff]   ;;  %v3645_v22 = vld [vmem:[%s5183_s3 + $0x90] ss:$8 sps:$4 sm:$0xff]   ;;  %v3656_v25 = vld [vmem:[%s5183_s3 + $0x5a4] ss:$8 sps:$4 sm:$0xff]  }
  0x3a   : > { %1594 = vmatpush1.bf16.msra.mxu0 %v3544_v39  ;;  %621 = vmatprep.subr.bf16.mxu1 %v3545_v40  ;;  %v1658_v39 = vrot.slane %v4327_v61, 1  ;;  %v1659_v40 = vrot.slane %v4329_v62, 1  ;;  %v3617_v61 = vld [vmem:[%s5183_s3 + $0x44] ss:$8 sps:$4 sm:$0xff]   ;;  %v3648_v23 = vld [vmem:[%s5183_s3 + $0x590] ss:$8 sps:$4 sm:$0xff]  }
  0x3b   : > { %1595 = vmatprep.subr.bf16.mxu0 %v3547_v41  ;;  %v3592_v41 = vld [vmem:[%s5183_s3 + $0x500] ss:$8 sps:$4 sm:$0xff]   ;;  %v3620_v62 = vld [vmem:[%s5183_s3 + $0x544] ss:$8 sps:$4 sm:$0xff]   ;;  %v3659_v28 = vld [vmem:[%s5183_s3 + $0xb4] ss:$8 sps:$4 sm:$0xff]  }
  0x3c   : > { %v3654_v27 = vld [vmem:[%s5183_s3 + $0x5a0] ss:$8 sps:$4 sm:$0xff]   ;;  %s3373_s9 = sshll.u32 %s2675_s28, 7  ;;  %s4031_s16 = smov [#allocation2]  }
  0x3d   : > { %622 = vmatpush1.bf16.msra.mxu1 %v3549_v42  ;;  %v426_v42 = vsel %vm414_vm0, %v421_v33, %v425_v34  ;;  %v3668_v33 = vld [vmem:[%s5183_s3 + $0x5c4] ss:$8 sps:$4 sm:$0xff]   ;;  %v3663_v34 = vld [vmem:[%s5183_s3 + $0xc0] ss:$8 sps:$4 sm:$0xff]   ;;  %s5124_s17 = scalar_lea.hbm %s5185_s5, %s3373_s9  ;;  %s3939_s15 = sshll.u32 %s4031_s16, 4  ;;  %s3940_s15 = int_to_ptr.vmem [resolvable:$false] %s3939_s15 }
  0x3e   : > { %1596 = vmatpush1.bf16.msra.mxu0 %v3550_v43  ;;  %623 = vmatprep.subr.bf16.mxu1 %v3551_v44  ;;  %v1400_v43 = vsel %vm414_vm0, %v1395_v35, %v1399_v36  ;;  %v3599_v44 = vld [vmem:[%s5183_s3 + $0x14] ss:$8 sps:$4 sm:$0xff]   ;;  %v3666_v35 = vld [vmem:[%s5183_s3 + $0x5c0] ss:$8 sps:$4 sm:$0xff]   ;;  %s3941_s10 = scalar_lea.vmem %s3940_s15, 1024 }
  0x3f   : > { %1597 = vmatprep.subr.bf16.mxu0 %v3553_v45  ;;  %v886_v45 = vrot.slane %v4300_v49, 1  ;;  %v3671_v36 = vld [vmem:[%s5183_s3 + $0xd4] ss:$8 sps:$4 sm:$0xff]  }
  0x41   : > { %624 = vmatpush1.bf16.msra.mxu1 %v3555_v46  ;;  %v3602_v46 = vld [vmem:[%s5183_s3 + $0x514] ss:$8 sps:$4 sm:$0xff]  }
  0x42   : > { %1598 = vmatpush1.bf16.msra.mxu0 %v3556_v47  ;;  %625 = vmatprep.subr.bf16.mxu1 %v3557_v51  ;;  %v887_v47 = vrot.slane %v4302_v50, 1  ;;  %v1660_v51 = vsel %vm882_vm1, %v1658_v39, %v1659_v40  ;;  %v3605_v50 = vld [vmem:[%s5183_s3 + $0x24] ss:$8 sps:$4 sm:$0xff]   ;;  %v3672_v39 = vld [vmem:[%s5183_s3 + $0x5d0] ss:$8 sps:$4 sm:$0xff]  }
  0x43   : > { %1599 = vmatprep.subr.bf16.mxu0 %v3559_v52  ;;  %v3677_v40 = vld [vmem:[%s5183_s3 + $0xe4] ss:$8 sps:$4 sm:$0xff]  }
  0x44   : > { %v4411_v52 = vsel %vm882_vm1, %v886_v45, %v887_v47  ;;  %v3686_v45 = vld [vmem:[%s5183_s3 + $0x5f4] ss:$8 sps:$4 sm:$0xff]   ;;  %v1655_v47 = vrot.slane %v4332_v1, 1  ;;  %v3687_v1 = vld [vmem:[%s5183_s3 + $0x200] ss:$8 sps:$4 sm:$0xff]  }
  0x45   : > { %626 = vmatpush1.bf16.msra.mxu1 %v3561_v53  ;;  %v3600_v53 = vld [vmem:[%s5183_s3 + $0x510] ss:$8 sps:$4 sm:$0xff]  }
  0x46   : > { %1600 = vmatpush1.bf16.msra.mxu0 %v3562_v54  ;;  %627 = vmatprep.subr.bf16.mxu1 %v3563_v59  ;;  %v3608_v54 = vld [vmem:[%s5183_s3 + $0x524] ss:$8 sps:$4 sm:$0xff]   ;;  %v3612_v59 = vld [vmem:[%s5183_s3 + $0x530] ss:$8 sps:$4 sm:$0xff]  }
  0x47   : > { %1601 = vmatprep.subr.bf16.mxu0 %v3565_v2  ;;  %v3623_v2 = vld [vmem:[%s5183_s3 + $0x54] ss:$8 sps:$4 sm:$0xff]  }
  0x49   : > { %628 = vmatpush1.bf16.msra.mxu1 %v3567_v7  ;;  %v3632_v7 = vld [vmem:[%s5183_s3 + $0x564] ss:$8 sps:$4 sm:$0xff]  }
  0x4a   : > { %1602 = vmatpush1.bf16.msra.mxu0 %v3568_v11  ;;  %629 = vmatprep.subr.bf16.mxu1 %v3569_v16  ;;  %v3635_v11 = vld [vmem:[%s5183_s3 + $0x74] ss:$8 sps:$4 sm:$0xff]   ;;  %v3641_v16 = vld [vmem:[%s5183_s3 + $0x84] ss:$8 sps:$4 sm:$0xff]  }
  0x4b   : > { %1603 = vmatprep.subr.bf16.mxu0 %v3571_v17  ;;  %v3644_v17 = vld [vmem:[%s5183_s3 + $0x584] ss:$8 sps:$4 sm:$0xff]  }
  0x4d   : > { %630 = vmatpush1.bf16.msra.mxu1 %v3573_v19  ;;  %v3642_v19 = vld [vmem:[%s5183_s3 + $0x580] ss:$8 sps:$4 sm:$0xff]  }
  0x4e   : > { %1604 = vmatpush1.bf16.msra.mxu0 %v3574_v20  ;;  %631 = vmatprep.subr.bf16.mxu1 %v3575_v21  ;;  %v3647_v20 = vld [vmem:[%s5183_s3 + $0x94] ss:$8 sps:$4 sm:$0xff]  }
  0x4f   : > { %1605 = vmatprep.subr.bf16.mxu0 %v3577_v29  ;;  %v3650_v21 = vld [vmem:[%s5183_s3 + $0x594] ss:$8 sps:$4 sm:$0xff]  }
  0x50   : > { %v3662_v29 = vld [vmem:[%s5183_s3 + $0x5b4] ss:$8 sps:$4 sm:$0xff]  }
  0x51   : > { %632 = vmatpush1.bf16.msra.mxu1 %v3579_v30  ;;  %v3657_v30 = vld [vmem:[%s5183_s3 + $0xb0] ss:$8 sps:$4 sm:$0xff]  }
  0x52   : > { %1606 = vmatpush1.bf16.msra.mxu0 %v3580_v31  ;;  %806 = vmatprep.subr.bf16.mxu1 %v3587_v32  ;;  %v3660_v31 = vld [vmem:[%s5183_s3 + $0x5b0] ss:$8 sps:$4 sm:$0xff]   ;;  %v3665_v32 = vld [vmem:[%s5183_s3 + $0xc4] ss:$8 sps:$4 sm:$0xff]  }
  0x53   : > { %1823 = vmatprep.subr.bf16.mxu0 %v3594_v37  ;;  %v3674_v37 = vld [vmem:[%s5183_s3 + $0x5d4] ss:$8 sps:$4 sm:$0xff]  }
  0x54   : > { %634 = vmatmul.mubr.bf16.vlgmr.msra.gmra.mrb[0].mxu1 %v426_v42  ;;  %v3675_v42 = vld [vmem:[%s5183_s3 + $0xe0] ss:$8 sps:$4 sm:$0xff]  }
  0x55   : > { %1608 = vmatmul.mubr.bf16.vlgmr.msra.gmra.mrb[0].mxu0 %v1400_v43  ;;  %807 = vmatpush1.bf16.msra.mxu1 %v3585_v38  ;;  %v3669_v38 = vld [vmem:[%s5183_s3 + $0xd0] ss:$8 sps:$4 sm:$0xff]   ;;  %v3678_v43 = vld [vmem:[%s5183_s3 + $0x5e0] ss:$8 sps:$4 sm:$0xff]  }
  0x56   : > { %1824 = vmatpush1.bf16.msra.mxu0 %v3592_v41  ;;  %808 = vmatprep.subr.bf16.mxu1 %v3599_v44  ;;  %v3680_v41 = vld [vmem:[%s5183_s3 + $0x5e4] ss:$8 sps:$4 sm:$0xff]   ;;  %v3683_v44 = vld [vmem:[%s5183_s3 + $0xf4] ss:$8 sps:$4 sm:$0xff]  }
  0x57   : > { %1825 = vmatprep.subr.bf16.mxu0 %v3602_v46  ;;  %838 = vmatprep.mubr.bf16.mxu1 %v4300_v49  ;;  %v3614_v49 = vld [vmem:[%s5183_s3 + $0x534] ss:$8 sps:$4 sm:$0xff]   ;;  %v3681_v46 = vld [vmem:[%s5183_s3 + $0xf0] ss:$8 sps:$4 sm:$0xff]  }
  0x58   : > { %1855 = vmatprep.mubr.bf16.mxu0 %v1660_v51  ;;  %v3689_v51 = vld [vmem:[%s5183_s3 + $0x204] ss:$8 sps:$4 sm:$0xff]  }
  0x59   : > { %809 = vmatpush1.bf16.msra.mxu1 %v3597_v48  ;;  %v3684_v48 = vld [vmem:[%s5183_s3 + $0x5f0] ss:$8 sps:$4 sm:$0xff]  }
  0x5a   : > { %1826 = vmatpush1.bf16.msra.mxu0 %v3600_v53  ;;  %810 = vmatprep.subr.bf16.mxu1 %v3605_v50  ;;  %v1656_v53 = vrot.slane %v4350_v14, 1  ;;  %v3692_v50 = vld [vmem:[%s5183_s3 + $0x604] ss:$8 sps:$4 sm:$0xff]   ;;  %v3695_v14 = vld [vmem:[%s5183_s3 + $0x214] ss:$8 sps:$4 sm:$0xff]  }
  0x5b   : > { %1827 = vmatprep.subr.bf16.mxu0 %v3608_v54  ;;  %v3690_v54 = vld [vmem:[%s5183_s3 + $0x600] ss:$8 sps:$4 sm:$0xff]  }
  0x5d   : > { %811 = vmatpush1.bf16.msra.mxu1 %v3603_v55  ;;  %v1657_v55 = vsel %vm882_vm1, %v1655_v47, %v1656_v53  ;;  %v3776_v47 = vld [vmem:[%s5183_s3 + $0x6e4] ss:$8 sps:$4 sm:$0xff]  }
  0x5e   : > { %1828 = vmatpush1.bf16.msra.mxu0 %v3606_v56  ;;  %812 = vmatprep.subr.bf16.mxu1 %v3611_v57  ;;  %v3698_v56 = vld [vmem:[%s5183_s3 + $0x614] ss:$8 sps:$4 sm:$0xff]   ;;  %v3693_v57 = vld [vmem:[%s5183_s3 + $0x210] ss:$8 sps:$4 sm:$0xff]  }
  0x5f   : > { %1829 = vmatprep.subr.bf16.mxu0 %v3614_v49  ;;  %v3696_v49 = vld [vmem:[%s5183_s3 + $0x610] ss:$8 sps:$4 sm:$0xff]  }
  0x61   : > { %813 = vmatpush1.bf16.msra.mxu1 %v3609_v58  ;;  %v3701_v58 = vld [vmem:[%s5183_s3 + $0x224] ss:$8 sps:$4 sm:$0xff]  }
  0x62   : > { %1830 = vmatpush1.bf16.msra.mxu0 %v3612_v59  ;;  %814 = vmatprep.subr.bf16.mxu1 %v3617_v61  ;;  %v4628_v59 = vld [vmem:[%s4621_s26 + $0x4] ss:$8 sps:$4 sm:$0xff]   ;;  %v3699_v61 = vld [vmem:[%s5183_s3 + $0x220] ss:$8 sps:$4 sm:$0xff]  }
  0x63   : > { %1831 = vmatprep.subr.bf16.mxu0 %v3620_v62  ;;  %v3702_v62 = vld [vmem:[%s5183_s3 + $0x620] ss:$8 sps:$4 sm:$0xff]   ;;  %v2176_v53 = vshll.u32 %v4628_v59, 16 }
  0x65   : > { %815 = vmatpush1.bf16.msra.mxu1 %v3615_v63  ;;  %v3707_v63 = vld [vmem:[%s5183_s3 + $0x234] ss:$8 sps:$4 sm:$0xff]  }
  0x66   : > { %1832 = vmatpush1.bf16.msra.mxu0 %v3618_v0  ;;  %816 = vmatprep.subr.bf16.mxu1 %v3623_v2  ;;  %v3705_v0 = vld [vmem:[%s5183_s3 + $0x230] ss:$8 sps:$4 sm:$0xff]  }
  0x67   : > { %1833 = vmatprep.subr.bf16.mxu0 %v3626_v3  ;;  %v3708_v2 = vld [vmem:[%s5183_s3 + $0x630] ss:$8 sps:$4 sm:$0xff]   ;;  %v3713_v3 = vld [vmem:[%s5183_s3 + $0x244] ss:$8 sps:$4 sm:$0xff]  }
  0x69   : > { %817 = vmatpush1.bf16.msra.mxu1 %v3621_v4  ;;  %v3716_v4 = vld [vmem:[%s5183_s3 + $0x644] ss:$8 sps:$4 sm:$0xff]  }
  0x6a   : > { %1834 = vmatpush1.bf16.msra.mxu0 %v3624_v5  ;;  %818 = vmatprep.subr.bf16.mxu1 %v3629_v6  ;;  %v3711_v5 = vld [vmem:[%s5183_s3 + $0x240] ss:$8 sps:$4 sm:$0xff]  }
  0x6b   : > { %1835 = vmatprep.subr.bf16.mxu0 %v3632_v7  ;;  %v3714_v6 = vld [vmem:[%s5183_s3 + $0x640] ss:$8 sps:$4 sm:$0xff]   ;;  %v3719_v7 = vld [vmem:[%s5183_s3 + $0x254] ss:$8 sps:$4 sm:$0xff]  }
  0x6d   : > { %819 = vmatpush1.bf16.msra.mxu1 %v3627_v8  ;;  %v3722_v8 = vld [vmem:[%s5183_s3 + $0x654] ss:$8 sps:$4 sm:$0xff]  }
  0x6e   : > { %1836 = vmatpush1.bf16.msra.mxu0 %v3630_v9  ;;  %820 = vmatprep.subr.bf16.mxu1 %v3635_v11  ;;  %v3717_v9 = vld [vmem:[%s5183_s3 + $0x250] ss:$8 sps:$4 sm:$0xff]  }
  0x6f   : > { %1837 = vmatprep.subr.bf16.mxu0 %v3638_v12  ;;  %v3720_v11 = vld [vmem:[%s5183_s3 + $0x650] ss:$8 sps:$4 sm:$0xff]   ;;  %v3725_v12 = vld [vmem:[%s5183_s3 + $0x264] ss:$8 sps:$4 sm:$0xff]  }
  0x71   : > { %821 = vmatpush1.bf16.msra.mxu1 %v3633_v13  ;;  %v3728_v13 = vld [vmem:[%s5183_s3 + $0x664] ss:$8 sps:$4 sm:$0xff]  }
  0x72   : > { %1838 = vmatpush1.bf16.msra.mxu0 %v3636_v15  ;;  %822 = vmatprep.subr.bf16.mxu1 %v3641_v16  ;;  %v3723_v15 = vld [vmem:[%s5183_s3 + $0x260] ss:$8 sps:$4 sm:$0xff]  }
  0x73   : > { %1839 = vmatprep.subr.bf16.mxu0 %v3644_v17  ;;  %v3726_v16 = vld [vmem:[%s5183_s3 + $0x660] ss:$8 sps:$4 sm:$0xff]   ;;  %v3731_v17 = vld [vmem:[%s5183_s3 + $0x274] ss:$8 sps:$4 sm:$0xff]  }
  0x75   : > { %823 = vmatpush1.bf16.msra.mxu1 %v3639_v18  ;;  %v3734_v18 = vld [vmem:[%s5183_s3 + $0x674] ss:$8 sps:$4 sm:$0xff]  }
  0x76   : > { %1840 = vmatpush1.bf16.msra.mxu0 %v3642_v19  ;;  %824 = vmatprep.subr.bf16.mxu1 %v3647_v20  ;;  %v3729_v19 = vld [vmem:[%s5183_s3 + $0x270] ss:$8 sps:$4 sm:$0xff]  }
  0x77   : > { %1841 = vmatprep.subr.bf16.mxu0 %v3650_v21  ;;  %v3732_v20 = vld [vmem:[%s5183_s3 + $0x670] ss:$8 sps:$4 sm:$0xff]   ;;  %v3737_v21 = vld [vmem:[%s5183_s3 + $0x284] ss:$8 sps:$4 sm:$0xff]  }
  0x79   : > { %825 = vmatpush1.bf16.msra.mxu1 %v3645_v22  ;;  %v3740_v22 = vld [vmem:[%s5183_s3 + $0x684] ss:$8 sps:$4 sm:$0xff]  }
  0x7a   : > { %1842 = vmatpush1.bf16.msra.mxu0 %v3648_v23  ;;  %826 = vmatprep.subr.bf16.mxu1 %v3653_v24  ;;  %v3735_v23 = vld [vmem:[%s5183_s3 + $0x280] ss:$8 sps:$4 sm:$0xff]  }
  0x7b   : > { %1843 = vmatprep.subr.bf16.mxu0 %v3656_v25  ;;  %v3738_v24 = vld [vmem:[%s5183_s3 + $0x680] ss:$8 sps:$4 sm:$0xff]   ;;  %v3743_v25 = vld [vmem:[%s5183_s3 + $0x294] ss:$8 sps:$4 sm:$0xff]  }
  0x7d   : > { %827 = vmatpush1.bf16.msra.mxu1 %v3651_v26  ;;  %v3746_v26 = vld [vmem:[%s5183_s3 + $0x694] ss:$8 sps:$4 sm:$0xff]  }
  0x7e   : > { %1844 = vmatpush1.bf16.msra.mxu0 %v3654_v27  ;;  %828 = vmatprep.subr.bf16.mxu1 %v3659_v28  ;;  %v3741_v27 = vld [vmem:[%s5183_s3 + $0x290] ss:$8 sps:$4 sm:$0xff]  }
  0x7f   : > { %1845 = vmatprep.subr.bf16.mxu0 %v3662_v29  ;;  %v3744_v28 = vld [vmem:[%s5183_s3 + $0x690] ss:$8 sps:$4 sm:$0xff]   ;;  %v3749_v29 = vld [vmem:[%s5183_s3 + $0x2a4] ss:$8 sps:$4 sm:$0xff]  }
  0x81   : > { %829 = vmatpush1.bf16.msra.mxu1 %v3657_v30  ;;  %v3752_v30 = vld [vmem:[%s5183_s3 + $0x6a4] ss:$8 sps:$4 sm:$0xff]  }
  0x82   : > { %1846 = vmatpush1.bf16.msra.mxu0 %v3660_v31  ;;  %830 = vmatprep.subr.bf16.mxu1 %v3665_v32  ;;  %v3747_v31 = vld [vmem:[%s5183_s3 + $0x2a0] ss:$8 sps:$4 sm:$0xff]  }
  0x83   : > { %1847 = vmatprep.subr.bf16.mxu0 %v3668_v33  ;;  %v3750_v32 = vld [vmem:[%s5183_s3 + $0x6a0] ss:$8 sps:$4 sm:$0xff]   ;;  %v3755_v33 = vld [vmem:[%s5183_s3 + $0x2b4] ss:$8 sps:$4 sm:$0xff]  }
  0x85   : > { %831 = vmatpush1.bf16.msra.mxu1 %v3663_v34  ;;  %v3758_v34 = vld [vmem:[%s5183_s3 + $0x6b4] ss:$8 sps:$4 sm:$0xff]  }
  0x86   : > { %1848 = vmatpush1.bf16.msra.mxu0 %v3666_v35  ;;  %832 = vmatprep.subr.bf16.mxu1 %v3671_v36  ;;  %v3753_v35 = vld [vmem:[%s5183_s3 + $0x2b0] ss:$8 sps:$4 sm:$0xff]  }
  0x87   : > { %1849 = vmatprep.subr.bf16.mxu0 %v3674_v37  ;;  %v3756_v36 = vld [vmem:[%s5183_s3 + $0x6b0] ss:$8 sps:$4 sm:$0xff]   ;;  %v3761_v37 = vld [vmem:[%s5183_s3 + $0x2c4] ss:$8 sps:$4 sm:$0xff]  }
  0x89   : > { %833 = vmatpush1.bf16.msra.mxu1 %v3669_v38  ;;  %v3764_v38 = vld [vmem:[%s5183_s3 + $0x6c4] ss:$8 sps:$4 sm:$0xff]  }
  0x8a   : > { %1850 = vmatpush1.bf16.msra.mxu0 %v3672_v39  ;;  %834 = vmatprep.subr.bf16.mxu1 %v3677_v40  ;;  %v3759_v39 = vld [vmem:[%s5183_s3 + $0x2c0] ss:$8 sps:$4 sm:$0xff]  }
  0x8b   : > { %1851 = vmatprep.subr.bf16.mxu0 %v3680_v41  ;;  %v3762_v40 = vld [vmem:[%s5183_s3 + $0x6c0] ss:$8 sps:$4 sm:$0xff]   ;;  %v3767_v41 = vld [vmem:[%s5183_s3 + $0x2d4] ss:$8 sps:$4 sm:$0xff]  }
  0x8d   : > { %835 = vmatpush1.bf16.msra.mxu1 %v3675_v42  ;;  %v3770_v42 = vld [vmem:[%s5183_s3 + $0x6d4] ss:$8 sps:$4 sm:$0xff]  }
  0x8e   : > { %1852 = vmatpush1.bf16.msra.mxu0 %v3678_v43  ;;  %836 = vmatprep.subr.bf16.mxu1 %v3683_v44  ;;  %v3765_v43 = vld [vmem:[%s5183_s3 + $0x2d0] ss:$8 sps:$4 sm:$0xff]  }
  0x8f   : > { %1853 = vmatprep.subr.bf16.mxu0 %v3686_v45  ;;  %v3768_v44 = vld [vmem:[%s5183_s3 + $0x6d0] ss:$8 sps:$4 sm:$0xff]   ;;  %v3773_v45 = vld [vmem:[%s5183_s3 + $0x2e4] ss:$8 sps:$4 sm:$0xff]  }
  0x91   : > { %837 = vmatpush1.bf16.msra.mxu1 %v3681_v46  ;;  %v1872_v46 = vld [vmem:[%s4621_s26 + $0x10] sm:$0x11] }
  0x92   : > { %1854 = vmatpush1.bf16.msra.mxu0 %v3684_v48  ;;  %1051 = vmatprep.subr.bf16.mxu1 %v3689_v51  ;;  %v3771_v48 = vld [vmem:[%s5183_s3 + $0x2e0] ss:$8 sps:$4 sm:$0xff]   ;;  %v3273_v51 = vcombine.high %v1872_v46, %v1872_v46 }
  0x93   : > { %2076 = vmatprep.subr.bf16.mxu0 %v3692_v50  ;;  %v3774_v50 = vld [vmem:[%s5183_s3 + $0x6e0] ss:$8 sps:$4 sm:$0xff]  }
  0x94   : > { %839 = vmatmul.mubr.bf16.vlgmr.msra.gmra.mrb[0].mxu1 %v4324_v60  ;;  %v3704_v60 = vld [vmem:[%s5183_s3 + $0x624] ss:$8 sps:$4 sm:$0xff]  }
  0x95   : > { %1856 = vmatmul.mubr.bf16.vlgmr.msra.gmra.mrb[0].mxu0 %v1657_v55  ;;  %1052 = vmatpush1.bf16.msra.mxu1 %v3687_v1  ;;  %v3779_v1 = vld [vmem:[%s5183_s3 + $0x2f4] ss:$8 sps:$4 sm:$0xff]   ;;  %v3777_v55 = vld [vmem:[%s5183_s3 + $0x2f0] ss:$8 sps:$4 sm:$0xff]  }
  0x96   : > { %2077 = vmatpush1.bf16.msra.mxu0 %v3690_v54  ;;  %1053 = vmatprep.subr.bf16.mxu1 %v3695_v14  ;;  %v3782_v54 = vld [vmem:[%s5183_s3 + $0x6f4] ss:$8 sps:$4 sm:$0xff]   ;;  %v2174_v14 = vshrl.u32 %v4628_v59, 16 }
  0x97   : > { %2078 = vmatprep.subr.bf16.mxu0 %v3698_v56  ;;  %1083 = vmatprep.mubr.bf16.mxu1 %v4411_v52  ;;  %v3710_v52 = vld [vmem:[%s5183_s3 + $0x634] ss:$8 sps:$4 sm:$0xff]   ;;  %v2178_v56 = vrot.slane %v2176_v53, 1  ;;  %v3843_v53 = vld [vmem:[%s5183_s3 + $0x790] ss:$8 sps:$4 sm:$0xff]  }
  0x98   : > { %2108 = vmatprep.mubr.bf16.mxu0 %v4628_v59 }
  0x99   : > { %1054 = vmatpush1.bf16.msra.mxu1 %v3693_v57  ;;  %v2181_v57 = vshll.u32 %v3273_v51, 16 }
  0x9a   : > { %2079 = vmatpush1.bf16.msra.mxu0 %v3696_v49  ;;  %1055 = vmatprep.subr.bf16.mxu1 %v3701_v58  ;;  %v3780_v49 = vld [vmem:[%s5183_s3 + $0x6f0] ss:$8 sps:$4 sm:$0xff]   ;;  %v3932_v58 = vld [vmem:[%s4282_s8] ss:$8 sps:$4 sm:$0xff]   ;;  %s299_s8 = sand.u32 1, %s4005_s19  }
  0x9b   : > { %2080 = vmatprep.subr.bf16.mxu0 %v3704_v60  ;;  %v883_v60 = vrot.slane %v3932_v58, 1  ;;  %v3860_v58 = vld [vmem:[%s5183_s3 + $0x3c4] ss:$8 sps:$4 sm:$0xff]   ;;  %s2810_s24 = sshll.u32 %s299_s8, 5  ;;  %s5128_s30 = scalar_lea.sflag [#allocation3], %s299_s8 }
  0x9c   : > { %s301_s13 = scalar_lea.vmem [#allocation2], %s2810_s24 }
  0x9d   : > { %1056 = vmatpush1.bf16.msra.mxu1 %v3699_v61  ;;  %v884_v61 = vrot.slane %v4343_v10, 1  ;;  %v2183_v10 = vrot.slane %v2181_v57, 1  ;;  %v3852_v57 = vld [vmem:[%s5183_s3 + $0x3b0] ss:$8 sps:$4 sm:$0xff]  }
  0x9e   : > { %2081 = vmatpush1.bf16.msra.mxu0 %v3702_v62  ;;  %1057 = vmatprep.subr.bf16.mxu1 %v3707_v63  ;;  %v3785_v62 = vld [vmem:[%s5183_s3 + $0x304] ss:$8 sps:$4 sm:$0xff]  }
  0x9f   : > { %2082 = vmatprep.subr.bf16.mxu0 %v3710_v52  ;;  %v3790_v63 = vld [vmem:[%s5183_s3 + $0x704] ss:$8 sps:$4 sm:$0xff]   ;;  %v3783_v52 = vld [vmem:[%s5183_s3 + $0x300] ss:$8 sps:$4 sm:$0xff]  }
  0xa1   : > { %1058 = vmatpush1.bf16.msra.mxu1 %v3705_v0  ;;  %v4808_v0 = vld [vmem:[%s4621_s26] ss:$8 sps:$4 sm:$0xff]  }
  0xa2   : > { %2083 = vmatpush1.bf16.msra.mxu0 %v3708_v2  ;;  %1059 = vmatprep.subr.bf16.mxu1 %v3713_v3  ;;  %v4810_v2 = vcombine.low %v1872_v46, %v1872_v46  ;;  %v2179_v3 = vor.u32 %v2178_v56, %v2174_v14  ;;  %v3837_v46 = vld [vmem:[%s5183_s3 + $0x780] ss:$8 sps:$4 sm:$0xff]   ;;  %v3854_v14 = vld [vmem:[%s5183_s3 + $0x3b4] ss:$8 sps:$4 sm:$0xff]  }
  0xa3   : > { %2084 = vmatprep.subr.bf16.mxu0 %v3716_v4  ;;  %v2430_v4 = vrot.slane %v4628_v59, 1  ;;  %v3794_v59 = vld [vmem:[%s5183_s3 + $0x314] ss:$8 sps:$4 sm:$0xff]  }
  0xa4   : > { %v3857_v56 = vld [vmem:[%s5183_s3 + $0x7b4] ss:$8 sps:$4 sm:$0xff]  }
  0xa5   : > { %1060 = vmatpush1.bf16.msra.mxu1 %v3711_v5  ;;  %v2431_v5 = vrot.slane %v3273_v51, 1  ;;  %v3840_v51 = vld [vmem:[%s5183_s3 + $0x390] ss:$8 sps:$4 sm:$0xff]  }
  0xa6   : > { %2085 = vmatpush1.bf16.msra.mxu0 %v3714_v6  ;;  %1061 = vmatprep.subr.bf16.mxu1 %v3719_v7  ;;  %v3788_v6 = vld [vmem:[%s5183_s3 + $0x700] ss:$8 sps:$4 sm:$0xff]   ;;  %v885_v7 = vsel %vm882_vm1, %v883_v60, %v884_v61  ;;  %v3863_v60 = vld [vmem:[%s5183_s3 + $0x7c4] ss:$8 sps:$4 sm:$0xff]  }
  0xa7   : > { %2086 = vmatprep.subr.bf16.mxu0 %v3722_v8  ;;  %v2427_v8 = vrot.slane %v4808_v0, 1  ;;  %v3858_v61 = vld [vmem:[%s5183_s3 + $0x3c0] ss:$8 sps:$4 sm:$0xff]  }
  0xa9   : > { %1062 = vmatpush1.bf16.msra.mxu1 %v3717_v9  ;;  %v2428_v9 = vrot.slane %v4810_v2, 1 }
  0xaa   : > { %2087 = vmatpush1.bf16.msra.mxu0 %v3720_v11  ;;  %1063 = vmatprep.subr.bf16.mxu1 %v3725_v12  ;;  %v3797_v11 = vld [vmem:[%s5183_s3 + $0x714] ss:$8 sps:$4 sm:$0xff]   ;;  %v4826_v12 = vsel %vm882_vm1, %v2430_v4, %v2431_v5  ;;  %v2164_v4 = vshll.u32 %v4808_v0, 16  ;;  %v3872_v5 = vld [vmem:[%s5183_s3 + $0x3e4] ss:$8 sps:$4 sm:$0xff]  }
  0xab   : > { %2088 = vmatprep.subr.bf16.mxu0 %v3728_v13  ;;  %v4829_v13 = vsel %vm882_vm1, %v2427_v8, %v2428_v9  ;;  %v3870_v8 = vld [vmem:[%s5183_s3 + $0x3e0] ss:$8 sps:$4 sm:$0xff]  }
  0xac   : > { %v3873_v9 = vld [vmem:[%s5183_s3 + $0x7e0] ss:$8 sps:$4 sm:$0xff]  }
  0xad   : > { %1064 = vmatpush1.bf16.msra.mxu1 %v3723_v15  ;;  %v3792_v15 = vld [vmem:[%s5183_s3 + $0x310] ss:$8 sps:$4 sm:$0xff]  }
  0xae   : > { %2089 = vmatpush1.bf16.msra.mxu0 %v3726_v16  ;;  %1065 = vmatprep.subr.bf16.mxu1 %v3731_v17  ;;  %v2184_v16 = vsel %vm414_vm0, %v2179_v3, %v2183_v10  ;;  %v3795_v17 = vld [vmem:[%s5183_s3 + $0x710] ss:$8 sps:$4 sm:$0xff]  }
  0xaf   : > { %2090 = vmatprep.subr.bf16.mxu0 %v3734_v18  ;;  %v3800_v18 = vld [vmem:[%s5183_s3 + $0x324] ss:$8 sps:$4 sm:$0xff]   ;;  %v3864_v3 = vld [vmem:[%s5183_s3 + $0x3d0] ss:$8 sps:$4 sm:$0xff]  }
  0xb0   : > { %v3867_v10 = vld [vmem:[%s5183_s3 + $0x7d0] ss:$8 sps:$4 sm:$0xff]  }
  0xb1   : > { %1066 = vmatpush1.bf16.msra.mxu1 %v3729_v19  ;;  %v3803_v19 = vld [vmem:[%s5183_s3 + $0x724] ss:$8 sps:$4 sm:$0xff]  }
  0xb2   : > { %2091 = vmatpush1.bf16.msra.mxu0 %v3732_v20  ;;  %1067 = vmatprep.subr.bf16.mxu1 %v3737_v21  ;;  %v3933_v20 = vld [vmem:[%s4297_s27 + $0x4] ss:$8 sps:$4 sm:$0xff]   ;;  %v3798_v21 = vld [vmem:[%s5183_s3 + $0x320] ss:$8 sps:$4 sm:$0xff]  }
  0xb3   : > { %2092 = vmatprep.subr.bf16.mxu0 %v3740_v22  ;;  %v3801_v22 = vld [vmem:[%s5183_s3 + $0x720] ss:$8 sps:$4 sm:$0xff]  }
  0xb5   : > { %1068 = vmatpush1.bf16.msra.mxu1 %v3735_v23  ;;  %v3806_v23 = vld [vmem:[%s5183_s3 + $0x334] ss:$8 sps:$4 sm:$0xff]  }
  0xb6   : > { %2093 = vmatpush1.bf16.msra.mxu0 %v3738_v24  ;;  %1069 = vmatprep.subr.bf16.mxu1 %v3743_v25  ;;  %v3809_v24 = vld [vmem:[%s5183_s3 + $0x734] ss:$8 sps:$4 sm:$0xff]   ;;  %v3804_v25 = vld [vmem:[%s5183_s3 + $0x330] ss:$8 sps:$4 sm:$0xff]  }
  0xb7   : > { %2094 = vmatprep.subr.bf16.mxu0 %v3746_v26  ;;  %v3807_v26 = vld [vmem:[%s5183_s3 + $0x730] ss:$8 sps:$4 sm:$0xff]  }
  0xb9   : > { %1070 = vmatpush1.bf16.msra.mxu1 %v3741_v27  ;;  %v3812_v27 = vld [vmem:[%s5183_s3 + $0x344] ss:$8 sps:$4 sm:$0xff]  }
  0xba   : > { %2095 = vmatpush1.bf16.msra.mxu0 %v3744_v28  ;;  %1071 = vmatprep.subr.bf16.mxu1 %v3749_v29  ;;  %v3815_v28 = vld [vmem:[%s5183_s3 + $0x744] ss:$8 sps:$4 sm:$0xff]   ;;  %v3810_v29 = vld [vmem:[%s5183_s3 + $0x340] ss:$8 sps:$4 sm:$0xff]  }
  0xbb   : > { %2096 = vmatprep.subr.bf16.mxu0 %v3752_v30  ;;  %v3813_v30 = vld [vmem:[%s5183_s3 + $0x740] ss:$8 sps:$4 sm:$0xff]  }
  0xbd   : > { %1072 = vmatpush1.bf16.msra.mxu1 %v3747_v31  ;;  %v3818_v31 = vld [vmem:[%s5183_s3 + $0x354] ss:$8 sps:$4 sm:$0xff]  }
  0xbe   : > { %2097 = vmatpush1.bf16.msra.mxu0 %v3750_v32  ;;  %1073 = vmatprep.subr.bf16.mxu1 %v3755_v33  ;;  %v3821_v32 = vld [vmem:[%s5183_s3 + $0x754] ss:$8 sps:$4 sm:$0xff]   ;;  %v3816_v33 = vld [vmem:[%s5183_s3 + $0x350] ss:$8 sps:$4 sm:$0xff]  }
  0xbf   : > { %2098 = vmatprep.subr.bf16.mxu0 %v3758_v34  ;;  %v3819_v34 = vld [vmem:[%s5183_s3 + $0x750] ss:$8 sps:$4 sm:$0xff]  }
  0xc1   : > { %1074 = vmatpush1.bf16.msra.mxu1 %v3753_v35  ;;  %v3824_v35 = vld [vmem:[%s5183_s3 + $0x364] ss:$8 sps:$4 sm:$0xff]  }
  0xc2   : > { %2099 = vmatpush1.bf16.msra.mxu0 %v3756_v36  ;;  %1075 = vmatprep.subr.bf16.mxu1 %v3761_v37  ;;  %v3827_v36 = vld [vmem:[%s5183_s3 + $0x764] ss:$8 sps:$4 sm:$0xff]   ;;  %v3822_v37 = vld [vmem:[%s5183_s3 + $0x360] ss:$8 sps:$4 sm:$0xff]  }
  0xc3   : > { %2100 = vmatprep.subr.bf16.mxu0 %v3764_v38  ;;  %v3825_v38 = vld [vmem:[%s5183_s3 + $0x760] ss:$8 sps:$4 sm:$0xff]  }
  0xc5   : > { %1076 = vmatpush1.bf16.msra.mxu1 %v3759_v39  ;;  %v3830_v39 = vld [vmem:[%s5183_s3 + $0x374] ss:$8 sps:$4 sm:$0xff]  }
  0xc6   : > { %2101 = vmatpush1.bf16.msra.mxu0 %v3762_v40  ;;  %1077 = vmatprep.subr.bf16.mxu1 %v3767_v41  ;;  %v3833_v40 = vld [vmem:[%s5183_s3 + $0x774] ss:$8 sps:$4 sm:$0xff]   ;;  %v3828_v41 = vld [vmem:[%s5183_s3 + $0x370] ss:$8 sps:$4 sm:$0xff]  }
  0xc7   : > { %2102 = vmatprep.subr.bf16.mxu0 %v3770_v42  ;;  %v3831_v42 = vld [vmem:[%s5183_s3 + $0x770] ss:$8 sps:$4 sm:$0xff]  }
  0xc9   : > { %1078 = vmatpush1.bf16.msra.mxu1 %v3765_v43  ;;  %v3836_v43 = vld [vmem:[%s5183_s3 + $0x384] ss:$8 sps:$4 sm:$0xff]  }
  0xca   : > { %2103 = vmatpush1.bf16.msra.mxu0 %v3768_v44  ;;  %1079 = vmatprep.subr.bf16.mxu1 %v3773_v45  ;;  %v3839_v44 = vld [vmem:[%s5183_s3 + $0x784] ss:$8 sps:$4 sm:$0xff]   ;;  %v3834_v45 = vld [vmem:[%s5183_s3 + $0x380] ss:$8 sps:$4 sm:$0xff]  }
  0xcb   : > { %2104 = vmatprep.subr.bf16.mxu0 %v3776_v47  ;;  %v3842_v47 = vld [vmem:[%s5183_s3 + $0x394] ss:$8 sps:$4 sm:$0xff]  }
  0xcd   : > { %1080 = vmatpush1.bf16.msra.mxu1 %v3771_v48  ;;  %v3845_v48 = vld [vmem:[%s5183_s3 + $0x794] ss:$8 sps:$4 sm:$0xff]  }
  0xce   : > { %2105 = vmatpush1.bf16.msra.mxu0 %v3774_v50  ;;  %1081 = vmatprep.subr.bf16.mxu1 %v3779_v1  ;;  %v3848_v50 = vld [vmem:[%s5183_s3 + $0x3a4] ss:$8 sps:$4 sm:$0xff]  }
  0xcf   : > { %2106 = vmatprep.subr.bf16.mxu0 %v3782_v54  ;;  %v3851_v1 = vld [vmem:[%s5183_s3 + $0x7a4] ss:$8 sps:$4 sm:$0xff]   ;;  %v3846_v54 = vld [vmem:[%s5183_s3 + $0x3a0] ss:$8 sps:$4 sm:$0xff]  }
  0xd1   : > { %1082 = vmatpush1.bf16.msra.mxu1 %v3777_v55  ;;  %v3849_v55 = vld [vmem:[%s5183_s3 + $0x7a0] ss:$8 sps:$4 sm:$0xff]  }
  0xd2   : > { %2107 = vmatpush1.bf16.msra.mxu0 %v3780_v49  ;;  %1304 = vmatprep.subr.bf16.mxu1 %v3785_v62  ;;  %v3855_v49 = vld [vmem:[%s5183_s3 + $0x7b0] ss:$8 sps:$4 sm:$0xff]   ;;  %v3861_v62 = vld [vmem:[%s5183_s3 + $0x7c0] ss:$8 sps:$4 sm:$0xff]  }
  0xd3   : > { %2347 = vmatprep.subr.bf16.mxu0 %v3790_v63  ;;  %v3866_v63 = vld [vmem:[%s5183_s3 + $0x3d4] ss:$8 sps:$4 sm:$0xff]  }
  0xd4   : > { %1084 = vmatmul.mubr.bf16.vlgmr.msra.gmra.mrb[0].mxu1 %v885_v7  ;;  %v2162_v7 = vshrl.u32 %v4808_v0, 16 }
  0xd5   : > { %2109 = vmatmul.mubr.bf16.vlgmr.msra.gmra.mrb[0].mxu0 %v4808_v0  ;;  %1305 = vmatpush1.bf16.msra.mxu1 %v3783_v52  ;;  %v3869_v52 = vld [vmem:[%s5183_s3 + $0x7d4] ss:$8 sps:$4 sm:$0xff]  }
  0xd6   : > { %2348 = vmatpush1.bf16.msra.mxu0 %v3788_v6  ;;  %1306 = vmatprep.subr.bf16.mxu1 %v3794_v59  ;;  %v3875_v6 = vld [vmem:[%s5183_s3 + $0x7e4] ss:$8 sps:$4 sm:$0xff]   ;;  %v2166_v59 = vrot.slane %v2164_v4, 1  ;;  %v3881_v0 = vld [vmem:[%s5183_s3 + $0x7f4] ss:$8 sps:$4 sm:$0xff]  }
  0xd7   : > { %2349 = vmatprep.subr.bf16.mxu0 %v3797_v11  ;;  %1336 = vmatprep.mubr.bf16.mxu1 %v3933_v20  ;;  %v2169_v11 = vshll.u32 %v4810_v2, 16  ;;  %v3879_v2 = vld [vmem:[%s5183_s3 + $0x7f0] ss:$8 sps:$4 sm:$0xff]   ;;  %v3883_v20 = vld [vmem:[%s5183_s3 + $0x800] ss:$8 sps:$4 sm:$0xff]  }
  0xd8   : > { %2379 = vmatprep.mubr.bf16.mxu0 %v2184_v16  ;;  %v3876_v16 = vld [vmem:[%s5183_s3 + $0x3f0] ss:$8 sps:$4 sm:$0xff]  }
  0xd9   : > { %1307 = vmatpush1.bf16.msra.mxu1 %v3792_v15  ;;  %v3878_v15 = vld [vmem:[%s5183_s3 + $0x3f4] ss:$8 sps:$4 sm:$0xff]  }
  0xda   : > { %2350 = vmatpush1.bf16.msra.mxu0 %v3795_v17  ;;  %1308 = vmatprep.subr.bf16.mxu1 %v3800_v18  ;;  %v2167_v17 = vor.u32 %v2166_v59, %v2162_v7  ;;  %v2171_v18 = vrot.slane %v2169_v11, 1 }
  0xdb   : > { %2351 = vmatprep.subr.bf16.mxu0 %v3803_v19  ;;  %v3885_v19 = vld [vmem:[%s5183_s3 + $0x804] ss:$8 sps:$4 sm:$0xff]  }
  0xdd   : > { %1309 = vmatpush1.bf16.msra.mxu1 %v3798_v21  ;;  %v2172_v21 = vsel %vm414_vm0, %v2167_v17, %v2171_v18 }
  0xde   : > { %2352 = vmatpush1.bf16.msra.mxu0 %v3801_v22  ;;  %1310 = vmatprep.subr.bf16.mxu1 %v3806_v23  ;;  %v3889_v22 = vld [vmem:[%s5183_s3 + $0x814] ss:$8 sps:$4 sm:$0xff]   ;;  %v3934_v23 = vld [vmem:[%s4297_s27] ss:$8 sps:$4 sm:$0xff]   ;;  %s2678_s27 = sshll.u32 %s301_s13, 4  ;;  %s5119_s27 = int_to_ptr.vmem [resolvable:$true] %s2678_s27 }
  0xdf   : > { %2353 = vmatprep.subr.bf16.mxu0 %v3809_v24  ;;  %v3887_v24 = vld [vmem:[%s5183_s3 + $0x810] ss:$8 sps:$4 sm:$0xff]   ;;  %s3935_s29 = scalar_lea.vmem %s5119_s27, 512  ;;  %p3942_p6 = scmp.lt.s32.totalorder %s5119_s27, %s3940_s15 }
  0xe0   : > { %p3936_p2 = scmp.ne.s32.totalorder %s5119_s27, %s3935_s29  ;;  %p3943_p7 = scmp.lt.s32.totalorder %s3941_s10, %s3935_s29 }
  0xe1   : > { %1311 = vmatpush1.bf16.msra.mxu1 %v3804_v25  ;;  %v3892_v25 = vld [vmem:[%s5183_s3 + $0x824] ss:$8 sps:$4 sm:$0xff]  }
  0xe2   : > { %2354 = vmatpush1.bf16.msra.mxu0 %v3807_v26  ;;  %1312 = vmatprep.subr.bf16.mxu1 %v3812_v27  ;;  %v3890_v26 = vld [vmem:[%s5183_s3 + $0x820] ss:$8 sps:$4 sm:$0xff]   ;;  %v3895_v27 = vld [vmem:[%s5183_s3 + $0x834] ss:$8 sps:$4 sm:$0xff]   ;;  %p3937_p4 = pnand %p3936_p2, %p4115_p3  ;;  %p3944_p9 = por %p3943_p7, %p3942_p6 }
  0xe3   : > { %2355 = vmatprep.subr.bf16.mxu0 %v3815_v28  ;;  %v3898_v28 = vld [vmem:[%s5183_s3 + $0x844] ss:$8 sps:$4 sm:$0xff]  }
  0xe4   : > { %p3938_p5 = pneg %p3937_p4 }
  0xe5   : > { %1313 = vmatpush1.bf16.msra.mxu1 %v3810_v29  ;;  %v3896_v29 = vld [vmem:[%s5183_s3 + $0x840] ss:$8 sps:$4 sm:$0xff]  }
  0xe6   : > { %2356 = vmatpush1.bf16.msra.mxu0 %v3813_v30  ;;  %1314 = vmatprep.subr.bf16.mxu1 %v3818_v31  ;;  %v3901_v30 = vld [vmem:[%s5183_s3 + $0x854] ss:$8 sps:$4 sm:$0xff]   ;;  %v3899_v31 = vld [vmem:[%s5183_s3 + $0x850] ss:$8 sps:$4 sm:$0xff]   ;;  %p3945_p10 = pnand %p3944_p9, %p3938_p5 }
  0xe7   : > { %2357 = vmatprep.subr.bf16.mxu0 %v3821_v32  ;;  %v3904_v32 = vld [vmem:[%s5183_s3 + $0x864] ss:$8 sps:$4 sm:$0xff]  }
  0xe9   : > { %1315 = vmatpush1.bf16.msra.mxu1 %v3816_v33  ;;  %v3902_v33 = vld [vmem:[%s5183_s3 + $0x860] ss:$8 sps:$4 sm:$0xff]  }
  0xea   : > { %2358 = vmatpush1.bf16.msra.mxu0 %v3819_v34  ;;  %1316 = vmatprep.subr.bf16.mxu1 %v3824_v35  ;;  %v3907_v34 = vld [vmem:[%s5183_s3 + $0x874] ss:$8 sps:$4 sm:$0xff]   ;;  %v3905_v35 = vld [vmem:[%s5183_s3 + $0x870] ss:$8 sps:$4 sm:$0xff]  }
  0xeb   : > { %2359 = vmatprep.subr.bf16.mxu0 %v3827_v36  ;;  %v3910_v36 = vld [vmem:[%s5183_s3 + $0x884] ss:$8 sps:$4 sm:$0xff]  }
  0xed   : > { %1317 = vmatpush1.bf16.msra.mxu1 %v3822_v37  ;;  %v3908_v37 = vld [vmem:[%s5183_s3 + $0x880] ss:$8 sps:$4 sm:$0xff]  }
  0xee   : > { %2360 = vmatpush1.bf16.msra.mxu0 %v3825_v38  ;;  %1318 = vmatprep.subr.bf16.mxu1 %v3830_v39  ;;  %v3913_v38 = vld [vmem:[%s5183_s3 + $0x894] ss:$8 sps:$4 sm:$0xff]   ;;  %v3911_v39 = vld [vmem:[%s5183_s3 + $0x890] ss:$8 sps:$4 sm:$0xff]  }
  0xef   : > { %2361 = vmatprep.subr.bf16.mxu0 %v3833_v40  ;;  %v3916_v40 = vld [vmem:[%s5183_s3 + $0x8a4] ss:$8 sps:$4 sm:$0xff]  }
  0xf1   : > { %1319 = vmatpush1.bf16.msra.mxu1 %v3828_v41  ;;  %v3914_v41 = vld [vmem:[%s5183_s3 + $0x8a0] ss:$8 sps:$4 sm:$0xff]  }
  0xf2   : > { %2362 = vmatpush1.bf16.msra.mxu0 %v3831_v42  ;;  %1320 = vmatprep.subr.bf16.mxu1 %v3836_v43  ;;  %v3919_v42 = vld [vmem:[%s5183_s3 + $0x8b4] ss:$8 sps:$4 sm:$0xff]   ;;  %v3917_v43 = vld [vmem:[%s5183_s3 + $0x8b0] ss:$8 sps:$4 sm:$0xff]  }
  0xf3   : > { %2363 = vmatprep.subr.bf16.mxu0 %v3839_v44  ;;  %v3922_v44 = vld [vmem:[%s5183_s3 + $0x8c4] ss:$8 sps:$4 sm:$0xff]  }
  0xf5   : > { %1321 = vmatpush1.bf16.msra.mxu1 %v3834_v45  ;;  %v3920_v45 = vld [vmem:[%s5183_s3 + $0x8c0] ss:$8 sps:$4 sm:$0xff]  }
  0xf6   : > { %2364 = vmatpush1.bf16.msra.mxu0 %v3837_v46  ;;  %1322 = vmatprep.subr.bf16.mxu1 %v3842_v47  ;;  %v3925_v46 = vld [vmem:[%s5183_s3 + $0x8d4] ss:$8 sps:$4 sm:$0xff]   ;;  %v3923_v47 = vld [vmem:[%s5183_s3 + $0x8d0] ss:$8 sps:$4 sm:$0xff]  }
  0xf7   : > { %2365 = vmatprep.subr.bf16.mxu0 %v3845_v48  ;;  %v3928_v48 = vld [vmem:[%s5183_s3 + $0x8e4] ss:$8 sps:$4 sm:$0xff]  }
  0xf9   : > { %1323 = vmatpush1.bf16.msra.mxu1 %v3840_v51  ;;  %v3926_v51 = vld [vmem:[%s5183_s3 + $0x8e0] ss:$8 sps:$4 sm:$0xff]  }
  0xfa   : > { %2366 = vmatpush1.bf16.msra.mxu0 %v3843_v53  ;;  %1324 = vmatprep.subr.bf16.mxu1 %v3848_v50  ;;  %v3931_v53 = vld [vmem:[%s5183_s3 + $0x8f4] ss:$8 sps:$4 sm:$0xff]   ;;  %v3929_v50 = vld [vmem:[%s5183_s3 + $0x8f0] ss:$8 sps:$4 sm:$0xff]  }
  0xfb   : > { %2367 = vmatprep.subr.bf16.mxu0 %v3851_v1 }
  0xfd   : > { %1325 = vmatpush1.bf16.msra.mxu1 %v3846_v54 }
  0xfe   : > { %2368 = vmatpush1.bf16.msra.mxu0 %v3849_v55  ;;  %1326 = vmatprep.subr.bf16.mxu1 %v3854_v14 }
  0xff   : > { %2369 = vmatprep.subr.bf16.mxu0 %v3857_v56  ;;  %v2644_v56 = vlaneseq }
 0x101   : > { %1327 = vmatpush1.bf16.msra.mxu1 %v3852_v57  ;;  %v2645_v57 = vshrl.u32 %v2644_v56, 7 }
 0x102   : > { %2370 = vmatpush1.bf16.msra.mxu0 %v3855_v49  ;;  %1328 = vmatprep.subr.bf16.mxu1 %v3860_v58  ;;  %v2642_v58 = vld [vmem:[%s5184_s4] sm:$0x3] }
 0x103   : > { %2371 = vmatprep.subr.bf16.mxu0 %v3863_v60  ;;  %v2646_v49 = vsub.s32 0, %v2645_v57  ;;  %v2650_v60 = vsub.s32 1, %v2645_v57 }
 0x105   : > { %1329 = vmatpush1.bf16.msra.mxu1 %v3858_v61  ;;  %v2647_v61 = vrot.slane %v2642_v58, %v2646_v49 }
 0x106   : > { %2372 = vmatpush1.bf16.msra.mxu0 %v3861_v62  ;;  %1330 = vmatprep.subr.bf16.mxu1 %v3866_v63 }
 0x107   : > { %2373 = vmatprep.subr.bf16.mxu0 %v3869_v52 }
 0x109   : > { %1331 = vmatpush1.bf16.msra.mxu1 %v3864_v3 }
 0x10a   : > { %2374 = vmatpush1.bf16.msra.mxu0 %v3867_v10  ;;  %1332 = vmatprep.subr.bf16.mxu1 %v3872_v5 }
 0x10b   : > { %2375 = vmatprep.subr.bf16.mxu0 %v3875_v6 }
 0x10d   : > { %1333 = vmatpush1.bf16.msra.mxu1 %v3870_v8 }
 0x10e   : > { %2376 = vmatpush1.bf16.msra.mxu0 %v3873_v9  ;;  %1334 = vmatprep.subr.bf16.mxu1 %v3878_v15 }
 0x10f   : > { %2377 = vmatprep.subr.bf16.mxu0 %v3881_v0 }
 0x111   : > { %1335 = vmatpush1.bf16.msra.mxu1 %v3876_v16 }
 0x112   : > { %2378 = vmatpush1.bf16.msra.mxu0 %v3879_v2 }
 0x113   : > { %2595 = vmatprep.subr.bf16.mxu0 %v3885_v19 }
 0x114   : > { %1337 = vmatmul.mubr.bf16.vlgmr.msra.gmra.mrb[0].mxu1 %v3934_v23 }
 0x115   : > { %2380 = vmatmul.mubr.bf16.vlgmr.msra.gmra.mrb[0].mxu0 %v2172_v21 }
 0x116   : > { %2596 = vmatpush1.bf16.msra.mxu0 %v3883_v20  ;;  %2627 = vmatprep.mubr.bf16.mxu0 %v4826_v12  ;;  %v3893_v12 = vld [vmem:[%s5183_s3 + $0x830] ss:$8 sps:$4 sm:$0xff]  }
 0x117   : > { %2597 = vmatprep.subr.bf16.mxu0 %v3889_v22 }
 0x11a   : > { %2598 = vmatpush1.bf16.msra.mxu0 %v3887_v24 }
 0x11b   : > { %2599 = vmatprep.subr.bf16.mxu0 %v3892_v25 }
 0x11e   : > { %2600 = vmatpush1.bf16.msra.mxu0 %v3890_v26 }
 0x11f   : > { %2601 = vmatprep.subr.bf16.mxu0 %v3895_v27 }
 0x122   : > { %2602 = vmatpush1.bf16.msra.mxu0 %v3893_v12 }
 0x123   : > { %2603 = vmatprep.subr.bf16.mxu0 %v3898_v28 }
 0x126   : > { %2604 = vmatpush1.bf16.msra.mxu0 %v3896_v29 }
 0x127   : > { %2605 = vmatprep.subr.bf16.mxu0 %v3901_v30 }
 0x12a   : > { %2606 = vmatpush1.bf16.msra.mxu0 %v3899_v31 }
 0x12b   : > { %2607 = vmatprep.subr.bf16.mxu0 %v3904_v32 }
 0x12e   : > { %2608 = vmatpush1.bf16.msra.mxu0 %v3902_v33 }
 0x12f   : > { %2609 = vmatprep.subr.bf16.mxu0 %v3907_v34 }
 0x132   : > { %2610 = vmatpush1.bf16.msra.mxu0 %v3905_v35 }
 0x133   : > { %2611 = vmatprep.subr.bf16.mxu0 %v3910_v36 }
 0x136   : > { %2612 = vmatpush1.bf16.msra.mxu0 %v3908_v37 }
 0x137   : > { %2613 = vmatprep.subr.bf16.mxu0 %v3913_v38 }
 0x13a   : > { %2614 = vmatpush1.bf16.msra.mxu0 %v3911_v39 }
 0x13b   : > { %2615 = vmatprep.subr.bf16.mxu0 %v3916_v40 }
 0x13e   : > { %2616 = vmatpush1.bf16.msra.mxu0 %v3914_v41 }
 0x13f   : > { %2617 = vmatprep.subr.bf16.mxu0 %v3919_v42 }
 0x142   : > { %2618 = vmatpush1.bf16.msra.mxu0 %v3917_v43 }
 0x143   : > { %2619 = vmatprep.subr.bf16.mxu0 %v3922_v44 }
 0x146   : > { %2620 = vmatpush1.bf16.msra.mxu0 %v3920_v45 }
 0x147   : > { %2621 = vmatprep.subr.bf16.mxu0 %v3925_v46 }
 0x14a   : > { %2622 = vmatpush1.bf16.msra.mxu0 %v3923_v47 }
 0x14b   : > { %2623 = vmatprep.subr.bf16.mxu0 %v3928_v48 }
 0x14e   : > { %2624 = vmatpush1.bf16.msra.mxu0 %v3926_v51 }
 0x14f   : > { %2625 = vmatprep.subr.bf16.mxu0 %v3931_v53 }
 0x152   : > { %2626 = vmatpush1.bf16.msra.mxu0 %v3929_v50 }
 0x155   : > { %2628 = vmatmul.mubr.bf16.vlgmr.msra.gmra.mrb[0].mxu0 %v4829_v13  ;;  %v2651_v13 = vrot.slane %v2642_v58, %v2650_v60 }
 0x1e7   : > { %v1338_v1 = vpop.f32.mrb[0].mxu1 }
 0x1e8   : > { %v1340_v54 = vpop.f32.mrb[1].mxu1 }
 0x1e9   : > { %v1342_v55 = vpop.f32.mrb[2].mxu1 }
 0x1ea   : > { %v1344_v14 = vpop.f32.mrb[3].mxu1 }
 0x228   : > { %v2629_v62 = vpop.f32.mrb[0].mxu0 }
 0x229   : > { %v3376_v63 = vadd.f32 %v2629_v62, %v1338_v1  ;;  %v2631_v52 = vpop.f32.mrb[1].mxu0 }
 0x22a   : > { %v3377_v3 = vadd.f32 %v2631_v52, %v1340_v54  ;;  %v2633_v10 = vpop.f32.mrb[2].mxu0 }
 0x22b   : > { %v2654_v4 = vadd.f32 %v3376_v63, %v2647_v61  ;;  %v3378_v5 = vadd.f32 %v2633_v10, %v1342_v55  ;;  %v2635_v6 = vpop.f32.mrb[3].mxu0 }
 0x22c   : > { %v2655_v7 = vadd.f32 %v3377_v3, %v2651_v13  ;;  %v3379_v8 = vadd.f32 %v2635_v6, %v1344_v14 }
 0x22d   : > { %2658 = vst [vmem:[%s301_s13] sm:$0xff] %v2654_v4  ;;  %v2656_v9 = vadd.f32 %v3378_v5, %v2647_v61 }
 0x22e   : > { %2659 = vst [vmem:[%s301_s13 + $0x8] sm:$0xff] %v2655_v7  ;;  %v2657_v59 = vadd.f32 %v3379_v8, %v2651_v13 }
 0x22f   : > { %2660 = vst [vmem:[%s301_s13 + $0x10] sm:$0xff] %v2656_v9 }
 0x230   : > { %2661 = vst [vmem:[%s301_s13 + $0x18] sm:$0xff] %v2657_v59 }
 0x231   : > { %3948 = shalt.err (!%p3945_p10)
}
 0x232   : > { %s3949_s8 = scalar_lea.hbm %s5124_s17, 512  ;;  %s3953_s12 = scalar_lea.hbm %s5185_s5, 16384 }
 0x233   : > { %p3950_p11 = scmp.ne.s32.totalorder %s5124_s17, %s3949_s8  ;;  %p3954_p0 = scmp.lt.u32.totalorder %s5124_s17, %s5185_s5 }
 0x234   : > { %p3955_p1 = scmp.lt.u32.totalorder %s3953_s12, %s3949_s8  ;;  %p3957_p4 = scmp.lt.u32.totalorder %s3949_s8, %s5124_s17 }
 0x235   : > { %p3951_p12 = pnand %p3950_p11, %p4115_p3 }
 0x236   : > { %p3956_p2 = por %p3955_p1, %p3954_p0 }
 0x237   : > { %p3952_p13 = pneg %p3951_p12 }
 0x238   : > { %p3958_p5 = por %p3957_p4, %p3956_p2 }
 0x23a   : > { %p3959_p6 = pnand %p3958_p5, %p3952_p13 }
 0x23c   : > { %3962 = shalt.err (!%p3959_p6)
}
 0x23d   : > { %s4032_s13 = smov 256   ;;  %s4033_s9 = smov 16  }
 0x23e   : > { %3412 = dma.vmem_to_hbm [thread:$0]  (%p4115_p3), %s5119_s27, 512, %s5124_s17, %s5128_s30, %s4032_s13, %s4032_s13, %s4033_s9  }
 0x23f PF: > { %p3418_p7 = scmp.ge.s32.totalorder %s4029_s25, 2  ;;  %s2693_s21 = sand.u32 1, %s4001_s18  }
 0x240   : > { %s2694_s22 = scalar_lea.sflag [#allocation3], %s2693_s21 }
 0x241   : > { %p3415_p9 = pnand %p3418_p7, %p4124_p8 }
 0x243   : > { %3996 = dma.done.wait (!%p3415_p9), %s2694_s22, 512  }
 0x244   : > { %3998 = vsyncadd (!%p3415_p9), %s2694_s22, 4294966784  ;;  %s18_s25 = sadd.s32 1, %s4029_s25   ;;  %s5194_s22 = sld [smem:[#allocation5_spill]] }
 0x245   : > { %p15_p10 = scmp.ge.s32.totalorder %s18_s25, 34   ;;  %s5195_s6 = sld [smem:[#allocation6_spill]] }
 0x246   : > { %s5196_s24 = sld [smem:[#allocation7_spill]]  ;;  %s5197_s18 = smov %s4005_s19 }
 0x247   : > { %s5198_s19 = smov %s4009_s20  ;;  %s5199_s20 = smov %s4133_s11 }
 0x248   : > { %s5200_s21 = smov %s4021_s23  ;;  %17 = sbr.rel (!%p15_p10) target bundleno = 5 (0x5), region = 89 }
 0x24b   : > { %s5201_s23 = smov %s5195_s6 }
 0x24f   :  { %2699 = vsyncpa [#allocation3], 1 }
 0x250   :  { %2701 = vsyncpa [#allocation3 + $0x1], 1 }

</bundles_post_ra>
